<compile_context>
chip_gen: v7x
topology: tpu7x:2x2x1
jax: 0.10.0
libtpu: 0.0.40
codegen_flags: <defaults>
</compile_context>

<pallas_src>
import functools

import jax
import jax.numpy as jnp
from jax.experimental import pallas as pl
from jax.experimental.pallas import tpu as pltpu

D_PAD = 128  # lane-dense channel padding (all feature dims padded to 128)


def _round_up(v, m):
    return (v + m - 1) // m * m


# ---------------------------------------------------------------------------
# Kernel: one ResGatedGraphConv layer (+ optionally fused BatchNorm) + ReLU
# ---------------------------------------------------------------------------
def _layer_kernel(xi_ref, xj_ref, a_ref, w_ref, b_ref,
                  gamma_ref, beta_ref, mean_ref, var_ref,
                  o_ref, k_sc, acc_sc, *, d, has_bn, eps):
    """Grid = (i-tiles, j-tiles); j (in-neighbor axis) is the reduction axis."""
    j = pl.program_id(1)
    w = w_ref[...]                      # (D_in, 4*D) bf16, fused [Wk | Wq | Wv | Wskip]
    b = b_ref[...]                      # (1,    4*D) f32,  fused [bk | bq | bv | b_conv]

    # --- i-tile projections (k, skip) + accumulator init: once per i-tile ----
    @pl.when(j == 0)
    def _init():
        xi = xi_ref[...].astype(jnp.bfloat16)
        pi = jnp.dot(xi, w, preferred_element_type=jnp.float32) + b   # (TI, 4D)
        k_sc[...] = pi[:, 0:d]                       # k_i
        acc_sc[...] = pi[:, 3 * d:4 * d]             # skip_i + conv bias (added once)

    # --- j-tile projections (q, v): every grid step -------------------------
    xj = xj_ref[...].astype(jnp.bfloat16)
    pj = jnp.dot(xj, w, preferred_element_type=jnp.float32) + b       # (TJ, 4D)
    q = pj[:, d:2 * d]                               # (TJ, D)
    v = pj[:, 2 * d:3 * d]                           # (TJ, D)
    k = k_sc[...]                                    # (TI, D)
    a = a_ref[...].astype(jnp.float32)               # (TI, TJ)

    # Gated message block for this (i, j) tile, accumulated into VMEM scratch.
    # Temporaries are bounded to (TI, TJ, D) per step instead of full (N, N, D).
    gate = jax.nn.sigmoid(k[:, None, :] + q[None, :, :])              # (TI, TJ, D) f32
    msg = (a[:, :, None] * gate) * v[None, :, :]
    acc_sc[...] += jnp.sum(msg, axis=1)

    # --- epilogue: fused eval-mode BatchNorm + ReLU, lane-dense (TI, 128) store
    @pl.when(j == pl.num_programs(1) - 1)
    def _finish():
        y = acc_sc[...]
        if has_bn:
            inv_std = jax.lax.rsqrt(var_ref[...] + eps)
            y = (y - mean_ref[...]) * inv_std * gamma_ref[...] + beta_ref[...]
        o_ref[...] = jnp.maximum(y, 0.0).astype(o_ref.dtype)


# ---------------------------------------------------------------------------
# Per-layer wrapper
# ---------------------------------------------------------------------------
def _resgated_layer(x_p, a_p, lp, *, ti, tj, eps=1e-5):
    n_pad, d_in_p = x_p.shape
    d4 = lp["w"].shape[1]
    d_out_p = d4 // 4
    grid = (n_pad // ti, n_pad // tj)
    bn_spec = pl.BlockSpec((1, d_out_p), lambda i, j: (0, 0))
    kern = functools.partial(_layer_kernel, d=d_out_p, has_bn=lp["has_bn"], eps=eps)
    return pl.pallas_call(
        kern,
        out_shape=jax.ShapeDtypeStruct((n_pad, d_out_p), jnp.float32),
        grid=grid,
        in_specs=[
            pl.BlockSpec((ti, d_in_p), lambda i, j: (i, 0)),   # x rows: destination tile
            pl.BlockSpec((tj, d_in_p), lambda i, j: (j, 0)),   # x rows: source tile
            pl.BlockSpec((ti, tj), lambda i, j: (i, j)),       # adjacency block (bf16)
            pl.BlockSpec((d_in_p, d4), lambda i, j: (0, 0)),   # fused weight (bf16)
            pl.BlockSpec((1, d4), lambda i, j: (0, 0)),        # fused bias (f32)
            bn_spec, bn_spec, bn_spec, bn_spec,                # BN gamma/beta/mean/var
        ],
        out_specs=pl.BlockSpec((ti, d_out_p), lambda i, j: (i, 0)),
        scratch_shapes=[pltpu.VMEM((ti, d_out_p), jnp.float32),   # k_i
                        pltpu.VMEM((ti, d_out_p), jnp.float32)],  # accumulator
        compiler_params=pltpu.CompilerParams(
            dimension_semantics=("parallel", "arbitrary"),
            vmem_limit_bytes=48 * 1024 * 1024),
    )(x_p, x_p, a_p, lp["w"], lp["b"],
      lp["gamma"], lp["beta"], lp["mean"], lp["var"])


def resgated_gcn_forward(x, a, layer_params):
    """x: (N, D_in) f32, a: dense (N, N) f32 adjacency (a[i, j]=1 iff edge j->i)."""
    n, d_in = x.shape
    if n <= 128:
        n_pad = _round_up(max(n, 8), 8)
        ti = tj = n_pad                      # single tile covers the whole graph
    else:
        n_pad = _round_up(n, 128)
        ti, tj = 64, 128                     # bounded block temporaries for large graphs

    x_p = jnp.zeros((n_pad, D_PAD), jnp.float32).at[:n, :d_in].set(x)
    a_p = jnp.zeros((n_pad, n_pad), jnp.bfloat16).at[:n, :n].set(a.astype(jnp.bfloat16))

    h = x_p
    for lp in layer_params:
        h = _resgated_layer(h, a_p, lp, ti=ti, tj=tj)
        # TODO(synk): F.dropout treated as identity (eval-mode semantics); training-mode
        # dropout would use pltpu.prng_seed / pltpu.prng_random_bits.
        # TODO(synk): norm='GN' (GraphNorm) branch not implemented; BatchNorm path only.
    return h[:n]   # caller slices the feature dim


# ---------------------------------------------------------------------------
# Deterministic parameter construction (mirrors the module's tensor shapes)
# ---------------------------------------------------------------------------
def _init_linear(key, d_in, d_out, *, bias=True):
    kw, kb = jax.random.split(key)
    scale = 1.0 / jnp.sqrt(jnp.float32(d_in))
    w = jax.random.uniform(kw, (d_in, d_out), jnp.float32, -scale, scale)
    b = (jax.random.uniform(kb, (1, d_out), jnp.float32, -scale, scale) if bias else None)
    return w, b


def make_params(key, input_dim, hidden_dim, output_dim, num_layers):
    dims = [input_dim] + [hidden_dim] * (num_layers - 1) + [output_dim]
    keys = jax.random.split(key, 2 * num_layers)
    convs, bns = [], []
    for i in range(num_layers):
        d_in, d_out = dims[i], dims[i + 1]
        kk, kq, kv, ks, kc = jax.random.split(keys[i], 5)
        wk, bk = _init_linear(kk, d_in, d_out)
        wq, bq = _init_linear(kq, d_in, d_out)
        wv, bv = _init_linear(kv, d_in, d_out)
        ws, _ = _init_linear(ks, d_in, d_out, bias=False)
        bc = 0.1 * jax.random.normal(kc, (1, d_out), jnp.float32)
        convs.append(dict(wk=wk, bk=bk, wq=wq, bq=bq, wv=wv, bv=bv, ws=ws, bc=bc))
    for i in range(num_layers - 1):
        k1, k2, k3, k4 = jax.random.split(keys[num_layers + i], 4)
        d = hidden_dim
        bns.append(dict(
            gamma=1.0 + 0.1 * jax.random.normal(k1, (1, d), jnp.float32),
            beta=0.1 * jax.random.normal(k2, (1, d), jnp.float32),
            mean=0.1 * jax.random.normal(k3, (1, d), jnp.float32),
            var=1.0 + 0.1 * jax.random.uniform(k4, (1, d), jnp.float32),
        ))
    return dict(convs=convs, bns=bns)


def _pad2(m, rows, cols):
    return jnp.pad(m, ((0, rows - m.shape[0]), (0, cols - m.shape[1])))


def fuse_and_pad_params(raw):
    """Concat Wk|Wq|Wv|Wskip (bf16) and bk|bq|bv|b_conv (f32), zero-padded to 128 lanes."""
    convs, bns = raw["convs"], raw["bns"]
    n_layers = len(convs)
    layers = []
    for i, p in enumerate(convs):
        w_cat = jnp.concatenate(
            [_pad2(p[name], D_PAD, D_PAD) for name in ("wk", "wq", "wv", "ws")],
            axis=1).astype(jnp.bfloat16)                           # (128, 512)
        # conv bias rides in the skip slot (the skip linear has no bias in PyG).
        b_cat = jnp.concatenate(
            [_pad2(p[name], 1, D_PAD) for name in ("bk", "bq", "bv", "bc")],
            axis=1).astype(jnp.float32)                            # (1, 512)
        last = i == n_layers - 1
        if not last:
            bn = bns[i]
            gamma = _pad2(bn["gamma"], 1, D_PAD)
            beta = _pad2(bn["beta"], 1, D_PAD)
            mean = _pad2(bn["mean"], 1, D_PAD)
            var = jnp.pad(bn["var"], ((0, 0), (0, D_PAD - bn["var"].shape[1])),
                          constant_values=1.0)
        else:  # unused by the kernel when has_bn=False
            gamma = jnp.ones((1, D_PAD), jnp.float32)
            beta = jnp.zeros((1, D_PAD), jnp.float32)
            mean = jnp.zeros((1, D_PAD), jnp.float32)
            var = jnp.ones((1, D_PAD), jnp.float32)
        layers.append(dict(w=w_cat, b=b_cat, gamma=gamma, beta=beta,
                           mean=mean, var=var, has_bn=not last))
    return layers


# ---------------------------------------------------------------------------
# Pure-JAX f32 reference (forward semantics of the PyTorch module, eval mode)
# ---------------------------------------------------------------------------
def reference_forward(x, a, raw, eps=1e-5):
    convs, bns = raw["convs"], raw["bns"]
    h = x
    for i, p in enumerate(convs):
        k = jnp.dot(h, p["wk"]) + p["bk"]
        q = jnp.dot(h, p["wq"]) + p["bq"]
        v = jnp.dot(h, p["wv"]) + p["bv"]
        skip = jnp.dot(h, p["ws"])
        gate = jax.nn.sigmoid(k[:, None, :] + q[None, :, :])
        agg = jnp.einsum("ij,ijd->id", a, gate * v[None, :, :])
        h = agg + skip + p["bc"]
        if i < len(convs) - 1:
            bn = bns[i]
            h = (h - bn["mean"]) * jax.lax.rsqrt(bn["var"] + eps) * bn["gamma"] + bn["beta"]
        h = jnp.maximum(h, 0.0)
    return h


# ---------------------------------------------------------------------------
if __name__ == "__main__":
    N = 64                      # number of graph nodes
    input_dim, hidden_dim, output_dim, num_layers = 16, 32, 8, 3

    key = jax.random.PRNGKey(0)
    k_x, k_a, k_p = jax.random.split(key, 3)

    x = jax.random.normal(k_x, (N, input_dim), jnp.float32)
    # Dense binary adj_t: a[i, j] = 1 means edge j -> i.
    a = (jax.random.uniform(k_a, (N, N)) < 0.15).astype(jnp.float32)

    raw = make_params(k_p, input_dim, hidden_dim, output_dim, num_layers)
    layer_params = fuse_and_pad_params(raw)

    out_pad = resgated_gcn_forward(x, a, layer_params)
    out_pad = jax.block_until_ready(out_pad)
    out = out_pad[:, :output_dim]
    assert out.shape == (N, output_dim)

    # Validate against the f32 reference (bf16 MXU inputs -> relaxed tolerance).
    ref = reference_forward(x, a, raw)
    err = float(jnp.max(jnp.abs(out - ref)))
    scale = float(jnp.max(jnp.abs(ref))) + 1e-6
    assert err <= 5e-2 * scale + 5e-2, f"mismatch: max_abs_err={err}, scale={scale}"
    # Padded channels must stay exactly zero through the whole stack.
    assert float(jnp.max(jnp.abs(out_pad[:, output_dim:]))) == 0.0

    print("KERNEL_OK")
</pallas_src>

<mosaic_0001>
module attributes {stable_mosaic.version = 11 : i64} {
  func.func @_layer_kernel(%arg0: i32, %arg1: i32, %arg2: memref<64x128xf32, #tpu.memory_space<vmem>>, %arg3: memref<64x128xf32, #tpu.memory_space<vmem>>, %arg4: memref<64x64xbf16, #tpu.memory_space<vmem>>, %arg5: memref<128x512xbf16, #tpu.memory_space<vmem>>, %arg6: memref<1x512xf32, #tpu.memory_space<vmem>>, %arg7: memref<1x128xf32, #tpu.memory_space<vmem>>, %arg8: memref<1x128xf32, #tpu.memory_space<vmem>>, %arg9: memref<1x128xf32, #tpu.memory_space<vmem>>, %arg10: memref<1x128xf32, #tpu.memory_space<vmem>>, %arg11: memref<64x128xf32, #tpu.memory_space<vmem>>, %arg12: memref<64x128xf32, #tpu.memory_space<vmem>>, %arg13: memref<64x128xf32, #tpu.memory_space<vmem>>) attributes {dimension_semantics = [#tpu.dimension_semantics<parallel>, #tpu.dimension_semantics<arbitrary>], iteration_bounds = array<i64: 1, 1>, scalar_prefetch = 0 : i64, scratch_operands = 2 : i64, tpu.core_type = #tpu.core_type<tc>, window_params = [{transform_indices = @transform_0, window_bounds = array<i64: 64, 128>}, {transform_indices = @transform_1, window_bounds = array<i64: 64, 128>}, {transform_indices = @transform_2, window_bounds = array<i64: 64, 64>}, {pipeline_mode = #tpu.pipeline_mode<synchronous>, transform_indices = @transform_3, window_bounds = array<i64: 128, 512>}, {pipeline_mode = #tpu.pipeline_mode<synchronous>, transform_indices = @transform_4, window_bounds = array<i64: 1, 512>}, {pipeline_mode = #tpu.pipeline_mode<synchronous>, transform_indices = @transform_5, window_bounds = array<i64: 1, 128>}, {pipeline_mode = #tpu.pipeline_mode<synchronous>, transform_indices = @transform_6, window_bounds = array<i64: 1, 128>}, {pipeline_mode = #tpu.pipeline_mode<synchronous>, transform_indices = @transform_7, window_bounds = array<i64: 1, 128>}, {pipeline_mode = #tpu.pipeline_mode<synchronous>, transform_indices = @transform_8, window_bounds = array<i64: 1, 128>}, {transform_indices = @transform_9, window_bounds = array<i64: 64, 128>}]} {
    %c0 = arith.constant 0 : index
    %c0_0 = arith.constant 0 : index
    %0 = vector.load %arg5[%c0, %c0_0] : memref<128x512xbf16, #tpu.memory_space<vmem>>, vector<128x512xbf16>
    %c0_1 = arith.constant 0 : index
    %c0_2 = arith.constant 0 : index
    %1 = vector.load %arg6[%c0_1, %c0_2] : memref<1x512xf32, #tpu.memory_space<vmem>>, vector<1x512xf32>
    %c0_i32 = arith.constant 0 : i32
    %2 = arith.cmpi eq, %arg1, %c0_i32 : i32
    %3 = arith.extui %2 : i1 to i32
    %c0_i32_3 = arith.constant 0 : i32
    %4 = arith.cmpi ne, %3, %c0_i32_3 : i32
    scf.if %4 {
      %c0_18 = arith.constant 0 : index
      %c0_19 = arith.constant 0 : index
      %38 = vector.load %arg2[%c0_18, %c0_19] : memref<64x128xf32, #tpu.memory_space<vmem>>, vector<64x128xf32>
      %39 = arith.truncf %38 : vector<64x128xf32> to vector<64x128xbf16>
      %cst_20 = arith.constant dense<0.000000e+00> : vector<64x512xf32>
      %40 = tpu.matmul %39, %0, %cst_20 {dimension_numbers = #tpu.dot_dimension_numbers<[1], [0], [0], [1], [0, 0, 1, 1], [], []>} : vector<64x128xbf16>, vector<128x512xbf16>, vector<64x512xf32> -> vector<64x512xf32>
      %41 = vector.broadcast %1 : vector<1x512xf32> to vector<64x512xf32>
      %42 = arith.addf %40, %41 : vector<64x512xf32>
      %43 = vector.extract_strided_slice %42 {offsets = [0, 0], sizes = [64, 128], strides = [1, 1]} : vector<64x512xf32> to vector<64x128xf32>
      %c0_21 = arith.constant 0 : index
      %c0_22 = arith.constant 0 : index
      %44 = vector.load %arg12[%c0_21, %c0_22] : memref<64x128xf32, #tpu.memory_space<vmem>>, vector<64x128xf32>
      tpu.vector_store %arg12[%c0_21, %c0_22], %43 {strides = array<i32>} : memref<64x128xf32, #tpu.memory_space<vmem>>, vector<64x128xf32>,
      %45 = vector.extract_strided_slice %42 {offsets = [0, 384], sizes = [64, 128], strides = [1, 1]} : vector<64x512xf32> to vector<64x128xf32>
      %c0_23 = arith.constant 0 : index
      %c0_24 = arith.constant 0 : index
      %46 = vector.load %arg13[%c0_23, %c0_24] : memref<64x128xf32, #tpu.memory_space<vmem>>, vector<64x128xf32>
      tpu.vector_store %arg13[%c0_23, %c0_24], %45 {strides = array<i32>} : memref<64x128xf32, #tpu.memory_space<vmem>>, vector<64x128xf32>,
    } else {
    }
    %c0_4 = arith.constant 0 : index
    %c0_5 = arith.constant 0 : index
    %5 = vector.load %arg3[%c0_4, %c0_5] : memref<64x128xf32, #tpu.memory_space<vmem>>, vector<64x128xf32>
    %6 = arith.truncf %5 : vector<64x128xf32> to vector<64x128xbf16>
    %cst = arith.constant dense<0.000000e+00> : vector<64x512xf32>
    %7 = tpu.matmul %6, %0, %cst {dimension_numbers = #tpu.dot_dimension_numbers<[1], [0], [0], [1], [0, 0, 1, 1], [], []>} : vector<64x128xbf16>, vector<128x512xbf16>, vector<64x512xf32> -> vector<64x512xf32>
    %8 = vector.broadcast %1 : vector<1x512xf32> to vector<64x512xf32>
    %9 = arith.addf %7, %8 : vector<64x512xf32>
    %10 = vector.extract_strided_slice %9 {offsets = [0, 128], sizes = [64, 128], strides = [1, 1]} : vector<64x512xf32> to vector<64x128xf32>
    %11 = vector.extract_strided_slice %9 {offsets = [0, 256], sizes = [64, 128], strides = [1, 1]} : vector<64x512xf32> to vector<64x128xf32>
    %c0_6 = arith.constant 0 : index
    %c0_7 = arith.constant 0 : index
    %12 = vector.load %arg12[%c0_6, %c0_7] : memref<64x128xf32, #tpu.memory_space<vmem>>, vector<64x128xf32>
    %c0_8 = arith.constant 0 : index
    %c0_9 = arith.constant 0 : index
    %13 = vector.load %arg4[%c0_8, %c0_9] : memref<64x64xbf16, #tpu.memory_space<vmem>>, vector<64x64xbf16>
    %14 = arith.extf %13 : vector<64x64xbf16> to vector<64x64xf32>
    %15 = vector.shape_cast %12 : vector<64x128xf32> to vector<64x1x128xf32>
    %16 = vector.shape_cast %10 : vector<64x128xf32> to vector<1x64x128xf32>
    %17 = vector.broadcast %15 : vector<64x1x128xf32> to vector<64x64x128xf32>
    %18 = vector.broadcast %16 : vector<1x64x128xf32> to vector<64x64x128xf32>
    %19 = arith.addf %17, %18 : vector<64x64x128xf32>
    %20 = arith.negf %19 : vector<64x64x128xf32>
    %21 = math.exp %20 : vector<64x64x128xf32>
    %cst_10 = arith.constant 1.000000e+00 : f32
    %22 = vector.broadcast %cst_10 : f32 to vector<64x64x128xf32>
    %23 = arith.addf %22, %21 : vector<64x64x128xf32>
    %24 = arith.divf %22, %23 : vector<64x64x128xf32>
    %25 = vector.shape_cast %14 : vector<64x64xf32> to vector<64x64x1xf32>
    %26 = vector.broadcast %25 : vector<64x64x1xf32> to vector<64x64x128xf32>
    %27 = arith.mulf %26, %24 : vector<64x64x128xf32>
    %28 = vector.shape_cast %11 : vector<64x128xf32> to vector<1x64x128xf32>
    %29 = vector.broadcast %28 : vector<1x64x128xf32> to vector<64x64x128xf32>
    %30 = arith.mulf %27, %29 : vector<64x64x128xf32>
    %c0_11 = arith.constant 0 : index
    %c0_12 = arith.constant 0 : index
    %31 = vector.load %arg13[%c0_11, %c0_12] : memref<64x128xf32, #tpu.memory_space<vmem>>, vector<64x128xf32>
    %cst_13 = arith.constant dense<0.000000e+00> : vector<64x128xf32>
    %32 = vector.multi_reduction <add>, %30, %cst_13 [1] : vector<64x64x128xf32> to vector<64x128xf32>
    %33 = arith.addf %31, %32 : vector<64x128xf32>
    %c0_14 = arith.constant 0 : index
    %c0_15 = arith.constant 0 : index
    %34 = vector.load %arg13[%c0_14, %c0_15] : memref<64x128xf32, #tpu.memory_space<vmem>>, vector<64x128xf32>
    tpu.vector_store %arg13[%c0_14, %c0_15], %33 {strides = array<i32>} : memref<64x128xf32, #tpu.memory_space<vmem>>, vector<64x128xf32>,
    %c0_i32_16 = arith.constant 0 : i32
    %35 = arith.cmpi eq, %arg1, %c0_i32_16 : i32
    %36 = arith.extui %35 : i1 to i32
    %c0_i32_17 = arith.constant 0 : i32
    %37 = arith.cmpi ne, %36, %c0_i32_17 : i32
    scf.if %37 {
      %c0_18 = arith.constant 0 : index
      %c0_19 = arith.constant 0 : index
      %38 = vector.load %arg13[%c0_18, %c0_19] : memref<64x128xf32, #tpu.memory_space<vmem>>, vector<64x128xf32>
      %c0_20 = arith.constant 0 : index
      %c0_21 = arith.constant 0 : index
      %39 = vector.load %arg10[%c0_20, %c0_21] : memref<1x128xf32, #tpu.memory_space<vmem>>, vector<1x128xf32>
      %cst_22 = arith.constant 9.99999974E-6 : f32
      %40 = vector.broadcast %cst_22 : f32 to vector<1x128xf32>
      %41 = arith.addf %39, %40 : vector<1x128xf32>
      %42 = math.rsqrt %41 : vector<1x128xf32>
      %c0_23 = arith.constant 0 : index
      %c0_24 = arith.constant 0 : index
      %43 = vector.load %arg9[%c0_23, %c0_24] : memref<1x128xf32, #tpu.memory_space<vmem>>, vector<1x128xf32>
      %44 = vector.broadcast %43 : vector<1x128xf32> to vector<64x128xf32>
      %45 = arith.subf %38, %44 : vector<64x128xf32>
      %46 = vector.broadcast %42 : vector<1x128xf32> to vector<64x128xf32>
      %47 = arith.mulf %45, %46 : vector<64x128xf32>
      %c0_25 = arith.constant 0 : index
      %c0_26 = arith.constant 0 : index
      %48 = vector.load %arg7[%c0_25, %c0_26] : memref<1x128xf32, #tpu.memory_space<vmem>>, vector<1x128xf32>
      %49 = vector.broadcast %48 : vector<1x128xf32> to vector<64x128xf32>
      %50 = arith.mulf %47, %49 : vector<64x128xf32>
      %c0_27 = arith.constant 0 : index
      %c0_28 = arith.constant 0 : index
      %51 = vector.load %arg8[%c0_27, %c0_28] : memref<1x128xf32, #tpu.memory_space<vmem>>, vector<1x128xf32>
      %52 = vector.broadcast %51 : vector<1x128xf32> to vector<64x128xf32>
      %53 = arith.addf %50, %52 : vector<64x128xf32>
      %cst_29 = arith.constant 0.000000e+00 : f32
      %54 = vector.broadcast %cst_29 : f32 to vector<64x128xf32>
      %55 = arith.maximumf %53, %54 : vector<64x128xf32>
      %c0_30 = arith.constant 0 : index
      %c0_31 = arith.constant 0 : index
      %56 = vector.load %arg11[%c0_30, %c0_31] : memref<64x128xf32, #tpu.memory_space<vmem>>, vector<64x128xf32>
      tpu.vector_store %arg11[%c0_30, %c0_31], %55 {strides = array<i32>} : memref<64x128xf32, #tpu.memory_space<vmem>>, vector<64x128xf32>,
    } else {
    }
    return
  }
  func.func @transform_0(%arg0: i32, %arg1: i32) -> (i32, i32) {
    %c0_i32 = arith.constant 0 : i32
    %c0_i32_0 = arith.constant 0 : i32
    return %arg0, %c0_i32 : i32, i32
  }
  func.func @transform_1(%arg0: i32, %arg1: i32) -> (i32, i32) {
    %c0_i32 = arith.constant 0 : i32
    %c0_i32_0 = arith.constant 0 : i32
    return %arg1, %c0_i32 : i32, i32
  }
  func.func @transform_2(%arg0: i32, %arg1: i32) -> (i32, i32) {
    %c0_i32 = arith.constant 0 : i32
    return %arg0, %arg1 : i32, i32
  }
  func.func @transform_3(%arg0: i32, %arg1: i32) -> (i32, i32) {
    %c0_i32 = arith.constant 0 : i32
    %c0_i32_0 = arith.constant 0 : i32
    %c0_i32_1 = arith.constant 0 : i32
    return %c0_i32, %c0_i32_0 : i32, i32
  }
  func.func @transform_4(%arg0: i32, %arg1: i32) -> (i32, i32) {
    %c0_i32 = arith.constant 0 : i32
    %c0_i32_0 = arith.constant 0 : i32
    %c0_i32_1 = arith.constant 0 : i32
    return %c0_i32, %c0_i32_0 : i32, i32
  }
  func.func @transform_5(%arg0: i32, %arg1: i32) -> (i32, i32) {
    %c0_i32 = arith.constant 0 : i32
    %c0_i32_0 = arith.constant 0 : i32
    %c0_i32_1 = arith.constant 0 : i32
    return %c0_i32, %c0_i32_0 : i32, i32
  }
  func.func @transform_6(%arg0: i32, %arg1: i32) -> (i32, i32) {
    %c0_i32 = arith.constant 0 : i32
    %c0_i32_0 = arith.constant 0 : i32
    %c0_i32_1 = arith.constant 0 : i32
    return %c0_i32, %c0_i32_0 : i32, i32
  }
  func.func @transform_7(%arg0: i32, %arg1: i32) -> (i32, i32) {
    %c0_i32 = arith.constant 0 : i32
    %c0_i32_0 = arith.constant 0 : i32
    %c0_i32_1 = arith.constant 0 : i32
    return %c0_i32, %c0_i32_0 : i32, i32
  }
  func.func @transform_8(%arg0: i32, %arg1: i32) -> (i32, i32) {
    %c0_i32 = arith.constant 0 : i32
    %c0_i32_0 = arith.constant 0 : i32
    %c0_i32_1 = arith.constant 0 : i32
    return %c0_i32, %c0_i32_0 : i32, i32
  }
  func.func @transform_9(%arg0: i32, %arg1: i32) -> (i32, i32) {
    %c0_i32 = arith.constant 0 : i32
    %c0_i32_0 = arith.constant 0 : i32
    return %arg0, %c0_i32 : i32, i32
  }
}

</mosaic_0001>

<bundles_post_ra>
// kernel: tpu_custom_call.1
= control target key start
LH: loop header
LB: loop body
LE: loop exit
PB: predicated region body
PF: predicated region fallthrough
CT: control target
= control target key end

     0   :  { %14 = vsyncpa [#allocation5], 0  ;;  %s18179_s0 = inlined_call_operand.hbm [shape: f32[64,128], index: 0, kind: input, shape index: {}]   ;;  %s18180_s1 = inlined_call_operand.hbm [shape: f32[64,128], index: 1, kind: input, shape index: {}]   ;;  %s18181_s2 = inlined_call_operand.hbm [shape: bf16[64,64], index: 2, kind: input, shape index: {}]   ;;  %s18182_s3 = inlined_call_operand.hbm [shape: bf16[128,512], index: 3, kind: input, shape index: {}]   ;;  %s18183_s4 = inlined_call_operand.vmem [shape: f32[1,512], index: 4, kind: input, shape index: {}]   ;;  %s18184_s5 = inlined_call_operand.vmem [shape: f32[1,128], index: 5, kind: input, shape index: {}]   ;;  %s18185_s6 = inlined_call_operand.vmem [shape: f32[1,128], index: 6, kind: input, shape index: {}]   ;;  %s18186_s7 = inlined_call_operand.vmem [shape: f32[1,128], index: 7, kind: input, shape index: {}]   ;;  %s18187_s8 = inlined_call_operand.vmem [shape: f32[1,128], index: 8, kind: input, shape index: {}]   ;;  %s18188_s9 = inlined_call_operand.hbm [shape: f32[64,128], index: 9, kind: output, shape index: {}]  }
   0x1   :  { %15 = vsyncpa [#allocation8], 0 }
   0x2   :  { %16 = vsyncpa [#allocation11], 0 }
   0x3   :  { %17 = vsyncpa [#allocation6], 0  ;;  %s12294_s30 = smov [#allocation7]   ;;  %s12295_s11 = smov [#allocation4]  }
   0x4   :  { %s35_s10 = sshll.u32 %s12294_s30, 4  ;;  %s23_s12 = sshll.u32 %s12295_s11, 4  ;;  %s36_s10 = int_to_ptr.vmem [resolvable:$true] %s35_s10  ;;  %s12357_s12 = int_to_ptr.vmem [resolvable:$true] %s23_s12 }
   0x5   :  { %s12176_s15 = scalar_lea.hbm %s18180_s1, 1024 }
   0x6   :  { %p12177_p0 = scmp.ne.s32.totalorder %s18180_s1, %s12176_s15  ;;  %p12180_p1 = scmp.lt.u32.totalorder %s12176_s15, %s18180_s1 }
   0x8   :  { %p12182_p2 = pnand %p12180_p1, %p12177_p0 }
   0xa   :  { %12185 = shalt.err (!%p12182_p2)
}
   0xb   :  { %s12186_s20 = scalar_lea.vmem %s36_s10, 1024  ;;  %p12191_p4 = scmp.lt.s32.totalorder %s36_s10, %s36_s10 }
   0xc   :  { %p12187_p3 = scmp.ne.s32.totalorder %s36_s10, %s12186_s20  ;;  %p12192_p5 = scmp.lt.s32.totalorder %s12186_s20, %s12186_s20 }
   0xe   :  { %p12193_p6 = por %p12192_p5, %p12191_p4 }
  0x10   :  { %p12194_p7 = pnand %p12193_p6, %p12187_p3 }
  0x12   :  { %12197 = shalt.err (!%p12194_p7)
}
  0x13   :  { %s12296_s21 = smov 128   ;;  %s12297_s22 = smov 8  }
  0x14   :  { %41 = dma.hbm_to_vmem [thread:$0]  %s18180_s1, 1024, %s36_s10, [#allocation8], %s12296_s21, %s12296_s21, %s12297_s22  }
  0x15   :  { %s12198_s27 = scalar_lea.hbm %s18179_s0, 1024 }
  0x16   :  { %p12199_p8 = scmp.ne.s32.totalorder %s18179_s0, %s12198_s27  ;;  %p12202_p9 = scmp.lt.u32.totalorder %s12198_s27, %s18179_s0 }
  0x18   :  { %p12204_p10 = pnand %p12202_p9, %p12199_p8 }
  0x1a   :  { %12207 = shalt.err (!%p12204_p10)
}
  0x1b   :  { %s12208_s13 = scalar_lea.vmem %s12357_s12, 1024  ;;  %p12213_p12 = scmp.lt.s32.totalorder %s12357_s12, %s12357_s12 }
  0x1c   :  { %p12209_p11 = scmp.ne.s32.totalorder %s12357_s12, %s12208_s13  ;;  %p12214_p13 = scmp.lt.s32.totalorder %s12208_s13, %s12208_s13 }
  0x1e   :  { %p12215_p0 = por %p12214_p13, %p12213_p12 }
  0x20   :  { %p12216_p1 = pnand %p12215_p0, %p12209_p11 }
  0x22   :  { %12219 = shalt.err (!%p12216_p1)
}
  0x23   :  { %29 = dma.hbm_to_vmem [thread:$0]  %s18179_s0, 1024, %s12357_s12, [#allocation5], %s12296_s21, %s12296_s21, %s12297_s22  }
  0x24   :  { %s12298_s14 = smov [#allocation9]   ;;  %s12220_s18 = scalar_lea.hbm %s18181_s2, 512 }
  0x25   :  { %s47_s15 = sshll.u32 %s12298_s14, 4  ;;  %p12221_p2 = scmp.ne.s32.totalorder %s18181_s2, %s12220_s18  ;;  %s48_s15 = int_to_ptr.vmem [resolvable:$true] %s47_s15 }
  0x26   :  { %p12224_p3 = scmp.lt.u32.totalorder %s12220_s18, %s18181_s2 }
  0x28   :  { %p12226_p4 = pnand %p12224_p3, %p12221_p2 }
  0x2a   :  { %12229 = shalt.err (!%p12226_p4)
}
  0x2b   :  { %s12230_s25 = scalar_lea.vmem %s48_s15, 512  ;;  %p12235_p6 = scmp.lt.s32.totalorder %s48_s15, %s48_s15 }
  0x2c   :  { %p12231_p5 = scmp.ne.s32.totalorder %s48_s15, %s12230_s25  ;;  %p12236_p7 = scmp.lt.s32.totalorder %s12230_s25, %s12230_s25 }
  0x2e   :  { %p12237_p8 = por %p12236_p7, %p12235_p6 }
  0x30   :  { %p12238_p9 = pnand %p12237_p8, %p12231_p5 }
  0x32   :  { %12241 = shalt.err (!%p12238_p9)
}
  0x33   :  { %s12299_s0 = smov 64   ;;  %s12300_s12 = smov 4  }
  0x34   :  { %53 = dma.hbm_to_vmem [thread:$0]  %s18181_s2, 512, %s48_s15, [#allocation8], %s12299_s0, %s12299_s0, %s12300_s12  }
  0x35   :  { %s12301_s28 = smov [#allocation10]   ;;  %s12242_s13 = scalar_lea.hbm %s18182_s3, 4096 }
  0x36   :  { %s59_s29 = sshll.u32 %s12301_s28, 4  ;;  %p12243_p10 = scmp.ne.s32.totalorder %s18182_s3, %s12242_s13  ;;  %s60_s29 = int_to_ptr.vmem [resolvable:$true] %s59_s29 }
  0x37   :  { %p12246_p11 = scmp.lt.u32.totalorder %s12242_s13, %s18182_s3 }
  0x39   :  { %p12248_p12 = pnand %p12246_p11, %p12243_p10 }
  0x3b   :  { %12251 = shalt.err (!%p12248_p12)
}
  0x3c   :  { %s12252_s17 = scalar_lea.vmem %s60_s29, 4096  ;;  %p12257_p0 = scmp.lt.s32.totalorder %s60_s29, %s60_s29 }
  0x3d   :  { %p12253_p13 = scmp.ne.s32.totalorder %s60_s29, %s12252_s17  ;;  %p12258_p1 = scmp.lt.s32.totalorder %s12252_s17, %s12252_s17 }
  0x3f   :  { %p12259_p2 = por %p12258_p1, %p12257_p0 }
  0x41   :  { %p12260_p3 = pnand %p12259_p2, %p12253_p13 }
  0x43   :  { %12263 = shalt.err (!%p12260_p3)
}
  0x44   :  { %s12302_s2 = smov 256   ;;  %s12303_s15 = smov 16  }
  0x45   :  { %65 = dma.hbm_to_vmem [thread:$0]  %s18182_s3, 4096, %s60_s29, [#allocation11], %s12302_s2, %s12302_s2, %s12303_s15  }
  0x46   :  { %12286 = dma.done.wait [#allocation5], 1024  }
  0x47   :  { %12287 = vsyncadd [#allocation5], 4294966272 }
  0x48   :  { %12288 = dma.done.wait [#allocation8], 1536  }
  0x49   :  { %12289 = vsyncadd [#allocation8], 4294965760 }
  0x4a   :  { %12290 = dma.done.wait [#allocation11], 4096  }
  0x4b   :  { %12291 = vsyncadd [#allocation11], 4294963200  ;;  %v139_v0 = vlaneseq  ;;  %v12304_v1 = vmov 0   ;;  %v12422_v3 = vld [vmem:[#allocation10 + $0x4] ss:$16 sps:$4 sm:$0xff]   ;;  %v127_v35 = vld [vmem:[#allocation4 + $0x8] sm:$0xff] }
  0x4c   :  { %341 = vmatprep.mubr.bf16.mxu0 %v12304_v1  ;;  %406 = vmatprep.mubr.bf16.mxu1 %v12304_v1  ;;  %v12427_v5 = vld [vmem:[#allocation10] ss:$16 sps:$4 sm:$0xff]   ;;  %v12435_v8 = vld [vmem:[#allocation10 + $0x24] ss:$16 sps:$4 sm:$0xff]   ;;  %v12457_v16 = vld [vmem:[#allocation10 + $0xc] ss:$16 sps:$4 sm:$0xff]  }
  0x4d   :  { %v12420_v2 = vshrl.u32 %v139_v0, 7  ;;  %v12429_v6 = vld [vmem:[#allocation9] sm:$0xff]   ;;  %309 = vmatprep.subr.bf16.mxu0 %v12422_v3  ;;  %v12459_v17 = vld [vmem:[#allocation10 + $0x8] ss:$16 sps:$4 sm:$0xff]   ;;  %v12464_v19 = vld [vmem:[#allocation10 + $0x2c] ss:$16 sps:$4 sm:$0xff]   ;;  %374 = vmatprep.subr.bf16.mxu1 %v12457_v16 }
  0x4e   :  { %v12433_v7 = vunpack.c.l.bf16 %v12429_v6  ;;  %310 = vmatpush1.bf16.msra.mxu0 %v12427_v5  ;;  %v12438_v9 = vld [vmem:[#allocation10 + $0x20] ss:$16 sps:$4 sm:$0xff]   ;;  %v12443_v11 = vld [vmem:[#allocation10 + $0x44] ss:$16 sps:$4 sm:$0xff]   ;;  %375 = vmatpush1.bf16.msra.mxu1 %v12459_v17  ;;  %v12474_v22 = vld [vmem:[#allocation10 + $0x28] ss:$16 sps:$4 sm:$0xff]  }
  0x4f   :  { %v12425_v4 = vsub.s32 0, %v12420_v2  ;;  %311 = vmatprep.subr.bf16.mxu0 %v12435_v8  ;;  %v12446_v12 = vld [vmem:[#allocation10 + $0x40] ss:$16 sps:$4 sm:$0xff]   ;;  %v12449_v13 = vld [vmem:[#allocation10 + $0x64] ss:$16 sps:$4 sm:$0xff]   ;;  %v12462_v18 = vsub.s32 1, %v12420_v2  ;;  %376 = vmatprep.subr.bf16.mxu1 %v12464_v19 }
  0x50   :  { %v12452_v14 = vld [vmem:[#allocation10 + $0x60] ss:$16 sps:$4 sm:$0xff]   ;;  %v12455_v15 = vld [vmem:[#allocation10 + $0x84] ss:$16 sps:$4 sm:$0xff]   ;;  %v12477_v23 = vld [vmem:[#allocation10 + $0x4c] ss:$16 sps:$4 sm:$0xff]  }
  0x51   :  { %18316 = vst [vmem:[#allocation17_spill] sm:$0xff] %v12425_v4  ;;  %v5099_v10 = vrot.slane %v12433_v7, %v12425_v4  ;;  %18317 = vst [vmem:[#allocation18_spill] sm:$0xff] %v12462_v18  ;;  %v12467_v20 = vld [vmem:[#allocation10 + $0x80] ss:$16 sps:$4 sm:$0xff]   ;;  %v12471_v21 = vld [vmem:[#allocation10 + $0xa4] ss:$16 sps:$4 sm:$0xff]   ;;  %v5134_v24 = vrot.slane %v12433_v7, %v12462_v18 }
  0x52   :  { %312 = vmatpush1.bf16.msra.mxu0 %v12438_v9  ;;  %v12482_v25 = vld [vmem:[#allocation10 + $0xa0] ss:$16 sps:$4 sm:$0xff]   ;;  %v12484_v26 = vld [vmem:[#allocation10 + $0xc4] ss:$16 sps:$4 sm:$0xff]   ;;  %377 = vmatpush1.bf16.msra.mxu1 %v12474_v22  ;;  %v12488_v27 = vld [vmem:[#allocation10 + $0x48] ss:$16 sps:$4 sm:$0xff]  }
  0x53   :  { %5109 = vbcast.lane.b32.xlu1 %v5099_v10, 272  ;;  %5101 = vbcast.lane.b32.xlu0 %v5099_v10, 256  ;;  %v12491_v28 = vld [vmem:[#allocation10 + $0x6c] ss:$16 sps:$4 sm:$0xff]   ;;  %v12494_v29 = vld [vmem:[#allocation10 + $0xc0] ss:$16 sps:$4 sm:$0xff]  }
  0x54   :  { %313 = vmatprep.subr.bf16.mxu0 %v12443_v11  ;;  %378 = vmatprep.subr.bf16.mxu1 %v12477_v23  ;;  %v12497_v30 = vld [vmem:[#allocation10 + $0xe4] ss:$16 sps:$4 sm:$0xff]   ;;  %v12500_v31 = vld [vmem:[#allocation10 + $0x68] ss:$16 sps:$4 sm:$0xff]   ;;  %v12503_v32 = vld [vmem:[#allocation10 + $0x8c] ss:$16 sps:$4 sm:$0xff]  }
  0x55   :  { %v12506_v33 = vld [vmem:[#allocation10 + $0xe0] ss:$16 sps:$4 sm:$0xff]   ;;  %v12510_v36 = vld [vmem:[#allocation10 + $0x88] ss:$16 sps:$4 sm:$0xff]   ;;  %v12513_v37 = vld [vmem:[#allocation10 + $0xac] ss:$16 sps:$4 sm:$0xff]  }
  0x56   :  { %314 = vmatpush1.bf16.msra.mxu0 %v12446_v12  ;;  %379 = vmatpush1.bf16.msra.mxu1 %v12488_v27  ;;  %v126_v34 = vld [vmem:[#allocation4] sm:$0xff]  ;;  %v12516_v38 = vsub.s32 2, %v12420_v2  ;;  %v12522_v40 = vld [vmem:[#allocation10 + $0xa8] ss:$16 sps:$4 sm:$0xff]   ;;  %v12526_v42 = vld [vmem:[#allocation10 + $0xcc] ss:$16 sps:$4 sm:$0xff]  }
  0x57   :  { %5113 = vbcast.lane.b32.xlu1 %v5099_v10, 280  ;;  %5105 = vbcast.lane.b32.xlu0 %v5099_v10, 264  ;;  %v134_v39 = vpack.c.bf16 %v127_v35, %v126_v34  ;;  %v128_v43 = vld [vmem:[#allocation4 + $0x10] sm:$0xff]  ;;  %v129_v44 = vld [vmem:[#allocation4 + $0x18] sm:$0xff]  ;;  %v130_v49 = vld [vmem:[#allocation4 + $0x20] sm:$0xff]  ;;  %v12548_v51 = vsub.s32 3, %v12420_v2 }
  0x58   :  { %315 = vmatprep.subr.bf16.mxu0 %v12449_v13  ;;  %380 = vmatprep.subr.bf16.mxu1 %v12491_v28  ;;  %18318 = vst [vmem:[#allocation19_spill] sm:$0xff] %v12516_v38  ;;  %v5169_v41 = vrot.slane %v12433_v7, %v12516_v38  ;;  %v12532_v45 = vld [vmem:[#allocation10 + $0xc8] ss:$16 sps:$4 sm:$0xff]   ;;  %v135_v46 = vpack.c.bf16 %v129_v44, %v128_v43  ;;  %v12535_v47 = vld [vmem:[#allocation10 + $0xec] ss:$16 sps:$4 sm:$0xff]   ;;  %v132_v54 = vld [vmem:[#allocation4 + $0x30] sm:$0xff] }
  0x59   :  { %v12540_v48 = vld [vmem:[#allocation10 + $0xe8] ss:$16 sps:$4 sm:$0xff]   ;;  %18319 = vst [vmem:[#allocation20_spill] sm:$0xff] %v12548_v51  ;;  %v5204_v53 = vrot.slane %v12433_v7, %v12548_v51  ;;  %v455_v57 = vld [vmem:[#allocation7] sm:$0xff]  ;;  %v12572_v59 = vsub.s32 4, %v12420_v2  ;;  %v457_v62 = vld [vmem:[#allocation7 + $0x10] sm:$0xff] }
  0x5a   :  { %316 = vmatpush1.bf16.msra.mxu0 %v12452_v14  ;;  %381 = vmatpush1.bf16.msra.mxu1 %v12500_v31  ;;  %v131_v50 = vld [vmem:[#allocation4 + $0x28] sm:$0xff]  ;;  %v133_v55 = vld [vmem:[#allocation4 + $0x38] sm:$0xff]  ;;  %vm9264_vm0 = vcmask 1041409   ;;  %vm9266_vm1 = vcmask 1042434   ;;  %vm9268_vm2 = vcmask 1043459   ;;  %vm9270_vm3 = vcmask 1044484  }
  0x5b   :  { %5121 = vbcast.lane.b32.xlu1 %v5099_v10, 296  ;;  %5117 = vbcast.lane.b32.xlu0 %v5099_v10, 288  ;;  %v136_v52 = vpack.c.bf16 %v131_v50, %v130_v49  ;;  %v137_v56 = vpack.c.bf16 %v133_v55, %v132_v54  ;;  %v456_v58 = vld [vmem:[#allocation7 + $0x8] sm:$0xff]  ;;  %18320 = vst [vmem:[#allocation21_spill] sm:$0xff] %v12572_v59  ;;  %v458_v63 = vld [vmem:[#allocation7 + $0x18] sm:$0xff]  ;;  %vm9272_vm4 = vcmask 1045509  }
  0x5c   :  { %317 = vmatprep.subr.bf16.mxu0 %v12455_v15  ;;  %382 = vmatprep.subr.bf16.mxu1 %v12503_v32  ;;  %v463_v60 = vpack.c.bf16 %v456_v58, %v455_v57  ;;  %v5239_v61 = vrot.slane %v12433_v7, %v12572_v59  ;;  %v464_v0 = vpack.c.bf16 %v458_v63, %v457_v62  ;;  %vm9274_vm5 = vcmask 1046534   ;;  %s12306_s14 = smov [#allocation12]  }
  0x5d   :  { %vm9276_vm6 = vcmask 1047559   ;;  %s9445_s16 = sshll.u32 %s12306_s14, 4  ;;  %s9446_s16 = int_to_ptr.vmem [resolvable:$true] %s9445_s16 }
  0x5e   :  { %318 = vmatpush1.bf16.msra.mxu0 %v12467_v20  ;;  %383 = vmatpush1.bf16.msra.mxu1 %v12510_v36  ;;  %s12264_s17 = scalar_lea.vmem %s9446_s16, 1024  ;;  %p12269_p5 = scmp.lt.s32.totalorder %s9446_s16, %s9446_s16 }
  0x5f   :  { %5129 = vbcast.lane.b32.xlu1 %v5099_v10, 312  ;;  %5125 = vbcast.lane.b32.xlu0 %v5099_v10, 304  ;;  %p12265_p4 = scmp.ne.s32.totalorder %s9446_s16, %s12264_s17  ;;  %p12270_p6 = scmp.lt.s32.totalorder %s12264_s17, %s12264_s17 }
  0x60   :  { %319 = vmatprep.subr.bf16.mxu0 %v12471_v21  ;;  %384 = vmatprep.subr.bf16.mxu1 %v12513_v37 }
  0x61   :  { %p12271_p7 = por %p12270_p6, %p12269_p5 }
  0x62   :  { %320 = vmatpush1.bf16.msra.mxu0 %v12482_v25  ;;  %385 = vmatpush1.bf16.msra.mxu1 %v12522_v40 }
  0x63   :  { %5140 = vbcast.lane.b32.xlu1 %v5134_v24, 264  ;;  %5136 = vbcast.lane.b32.xlu0 %v5134_v24, 256  ;;  %p12272_p8 = pnand %p12271_p7, %p12265_p4 }
  0x64   :  { %321 = vmatprep.subr.bf16.mxu0 %v12484_v26  ;;  %386 = vmatprep.subr.bf16.mxu1 %v12526_v42 }
  0x66   :  { %322 = vmatpush1.bf16.msra.mxu0 %v12494_v29  ;;  %387 = vmatpush1.bf16.msra.mxu1 %v12532_v45 }
  0x67   :  { %5148 = vbcast.lane.b32.xlu1 %v5134_v24, 280  ;;  %5144 = vbcast.lane.b32.xlu0 %v5134_v24, 272 }
  0x68   :  { %323 = vmatprep.subr.bf16.mxu0 %v12497_v30  ;;  %388 = vmatprep.subr.bf16.mxu1 %v12535_v47 }
  0x6a   :  { %324 = vmatpush1.bf16.msra.mxu0 %v12506_v33  ;;  %389 = vmatpush1.bf16.msra.mxu1 %v12540_v48 }
  0x6b   :  { %5156 = vbcast.lane.b32.xlu1 %v5134_v24, 296  ;;  %5152 = vbcast.lane.b32.xlu0 %v5134_v24, 288 }
  0x6c   :  { %638 = vmatprep.subr.bf16.mxu0 %v12422_v3  ;;  %703 = vmatprep.subr.bf16.mxu1 %v12457_v16  ;;  %v459_v3 = vld [vmem:[#allocation7 + $0x20] sm:$0xff]  ;;  %v12605_v16 = vsub.s32 7, %v12420_v2 }
  0x6d   :  { %342 = vmatmul.mubr.bf16.vlgmr.msra.gmra.mrb[0].mxu0 %v134_v39  ;;  %407 = vmatmul.mubr.bf16.vlgmr.msra.gmra.mrb[0].mxu1 %v134_v39 }
  0x6e   :  { %639 = vmatpush1.bf16.msra.mxu0 %v12427_v5  ;;  %349 = vmatprep.mubr.bf16.mxu0 %v12304_v1  ;;  %v460_v5 = vld [vmem:[#allocation7 + $0x28] sm:$0xff]  ;;  %18323 = vst [vmem:[#allocation24_spill] sm:$0xff] %v12605_v16 }
  0x6f   :  { %5164 = vbcast.lane.b32.xlu1 %v5134_v24, 312  ;;  %5160 = vbcast.lane.b32.xlu0 %v5134_v24, 304 }
  0x70   :  { %640 = vmatprep.subr.bf16.mxu0 %v12435_v8  ;;  %704 = vmatpush1.bf16.msra.mxu1 %v12459_v17  ;;  %v12591_v8 = vsub.s32 5, %v12420_v2 }
  0x71   :  { %705 = vmatprep.subr.bf16.mxu1 %v12464_v19  ;;  %414 = vmatprep.mubr.bf16.mxu1 %v12304_v1 }
  0x72   :  { %641 = vmatpush1.bf16.msra.mxu0 %v12438_v9  ;;  %18321 = vst [vmem:[#allocation22_spill] sm:$0xff] %v12591_v8  ;;  %v465_v9 = vpack.c.bf16 %v460_v5, %v459_v3  ;;  %v5274_v10 = vrot.slane %v12433_v7, %v12591_v8 }
  0x73   :  { %5175 = vbcast.lane.b32.xlu1 %v5169_v41, 264  ;;  %5171 = vbcast.lane.b32.xlu0 %v5169_v41, 256 }
  0x74   :  { %642 = vmatprep.subr.bf16.mxu0 %v12443_v11  ;;  %706 = vmatpush1.bf16.msra.mxu1 %v12474_v22  ;;  %v461_v11 = vld [vmem:[#allocation7 + $0x30] sm:$0xff]  ;;  %v12618_v22 = vunpack.c.h.bf16 %v12429_v6 }
  0x75   :  { %350 = vmatmul.mubr.bf16.gmra.mrb[4].mxu0 %v135_v46  ;;  %707 = vmatprep.subr.bf16.mxu1 %v12477_v23 }
  0x76   :  { %643 = vmatpush1.bf16.msra.mxu0 %v12446_v12  ;;  %357 = vmatprep.mubr.bf16.mxu0 %v12304_v1  ;;  %v462_v12 = vld [vmem:[#allocation7 + $0x38] sm:$0xff]  ;;  %v5379_v24 = vrot.slane %v12618_v22, %v12425_v4  ;;  %v5519_v54 = vrot.slane %v12618_v22, %v12572_v59  ;;  %v5554_v62 = vrot.slane %v12618_v22, %v12591_v8 }
  0x77   :  { %5183 = vbcast.lane.b32.xlu1 %v5169_v41, 280  ;;  %5179 = vbcast.lane.b32.xlu0 %v5169_v41, 272 }
  0x78   :  { %644 = vmatprep.subr.bf16.mxu0 %v12449_v13  ;;  %415 = vmatmul.mubr.bf16.gmra.mrb[4].mxu1 %v135_v46  ;;  %v466_v13 = vpack.c.bf16 %v462_v12, %v461_v11  ;;  %v5484_v46 = vrot.slane %v12618_v22, %v12548_v51 }
  0x79   :  { %708 = vmatpush1.bf16.msra.mxu1 %v12488_v27  ;;  %422 = vmatprep.mubr.bf16.mxu1 %v12304_v1 }
  0x7a   :  { %645 = vmatpush1.bf16.msra.mxu0 %v12452_v14  ;;  %709 = vmatprep.subr.bf16.mxu1 %v12491_v28  ;;  %v12599_v14 = vsub.s32 6, %v12420_v2 }
  0x7b   :  { %5191 = vbcast.lane.b32.xlu1 %v5169_v41, 296  ;;  %5187 = vbcast.lane.b32.xlu0 %v5169_v41, 288 }
  0x7c   :  { %646 = vmatprep.subr.bf16.mxu0 %v12455_v15  ;;  %18322 = vst [vmem:[#allocation23_spill] sm:$0xff] %v12599_v14  ;;  %v5309_v15 = vrot.slane %v12433_v7, %v12599_v14 }
  0x7d   :  { %358 = vmatmul.mubr.bf16.gmra.mrb[8].mxu0 %v136_v52  ;;  %710 = vmatpush1.bf16.msra.mxu1 %v12500_v31  ;;  %v5414_v31 = vrot.slane %v12618_v22, %v12462_v18 }
  0x7e   :  { %647 = vmatpush1.bf16.msra.mxu0 %v12467_v20  ;;  %365 = vmatprep.mubr.bf16.mxu0 %v12304_v1 }
  0x7f   :  { %5199 = vbcast.lane.b32.xlu1 %v5169_v41, 312  ;;  %5195 = vbcast.lane.b32.xlu0 %v5169_v41, 304 }
  0x80   :  { %648 = vmatprep.subr.bf16.mxu0 %v12471_v21  ;;  %711 = vmatprep.subr.bf16.mxu1 %v12503_v32 }
  0x81   :  { %423 = vmatmul.mubr.bf16.gmra.mrb[8].mxu1 %v136_v52 }
  0x82   :  { %649 = vmatpush1.bf16.msra.mxu0 %v12482_v25  ;;  %712 = vmatpush1.bf16.msra.mxu1 %v12510_v36 }
  0x83   :  { %5210 = vbcast.lane.b32.xlu1 %v5204_v53, 264  ;;  %5206 = vbcast.lane.b32.xlu0 %v5204_v53, 256 }
  0x84   :  { %650 = vmatprep.subr.bf16.mxu0 %v12484_v26  ;;  %430 = vmatprep.mubr.bf16.mxu1 %v12304_v1 }
  0x85   :  { %366 = vmatmul.mubr.bf16.gmra.mrb[12].mxu0 %v137_v56  ;;  %713 = vmatprep.subr.bf16.mxu1 %v12513_v37 }
  0x86   :  { %651 = vmatpush1.bf16.msra.mxu0 %v12494_v29  ;;  %670 = vmatprep.mubr.bf16.mxu0 %v12304_v1 }
  0x87   :  { %5218 = vbcast.lane.b32.xlu1 %v5204_v53, 280  ;;  %5214 = vbcast.lane.b32.xlu0 %v5204_v53, 272 }
  0x88   :  { %652 = vmatprep.subr.bf16.mxu0 %v12497_v30  ;;  %714 = vmatpush1.bf16.msra.mxu1 %v12522_v40  ;;  %v5449_v40 = vrot.slane %v12618_v22, %v12516_v38 }
  0x89   :  { %715 = vmatprep.subr.bf16.mxu1 %v12526_v42  ;;  %431 = vmatmul.mubr.bf16.gmra.mrb[12].mxu1 %v137_v56 }
  0x8a   :  { %653 = vmatpush1.bf16.msra.mxu0 %v12506_v33  ;;  %735 = vmatprep.mubr.bf16.mxu1 %v12304_v1 }
  0x8b   :  { %5226 = vbcast.lane.b32.xlu1 %v5204_v53, 296  ;;  %5222 = vbcast.lane.b32.xlu0 %v5204_v53, 288 }
  0x8c   :  { %716 = vmatpush1.bf16.msra.mxu1 %v12532_v45 }
  0x8d   :  { %671 = vmatmul.mubr.bf16.vlgmr.msra.gmra.mrb[16].mxu0 %v463_v60  ;;  %717 = vmatprep.subr.bf16.mxu1 %v12535_v47 }
  0x8e   :  { %678 = vmatprep.mubr.bf16.mxu0 %v12304_v1 }
  0x8f   :  { %5234 = vbcast.lane.b32.xlu1 %v5204_v53, 312  ;;  %5230 = vbcast.lane.b32.xlu0 %v5204_v53, 304 }
  0x90   :  { %718 = vmatpush1.bf16.msra.mxu1 %v12540_v48 }
  0x93   :  { %5245 = vbcast.lane.b32.xlu1 %v5239_v61, 264  ;;  %5241 = vbcast.lane.b32.xlu0 %v5239_v61, 256 }
  0x94   :  { %736 = vmatmul.mubr.bf16.vlgmr.msra.gmra.mrb[16].mxu1 %v463_v60 }
  0x95   :  { %679 = vmatmul.mubr.bf16.gmra.mrb[20].mxu0 %v464_v0  ;;  %743 = vmatprep.mubr.bf16.mxu1 %v12304_v1 }
  0x96   :  { %686 = vmatprep.mubr.bf16.mxu0 %v12304_v1 }
  0x97   :  { %5253 = vbcast.lane.b32.xlu1 %v5239_v61, 280  ;;  %5249 = vbcast.lane.b32.xlu0 %v5239_v61, 272 }
  0x9b   :  { %5261 = vbcast.lane.b32.xlu1 %v5239_v61, 296  ;;  %5257 = vbcast.lane.b32.xlu0 %v5239_v61, 288 }
  0x9c   :  { %744 = vmatmul.mubr.bf16.gmra.mrb[20].mxu1 %v464_v0 }
  0x9d   :  { %687 = vmatmul.mubr.bf16.gmra.mrb[24].mxu0 %v465_v9  ;;  %751 = vmatprep.mubr.bf16.mxu1 %v12304_v1 }
  0x9e   :  { %694 = vmatprep.mubr.bf16.mxu0 %v12304_v1 }
  0x9f   :  { %5269 = vbcast.lane.b32.xlu1 %v5239_v61, 312  ;;  %5265 = vbcast.lane.b32.xlu0 %v5239_v61, 304 }
  0xa3   :  { %5280 = vbcast.lane.b32.xlu1 %v5274_v10, 264  ;;  %5276 = vbcast.lane.b32.xlu0 %v5274_v10, 256 }
  0xa4   :  { %752 = vmatmul.mubr.bf16.gmra.mrb[24].mxu1 %v465_v9  ;;  %v5589_v9 = vrot.slane %v12618_v22, %v12599_v14 }
  0xa5   :  { %695 = vmatmul.mubr.bf16.gmra.mrb[28].mxu0 %v466_v13  ;;  %759 = vmatprep.mubr.bf16.mxu1 %v12304_v1  ;;  %v5344_v1 = vrot.slane %v12433_v7, %v12605_v16 }
  0xa7   :  { %5288 = vbcast.lane.b32.xlu1 %v5274_v10, 280  ;;  %5284 = vbcast.lane.b32.xlu0 %v5274_v10, 272 }
  0xab   :  { %5296 = vbcast.lane.b32.xlu1 %v5274_v10, 296  ;;  %5292 = vbcast.lane.b32.xlu0 %v5274_v10, 288 }
  0xac   :  { %760 = vmatmul.mubr.bf16.gmra.mrb[28].mxu1 %v466_v13 }
  0xaf   :  { %5304 = vbcast.lane.b32.xlu1 %v5274_v10, 312  ;;  %5300 = vbcast.lane.b32.xlu0 %v5274_v10, 304 }
  0xb3   :  { %5315 = vbcast.lane.b32.xlu1 %v5309_v15, 264  ;;  %5311 = vbcast.lane.b32.xlu0 %v5309_v15, 256 }
  0xb7   :  { %5323 = vbcast.lane.b32.xlu1 %v5309_v15, 280  ;;  %5319 = vbcast.lane.b32.xlu0 %v5309_v15, 272 }
  0xbb   :  { %5331 = vbcast.lane.b32.xlu1 %v5309_v15, 296  ;;  %5327 = vbcast.lane.b32.xlu0 %v5309_v15, 288 }
  0xbf   :  { %5339 = vbcast.lane.b32.xlu1 %v5309_v15, 312  ;;  %5335 = vbcast.lane.b32.xlu0 %v5309_v15, 304 }
  0xc3   :  { %5350 = vbcast.lane.b32.xlu1 %v5344_v1, 264  ;;  %5346 = vbcast.lane.b32.xlu0 %v5344_v1, 256 }
  0xc5   :  { %v12609_v17 = vpop.permute.xlu1 %5109  ;;  %v12611_v19 = vpop.permute.xlu0 %5101 }
  0xc6   :  { %18324 = vst [vmem:[#allocation25_spill] sm:$0xff] %v12609_v17 }
  0xc7   :  { %5358 = vbcast.lane.b32.xlu1 %v5344_v1, 280  ;;  %5354 = vbcast.lane.b32.xlu0 %v5344_v1, 272 }
  0xc9   :  { %v12613_v20 = vpop.permute.xlu1 %5113  ;;  %v12615_v21 = vpop.permute.xlu0 %5105 }
  0xca   :  { %18325 = vst [vmem:[#allocation26_spill] sm:$0xff] %v12613_v20 }
  0xcb   :  { %5366 = vbcast.lane.b32.xlu1 %v5344_v1, 296  ;;  %5362 = vbcast.lane.b32.xlu0 %v5344_v1, 288 }
  0xcd   :  { %v12620_v23 = vpop.permute.xlu1 %5121  ;;  %v12622_v7 = vpop.permute.xlu0 %5117 }
  0xce   :  { %18326 = vst [vmem:[#allocation27_spill] sm:$0xff] %v12620_v23  ;;  %18327 = vst [vmem:[#allocation28_spill] sm:$0xff] %v12622_v7 }
  0xcf   :  { %5374 = vbcast.lane.b32.xlu1 %v5344_v1, 312  ;;  %5370 = vbcast.lane.b32.xlu0 %v5344_v1, 304 }
  0xd1   :  { %v12626_v25 = vpop.permute.xlu1 %5129  ;;  %v12628_v26 = vpop.permute.xlu0 %5125 }
  0xd2   :  { %18328 = vst [vmem:[#allocation29_spill] sm:$0xff] %v12626_v25  ;;  %18329 = vst [vmem:[#allocation30_spill] sm:$0xff] %v12628_v26 }
  0xd3   :  { %5385 = vbcast.lane.b32.xlu1 %v5379_v24, 264  ;;  %5381 = vbcast.lane.b32.xlu0 %v5379_v24, 256 }
  0xd5   :  { %v12630_v27 = vpop.permute.xlu0 %5136  ;;  %v12632_v28 = vpop.permute.xlu1 %5140 }
  0xd7   :  { %5393 = vbcast.lane.b32.xlu1 %v5379_v24, 280  ;;  %5389 = vbcast.lane.b32.xlu0 %v5379_v24, 272 }
  0xd9   :  { %v12634_v6 = vpop.permute.xlu0 %5144  ;;  %v12636_v29 = vpop.permute.xlu1 %5148 }
  0xda   :  { %18330 = vst [vmem:[#allocation31_spill] sm:$0xff] %v12634_v6  ;;  %18331 = vst [vmem:[#allocation32_spill] sm:$0xff] %v12636_v29 }
  0xdb   :  { %5401 = vbcast.lane.b32.xlu1 %v5379_v24, 296  ;;  %5397 = vbcast.lane.b32.xlu0 %v5379_v24, 288 }
  0xdd   :  { %v12638_v30 = vpop.permute.xlu0 %5152  ;;  %v12644_v33 = vpop.permute.xlu1 %5156 }
  0xde   :  { %18332 = vst [vmem:[#allocation33_spill] sm:$0xff] %v12638_v30  ;;  %18334 = vst [vmem:[#allocation35_spill] sm:$0xff] %v12644_v33 }
  0xdf   :  { %5409 = vbcast.lane.b32.xlu1 %v5379_v24, 312  ;;  %5405 = vbcast.lane.b32.xlu0 %v5379_v24, 304  ;;  %v12305_v24 = vmov 1966171168  }
  0xe1   :  { %v12642_v32 = vpop.permute.xlu0 %5160  ;;  %v12648_v35 = vpop.permute.xlu1 %5164 }
  0xe2   :  { %18333 = vst [vmem:[#allocation34_spill] sm:$0xff] %v12642_v32  ;;  %18335 = vst [vmem:[#allocation36_spill] sm:$0xff] %v12648_v35 }
  0xe3   :  { %5420 = vbcast.lane.b32.xlu1 %v5414_v31, 264  ;;  %5416 = vbcast.lane.b32.xlu0 %v5414_v31, 256 }
  0xe5   :  { %v12646_v34 = vpop.permute.xlu0 %5171  ;;  %v12654_v39 = vpop.permute.xlu1 %5175 }
  0xe6   :  { %18338 = vst [vmem:[#allocation39_spill] sm:$0xff] %v12654_v39 }
  0xe7   :  { %5428 = vbcast.lane.b32.xlu1 %v5414_v31, 280  ;;  %5424 = vbcast.lane.b32.xlu0 %v5414_v31, 272 }
  0xe9   :  { %v12650_v36 = vpop.permute.xlu0 %5179  ;;  %v12660_v42 = vpop.permute.xlu1 %5183 }
  0xea   :  { %18336 = vst [vmem:[#allocation37_spill] sm:$0xff] %v12650_v36  ;;  %18340 = vst [vmem:[#allocation41_spill] sm:$0xff] %v12660_v42 }
  0xeb   :  { %5436 = vbcast.lane.b32.xlu1 %v5414_v31, 296  ;;  %5432 = vbcast.lane.b32.xlu0 %v5414_v31, 288 }
  0xed   :  { %v12652_v37 = vpop.permute.xlu0 %5187  ;;  %v12664_v44 = vpop.permute.xlu1 %5191 }
  0xee   :  { %18337 = vst [vmem:[#allocation38_spill] sm:$0xff] %v12652_v37  ;;  %18341 = vst [vmem:[#allocation42_spill] sm:$0xff] %v12664_v44 }
  0xef   :  { %5444 = vbcast.lane.b32.xlu1 %v5414_v31, 312  ;;  %5440 = vbcast.lane.b32.xlu0 %v5414_v31, 304  ;;  %v802_v31 = vunpack.c.l.s4 %v12305_v24 }
  0xf1   :  { %v12658_v41 = vpop.permute.xlu0 %5195  ;;  %v12670_v47 = vpop.permute.xlu1 %5199 }
  0xf2   :  { %18339 = vst [vmem:[#allocation40_spill] sm:$0xff] %v12658_v41  ;;  %18343 = vst [vmem:[#allocation44_spill] sm:$0xff] %v12670_v47 }
  0xf3   :  { %5455 = vbcast.lane.b32.xlu1 %v5449_v40, 264  ;;  %5451 = vbcast.lane.b32.xlu0 %v5449_v40, 256 }
  0xf5   :  { %v12662_v43 = vpop.permute.xlu0 %5206  ;;  %v12674_v49 = vpop.permute.xlu1 %5210 }
  0xf6   :  { %18345 = vst [vmem:[#allocation46_spill] sm:$0xff] %v12674_v49 }
  0xf7   :  { %5463 = vbcast.lane.b32.xlu1 %v5449_v40, 280  ;;  %5459 = vbcast.lane.b32.xlu0 %v5449_v40, 272 }
  0xf9   :  { %v12666_v45 = vpop.permute.xlu0 %5214  ;;  %v12678_v52 = vpop.permute.xlu1 %5218 }
  0xfa   :  { %18342 = vst [vmem:[#allocation43_spill] sm:$0xff] %v12666_v45  ;;  %18347 = vst [vmem:[#allocation48_spill] sm:$0xff] %v12678_v52 }
  0xfb   :  { %5471 = vbcast.lane.b32.xlu1 %v5449_v40, 296  ;;  %5467 = vbcast.lane.b32.xlu0 %v5449_v40, 288 }
  0xfd   :  { %v12672_v48 = vpop.permute.xlu0 %5222  ;;  %v12684_v55 = vpop.permute.xlu1 %5226 }
  0xfe   :  { %18344 = vst [vmem:[#allocation45_spill] sm:$0xff] %v12672_v48  ;;  %18348 = vst [vmem:[#allocation49_spill] sm:$0xff] %v12684_v55 }
  0xff   :  { %5479 = vbcast.lane.b32.xlu1 %v5449_v40, 312  ;;  %5475 = vbcast.lane.b32.xlu0 %v5449_v40, 304  ;;  %v12723_v40 = vld [vmem:[%s18183_s4] sm:$0xf] }
 0x101   :  { %v12676_v50 = vpop.permute.xlu0 %5230  ;;  %v12688_v57 = vpop.permute.xlu1 %5234 }
 0x102   :  { %18346 = vst [vmem:[#allocation47_spill] sm:$0xff] %v12676_v50  ;;  %18350 = vst [vmem:[#allocation51_spill] sm:$0xff] %v12688_v57 }
 0x103   :  { %5490 = vbcast.lane.b32.xlu1 %v5484_v46, 264  ;;  %5486 = vbcast.lane.b32.xlu0 %v5484_v46, 256 }
 0x105   :  { %v12680_v53 = vpop.permute.xlu0 %5241  ;;  %v12692_v60 = vpop.permute.xlu1 %5245 }
 0x106   :  { %18352 = vst [vmem:[#allocation53_spill] sm:$0xff] %v12692_v60 }
 0x107   :  { %5498 = vbcast.lane.b32.xlu1 %v5484_v46, 280  ;;  %5494 = vbcast.lane.b32.xlu0 %v5484_v46, 272 }
 0x109   :  { %v12686_v56 = vpop.permute.xlu0 %5249  ;;  %v12698_v63 = vpop.permute.xlu1 %5253 }
 0x10a   :  { %18349 = vst [vmem:[#allocation50_spill] sm:$0xff] %v12686_v56  ;;  %18354 = vst [vmem:[#allocation55_spill] sm:$0xff] %v12698_v63 }
 0x10b   :  { %5506 = vbcast.lane.b32.xlu1 %v5484_v46, 296  ;;  %5502 = vbcast.lane.b32.xlu0 %v5484_v46, 288 }
 0x10d   :  { %v12690_v58 = vpop.permute.xlu0 %5257  ;;  %v12702_v3 = vpop.permute.xlu1 %5261 }
 0x10e   :  { %18351 = vst [vmem:[#allocation52_spill] sm:$0xff] %v12690_v58  ;;  %18356 = vst [vmem:[#allocation57_spill] sm:$0xff] %v12702_v3 }
 0x10f   :  { %5514 = vbcast.lane.b32.xlu1 %v5484_v46, 312  ;;  %5510 = vbcast.lane.b32.xlu0 %v5484_v46, 304  ;;  %v5624_v46 = vrot.slane %v12618_v22, %v12605_v16  ;;  %v10054_v22 = vld [vmem:[#allocation9 + $0x8] sm:$0xff]  }
 0x110   :  { %v12746_v50 = vunpack.c.l.bf16 %v10054_v22 }
 0x111   :  { %v12694_v61 = vpop.permute.xlu0 %5265  ;;  %v12708_v10 = vpop.permute.xlu1 %5269 }
 0x112   :  { %18353 = vst [vmem:[#allocation54_spill] sm:$0xff] %v12694_v61  ;;  %18358 = vst [vmem:[#allocation59_spill] sm:$0xff] %v12708_v10 }
 0x113   :  { %5525 = vbcast.lane.b32.xlu1 %v5519_v54, 264  ;;  %5521 = vbcast.lane.b32.xlu0 %v5519_v54, 256  ;;  %18368 = vst [vmem:[#allocation69_spill] sm:$0xff] %v12746_v50 }
 0x115   :  { %v12700_v0 = vpop.permute.xlu0 %5276  ;;  %v12712_v12 = vpop.permute.xlu1 %5280 }
 0x116   :  { %18355 = vst [vmem:[#allocation56_spill] sm:$0xff] %v12700_v0  ;;  %18360 = vst [vmem:[#allocation61_spill] sm:$0xff] %v12712_v12 }
 0x117   :  { %5533 = vbcast.lane.b32.xlu1 %v5519_v54, 280  ;;  %5529 = vbcast.lane.b32.xlu0 %v5519_v54, 272 }
 0x119   :  { %v12704_v5 = vpop.permute.xlu0 %5284  ;;  %v12716_v15 = vpop.permute.xlu1 %5288 }
 0x11a   :  { %18357 = vst [vmem:[#allocation58_spill] sm:$0xff] %v12704_v5  ;;  %18362 = vst [vmem:[#allocation63_spill] sm:$0xff] %v12716_v15 }
 0x11b   :  { %5541 = vbcast.lane.b32.xlu1 %v5519_v54, 296  ;;  %5537 = vbcast.lane.b32.xlu0 %v5519_v54, 288 }
 0x11d   :  { %v12710_v11 = vpop.permute.xlu0 %5292  ;;  %v12731_v14 = vpop.permute.xlu1 %5296 }
 0x11e   :  { %18359 = vst [vmem:[#allocation60_spill] sm:$0xff] %v12710_v11  ;;  %18364 = vst [vmem:[#allocation65_spill] sm:$0xff] %v12731_v14 }
 0x11f   :  { %5549 = vbcast.lane.b32.xlu1 %v5519_v54, 312  ;;  %5545 = vbcast.lane.b32.xlu0 %v5519_v54, 304  ;;  %v12729_v54 = vrot.slane %v12723_v40, %v12425_v4 }
 0x121   :  { %v12714_v13 = vpop.permute.xlu0 %5300  ;;  %v12740_v25 = vpop.permute.xlu1 %5304 }
 0x122   :  { %18361 = vst [vmem:[#allocation62_spill] sm:$0xff] %v12714_v13  ;;  %18366 = vst [vmem:[#allocation67_spill] sm:$0xff] %v12740_v25 }
 0x123   :  { %5560 = vbcast.lane.b32.xlu1 %v5554_v62, 264  ;;  %5556 = vbcast.lane.b32.xlu0 %v5554_v62, 256 }
 0x125   :  { %v12718_v1 = vpop.permute.xlu0 %5311 }
 0x126   :  { %18363 = vst [vmem:[#allocation64_spill] sm:$0xff] %v12718_v1 }
 0x127   :  { %5568 = vbcast.lane.b32.xlu1 %v5554_v62, 280  ;;  %5564 = vbcast.lane.b32.xlu0 %v5554_v62, 272 }
 0x129   :  { %v12733_v10 = vpop.permute.xlu0 %5319 }
 0x12a   :  { %18365 = vst [vmem:[#allocation66_spill] sm:$0xff] %v12733_v10 }
 0x12b   :  { %5576 = vbcast.lane.b32.xlu1 %v5554_v62, 296  ;;  %5572 = vbcast.lane.b32.xlu0 %v5554_v62, 288 }
 0x12d   :  { %v12742_v8 = vpop.permute.xlu0 %5327 }
 0x12e   :  { %18367 = vst [vmem:[#allocation68_spill] sm:$0xff] %v12742_v8 }
 0x12f   :  { %5584 = vbcast.lane.b32.xlu1 %v5554_v62, 312  ;;  %5580 = vbcast.lane.b32.xlu0 %v5554_v62, 304  ;;  %v803_v62 = vunpack.c.0.s8 %v802_v31 }
 0x131   :  { %v12759_v14 = vpop.permute.xlu0 %5335 }
 0x132   :  { %18370 = vst [vmem:[#allocation71_spill] sm:$0xff] %v12759_v14 }
 0x133   :  { %5595 = vbcast.lane.b32.xlu1 %v5589_v9, 264  ;;  %5591 = vbcast.lane.b32.xlu0 %v5589_v9, 256 }
 0x135   :  { %v12796_v48 = vpop.permute.xlu0 %5346 }
 0x136   :  { %18373 = vst [vmem:[#allocation74_spill] sm:$0xff] %v12796_v48 }
 0x137   :  { %5603 = vbcast.lane.b32.xlu1 %v5589_v9, 280  ;;  %5599 = vbcast.lane.b32.xlu0 %v5589_v9, 272 }
 0x13b   :  { %5611 = vbcast.lane.b32.xlu1 %v5589_v9, 296  ;;  %5607 = vbcast.lane.b32.xlu0 %v5589_v9, 288 }
 0x13f   :  { %5619 = vbcast.lane.b32.xlu1 %v5589_v9, 312  ;;  %5615 = vbcast.lane.b32.xlu0 %v5589_v9, 304  ;;  %v12737_v9 = vsub.s32 %v803_v62, %v12420_v2 }
 0x140   :  { %v343_v24 = vpop.f32.mrb[0].mxu0  ;;  %v408_v55 = vpop.f32.mrb[0].mxu1 }
 0x141   :  { %v345_v57 = vpop.f32.mrb[1].mxu0  ;;  %v344_v47 = vadd.f32 %v343_v24, %v12729_v54  ;;  %v12777_v59 = vpop.f32.mrb[1].mxu1 }
 0x142   :  { %v346_v35 = vpop.f32.mrb[2].mxu0 }
 0x143   :  { %5630 = vbcast.lane.b32.xlu1 %v5624_v46, 264  ;;  %5626 = vbcast.lane.b32.xlu0 %v5624_v46, 256  ;;  %v347_v16 = vadd.f32 %v346_v35, %v12729_v54  ;;  %v348_v31 = vpop.f32.mrb[3].mxu0  ;;  %v800_v13 = vcombine.high %v344_v47, %v344_v47  ;;  %v807_v61 = vrot.slane %v344_v47, %v12737_v9  ;;  %v12753_v47 = vpop.permute.xlu1 %5315 }
 0x144   :  { %18369 = vst [vmem:[#allocation70_spill] sm:$0xff] %v12753_v47 }
 0x145   :  { %v849_v57 = vcombine.high %v347_v16, %v347_v16  ;;  %v856_v24 = vrot.slane %v347_v16, %v12737_v9  ;;  %v814_v31 = vrot.slane %v800_v13, %v12737_v9  ;;  %v815_v25 = vcombine.high %v807_v61, %v807_v61 }
 0x146   :  { %v12757_v16 = vrot.slane %v12746_v50, %v12425_v4  ;;  %v823_v33 = vrot.slane %v807_v61, %v12737_v9  ;;  %v411_v61 = vpop.f32.mrb[2].mxu1 }
 0x147   :  { %5638 = vbcast.lane.b32.xlu1 %v5624_v46, 280  ;;  %5634 = vbcast.lane.b32.xlu0 %v5624_v46, 272  ;;  %v863_v2 = vrot.slane %v849_v57, %v12737_v9  ;;  %v864_v62 = vcombine.high %v856_v24, %v856_v24  ;;  %v12751_v26 = vrot.slane %v856_v24, %v12737_v9  ;;  %v12899_v52 = vpop.f32.mrb[3].mxu1 }
 0x148   :  { %v351_v41 = vpop.f32.mrb[4].mxu0  ;;  %v816_v44 = vcombine.high %v814_v31, %v814_v31  ;;  %v837_v14 = vrot.slane %v815_v25, %v12737_v9  ;;  %v12788_v25 = vrot.slane %v12746_v50, %v12462_v18  ;;  %v845_v37 = vcombine.high %v823_v33, %v823_v33  ;;  %18381 = vst [vmem:[#allocation82_spill] sm:$0xff] %v12899_v52 }
 0x149   :  { %v353_v35 = vpop.f32.mrb[5].mxu0  ;;  %v865_v32 = vcombine.high %v863_v2, %v863_v2  ;;  %v12762_v57 = vrot.slane %v863_v2, %v12737_v9  ;;  %v12765_v13 = vrot.slane %v864_v62, %v12737_v9  ;;  %v352_v3 = vadd.f32 %v351_v41, %v12729_v54  ;;  %v12790_v62 = vpop.permute.xlu1 %5323 }
 0x14a   :  { %v354_v22 = vpop.f32.mrb[6].mxu0  ;;  %v830_v41 = vrot.slane %v814_v31, %v12737_v9  ;;  %18372 = vst [vmem:[#allocation73_spill] sm:$0xff] %v12790_v62  ;;  %v844_v31 = vrot.slane %v816_v44, %v12737_v9  ;;  %v847_v30 = vcombine.high %v837_v14, %v837_v14  ;;  %v12801_v61 = vrot.slane %v12746_v50, %v12516_v38 }
 0x14b   :  { %5646 = vbcast.lane.b32.xlu1 %v5624_v46, 296  ;;  %5642 = vbcast.lane.b32.xlu0 %v5624_v46, 288  ;;  %v12768_v24 = vrot.slane %v865_v32, %v12737_v9  ;;  %v356_v35 = vpop.f32.mrb[7].mxu0  ;;  %v898_v2 = vcombine.high %v352_v3, %v352_v3  ;;  %v12781_v32 = vrot.slane %v12723_v40, %v12516_v38 }
 0x14c   :  { %v905_v35 = vrot.slane %v352_v3, %v12737_v9  ;;  %v355_v8 = vadd.f32 %v354_v22, %v12729_v54  ;;  %v846_v48 = vcombine.high %v830_v41, %v830_v41  ;;  %v12816_v62 = vrot.slane %v837_v14, %v12425_v4 }
 0x14d   :  { %18371 = vst [vmem:[#allocation72_spill] sm:$0xff] %v12781_v32  ;;  %v912_v23 = vrot.slane %v898_v2, %v12737_v9  ;;  %v12825_v10 = vrot.slane %v845_v37, %v12425_v4  ;;  %v12828_v1 = vpop.permute.xlu1 %5331  ;;  %v895_v14 = vcombine.high %v12762_v57, %v12762_v57  ;;  %v896_v37 = vcombine.high %v12765_v13, %v12765_v13 }
 0x14e   :  { %v12804_v3 = vrot.slane %v905_v35, %v12737_v9  ;;  %v947_v44 = vcombine.high %v355_v8, %v355_v8  ;;  %18374 = vst [vmem:[#allocation75_spill] sm:$0xff] %v12828_v1  ;;  %v12849_v50 = vrot.slane %v844_v31, %v12425_v4  ;;  %v12852_v15 = vrot.slane %v846_v48, %v12425_v4 }
 0x14f   :  { %5654 = vbcast.lane.b32.xlu1 %v5624_v46, 312  ;;  %5650 = vbcast.lane.b32.xlu0 %v5624_v46, 304  ;;  %v12775_v46 = vrot.slane %v12723_v40, %v12462_v18  ;;  %v913_v18 = vcombine.high %v905_v35, %v905_v35  ;;  %v914_v7 = vcombine.high %v912_v23, %v912_v23 }
 0x150   :  { %v359_v55 = vpop.f32.mrb[8].mxu0  ;;  %v12807_v22 = vrot.slane %v912_v23, %v12737_v9  ;;  %v961_v47 = vrot.slane %v947_v44, %v12737_v9  ;;  %v12866_v0 = vrot.slane %v12751_v26, %v12425_v4  ;;  %v12895_v63 = vrot.slane %v895_v14, %v12425_v4  ;;  %v416_v14 = vpop.f32.mrb[4].mxu1 }
 0x151   :  { %v360_v11 = vadd.f32 %v359_v55, %v12729_v54  ;;  %v361_v58 = vpop.f32.mrb[9].mxu0  ;;  %v954_v55 = vrot.slane %v355_v8, %v12737_v9  ;;  %v12819_v35 = vrot.slane %v913_v18, %v12737_v9  ;;  %v12822_v23 = vrot.slane %v914_v7, %v12737_v9  ;;  %v12840_v7 = vpop.permute.xlu0 %5354 }
 0x152   :  { %v362_v2 = vpop.f32.mrb[10].mxu0  ;;  %v12810_v58 = vrot.slane %v823_v33, %v12425_v4  ;;  %v848_v33 = vcombine.high %v844_v31, %v844_v31  ;;  %v12834_v8 = vrot.slane %v830_v41, %v12425_v4  ;;  %v894_v18 = vcombine.high %v12751_v26, %v12751_v26  ;;  %18375 = vst [vmem:[#allocation76_spill] sm:$0xff] %v12840_v7 }
 0x153   :  { %5665 = vbcast.lane.b32.xlu1 %v12757_v16, 264  ;;  %5661 = vbcast.lane.b32.xlu0 %v12757_v16, 256  ;;  %v364_v38 = vpop.f32.mrb[11].mxu0  ;;  %v962_v32 = vcombine.high %v954_v55, %v954_v55  ;;  %v963_v44 = vcombine.high %v961_v47, %v961_v47  ;;  %v12845_v1 = vrot.slane %v954_v55, %v12737_v9 }
 0x154   :  { %v12831_v38 = vrot.slane %v847_v30, %v12425_v4  ;;  %v996_v30 = vcombine.high %v360_v11, %v360_v11  ;;  %v12855_v5 = vrot.slane %v961_v47, %v12737_v9  ;;  %v12862_v12 = vrot.slane %v848_v33, %v12425_v4  ;;  %18380 = vst [vmem:[#allocation81_spill] sm:$0xff] %v12895_v63 }
 0x155   :  { %v12858_v7 = vrot.slane %v962_v32, %v12737_v9  ;;  %v12869_v31 = vrot.slane %v963_v44, %v12737_v9  ;;  %v1003_v48 = vrot.slane %v360_v11, %v12737_v9  ;;  %v897_v47 = vcombine.high %v12768_v24, %v12768_v24 }
 0x156   :  { %v12876_v32 = vrot.slane %v12765_v13, %v12425_v4  ;;  %v12883_v33 = vrot.slane %v12762_v57, %v12425_v4  ;;  %v12888_v44 = vrot.slane %v896_v37, %v12425_v4  ;;  %v12892_v11 = vrot.slane %v12768_v24, %v12425_v4  ;;  %v12901_v57 = vpop.permute.xlu1 %5339 }
 0x157   :  { %5673 = vbcast.lane.b32.xlu1 %v12757_v16, 280  ;;  %5669 = vbcast.lane.b32.xlu0 %v12757_v16, 272  ;;  %v1010_v13 = vrot.slane %v996_v30, %v12737_v9  ;;  %18382 = vst [vmem:[#allocation83_spill] sm:$0xff] %v12901_v57  ;;  %v943_v37 = vcombine.high %v12804_v3, %v12804_v3  ;;  %v12911_v30 = vpop.permute.xlu0 %5362 }
 0x158   :  { %v367_v41 = vpop.f32.mrb[12].mxu0  ;;  %18376 = vst [vmem:[#allocation77_spill] sm:$0xff] %v12876_v32  ;;  %18378 = vst [vmem:[#allocation79_spill] sm:$0xff] %v12883_v33  ;;  %v944_v33 = vcombine.high %v12807_v22, %v12807_v22  ;;  %v1011_v24 = vcombine.high %v1003_v48, %v1003_v48  ;;  %v363_v63 = vadd.f32 %v362_v2, %v12729_v54 }
 0x159   :  { %v369_v55 = vpop.f32.mrb[13].mxu0  ;;  %18379 = vst [vmem:[#allocation80_spill] sm:$0xff] %v12892_v11  ;;  %v12908_v11 = vrot.slane %v1003_v48, %v12737_v9  ;;  %18383 = vst [vmem:[#allocation84_spill] sm:$0xff] %v12911_v30  ;;  %v1012_v52 = vcombine.high %v1010_v13, %v1010_v13  ;;  %v12916_v57 = vrot.slane %v1010_v13, %v12737_v9  ;;  %v12930_v30 = vpop.f32.mrb[5].mxu1 }
 0x15a   :  { %v12879_v55 = vrot.slane %v894_v18, %v12425_v4  ;;  %v12885_v26 = vpop.f32.mrb[14].mxu0  ;;  %v12920_v42 = vrot.slane %v897_v47, %v12425_v4  ;;  %v12923_v48 = vrot.slane %v1011_v24, %v12737_v9  ;;  %v12928_v14 = vrot.slane %v12723_v40, %v12548_v51  ;;  %18386 = vst [vmem:[#allocation87_spill] sm:$0xff] %v12930_v30 }
 0x15b   :  { %5681 = vbcast.lane.b32.xlu1 %v12757_v16, 296  ;;  %5677 = vbcast.lane.b32.xlu0 %v12757_v16, 288  ;;  %v372_v18 = vpop.f32.mrb[15].mxu0  ;;  %v946_v13 = vcombine.high %v12822_v23, %v12822_v23  ;;  %v12936_v2 = vrot.slane %v12804_v3, %v12425_v4  ;;  %v12939_v47 = vrot.slane %v1012_v52, %v12737_v9 }
 0x15c   :  { %18377 = vst [vmem:[#allocation78_spill] sm:$0xff] %v12879_v55  ;;  %v945_v18 = vcombine.high %v12819_v35, %v12819_v35  ;;  %18384 = vst [vmem:[#allocation85_spill] sm:$0xff] %v12920_v42  ;;  %v1045_v24 = vcombine.high %v363_v63, %v363_v63  ;;  %v419_v42 = vpop.f32.mrb[6].mxu1  ;;  %v12944_v40 = vrot.slane %v12819_v35, %v12425_v4 }
 0x15d   :  { %18385 = vst [vmem:[#allocation86_spill] sm:$0xff] %v12928_v14  ;;  %18387 = vst [vmem:[#allocation88_spill] sm:$0xff] %v12936_v2  ;;  %v12947_v30 = vrot.slane %v943_v37, %v12425_v4  ;;  %v12951_v51 = vrot.slane %v12807_v22, %v12425_v4  ;;  %v1052_v3 = vrot.slane %v363_v63, %v12737_v9  ;;  %v12968_v22 = vpop.permute.xlu1 %5350 }
 0x15e   :  { %18388 = vst [vmem:[#allocation89_spill] sm:$0xff] %v12944_v40  ;;  %v12962_v42 = vrot.slane %v12822_v23, %v12425_v4  ;;  %v12965_v35 = vrot.slane %v944_v33, %v12425_v4  ;;  %v1059_v37 = vrot.slane %v1045_v24, %v12737_v9  ;;  %18394 = vst [vmem:[#allocation95_spill] sm:$0xff] %v12968_v22  ;;  %v12975_v40 = vpop.permute.xlu0 %5370 }
 0x15f   :  { %5689 = vbcast.lane.b32.xlu1 %v12757_v16, 312  ;;  %5685 = vbcast.lane.b32.xlu0 %v12757_v16, 304  ;;  %v368_v16 = vadd.f32 %v367_v41, %v12729_v54  ;;  %18389 = vst [vmem:[#allocation90_spill] sm:$0xff] %v12947_v30  ;;  %18390 = vst [vmem:[#allocation91_spill] sm:$0xff] %v12951_v51  ;;  %v992_v63 = vcombine.high %v12845_v1, %v12845_v1 }
 0x160   :  { %v672_v41 = vpop.f32.mrb[16].mxu0  ;;  %18392 = vst [vmem:[#allocation93_spill] sm:$0xff] %v12962_v42  ;;  %18393 = vst [vmem:[#allocation94_spill] sm:$0xff] %v12965_v35  ;;  %v1060_v51 = vcombine.high %v1052_v3, %v1052_v3  ;;  %v12973_v30 = vrot.slane %v1052_v3, %v12737_v9  ;;  %v12978_v23 = vrot.slane %v946_v13, %v12425_v4 }
 0x161   :  { %v12955_v52 = vpop.f32.mrb[17].mxu0  ;;  %v12958_v41 = vrot.slane %v945_v18, %v12425_v4  ;;  %v1094_v18 = vcombine.high %v368_v16, %v368_v16  ;;  %18395 = vst [vmem:[#allocation96_spill] sm:$0xff] %v12975_v40  ;;  %v1061_v33 = vcombine.high %v1059_v37, %v1059_v37  ;;  %v12981_v35 = vrot.slane %v1059_v37, %v12737_v9 }
 0x162   :  { %18396 = vst [vmem:[#allocation97_spill] sm:$0xff] %v12978_v23  ;;  %v1101_v24 = vrot.slane %v368_v16, %v12737_v9  ;;  %v993_v3 = vcombine.high %v12855_v5, %v12855_v5  ;;  %v12994_v13 = vrot.slane %v1060_v51, %v12737_v9  ;;  %v994_v16 = vcombine.high %v12858_v7, %v12858_v7  ;;  %v13042_v56 = vpop.permute.xlu0 %5381 }
 0x163   :  { %5700 = vbcast.lane.b32.xlu1 %v12788_v25, 264  ;;  %5696 = vbcast.lane.b32.xlu0 %v12788_v25, 256  ;;  %18391 = vst [vmem:[#allocation92_spill] sm:$0xff] %v12958_v41  ;;  %v675_v41 = vpop.f32.mrb[18].mxu0  ;;  %v1108_v23 = vrot.slane %v1094_v18, %v12737_v9  ;;  %v13002_v37 = vrot.slane %v12858_v7, %v12425_v4 }
 0x164   :  { %v12985_v42 = vpop.f32.mrb[19].mxu0  ;;  %v12991_v41 = vrot.slane %v12845_v1, %v12425_v4  ;;  %v13005_v2 = vrot.slane %v1061_v33, %v12737_v9  ;;  %v1109_v40 = vcombine.high %v1101_v24, %v1101_v24  ;;  %v995_v1 = vcombine.high %v12869_v31, %v12869_v31 }
 0x165   :  { %18398 = vst [vmem:[#allocation99_spill] sm:$0xff] %v13002_v37  ;;  %v13010_v51 = vrot.slane %v992_v63, %v12425_v4  ;;  %v13014_v18 = vrot.slane %v12855_v5, %v12425_v4  ;;  %v1041_v22 = vcombine.high %v12908_v11, %v12908_v11  ;;  %v1042_v7 = vcombine.high %v12916_v57, %v12916_v57 }
 0x166   :  { %18397 = vst [vmem:[#allocation98_spill] sm:$0xff] %v12991_v41  ;;  %v1110_v41 = vcombine.high %v1108_v23, %v1108_v23  ;;  %v1043_v33 = vcombine.high %v12923_v48, %v12923_v48  ;;  %v13023_v37 = vrot.slane %v1101_v24, %v12737_v9  ;;  %v1044_v5 = vcombine.high %v12939_v47, %v12939_v47 }
 0x167   :  { %5708 = vbcast.lane.b32.xlu1 %v12788_v25, 280  ;;  %5704 = vbcast.lane.b32.xlu0 %v12788_v25, 272  ;;  %18399 = vst [vmem:[#allocation100_spill] sm:$0xff] %v13010_v51  ;;  %18400 = vst [vmem:[#allocation101_spill] sm:$0xff] %v13014_v18  ;;  %v13026_v51 = vpop.permute.xlu1 %5358  ;;  %v13031_v18 = vrot.slane %v1108_v23, %v12737_v9  ;;  %v13034_v29 = vrot.slane %v1109_v40, %v12737_v9 }
 0x168   :  { %v680_v63 = vpop.f32.mrb[20].mxu0  ;;  %18401 = vst [vmem:[#allocation102_spill] sm:$0xff] %v13026_v51  ;;  %v13037_v20 = vrot.slane %v1110_v41, %v12737_v9  ;;  %v13049_v51 = vrot.slane %v12869_v31, %v12425_v4  ;;  %v13052_v23 = vrot.slane %v993_v3, %v12425_v4  ;;  %v371_v40 = vadd.f32 %v12885_v26, %v12729_v54 }
 0x169   :  { %v13040_v24 = vpop.f32.mrb[21].mxu0  ;;  %v13045_v63 = vrot.slane %v994_v16, %v12425_v4  ;;  %v13057_v41 = vrot.slane %v995_v1, %v12425_v4  ;;  %v13061_v45 = vrot.slane %v12908_v11, %v12425_v4  ;;  %v13065_v16 = vrot.slane %v12923_v48, %v12425_v4 }
 0x16a   :  { %18403 = vst [vmem:[#allocation104_spill] sm:$0xff] %v13049_v51  ;;  %18404 = vst [vmem:[#allocation105_spill] sm:$0xff] %v13052_v23  ;;  %v13069_v31 = vrot.slane %v12916_v57, %v12425_v4  ;;  %v683_v3 = vpop.f32.mrb[22].mxu0  ;;  %v13072_v23 = vrot.slane %v1041_v22, %v12425_v4  ;;  %v13076_v54 = vrot.slane %v12939_v47, %v12425_v4 }
 0x16b   :  { %5716 = vbcast.lane.b32.xlu1 %v12788_v25, 296  ;;  %5712 = vbcast.lane.b32.xlu0 %v12788_v25, 288  ;;  %18402 = vst [vmem:[#allocation103_spill] sm:$0xff] %v13045_v63  ;;  %18405 = vst [vmem:[#allocation106_spill] sm:$0xff] %v13057_v41  ;;  %v13079_v26 = vrot.slane %v1042_v7, %v12425_v4  ;;  %v1143_v11 = vcombine.high %v371_v40, %v371_v40  ;;  %v13082_v48 = vpop.f32.mrb[23].mxu0 }
 0x16c   :  { %18406 = vst [vmem:[#allocation107_spill] sm:$0xff] %v13061_v45  ;;  %18407 = vst [vmem:[#allocation108_spill] sm:$0xff] %v13065_v16  ;;  %v13085_v1 = vrot.slane %v1043_v33, %v12425_v4  ;;  %v13088_v57 = vrot.slane %v1044_v5, %v12425_v4  ;;  %v1090_v22 = vcombine.high %v12973_v30, %v12973_v30  ;;  %v13103_v5 = vpop.permute.xlu1 %5366 }
 0x16d   :  { %18408 = vst [vmem:[#allocation109_spill] sm:$0xff] %v13069_v31  ;;  %18409 = vst [vmem:[#allocation110_spill] sm:$0xff] %v13072_v23  ;;  %v1150_v47 = vrot.slane %v371_v40, %v12737_v9  ;;  %v1091_v7 = vcombine.high %v12981_v35, %v12981_v35  ;;  %v1092_v3 = vcombine.high %v12994_v13, %v12994_v13  ;;  %v13114_v31 = vpop.permute.xlu0 %5389 }
 0x16e   :  { %18410 = vst [vmem:[#allocation111_spill] sm:$0xff] %v13076_v54  ;;  %18411 = vst [vmem:[#allocation112_spill] sm:$0xff] %v13079_v26  ;;  %v1157_v26 = vrot.slane %v1143_v11, %v12737_v9  ;;  %v13101_v33 = vadd.f32 %v12955_v52, %v12775_v46  ;;  %v13118_v11 = vrot.slane %v12994_v13, %v12425_v4 }
 0x16f   :  { %5724 = vbcast.lane.b32.xlu1 %v12788_v25, 312  ;;  %18412 = vst [vmem:[#allocation113_spill] sm:$0xff] %v13085_v1  ;;  %18413 = vst [vmem:[#allocation114_spill] sm:$0xff] %v13088_v57  ;;  %5720 = vbcast.lane.b32.xlu0 %v12788_v25, 304  ;;  %v1093_v57 = vcombine.high %v13005_v2, %v13005_v2  ;;  %v13109_v25 = vrot.slane %v12973_v30, %v12425_v4 }
 0x170   :  { %18414 = vst [vmem:[#allocation115_spill] sm:$0xff] %v13101_v33  ;;  %18415 = vst [vmem:[#allocation116_spill] sm:$0xff] %v13103_v5  ;;  %v1158_v40 = vcombine.high %v1150_v47, %v1150_v47  ;;  %v13112_v54 = vrot.slane %v1150_v47, %v12737_v9  ;;  %v13122_v52 = vrot.slane %v12981_v35, %v12425_v4  ;;  %v688_v30 = vpop.f32.mrb[24].mxu0 }
 0x171   :  { %18416 = vst [vmem:[#allocation117_spill] sm:$0xff] %v13109_v25  ;;  %18418 = vst [vmem:[#allocation119_spill] sm:$0xff] %v13114_v31  ;;  %v1159_v1 = vcombine.high %v1157_v26, %v1157_v26  ;;  %v13125_v23 = vrot.slane %v1157_v26, %v12737_v9  ;;  %v13129_v47 = vrot.slane %v1090_v22, %v12425_v4  ;;  %v13141_v26 = vpop.f32.mrb[25].mxu0 }
 0x172   :  { %18417 = vst [vmem:[#allocation118_spill] sm:$0xff] %v13112_v54  ;;  %18419 = vst [vmem:[#allocation120_spill] sm:$0xff] %v13118_v11  ;;  %v13133_v25 = vrot.slane %v13005_v2, %v12425_v4  ;;  %v1139_v13 = vcombine.high %v13023_v37, %v13023_v37  ;;  %v13138_v35 = vrot.slane %v1158_v40, %v12737_v9 }
 0x173   :  { %18420 = vst [vmem:[#allocation121_spill] sm:$0xff] %v13122_v52  ;;  %18421 = vst [vmem:[#allocation122_spill] sm:$0xff] %v13125_v23  ;;  %5735 = vbcast.lane.b32.xlu1 %v12801_v61, 264  ;;  %5731 = vbcast.lane.b32.xlu0 %v12801_v61, 256  ;;  %v13144_v52 = vrot.slane %v1092_v3, %v12425_v4  ;;  %v13147_v22 = vrot.slane %v1091_v7, %v12425_v4  ;;  %v691_v7 = vpop.f32.mrb[26].mxu0 }
 0x174   :  { %18422 = vst [vmem:[#allocation123_spill] sm:$0xff] %v13129_v47  ;;  %18423 = vst [vmem:[#allocation124_spill] sm:$0xff] %v13133_v25  ;;  %v13150_v30 = vrot.slane %v1159_v1, %v12737_v9  ;;  %v1512_v2 = vadd.f32 %v12810_v58, %v13101_v33  ;;  %v13155_v25 = vrot.slane %v1093_v57, %v12425_v4 }
 0x175   :  { %18424 = vst [vmem:[#allocation125_spill] sm:$0xff] %v13138_v35  ;;  %18425 = vst [vmem:[#allocation126_spill] sm:$0xff] %v13144_v52  ;;  %v1520_v40 = vadd.f32 %v12816_v62, %v13101_v33  ;;  %v1528_v47 = vadd.f32 %v12825_v10, %v13101_v33  ;;  %v1536_v3 = vadd.f32 %v12831_v38, %v13101_v33  ;;  %v13176_v52 = vpop.permute.xlu1 %5374 }
 0x176   :  { %18426 = vst [vmem:[#allocation127_spill] sm:$0xff] %v13147_v22  ;;  %18427 = vst [vmem:[#allocation128_spill] sm:$0xff] %v13150_v30  ;;  %v1140_v9 = vcombine.high %v13031_v18, %v13031_v18  ;;  %v1141_v1 = vcombine.high %v13034_v29, %v13034_v29  ;;  %v13169_v57 = vrot.slane %v13023_v37, %v12425_v4  ;;  %v13174_v22 = vpop.f32.mrb[27].mxu0  ;;  %v9523_v41 = vmul.f32 -1.442695, %v1512_v2 }
 0x177   :  { %18428 = vst [vmem:[#allocation129_spill] sm:$0xff] %v13155_v25  ;;  %v1544_v25 = vadd.f32 %v12834_v8, %v13101_v33  ;;  %5743 = vbcast.lane.b32.xlu1 %v12801_v61, 280  ;;  %18430 = vst [vmem:[#allocation131_spill] sm:$0xff] %v13174_v22  ;;  %v1142_v7 = vcombine.high %v13037_v20, %v13037_v20  ;;  %v13182_v30 = vrot.slane %v13034_v29, %v12425_v4 }
 0x178   :  { %18429 = vst [vmem:[#allocation130_spill] sm:$0xff] %v13169_v57  ;;  %18431 = vst [vmem:[#allocation132_spill] sm:$0xff] %v13176_v52  ;;  %v13185_v11 = vrot.slane %v1139_v13, %v12425_v4  ;;  %v1552_v37 = vadd.f32 %v12849_v50, %v13101_v33  ;;  %5739 = vbcast.lane.b32.xlu0 %v12801_v61, 272  ;;  %v13190_v57 = vpop.permute.xlu0 %5397  ;;  %v13194_v16 = vrot.slane %v13031_v18, %v12425_v4 }
 0x179   :  { %18432 = vst [vmem:[#allocation133_spill] sm:$0xff] %v13182_v30  ;;  %18434 = vst [vmem:[#allocation135_spill] sm:$0xff] %v13190_v57  ;;  %v1560_v45 = vadd.f32 %v12852_v15, %v13101_v33  ;;  %v13200_v29 = vadd.f32 %v12985_v42, %v12775_v46  ;;  %v1576_v13 = vadd.f32 %v12866_v0, %v13101_v33  ;;  %v9539_v30 = vmul.f32 -1.442695, %v1528_v47 }
 0x17a   :  { %18433 = vst [vmem:[#allocation134_spill] sm:$0xff] %v13185_v11  ;;  %18435 = vst [vmem:[#allocation136_spill] sm:$0xff] %v13194_v16  ;;  %v9531_v11 = vmul.f32 -1.442695, %v1520_v40  ;;  %v9547_v51 = vmul.f32 -1.442695, %v1536_v3  ;;  %v13206_v63 = vrot.slane %v13037_v20, %v12425_v4  ;;  %v1584_v18 = vadd.f32 %v12876_v32, %v13101_v33 }
 0x17b   :  { %18436 = vst [vmem:[#allocation137_spill] sm:$0xff] %v13200_v29  ;;  %v9555_v16 = vmul.f32 -1.442695, %v1544_v25  ;;  %10118 = vpow2.f32 %v9523_v41  ;;  %v13211_v2 = vrot.slane %v1141_v1, %v12425_v4  ;;  %v1592_v42 = vadd.f32 %v12879_v55, %v13101_v33  ;;  %5751 = vbcast.lane.b32.xlu1 %v12801_v61, 296  ;;  %v696_v41 = vpop.f32.mrb[28].mxu0  ;;  %v13222_v25 = vpop.permute.xlu1 %5385 }
 0x17c   :  { %18437 = vst [vmem:[#allocation138_spill] sm:$0xff] %v13206_v63  ;;  %v9563_v35 = vmul.f32 -1.442695, %v1552_v37  ;;  %10120 = vpow2.f32 %v9531_v11  ;;  %v13216_v47 = vrot.slane %v1140_v9, %v12425_v4  ;;  %v9571_v40 = vmul.f32 -1.442695, %v1560_v45  ;;  %5747 = vbcast.lane.b32.xlu0 %v12801_v61, 288  ;;  %v13229_v45 = vpop.permute.xlu0 %5405 }
 0x17d   :  { %18438 = vst [vmem:[#allocation139_spill] sm:$0xff] %v13211_v2  ;;  %10122 = vpow2.f32 %v9539_v30  ;;  %v1513_v20 = vadd.f32 %v12810_v58, %v13200_v29  ;;  %18440 = vst [vmem:[#allocation141_spill] sm:$0xff] %v13222_v25  ;;  %v13225_v3 = vrot.slane %v1142_v7, %v12425_v4  ;;  %v9587_v1 = vmul.f32 -1.442695, %v1576_v13  ;;  %v13243_v13 = vpop.f32.mrb[7].mxu1 }
 0x17e   :  { %18439 = vst [vmem:[#allocation140_spill] sm:$0xff] %v13216_v47  ;;  %10124 = vpow2.f32 %v9547_v51  ;;  %v1521_v11 = vadd.f32 %v12816_v62, %v13200_v29  ;;  %18442 = vst [vmem:[#allocation143_spill] sm:$0xff] %v13229_v45  ;;  %v9595_v30 = vmul.f32 -1.442695, %v1584_v18  ;;  %v1529_v9 = vadd.f32 %v12825_v10, %v13200_v29  ;;  %v424_v63 = vpop.f32.mrb[8].mxu1 }
 0x17f   :  { %18441 = vst [vmem:[#allocation142_spill] sm:$0xff] %v13225_v3  ;;  %10126 = vpow2.f32 %v9555_v16  ;;  %v13235_v37 = vadd.f32 %v13040_v24, %v12775_v46  ;;  %v9603_v41 = vmul.f32 -1.442695, %v1592_v42  ;;  %v1537_v7 = vadd.f32 %v12831_v38, %v13200_v29  ;;  %18445 = vst [vmem:[#allocation146_spill] sm:$0xff] %v13243_v13  ;;  %5759 = vbcast.lane.b32.xlu1 %v12801_v61, 312 }
 0x180   :  { %10128 = vpow2.f32 %v9563_v35  ;;  %v13241_v51 = vadd.f32 %v13082_v48, %v12775_v46  ;;  %v1545_v16 = vadd.f32 %v12834_v8, %v13200_v29  ;;  %v1553_v18 = vadd.f32 %v12849_v50, %v13200_v29  ;;  %5755 = vbcast.lane.b32.xlu0 %v12801_v61, 304 }
 0x181   :  { %18443 = vst [vmem:[#allocation144_spill] sm:$0xff] %v13235_v37  ;;  %10130 = vpow2.f32 %v9571_v40  ;;  %v9524_v24 = vmul.f32 -1.442695, %v1513_v20  ;;  %v1561_v35 = vadd.f32 %v12852_v15, %v13200_v29  ;;  %v1577_v42 = vadd.f32 %v12866_v0, %v13200_v29  ;;  %v13258_v20 = vpop.permute.xlu1 %5393 }
 0x182   :  { %18444 = vst [vmem:[#allocation145_spill] sm:$0xff] %v13241_v51  ;;  %10132 = vpow2.f32 %v9587_v1  ;;  %v9532_v3 = vmul.f32 -1.442695, %v1521_v11  ;;  %v1585_v48 = vadd.f32 %v12876_v32, %v13200_v29  ;;  %v1593_v40 = vadd.f32 %v12879_v55, %v13200_v29  ;;  %18446 = vst [vmem:[#allocation147_spill] sm:$0xff] %v13258_v20 }
 0x183   :  { %10134 = vpow2.f32 %v9595_v30  ;;  %v9540_v47 = vmul.f32 -1.442695, %v1529_v9  ;;  %v9548_v2 = vmul.f32 -1.442695, %v1537_v7  ;;  %v13264_v11 = vadd.f32 %v12777_v59, %v12928_v14  ;;  %v13266_v30 = vpop.f32.mrb[9].mxu1  ;;  %v13269_v9 = vpop.permute.xlu0 %5416 }
 0x184   :  { %10136 = vpow2.f32 %v9603_v41  ;;  %18448 = vst [vmem:[#allocation149_spill] sm:$0xff] %v13266_v30  ;;  %v13273_v63 = vadd.f32 %v12862_v12, %v13101_v33  ;;  %v9556_v23 = vmul.f32 -1.442695, %v1545_v16  ;;  %v13275_v52 = vmul.f32 -1.442695, %v1553_v18  ;;  %v427_v41 = vpop.f32.mrb[10].mxu1 }
 0x185   :  { %18447 = vst [vmem:[#allocation148_spill] sm:$0xff] %v13264_v11  ;;  %v10119_v13 = vpop.eup %10118  ;;  %10138 = vpow2.f32 %v9524_v24  ;;  %v13277_v59 = vmul.f32 -1.442695, %v1561_v35  ;;  %v13279_v54 = vmul.f32 -1.442695, %v1577_v42  ;;  %v1514_v18 = vadd.f32 %v12810_v58, %v13235_v37  ;;  %v13319_v20 = vpop.f32.mrb[11].mxu1 }
 0x186   :  { %v10121_v7 = vpop.eup %10120  ;;  %v3560_v1 = vadd.f32 1.0, %v10119_v13  ;;  %10140 = vpow2.f32 %v9532_v3  ;;  %v13281_v14 = vmul.f32 -1.442695, %v1585_v48  ;;  %v13283_v11 = vmul.f32 -1.442695, %v1593_v40  ;;  %18452 = vst [vmem:[#allocation153_spill] sm:$0xff] %v13319_v20 }
 0x187   :  { %v10123_v61 = vpop.eup %10122  ;;  %v3568_v30 = vadd.f32 1.0, %v10121_v7  ;;  %10142 = vpow2.f32 %v9540_v47  ;;  %v1522_v13 = vadd.f32 %v12816_v62, %v13235_v37  ;;  %v1530_v3 = vadd.f32 %v12825_v10, %v13235_v37  ;;  %v13295_v47 = vpop.permute.xlu1 %5401 }
 0x188   :  { %v10125_v45 = vpop.eup %10124  ;;  %v3576_v16 = vadd.f32 1.0, %v10123_v61  ;;  %10144 = vrcp.f32 %v3560_v1  ;;  %v1538_v42 = vadd.f32 %v12831_v38, %v13235_v37  ;;  %18449 = vst [vmem:[#allocation150_spill] sm:$0xff] %v13295_v47  ;;  %v1546_v1 = vadd.f32 %v12834_v8, %v13235_v37  ;;  %v13305_v7 = vpop.permute.xlu0 %5424 }
 0x189   :  { %v10127_v24 = vpop.eup %10126  ;;  %v3584_v35 = vadd.f32 1.0, %v10125_v45  ;;  %10146 = vrcp.f32 %v3568_v30  ;;  %v1554_v41 = vadd.f32 %v12849_v50, %v13235_v37  ;;  %v13301_v45 = vpop.f32.mrb[29].mxu0  ;;  %18451 = vst [vmem:[#allocation152_spill] sm:$0xff] %v13305_v7  ;;  %v1562_v61 = vadd.f32 %v12852_v15, %v13235_v37 }
 0x18a   :  { %v13293_v48 = vpop.eup %10128  ;;  %v3592_v40 = vadd.f32 1.0, %v10127_v24  ;;  %10148 = vrcp.f32 %v3576_v16  ;;  %18450 = vst [vmem:[#allocation151_spill] sm:$0xff] %v13301_v45  ;;  %v1578_v24 = vadd.f32 %v12866_v0, %v13235_v37  ;;  %v1586_v16 = vadd.f32 %v12876_v32, %v13235_v37  ;;  %v432_v6 = vpop.f32.mrb[12].mxu1 }
 0x18b   :  { %v13303_v30 = vpop.eup %10130  ;;  %10150 = vrcp.f32 %v3584_v35  ;;  %v1594_v5 = vadd.f32 %v12879_v55, %v13235_v37  ;;  %v13315_v57 = vmul.f32 -1.442695, %v1514_v18  ;;  %v13317_v4 = vmul.f32 -1.442695, %v1522_v13  ;;  %v699_v35 = vpop.f32.mrb[30].mxu0 }
 0x18c   :  { %v10133_v47 = vpop.eup %10132  ;;  %10152 = vrcp.f32 %v3592_v40  ;;  %v13321_v45 = vmul.f32 -1.442695, %v1530_v3  ;;  %v13323_v36 = vmul.f32 -1.442695, %v1538_v42  ;;  %v13325_v25 = vmul.f32 -1.442695, %v1546_v1  ;;  %v13335_v42 = vpop.permute.xlu1 %5409 }
 0x18d   :  { %v10135_v7 = vpop.eup %10134  ;;  %v3624_v31 = vadd.f32 1.0, %v10133_v47  ;;  %10154 = vpow2.f32 %v9548_v2  ;;  %v13327_v18 = vmul.f32 -1.442695, %v1554_v41  ;;  %v13329_v20 = vmul.f32 -1.442695, %v1562_v61  ;;  %v13333_v2 = vpop.f32.mrb[31].mxu0 }
 0x18e   :  { %v10137_v17 = vpop.eup %10136  ;;  %v3632_v40 = vadd.f32 1.0, %v10135_v7  ;;  %10156 = vpow2.f32 %v9556_v23  ;;  %v13331_v35 = vmul.f32 -1.442695, %v1578_v24  ;;  %18454 = vst [vmem:[#allocation155_spill] sm:$0xff] %v13333_v2  ;;  %18455 = vst [vmem:[#allocation156_spill] sm:$0xff] %v13335_v42  ;;  %v1569_v6 = vadd.f32 %v12862_v12, %v13200_v29  ;;  %v13343_v1 = vpop.f32.mrb[13].mxu1 }
 0x18f   :  { %v10139_v13 = vpop.eup %10138  ;;  %v3640_v60 = vadd.f32 1.0, %v10137_v17  ;;  %10158 = vrcp.f32 %v3624_v31  ;;  %v13339_v23 = vmul.f32 -1.442695, %v1586_v16  ;;  %v13341_v47 = vmul.f32 -1.442695, %v1594_v5  ;;  %18458 = vst [vmem:[#allocation159_spill] sm:$0xff] %v13343_v1 }
 0x190   :  { %18453 = vst [vmem:[#allocation154_spill] sm:$0xff] %v13331_v35  ;;  %v10141_v3 = vpop.eup %10140  ;;  %10160 = vrcp.f32 %v3632_v40  ;;  %v1515_v31 = vadd.f32 %v12810_v58, %v13241_v51  ;;  %v1523_v41 = vadd.f32 %v12816_v62, %v13241_v51  ;;  %v1531_v7 = vadd.f32 %v12825_v10, %v13241_v51  ;;  %v435_v61 = vpop.f32.mrb[14].mxu1 }
 0x191   :  { %18456 = vst [vmem:[#allocation157_spill] sm:$0xff] %v13339_v23  ;;  %18457 = vst [vmem:[#allocation158_spill] sm:$0xff] %v13341_v47  ;;  %v10143_v17 = vpop.eup %10142  ;;  %10162 = vrcp.f32 %v3640_v60  ;;  %v13351_v40 = vpop.permute.xlu0 %5432  ;;  %v1539_v5 = vadd.f32 %v12831_v38, %v13241_v51  ;;  %v1547_v60 = vadd.f32 %v12834_v8, %v13241_v51  ;;  %v1555_v16 = vadd.f32 %v12849_v50, %v13241_v51 }
 0x192   :  { %v10145_v24 = vpop.eup %10144  ;;  %18459 = vst [vmem:[#allocation160_spill] sm:$0xff] %v13351_v40  ;;  %10164 = vpow2.f32 %v13275_v52  ;;  %v3561_v42 = vadd.f32 1.0, %v10139_v13  ;;  %v1563_v61 = vadd.f32 %v12852_v15, %v13241_v51  ;;  %v1579_v40 = vadd.f32 %v12866_v0, %v13241_v51  ;;  %v13375_v35 = vpop.permute.xlu1 %5420 }
 0x193   :  { %v10147_v1 = vpop.eup %10146  ;;  %10166 = vpow2.f32 %v13277_v59  ;;  %v3569_v2 = vadd.f32 1.0, %v10141_v3  ;;  %v1587_v22 = vadd.f32 %v12876_v32, %v13241_v51  ;;  %v1595_v47 = vadd.f32 %v12879_v55, %v13241_v51 }
 0x194   :  { %v10149_v52 = vpop.eup %10148  ;;  %10168 = vpow2.f32 %v13279_v54  ;;  %v3577_v59 = vadd.f32 1.0, %v10143_v17  ;;  %v13371_v13 = vmul.f32 -1.442695, %v1515_v31  ;;  %v13373_v23 = vmul.f32 -1.442695, %v1523_v41 }
 0x195   :  { %v10151_v49 = vpop.eup %10150  ;;  %10170 = vpow2.f32 %v13281_v14  ;;  %v13378_v54 = vmul.f32 -1.442695, %v1531_v7  ;;  %v13380_v3 = vmul.f32 -1.442695, %v1539_v5  ;;  %v1570_v55 = vadd.f32 %v12862_v12, %v13235_v37 }
 0x196   :  { %18460 = vst [vmem:[#allocation161_spill] sm:$0xff] %v13373_v23  ;;  %v10153_v39 = vpop.eup %10152  ;;  %10172 = vpow2.f32 %v13283_v11  ;;  %v13384_v14 = vmul.f32 -1.442695, %v1547_v60  ;;  %v13386_v17 = vmul.f32 -1.442695, %v1555_v16  ;;  %v1571_v31 = vadd.f32 %v12862_v12, %v13241_v51  ;;  %v13390_v23 = vpop.permute.xlu0 %5440 }
 0x197   :  { %18461 = vst [vmem:[#allocation162_spill] sm:$0xff] %v13380_v3  ;;  %v10155_v32 = vpop.eup %10154  ;;  %10174 = vrcp.f32 %v3561_v42  ;;  %18464 = vst [vmem:[#allocation165_spill] sm:$0xff] %v13390_v23  ;;  %v13392_v7 = vmul.f32 -1.442695, %v1579_v40  ;;  %v13394_v5 = vmul.f32 -1.442695, %v1587_v22 }
 0x198   :  { %18462 = vst [vmem:[#allocation163_spill] sm:$0xff] %v13384_v14  ;;  %18463 = vst [vmem:[#allocation164_spill] sm:$0xff] %v13386_v17  ;;  %v10157_v41 = vpop.eup %10156  ;;  %v3585_v11 = vadd.f32 1.0, %v10155_v32  ;;  %10176 = vrcp.f32 %v3569_v2  ;;  %v13396_v42 = vmul.f32 -1.442695, %v1595_v47  ;;  %v13410_v40 = vadd.f32 1.0, %v13293_v48 }
 0x199   :  { %v10159_v3 = vpop.eup %10158  ;;  %v3593_v37 = vadd.f32 1.0, %v10157_v41  ;;  %10178 = vrcp.f32 %v3577_v59  ;;  %v13398_v60 = vmul.f32 -1.442695, %v1563_v61  ;;  %v13401_v17 = vmul.f32 -1.442695, %v13273_v63  ;;  %v13415_v59 = vpop.permute.xlu1 %5428 }
 0x19a   :  { %v10161_v16 = vpop.eup %10160  ;;  %10180 = vrcp.f32 %v3585_v11  ;;  %v13403_v14 = vmul.f32 -1.442695, %v1569_v6  ;;  %v13405_v32 = vmul.f32 -1.442695, %v1570_v55  ;;  %v13407_v22 = vmul.f32 -1.442695, %v1571_v31 }
 0x19b   :  { %v10163_v2 = vpop.eup %10162  ;;  %10182 = vrcp.f32 %v3593_v37  ;;  %v13413_v47 = vadd.f32 1.0, %v13303_v30  ;;  %v13419_v63 = vmul.f32 %v10145_v24, %v12611_v19  ;;  %v13422_v55 = vmul.f32 %v10147_v1, %v12630_v27  ;;  %v9362_v19 = vld [vmem:[%s18187_s8] sm:$0x1]  ;;  %v5452_v1 = vpop.permute.xlu0 %5451 }
 0x19c   :  { %v10165_v61 = vpop.eup %10164  ;;  %10184 = vpow2.f32 %v13315_v57  ;;  %v13425_v37 = vmul.f32 %v10149_v52, %v12646_v34  ;;  %v13429_v48 = vmul.f32 %v10151_v49, %v12662_v43  ;;  %v13432_v30 = vmul.f32 %v10153_v39, %v12680_v53 }
 0x19d   :  { %18465 = vst [vmem:[#allocation166_spill] sm:$0xff] %v13419_v63  ;;  %18466 = vst [vmem:[#allocation167_spill] sm:$0xff] %v13422_v55  ;;  %v10167_v6 = vpop.eup %10166  ;;  %10186 = vpow2.f32 %v13317_v4  ;;  %v1601_v27 = vadd.f32 %v12888_v44, %v13200_v29  ;;  %v13440_v34 = vmul.f32 %v10159_v3, %v13042_v56  ;;  %v1600_v4 = vadd.f32 %v12888_v44, %v13101_v33  ;;  %v18513_v33 = vld [vmem:[#allocation31_spill] sm:$0xff] }
 0x19e   :  { %18467 = vst [vmem:[#allocation168_spill] sm:$0xff] %v13425_v37  ;;  %18468 = vst [vmem:[#allocation169_spill] sm:$0xff] %v13429_v48  ;;  %v10169_v57 = vpop.eup %10168  ;;  %10188 = vpow2.f32 %v13321_v45  ;;  %v13447_v39 = vadd.f32 %v13141_v26, %v12775_v46  ;;  %v13450_v49 = vmul.f32 %v10161_v16, %v13269_v9  ;;  %v13452_v53 = vmul.f32 %v10163_v2, %v5452_v1  ;;  %v13464_v16 = vpop.permute.xlu1 %5436 }
 0x19f   :  { %18469 = vst [vmem:[#allocation170_spill] sm:$0xff] %v13432_v30  ;;  %18470 = vst [vmem:[#allocation171_spill] sm:$0xff] %v13440_v34  ;;  %v10171_v43 = vpop.eup %10170  ;;  %v3625_v24 = vadd.f32 1.0, %v10169_v57  ;;  %10190 = vpow2.f32 %v13323_v36  ;;  %v13456_v45 = vadd.f32 1.0, %v10165_v61  ;;  %v13458_v3 = vadd.f32 1e-05, %v9362_v19 }
 0x1a0   :  { %18471 = vst [vmem:[#allocation172_spill] sm:$0xff] %v13447_v39  ;;  %18472 = vst [vmem:[#allocation173_spill] sm:$0xff] %v13450_v49  ;;  %v10173_v56 = vpop.eup %10172  ;;  %v3633_v52 = vadd.f32 1.0, %v10171_v43  ;;  %10192 = vpow2.f32 %v13325_v25  ;;  %v13460_v41 = vadd.f32 1.0, %v10167_v6  ;;  %v13462_v9 = vmul.f32 -1.442695, %v1601_v27 }
 0x1a1   :  { %18473 = vst [vmem:[#allocation174_spill] sm:$0xff] %v13452_v53  ;;  %v10175_v31 = vpop.eup %10174  ;;  %v3641_v26 = vadd.f32 1.0, %v10173_v56  ;;  %10194 = vrcp.f32 %v3625_v24  ;;  %18474 = vst [vmem:[#allocation175_spill] sm:$0xff] %v13464_v16  ;;  %v13466_v36 = vmul.f32 -1.442695, %v1600_v4  ;;  %v1516_v25 = vadd.f32 %v12810_v58, %v13447_v39  ;;  %v18480_v16 = vld [vmem:[#allocation77_spill] sm:$0xff] }
 0x1a2   :  { %v10177_v11 = vpop.eup %10176  ;;  %10196 = vrcp.f32 %v3633_v52  ;;  %v1524_v2 = vadd.f32 %v12816_v62, %v13447_v39  ;;  %v1532_v6 = vadd.f32 %v12825_v10, %v13447_v39  ;;  %v1540_v19 = vadd.f32 %v12831_v38, %v13447_v39  ;;  %v18483_v49 = vld [vmem:[#allocation46_spill] sm:$0xff] }
 0x1a3   :  { %v10179_v61 = vpop.eup %10178  ;;  %10198 = vrcp.f32 %v3641_v26  ;;  %v1548_v27 = vadd.f32 %v12834_v8, %v13447_v39  ;;  %v13480_v1 = vmul.f32 %v10175_v31, %v12615_v21  ;;  %v1556_v4 = vadd.f32 %v12849_v50, %v13447_v39  ;;  %v18477_v31 = vld [vmem:[#allocation154_spill] sm:$0xff]  ;;  %v18478_v26 = vld [vmem:[#allocation39_spill] sm:$0xff] }
 0x1a4   :  { %v10181_v57 = vpop.eup %10180  ;;  %10200 = vpow2.f32 %v13327_v18  ;;  %v1564_v43 = vadd.f32 %v12852_v15, %v13447_v39  ;;  %v13488_v56 = vmul.f32 %v10177_v11, %v12632_v28  ;;  %v1572_v52 = vadd.f32 %v12862_v12, %v13447_v39  ;;  %v18482_v11 = vld [vmem:[#allocation157_spill] sm:$0xff] }
 0x1a5   :  { %18475 = vst [vmem:[#allocation176_spill] sm:$0xff] %v13480_v1  ;;  %v10183_v24 = vpop.eup %10182  ;;  %10202 = vpow2.f32 %v13329_v20  ;;  %v1580_v18 = vadd.f32 %v12866_v0, %v13447_v39  ;;  %v13496_v23 = vmul.f32 %v10179_v61, %v18478_v26  ;;  %v1588_v1 = vadd.f32 %v18480_v16, %v13447_v39  ;;  %v18481_v20 = vld [vmem:[#allocation78_spill] sm:$0xff] }
 0x1a6   :  { %18476 = vst [vmem:[#allocation177_spill] sm:$0xff] %v13488_v56  ;;  %v10185_v21 = vpop.eup %10184  ;;  %10204 = vpow2.f32 %v18477_v31  ;;  %v1596_v53 = vadd.f32 %v18481_v20, %v13447_v39  ;;  %v13504_v34 = vmul.f32 %v10181_v57, %v18483_v49  ;;  %v13506_v30 = vmul.f32 -1.442695, %v1516_v25  ;;  %v13508_v31 = vpop.permute.xlu1 %5444  ;;  %v18486_v61 = vld [vmem:[#allocation158_spill] sm:$0xff] }
 0x1a7   :  { %18479 = vst [vmem:[#allocation154_spill] sm:$0xff] %v13496_v23  ;;  %v10187_v28 = vpop.eup %10186  ;;  %10206 = vpow2.f32 %v18482_v11  ;;  %v3562_v56 = vadd.f32 1.0, %v10185_v21  ;;  %18485 = vst [vmem:[#allocation77_spill] sm:$0xff] %v13508_v31  ;;  %v13511_v23 = vmul.f32 -1.442695, %v1524_v2  ;;  %v18491_v31 = vld [vmem:[#allocation131_spill] sm:$0xff] }
 0x1a8   :  { %18484 = vst [vmem:[#allocation39_spill] sm:$0xff] %v13504_v34  ;;  %v10189_v48 = vpop.eup %10188  ;;  %10208 = vpow2.f32 %v18486_v61  ;;  %v3570_v26 = vadd.f32 1.0, %v10187_v28  ;;  %v13513_v37 = vmul.f32 -1.442695, %v1532_v6  ;;  %v13515_v11 = vmul.f32 -1.442695, %v1540_v19 }
 0x1a9   :  { %v10191_v55 = vpop.eup %10190  ;;  %v3578_v63 = vadd.f32 1.0, %v10189_v48  ;;  %10210 = vrcp.f32 %v3562_v56  ;;  %v13517_v21 = vmul.f32 -1.442695, %v1548_v27  ;;  %v13519_v57 = vmul.f32 -1.442695, %v1556_v4  ;;  %v18495_v27 = vld [vmem:[#allocation53_spill] sm:$0xff] }
 0x1aa   :  { %18487 = vst [vmem:[#allocation78_spill] sm:$0xff] %v13513_v37  ;;  %18488 = vst [vmem:[#allocation157_spill] sm:$0xff] %v13515_v11  ;;  %v10193_v49 = vpop.eup %10192  ;;  %v3586_v25 = vadd.f32 1.0, %v10191_v55  ;;  %10212 = vrcp.f32 %v3570_v26  ;;  %v13523_v61 = vadd.f32 %v18491_v31, %v12775_v46  ;;  %v13525_v6 = vmul.f32 -1.442695, %v1564_v43  ;;  %v13536_v26 = vpop.f32.mrb[15].mxu1 }
 0x1ab   :  { %18489 = vst [vmem:[#allocation46_spill] sm:$0xff] %v13517_v21  ;;  %18490 = vst [vmem:[#allocation158_spill] sm:$0xff] %v13519_v57  ;;  %v10195_v2 = vpop.eup %10194  ;;  %v3594_v28 = vadd.f32 1.0, %v10193_v49  ;;  %10214 = vrcp.f32 %v3578_v63  ;;  %v13527_v48 = vmul.f32 -1.442695, %v1572_v52  ;;  %v13530_v56 = vmul.f32 %v10183_v24, %v18495_v27  ;;  %v18500_v34 = vld [vmem:[#allocation141_spill] sm:$0xff] }
 0x1ac   :  { %18492 = vst [vmem:[#allocation131_spill] sm:$0xff] %v13523_v61  ;;  %18493 = vst [vmem:[#allocation178_spill] sm:$0xff] %v13525_v6  ;;  %v10197_v19 = vpop.eup %10196  ;;  %10216 = vrcp.f32 %v3586_v25  ;;  %v13532_v55 = vmul.f32 -1.442695, %v1580_v18  ;;  %v13534_v4 = vmul.f32 -1.442695, %v1588_v1  ;;  %v13539_v57 = vmul.f32 %v10195_v2, %v18500_v34  ;;  %v5456_v18 = vpop.permute.xlu1 %5455 }
 0x1ad   :  { %18494 = vst [vmem:[#allocation179_spill] sm:$0xff] %v13527_v48  ;;  %18496 = vst [vmem:[#allocation53_spill] sm:$0xff] %v13530_v56  ;;  %v10199_v31 = vpop.eup %10198  ;;  %10218 = vrcp.f32 %v3594_v28  ;;  %v13541_v63 = vmul.f32 -1.442695, %v1596_v53  ;;  %v13545_v43 = vadd.f32 %v12888_v44, %v13241_v51  ;;  %v13547_v52 = vpop.f32.mrb[16].mxu1  ;;  %v13550_v1 = vmul.f32 %v10197_v19, %v13375_v35  ;;  %v18505_v28 = vld [vmem:[#allocation161_spill] sm:$0xff] }
 0x1ae   :  { %18497 = vst [vmem:[#allocation180_spill] sm:$0xff] %v13532_v55  ;;  %18498 = vst [vmem:[#allocation181_spill] sm:$0xff] %v13534_v4  ;;  %v10201_v24 = vpop.eup %10200  ;;  %10220 = vpow2.f32 %v13371_v13  ;;  %v1517_v34 = vadd.f32 %v12810_v58, %v13523_v61  ;;  %v1525_v53 = vadd.f32 %v12816_v62, %v13523_v61  ;;  %v739_v49 = vpop.f32.mrb[17].mxu1  ;;  %v13557_v2 = vmul.f32 %v10199_v31, %v5456_v18  ;;  %v18509_v6 = vld [vmem:[#allocation25_spill] sm:$0xff]  ;;  %v18512_v37 = vld [vmem:[#allocation164_spill] sm:$0xff] }
 0x1af   :  { %18499 = vst [vmem:[#allocation182_spill] sm:$0xff] %v13536_v26  ;;  %18501 = vst [vmem:[#allocation141_spill] sm:$0xff] %v13539_v57  ;;  %v10203_v25 = vpop.eup %10202  ;;  %10222 = vpow2.f32 %v18505_v28  ;;  %v1533_v27 = vadd.f32 %v12825_v10, %v13523_v61  ;;  %v1541_v35 = vadd.f32 %v12831_v38, %v13523_v61  ;;  %v13565_v13 = vadd.f32 1.0, %v10201_v24  ;;  %v18506_v28 = vld [vmem:[#allocation162_spill] sm:$0xff]  ;;  %v18507_v24 = vld [vmem:[#allocation163_spill] sm:$0xff] }
 0x1b0   :  { %18502 = vst [vmem:[#allocation183_spill] sm:$0xff] %v13541_v63  ;;  %18503 = vst [vmem:[#allocation184_spill] sm:$0xff] %v13550_v1  ;;  %v10205_v19 = vpop.eup %10204  ;;  %10224 = vpow2.f32 %v13378_v54  ;;  %v1549_v26 = vadd.f32 %v12834_v8, %v13523_v61  ;;  %v1557_v31 = vadd.f32 %v12849_v50, %v13523_v61  ;;  %v1573_v1 = vadd.f32 %v12862_v12, %v13523_v61 }
 0x1b1   :  { %18504 = vst [vmem:[#allocation185_spill] sm:$0xff] %v13557_v2  ;;  %v10207_v18 = vpop.eup %10206  ;;  %v3626_v49 = vadd.f32 1.0, %v10205_v19  ;;  %10226 = vpow2.f32 %v18506_v28  ;;  %v1565_v2 = vadd.f32 %v12852_v15, %v13523_v61  ;;  %v13577_v56 = vadd.f32 1.0, %v10203_v25 }
 0x1b2   :  { %v10209_v57 = vpop.eup %10208  ;;  %v3634_v54 = vadd.f32 1.0, %v10207_v18  ;;  %10228 = vpow2.f32 %v18507_v24  ;;  %v1581_v63 = vadd.f32 %v12866_v0, %v13523_v61  ;;  %v1589_v19 = vadd.f32 %v18480_v16, %v13523_v61 }
 0x1b3   :  { %v10211_v51 = vpop.eup %10210  ;;  %v3642_v4 = vadd.f32 1.0, %v10209_v57  ;;  %10230 = vrcp.f32 %v3626_v49  ;;  %v1597_v28 = vadd.f32 %v18481_v20, %v13523_v61  ;;  %v13585_v48 = vmul.f32 -1.442695, %v1517_v34 }
 0x1b4   :  { %v10213_v55 = vpop.eup %10212  ;;  %10232 = vrcp.f32 %v3634_v54  ;;  %v13587_v18 = vmul.f32 -1.442695, %v1525_v53  ;;  %v13589_v25 = vmul.f32 -1.442695, %v1533_v27  ;;  %v13592_v21 = vmul.f32 %v10211_v51, %v18509_v6 }
 0x1b5   :  { %v10215_v24 = vpop.eup %10214  ;;  %10234 = vrcp.f32 %v3642_v4  ;;  %v13594_v57 = vmul.f32 -1.442695, %v1541_v35  ;;  %v13596_v49 = vmul.f32 -1.442695, %v1549_v26  ;;  %v13600_v54 = vmul.f32 %v10213_v55, %v18513_v33  ;;  %v18516_v4 = vld [vmem:[#allocation37_spill] sm:$0xff]  ;;  %v18521_v55 = vld [vmem:[#allocation144_spill] sm:$0xff] }
 0x1b6   :  { %18508 = vst [vmem:[#allocation161_spill] sm:$0xff] %v13589_v25  ;;  %v10217_v11 = vpop.eup %10216  ;;  %10236 = vpow2.f32 %v18512_v37  ;;  %v13602_v34 = vmul.f32 -1.442695, %v1557_v31  ;;  %v13604_v53 = vmul.f32 -1.442695, %v1565_v2  ;;  %v13608_v51 = vmul.f32 %v10215_v24, %v18516_v4  ;;  %v18522_v24 = vld [vmem:[#allocation43_spill] sm:$0xff] }
 0x1b7   :  { %18510 = vst [vmem:[#allocation162_spill] sm:$0xff] %v13594_v57  ;;  %18511 = vst [vmem:[#allocation163_spill] sm:$0xff] %v13596_v49  ;;  %v10219_v27 = vpop.eup %10218  ;;  %10238 = vpow2.f32 %v13392_v7  ;;  %v13610_v6 = vmul.f32 -1.442695, %v1573_v1  ;;  %v13612_v26 = vmul.f32 -1.442695, %v1581_v63  ;;  %v1602_v2 = vadd.f32 %v12888_v44, %v18521_v55 }
 0x1b8   :  { %18514 = vst [vmem:[#allocation25_spill] sm:$0xff] %v13602_v34  ;;  %18515 = vst [vmem:[#allocation164_spill] sm:$0xff] %v13604_v53  ;;  %v10221_v35 = vpop.eup %10220  ;;  %10240 = vpow2.f32 %v13394_v5  ;;  %v13615_v37 = vmul.f32 -1.442695, %v1589_v19  ;;  %v13617_v33 = vmul.f32 -1.442695, %v1597_v28  ;;  %v13623_v4 = vmul.f32 %v10217_v11, %v18522_v24 }
 0x1b9   :  { %18517 = vst [vmem:[#allocation31_spill] sm:$0xff] %v13610_v6  ;;  %18518 = vst [vmem:[#allocation37_spill] sm:$0xff] %v13612_v26  ;;  %v10223_v31 = vpop.eup %10222  ;;  %10242 = vpow2.f32 %v13396_v42  ;;  %v3563_v7 = vadd.f32 1.0, %v10221_v35  ;;  %v1605_v63 = vadd.f32 %v12888_v44, %v13523_v61  ;;  %v1604_v5 = vadd.f32 %v12888_v44, %v13447_v39  ;;  %v18524_v19 = vld [vmem:[#allocation151_spill] sm:$0xff]  ;;  %v18526_v35 = vld [vmem:[#allocation50_spill] sm:$0xff] }
 0x1ba   :  { %18519 = vst [vmem:[#allocation186_spill] sm:$0xff] %v13615_v37  ;;  %18520 = vst [vmem:[#allocation187_spill] sm:$0xff] %v13617_v33  ;;  %v10225_v1 = vpop.eup %10224  ;;  %v3571_v26 = vadd.f32 1.0, %v10223_v31  ;;  %10244 = vpow2.f32 %v13398_v60  ;;  %v13632_v28 = vadd.f32 %v18524_v19, %v12775_v46  ;;  %v13635_v11 = vmul.f32 %v10219_v27, %v18526_v35 }
 0x1bb   :  { %18523 = vst [vmem:[#allocation43_spill] sm:$0xff] %v13623_v4  ;;  %v10227_v33 = vpop.eup %10226  ;;  %v3579_v42 = vadd.f32 1.0, %v10225_v1  ;;  %10246 = vrcp.f32 %v3563_v7  ;;  %v13638_v24 = vmul.f32 -1.442695, %v13545_v43  ;;  %v13640_v60 = vmul.f32 -1.442695, %v1602_v2  ;;  %v5460_v2 = vpop.permute.xlu0 %5459 }
 0x1bc   :  { %18525 = vst [vmem:[#allocation151_spill] sm:$0xff] %v13632_v28  ;;  %18527 = vst [vmem:[#allocation50_spill] sm:$0xff] %v13635_v11  ;;  %v10229_v37 = vpop.eup %10228  ;;  %v3587_v31 = vadd.f32 1.0, %v10227_v33  ;;  %10248 = vrcp.f32 %v3571_v26  ;;  %v13642_v6 = vmul.f32 -1.442695, %v1605_v63  ;;  %v1518_v7 = vadd.f32 %v12810_v58, %v13632_v28  ;;  %v18531_v1 = vld [vmem:[#allocation119_spill] sm:$0xff] }
 0x1bd   :  { %18528 = vst [vmem:[#allocation188_spill] sm:$0xff] %v13640_v60  ;;  %v10231_v53 = vpop.eup %10230  ;;  %10250 = vrcp.f32 %v3579_v42  ;;  %v3595_v19 = vadd.f32 1.0, %v10229_v37  ;;  %v13644_v34 = vmul.f32 -1.442695, %v1604_v5  ;;  %v1526_v43 = vadd.f32 %v12816_v62, %v13632_v28  ;;  %v18533_v37 = vld [vmem:[#allocation152_spill] sm:$0xff] }
 0x1be   :  { %18529 = vst [vmem:[#allocation189_spill] sm:$0xff] %v13642_v6  ;;  %v10233_v27 = vpop.eup %10232  ;;  %v13649_v35 = vmul.f32 %v10231_v53, %v18531_v1  ;;  %10252 = vpow2.f32 %v13401_v17  ;;  %v1534_v26 = vadd.f32 %v12825_v10, %v13632_v28  ;;  %v1542_v5 = vadd.f32 %v12831_v38, %v13632_v28 }
 0x1bf   :  { %18530 = vst [vmem:[#allocation190_spill] sm:$0xff] %v13644_v34  ;;  %v10235_v33 = vpop.eup %10234  ;;  %v13657_v63 = vmul.f32 %v10233_v27, %v18533_v37  ;;  %10254 = vpow2.f32 %v13403_v14  ;;  %v1550_v53 = vadd.f32 %v12834_v8, %v13632_v28  ;;  %v1558_v1 = vadd.f32 %v12849_v50, %v13632_v28 }
 0x1c0   :  { %18532 = vst [vmem:[#allocation119_spill] sm:$0xff] %v13649_v35  ;;  %v10237_v17 = vpop.eup %10236  ;;  %v13664_v42 = vmul.f32 %v10235_v33, %v5460_v2  ;;  %10256 = vpow2.f32 %v13405_v32  ;;  %v1566_v27 = vadd.f32 %v12852_v15, %v13632_v28  ;;  %v1574_v34 = vadd.f32 %v12862_v12, %v13632_v28 }
 0x1c1   :  { %18534 = vst [vmem:[#allocation152_spill] sm:$0xff] %v13657_v63  ;;  %v10239_v37 = vpop.eup %10238  ;;  %10258 = vpow2.f32 %v13407_v22  ;;  %v3603_v14 = vadd.f32 1.0, %v10237_v17  ;;  %v1582_v6 = vadd.f32 %v12866_v0, %v13632_v28  ;;  %v1590_v32 = vadd.f32 %v18480_v16, %v13632_v28 }
 0x1c2   :  { %18535 = vst [vmem:[#allocation191_spill] sm:$0xff] %v13664_v42  ;;  %v10241_v33 = vpop.eup %10240  ;;  %v3627_v2 = vadd.f32 1.0, %v10239_v37  ;;  %10260 = vrcp.f32 %v3587_v31  ;;  %v1598_v60 = vadd.f32 %v18481_v20, %v13632_v28  ;;  %v13680_v22 = vmul.f32 -1.442695, %v1518_v7 }
 0x1c3   :  { %v10243_v42 = vpop.eup %10242  ;;  %v3635_v63 = vadd.f32 1.0, %v10241_v33  ;;  %10262 = vrcp.f32 %v3595_v19  ;;  %v13682_v17 = vmul.f32 -1.442695, %v1526_v43  ;;  %v13684_v57 = vmul.f32 -1.442695, %v1534_v26  ;;  %v18542_v19 = vld [vmem:[#allocation26_spill] sm:$0xff] }
 0x1c4   :  { %18536 = vst [vmem:[#allocation192_spill] sm:$0xff] %v13680_v22  ;;  %v10245_v35 = vpop.eup %10244  ;;  %v3643_v49 = vadd.f32 1.0, %v10243_v42  ;;  %10264 = vrcp.f32 %v3627_v2  ;;  %v13686_v37 = vmul.f32 -1.442695, %v1542_v5  ;;  %v13688_v25 = vmul.f32 -1.442695, %v1550_v53 }
 0x1c5   :  { %18537 = vst [vmem:[#allocation193_spill] sm:$0xff] %v13682_v17  ;;  %18538 = vst [vmem:[#allocation194_spill] sm:$0xff] %v13684_v57  ;;  %v10247_v31 = vpop.eup %10246  ;;  %10266 = vrcp.f32 %v3635_v63  ;;  %v3611_v11 = vadd.f32 1.0, %v10245_v35  ;;  %v13690_v4 = vmul.f32 -1.442695, %v1558_v1  ;;  %v18547_v35 = vld [vmem:[#allocation155_spill] sm:$0xff] }
 0x1c6   :  { %18539 = vst [vmem:[#allocation195_spill] sm:$0xff] %v13686_v37  ;;  %18540 = vst [vmem:[#allocation196_spill] sm:$0xff] %v13688_v25  ;;  %v10249_v33 = vpop.eup %10248  ;;  %10268 = vrcp.f32 %v3643_v49  ;;  %v13693_v7 = vmul.f32 %v10247_v31, %v18542_v19  ;;  %v13695_v43 = vmul.f32 -1.442695, %v1566_v27  ;;  %v13697_v42 = vmul.f32 -1.442695, %v1574_v34 }
 0x1c7   :  { %18541 = vst [vmem:[#allocation197_spill] sm:$0xff] %v13690_v4  ;;  %v10251_v26 = vpop.eup %10250  ;;  %10270 = vrcp.f32 %v13410_v40  ;;  %v13700_v5 = vmul.f32 -1.442695, %v1582_v6  ;;  %v13702_v63 = vmul.f32 -1.442695, %v1590_v32  ;;  %v13706_v53 = vadd.f32 %v18547_v35, %v12775_v46  ;;  %v18549_v49 = vld [vmem:[#allocation32_spill] sm:$0xff] }
 0x1c8   :  { %18543 = vst [vmem:[#allocation26_spill] sm:$0xff] %v13695_v43  ;;  %18544 = vst [vmem:[#allocation198_spill] sm:$0xff] %v13697_v42  ;;  %v10253_v1 = vpop.eup %10252  ;;  %10272 = vrcp.f32 %v13456_v45  ;;  %v13710_v2 = vmul.f32 %v10249_v33, %v18549_v49  ;;  %v18550_v27 = vld [vmem:[#allocation41_spill] sm:$0xff]  ;;  %v13715_v31 = vmul.f32 -1.442695, %v1598_v60  ;;  %v13722_v46 = vadd.f32 %v12888_v44, %v13632_v28  ;;  %v18606_v25 = vld [vmem:[#allocation179_spill] sm:$0xff] }
 0x1c9   :  { %18545 = vst [vmem:[#allocation199_spill] sm:$0xff] %v13700_v5  ;;  %18546 = vst [vmem:[#allocation200_spill] sm:$0xff] %v13702_v63  ;;  %v13713_v34 = vmul.f32 %v10251_v26, %v18550_v27  ;;  %v10255_v40 = vpop.eup %10254  ;;  %v3616_v6 = vadd.f32 1.0, %v10253_v1  ;;  %10274 = vrcp.f32 %v13565_v13  ;;  %v1519_v32 = vadd.f32 %v12810_v58, %v13706_v53  ;;  %v5464_v27 = vpop.permute.xlu1 %5463  ;;  %v18596_v63 = vld [vmem:[#allocation46_spill] sm:$0xff] }
 0x1ca   :  { %18548 = vst [vmem:[#allocation155_spill] sm:$0xff] %v13706_v53  ;;  %18551 = vst [vmem:[#allocation32_spill] sm:$0xff] %v13715_v31  ;;  %v10257_v45 = vpop.eup %10256  ;;  %v3617_v19 = vadd.f32 1.0, %v10255_v40  ;;  %10276 = vrcp.f32 %v3603_v14  ;;  %v1527_v33 = vadd.f32 %v12816_v62, %v13706_v53  ;;  %v1535_v60 = vadd.f32 %v12825_v10, %v13706_v53  ;;  %v18607_v37 = vld [vmem:[#allocation174_spill] sm:$0xff] }
 0x1cb   :  { %v10259_v26 = vpop.eup %10258  ;;  %v3618_v35 = vadd.f32 1.0, %v10257_v45  ;;  %10278 = vrcp.f32 %v13413_v47  ;;  %v1543_v58 = vadd.f32 %v12831_v38, %v13706_v53  ;;  %v1551_v13 = vadd.f32 %v12834_v8, %v13706_v53  ;;  %v18552_v47 = vld [vmem:[#allocation48_spill] sm:$0xff]  ;;  %v18553_v45 = vld [vmem:[#allocation55_spill] sm:$0xff] }
 0x1cc   :  { %v10261_v1 = vpop.eup %10260  ;;  %v3619_v49 = vadd.f32 1.0, %v10259_v26  ;;  %10280 = vrcp.f32 %v13460_v41  ;;  %v1559_v62 = vadd.f32 %v12849_v50, %v13706_v53  ;;  %v1567_v10 = vadd.f32 %v12852_v15, %v13706_v53 }
 0x1cd   :  { %v10263_v14 = vpop.eup %10262  ;;  %10282 = vrcp.f32 %v13577_v56  ;;  %v13740_v40 = vmul.f32 %v10261_v1, %v18552_v47  ;;  %v1575_v38 = vadd.f32 %v12862_v12, %v13706_v53  ;;  %v1583_v8 = vadd.f32 %v12866_v0, %v13706_v53  ;;  %v18554_v1 = vld [vmem:[#allocation147_spill] sm:$0xff] }
 0x1ce   :  { %v10265_v41 = vpop.eup %10264  ;;  %10284 = vrcp.f32 %v3611_v11  ;;  %v13747_v50 = vmul.f32 %v10263_v14, %v18553_v45  ;;  %v1591_v15 = vadd.f32 %v18480_v16, %v13706_v53  ;;  %v1599_v56 = vadd.f32 %v18481_v20, %v13706_v53 }
 0x1cf   :  { %v10267_v26 = vpop.eup %10266  ;;  %v13754_v47 = vmul.f32 %v10265_v41, %v18554_v1  ;;  %10286 = vrcp.f32 %v3616_v6  ;;  %v13756_v12 = vmul.f32 -1.442695, %v1519_v32  ;;  %v13758_v31 = vmul.f32 -1.442695, %v1527_v33  ;;  %v18564_v33 = vld [vmem:[#allocation56_spill] sm:$0xff] }
 0x1d0   :  { %v10269_v0 = vpop.eup %10268  ;;  %v13761_v11 = vmul.f32 %v10267_v26, %v13415_v59  ;;  %10288 = vrcp.f32 %v3617_v19  ;;  %v13763_v14 = vmul.f32 -1.442695, %v1535_v60  ;;  %v13765_v16 = vmul.f32 -1.442695, %v1543_v58  ;;  %v13778_v60 = vpop.permute.xlu1 %5471  ;;  %v18568_v58 = vld [vmem:[#allocation61_spill] sm:$0xff] }
 0x1d1   :  { %18555 = vst [vmem:[#allocation41_spill] sm:$0xff] %v13754_v47  ;;  %18556 = vst [vmem:[#allocation48_spill] sm:$0xff] %v13756_v12  ;;  %v10271_v45 = vpop.eup %10270  ;;  %v13767_v20 = vmul.f32 %v10269_v0, %v5464_v27  ;;  %10290 = vrcp.f32 %v3618_v35  ;;  %v13769_v41 = vmul.f32 -1.442695, %v1551_v13  ;;  %v13771_v6 = vmul.f32 -1.442695, %v1559_v62  ;;  %v13790_v27 = vpop.permute.xlu0 %5467 }
 0x1d2   :  { %18557 = vst [vmem:[#allocation55_spill] sm:$0xff] %v13758_v31  ;;  %18558 = vst [vmem:[#allocation147_spill] sm:$0xff] %v13761_v11  ;;  %v10273_v32 = vpop.eup %10272  ;;  %10292 = vrcp.f32 %v3619_v49  ;;  %v7376_v1 = vmul.f32 %v10271_v45, %v18564_v33  ;;  %v13774_v31 = vmul.f32 -1.442695, %v1567_v10  ;;  %v13776_v59 = vmul.f32 -1.442695, %v1575_v38 }
 0x1d3   :  { %18559 = vst [vmem:[#allocation201_spill] sm:$0xff] %v13763_v14  ;;  %18560 = vst [vmem:[#allocation202_spill] sm:$0xff] %v13765_v16  ;;  %v10275_v19 = vpop.eup %10274  ;;  %v13781_v26 = vmul.f32 %v10273_v32, %v18568_v58  ;;  %10294 = vrsqrt.f32 %v13458_v3  ;;  %v13784_v35 = vmul.f32 -1.442695, %v1583_v8  ;;  %v13786_v13 = vmul.f32 -1.442695, %v1591_v15 }
 0x1d4   :  { %18561 = vst [vmem:[#allocation203_spill] sm:$0xff] %v13767_v20  ;;  %18562 = vst [vmem:[#allocation204_spill] sm:$0xff] %v13769_v41  ;;  %v13788_v62 = vpop.f32.mrb[18].mxu1  ;;  %v10277_v49 = vpop.eup %10276  ;;  %v18571_v10 = vld [vmem:[#allocation58_spill] sm:$0xff]  ;;  %10296 = vpow2.f32 %v13462_v9  ;;  %v13796_v0 = vmul.f32 -1.442695, %v1599_v56  ;;  %v1607_v45 = vadd.f32 %v12888_v44, %v13706_v53 }
 0x1d5   :  { %18563 = vst [vmem:[#allocation205_spill] sm:$0xff] %v13771_v6  ;;  %18565 = vst [vmem:[#allocation56_spill] sm:$0xff] %v13774_v31  ;;  %v13793_v38 = vmul.f32 %v10275_v19, %v18571_v10  ;;  %v742_v3 = vpop.f32.mrb[19].mxu1  ;;  %v10279_v8 = vpop.eup %10278  ;;  %v18573_v32 = vld [vmem:[#allocation63_spill] sm:$0xff]  ;;  %10298 = vpow2.f32 %v13466_v36  ;;  %v13805_v33 = vmul.f32 -1.442695, %v13722_v46 }
 0x1d6   :  { %18566 = vst [vmem:[#allocation206_spill] sm:$0xff] %v13776_v59  ;;  %18567 = vst [vmem:[#allocation207_spill] sm:$0xff] %v13778_v60  ;;  %v13801_v15 = vmul.f32 %v10277_v49, %v18573_v32  ;;  %v18575_v58 = vld [vmem:[#allocation20_spill] sm:$0xff]  ;;  %v18576_v19 = vld [vmem:[#allocation69_spill] sm:$0xff]  ;;  %v10281_v9 = vpop.eup %10280  ;;  %10300 = vpow2.f32 %v13506_v30  ;;  %v13813_v44 = vmul.f32 -1.442695, %v1607_v45  ;;  %v13841_v31 = vpop.permute.xlu1 %5479 }
 0x1d7   :  { %18569 = vst [vmem:[#allocation61_spill] sm:$0xff] %v13784_v35  ;;  %18570 = vst [vmem:[#allocation208_spill] sm:$0xff] %v13786_v13  ;;  %v13809_v10 = vrot.slane %v18576_v19, %v18575_v58  ;;  %v18577_v56 = vld [vmem:[#allocation64_spill] sm:$0xff]  ;;  %v10283_v32 = vpop.eup %10282  ;;  %v18581_v36 = vld [vmem:[#allocation70_spill] sm:$0xff]  ;;  %10302 = vpow2.f32 %v13511_v23  ;;  %v13855_v14 = vpop.f32.mrb[20].mxu1 }
 0x1d8   :  { %18572 = vst [vmem:[#allocation58_spill] sm:$0xff] %v13796_v0  ;;  %18574 = vst [vmem:[#allocation63_spill] sm:$0xff] %v13805_v33  ;;  %v7384_v0 = vmul.f32 %v10279_v8, %v18577_v56  ;;  %v18579_v3 = vld [vmem:[#allocation72_spill] sm:$0xff]  ;;  %v13820_v13 = vmul.f32 %v10281_v9, %v18581_v36  ;;  %v18582_v46 = vld [vmem:[#allocation79_spill] sm:$0xff]  ;;  %v10285_v56 = vpop.eup %10284  ;;  %v13857_v12 = vpop.permute.xlu0 %5475 }
 0x1d9   :  { %18578 = vst [vmem:[#allocation64_spill] sm:$0xff] %v13813_v44  ;;  %v13817_v49 = vadd.f32 %v13547_v52, %v18579_v3  ;;  %5770 = vbcast.lane.b32.xlu1 %v13809_v10, 264  ;;  %5766 = vbcast.lane.b32.xlu0 %v13809_v10, 256  ;;  %v1609_v8 = vadd.f32 %v18582_v46, %v13200_v29  ;;  %v18583_v30 = vld [vmem:[#allocation115_spill] sm:$0xff]  ;;  %v18584_v58 = vld [vmem:[#allocation66_spill] sm:$0xff]  ;;  %v10287_v59 = vpop.eup %10286  ;;  %18588 = vst [vmem:[#allocation70_spill] sm:$0xff] %v13841_v31 }
 0x1da   :  { %v1608_v45 = vadd.f32 %v18582_v46, %v18583_v30  ;;  %v13830_v52 = vmul.f32 %v10283_v32, %v18584_v58  ;;  %v18585_v33 = vld [vmem:[#allocation78_spill] sm:$0xff]  ;;  %v18587_v23 = vld [vmem:[#allocation167_spill] sm:$0xff]  ;;  %v18589_v6 = vld [vmem:[#allocation73_spill] sm:$0xff]  ;;  %18594 = vst [vmem:[#allocation66_spill] sm:$0xff] %v13857_v12 }
 0x1db   :  { %18580 = vst [vmem:[#allocation72_spill] sm:$0xff] %v13817_v49  ;;  %10304 = vpow2.f32 %v18585_v33  ;;  %v18586_v9 = vld [vmem:[#allocation166_spill] sm:$0xff]  ;;  %v13839_v35 = vmul.f32 %v18587_v23, %v13817_v49  ;;  %v13844_v41 = vmul.f32 %v10285_v56, %v18589_v6  ;;  %v18591_v16 = vld [vmem:[#allocation157_spill] sm:$0xff]  ;;  %v18592_v58 = vld [vmem:[#allocation168_spill] sm:$0xff]  ;;  %v10289_v23 = vpop.eup %10288  ;;  %v13866_v56 = vmul.f32 %v7376_v1, %v13817_v49 }
 0x1dc   :  { %v13835_v36 = vmul.f32 %v18586_v9, %v13817_v49  ;;  %10306 = vpow2.f32 %v18591_v16  ;;  %v13849_v32 = vmul.f32 %v18592_v58, %v13817_v49  ;;  %v18593_v33 = vld [vmem:[#allocation169_spill] sm:$0xff]  ;;  %v18595_v44 = vld [vmem:[#allocation74_spill] sm:$0xff]  ;;  %v747_v58 = vpop.f32.mrb[21].mxu1  ;;  %v10291_v5 = vpop.eup %10290  ;;  %v13871_v43 = vmul.f32 %v7384_v0, %v13817_v49  ;;  %v18611_v30 = vld [vmem:[#allocation180_spill] sm:$0xff] }
 0x1dd   :  { %18590 = vst [vmem:[#allocation79_spill] sm:$0xff] %v13844_v41  ;;  %v13853_v9 = vmul.f32 %v18593_v33, %v13817_v49  ;;  %v7392_v31 = vmul.f32 %v10287_v59, %v18595_v44  ;;  %10308 = vpow2.f32 %v18596_v63  ;;  %v18597_v6 = vld [vmem:[#allocation170_spill] sm:$0xff]  ;;  %v18598_v33 = vld [vmem:[#allocation95_spill] sm:$0xff]  ;;  %5778 = vbcast.lane.b32.xlu1 %v13809_v10, 280  ;;  %5774 = vbcast.lane.b32.xlu0 %v13809_v10, 272  ;;  %v13879_v63 = vpop.f32.mrb[22].mxu1  ;;  %v10293_v1 = vpop.eup %10292 }
 0x1de   :  { %v13863_v16 = vmul.f32 %v18597_v6, %v13817_v49  ;;  %v7393_v42 = vmul.f32 %v10289_v23, %v18598_v33  ;;  %v18599_v60 = vld [vmem:[#allocation158_spill] sm:$0xff]  ;;  %v18600_v59 = vld [vmem:[#allocation171_spill] sm:$0xff]  ;;  %v18601_v6 = vld [vmem:[#allocation76_spill] sm:$0xff]  ;;  %v13898_v57 = vmul.f32 %v18607_v37, %v13817_v49 }
 0x1df   :  { %10310 = vpow2.f32 %v18599_v60  ;;  %v13875_v44 = vmul.f32 %v18600_v59, %v13817_v49  ;;  %v13882_v58 = vmul.f32 %v10291_v5, %v18601_v6  ;;  %v18602_v23 = vld [vmem:[#allocation178_spill] sm:$0xff]  ;;  %v13886_v60 = vmul.f32 %v7392_v31, %v13817_v49  ;;  %v18603_v0 = vld [vmem:[#allocation173_spill] sm:$0xff]  ;;  %v10295_v59 = vpop.eup %10294  ;;  %v750_v6 = vpop.f32.mrb[23].mxu1  ;;  %v18621_v19 = vld [vmem:[#allocation39_spill] sm:$0xff] }
 0x1e0   :  { %10312 = vpow2.f32 %v18602_v23  ;;  %v13890_v33 = vmul.f32 %v18603_v0, %v13817_v49  ;;  %v18604_v12 = vld [vmem:[#allocation102_spill] sm:$0xff]  ;;  %v13900_v5 = vmul.f32 -1.442695, %v1609_v8  ;;  %v10297_v23 = vpop.eup %10296  ;;  %v18609_v31 = vld [vmem:[#allocation17_spill] sm:$0xff]  ;;  %v13906_v0 = vmul.f32 -1.442695, %v1608_v45  ;;  %v13925_v45 = vpop.permute.xlu1 %5490 }
 0x1e1   :  { %v13893_v4 = vmul.f32 %v10293_v1, %v18604_v12  ;;  %10314 = vpow2.f32 %v18606_v25  ;;  %v13903_v17 = vrot.slane %v10295_v59, %v18609_v31  ;;  %v13910_v12 = vadd.f32 %v13788_v62, %v18579_v3  ;;  %v13912_v25 = vpop.f32.mrb[24].mxu1  ;;  %v10299_v1 = vpop.eup %10298  ;;  %v18615_v29 = vld [vmem:[#allocation181_spill] sm:$0xff]  ;;  %5786 = vbcast.lane.b32.xlu1 %v13809_v10, 296  ;;  %5782 = vbcast.lane.b32.xlu0 %v13809_v10, 288 }
 0x1e2   :  { %18608 = vst [vmem:[#allocation166_spill] sm:$0xff] %v13900_v5  ;;  %10316 = vpow2.f32 %v18611_v30  ;;  %18612 = vst [vmem:[#allocation73_spill] sm:$0xff] %v13906_v0  ;;  %v3649_v37 = vadd.f32 1.0, %v10297_v23  ;;  %v18616_v8 = vld [vmem:[#allocation145_spill] sm:$0xff]  ;;  %v13921_v59 = vadd.f32 %v18582_v46, %v18521_v55  ;;  %v755_v62 = vpop.f32.mrb[25].mxu1  ;;  %v10301_v30 = vpop.eup %10300  ;;  %v3648_v23 = vadd.f32 1.0, %v10299_v1 }
 0x1e3   :  { %18605 = vst [vmem:[#allocation78_spill] sm:$0xff] %v13893_v4  ;;  %18610 = vst [vmem:[#allocation167_spill] sm:$0xff] %v13903_v17  ;;  %10318 = vpow2.f32 %v18615_v29  ;;  %v13917_v6 = vadd.f32 %v18582_v46, %v18616_v8  ;;  %v13927_v31 = vpop.permute.xlu0 %5486  ;;  %v18617_v29 = vld [vmem:[#allocation183_spill] sm:$0xff]  ;;  %v18618_v17 = vld [vmem:[#allocation176_spill] sm:$0xff]  ;;  %v10303_v8 = vpop.eup %10302  ;;  %v3564_v22 = vadd.f32 1.0, %v10301_v30  ;;  %v7873_v28 = vmul.f32 %v18621_v19, %v13910_v12 }
 0x1e4   :  { %18613 = vst [vmem:[#allocation157_spill] sm:$0xff] %v13910_v12  ;;  %18614 = vst [vmem:[#allocation168_spill] sm:$0xff] %v13912_v25  ;;  %10320 = vpow2.f32 %v18617_v29  ;;  %v7849_v0 = vmul.f32 %v18618_v17, %v13910_v12  ;;  %v18619_v5 = vld [vmem:[#allocation177_spill] sm:$0xff]  ;;  %v18620_v25 = vld [vmem:[#allocation154_spill] sm:$0xff]  ;;  %v13938_v53 = vpop.f32.mrb[26].mxu1  ;;  %v3572_v29 = vadd.f32 1.0, %v10303_v8  ;;  %v7905_v19 = vmul.f32 %v7393_v42, %v13910_v12 }
 0x1e5   :  { %v7857_v55 = vmul.f32 %v18619_v5, %v13910_v12  ;;  %10322 = vrcp.f32 %v3649_v37  ;;  %v7865_v62 = vmul.f32 %v18620_v25, %v13910_v12  ;;  %18622 = vst [vmem:[#allocation169_spill] sm:$0xff] %v13938_v53  ;;  %v10305_v1 = vpop.eup %10304  ;;  %v18623_v20 = vld [vmem:[#allocation53_spill] sm:$0xff]  ;;  %v7889_v5 = vmul.f32 %v13781_v26, %v13910_v12  ;;  %v758_v11 = vpop.f32.mrb[27].mxu1  ;;  %5794 = vbcast.lane.b32.xlu1 %v13809_v10, 312 }
 0x1e6   :  { %10324 = vrcp.f32 %v3648_v23  ;;  %v7881_v17 = vmul.f32 %v18623_v20, %v13910_v12  ;;  %v10307_v37 = vpop.eup %10306  ;;  %v3580_v30 = vadd.f32 1.0, %v10305_v1  ;;  %v7897_v25 = vmul.f32 %v13820_v13, %v13910_v12  ;;  %5790 = vbcast.lane.b32.xlu0 %v13809_v10, 304  ;;  %v13949_v8 = vpop.f32.mrb[28].mxu1  ;;  %v18625_v26 = vld [vmem:[#allocation141_spill] sm:$0xff]  ;;  %v18626_v1 = vld [vmem:[#allocation184_spill] sm:$0xff] }
 0x1e7   :  { %10326 = vrcp.f32 %v3564_v22  ;;  %18624 = vst [vmem:[#allocation74_spill] sm:$0xff] %v13949_v8  ;;  %v10309_v23 = vpop.eup %10308  ;;  %v3588_v20 = vadd.f32 1.0, %v10307_v37  ;;  %v7913_v11 = vmul.f32 %v18625_v26, %v13910_v12  ;;  %v7921_v22 = vmul.f32 %v18626_v1, %v13910_v12  ;;  %v18627_v42 = vld [vmem:[#allocation185_spill] sm:$0xff]  ;;  %v763_v10 = vpop.f32.mrb[29].mxu1 }
 0x1e8   :  { %10328 = vrcp.f32 %v3572_v29  ;;  %v3596_v47 = vadd.f32 1.0, %v10309_v23  ;;  %v7929_v13 = vmul.f32 %v18627_v42, %v13910_v12  ;;  %v13958_v4 = vadd.f32 %v7849_v0, %v13835_v36  ;;  %v13960_v29 = vpop.permute.xlu1 %5498  ;;  %v13962_v37 = vpop.permute.xlu0 %5494 }
 0x1e9   :  { %v10311_v53 = vpop.eup %10310  ;;  %10330 = vrcp.f32 %v3580_v30  ;;  %v13965_v26 = vadd.f32 %v7857_v55, %v13839_v35  ;;  %v13968_v23 = vadd.f32 %v7865_v62, %v13849_v32  ;;  %v13971_v36 = vadd.f32 %v7873_v28, %v13853_v9 }
 0x1ea   :  { %v10313_v8 = vpop.eup %10312  ;;  %v3604_v41 = vadd.f32 1.0, %v10311_v53  ;;  %10332 = vrcp.f32 %v3588_v20  ;;  %v13974_v0 = vadd.f32 %v7881_v17, %v13863_v16  ;;  %v13977_v42 = vadd.f32 %v7889_v5, %v13866_v56 }
 0x1eb   :  { %v10315_v30 = vpop.eup %10314  ;;  %v3612_v1 = vadd.f32 1.0, %v10313_v8  ;;  %10334 = vrcp.f32 %v3596_v47  ;;  %v13980_v55 = vadd.f32 %v7897_v25, %v13871_v43  ;;  %v13983_v47 = vadd.f32 %v7905_v19, %v13886_v60 }
 0x1ec   :  { %v10317_v53 = vpop.eup %10316  ;;  %v3620_v20 = vadd.f32 1.0, %v10315_v30  ;;  %10336 = vrcp.f32 %v3604_v41  ;;  %v13986_v28 = vadd.f32 %v7913_v11, %v13875_v44  ;;  %v13989_v41 = vadd.f32 %v7921_v22, %v13890_v33  ;;  %v14001_v25 = vpop.permute.xlu1 %5506  ;;  %v18632_v22 = vld [vmem:[#allocation28_spill] sm:$0xff] }
 0x1ed   :  { %v10319_v35 = vpop.eup %10318  ;;  %v3628_v32 = vadd.f32 1.0, %v10317_v53  ;;  %10338 = vrcp.f32 %v3612_v1  ;;  %v13992_v56 = vadd.f32 %v7929_v13, %v13898_v57  ;;  %v13995_v17 = vmul.f32 -1.442695, %v13917_v6  ;;  %v14003_v33 = vpop.permute.xlu0 %5502  ;;  %v18633_v53 = vld [vmem:[#allocation33_spill] sm:$0xff] }
 0x1ee   :  { %v10321_v9 = vpop.eup %10320  ;;  %v3636_v16 = vadd.f32 1.0, %v10319_v35  ;;  %10340 = vrcp.f32 %v3620_v20  ;;  %v13998_v60 = vmul.f32 -1.442695, %v13921_v59  ;;  %v14007_v57 = vadd.f32 %v13855_v14, %v18579_v3  ;;  %v14022_v11 = vpop.f32.mrb[30].mxu1 }
 0x1ef   :  { %v10323_v43 = vpop.eup %10322  ;;  %v3644_v62 = vadd.f32 1.0, %v10321_v9  ;;  %10342 = vrcp.f32 %v3628_v32  ;;  %18628 = vst [vmem:[#allocation46_spill] sm:$0xff] %v13995_v17  ;;  %v14011_v19 = vadd.f32 %v18582_v46, %v13523_v61  ;;  %v14020_v8 = vadd.f32 %v13879_v63, %v18579_v3  ;;  %v766_v30 = vpop.f32.mrb[31].mxu1  ;;  %v18634_v9 = vld [vmem:[#allocation38_spill] sm:$0xff] }
 0x1f0   :  { %18629 = vst [vmem:[#allocation170_spill] sm:$0xff] %v13998_v60  ;;  %v10325_v44 = vpop.eup %10324  ;;  %v7425_v5 = vmul.f32 %v10323_v43, %v13925_v45  ;;  %10344 = vrcp.f32 %v3636_v16  ;;  %18630 = vst [vmem:[#allocation95_spill] sm:$0xff] %v14007_v57  ;;  %v14016_v45 = vadd.f32 %v18582_v46, %v13447_v39  ;;  %v7858_v35 = vmul.f32 %v13600_v54, %v14007_v57  ;;  %v18635_v16 = vld [vmem:[#allocation43_spill] sm:$0xff]  ;;  %v18638_v54 = vld [vmem:[#allocation50_spill] sm:$0xff] }
 0x1f1   :  { %v10327_v6 = vpop.eup %10326  ;;  %v7424_v59 = vmul.f32 %v10325_v44, %v13927_v31  ;;  %10346 = vrcp.f32 %v3644_v62  ;;  %18631 = vst [vmem:[#allocation158_spill] sm:$0xff] %v14020_v8  ;;  %v7850_v31 = vmul.f32 %v13592_v21, %v14007_v57  ;;  %v7866_v21 = vmul.f32 %v13608_v51, %v14007_v57  ;;  %v18636_v44 = vld [vmem:[#allocation45_spill] sm:$0xff]  ;;  %v18640_v30 = vld [vmem:[#allocation162_spill] sm:$0xff]  ;;  %v14058_v51 = vpop.permute.xlu1 %5514 }
 0x1f2   :  { %v10329_v14 = vpop.eup %10328  ;;  %v14025_v13 = vmul.f32 %v10327_v6, %v18632_v22  ;;  %10348 = vpow2.f32 %v13638_v24  ;;  %v7937_v10 = vmul.f32 %v7425_v5, %v13910_v12  ;;  %v7874_v43 = vmul.f32 %v18635_v16, %v14007_v57  ;;  %v18637_v5 = vld [vmem:[#allocation161_spill] sm:$0xff]  ;;  %v18639_v22 = vld [vmem:[#allocation52_spill] sm:$0xff]  ;;  %18641 = vst [vmem:[#allocation171_spill] sm:$0xff] %v14058_v51  ;;  %v18644_v16 = vld [vmem:[#allocation163_spill] sm:$0xff] }
 0x1f3   :  { %v10331_v1 = vpop.eup %10330  ;;  %v14032_v20 = vmul.f32 %v10329_v14, %v18633_v53  ;;  %10350 = vpow2.f32 %v13585_v48  ;;  %v7936_v63 = vmul.f32 %v7424_v59, %v13817_v49  ;;  %v7882_v59 = vmul.f32 %v18638_v54, %v14007_v57 }
 0x1f4   :  { %v10333_v32 = vpop.eup %10332  ;;  %v14039_v24 = vmul.f32 %v10331_v1, %v18634_v9  ;;  %10352 = vpow2.f32 %v13587_v18  ;;  %v14060_v1 = vpop.permute.xlu0 %5510  ;;  %v7890_v53 = vmul.f32 %v13793_v38, %v14007_v57  ;;  %v18647_v38 = vld [vmem:[#allocation25_spill] sm:$0xff] }
 0x1f5   :  { %v10335_v62 = vpop.eup %10334  ;;  %v14047_v48 = vmul.f32 %v10333_v32, %v18636_v44  ;;  %10354 = vpow2.f32 %v18637_v5  ;;  %v14050_v6 = vadd.f32 %v7937_v10, %v7936_v63  ;;  %18642 = vst [vmem:[#allocation76_spill] sm:$0xff] %v14060_v1  ;;  %v7898_v10 = vmul.f32 %v13830_v52, %v14007_v57  ;;  %v18643_v32 = vld [vmem:[#allocation60_spill] sm:$0xff]  ;;  %v18645_v44 = vld [vmem:[#allocation119_spill] sm:$0xff] }
 0x1f6   :  { %v10337_v14 = vpop.eup %10336  ;;  %v14055_v18 = vmul.f32 %v10335_v62, %v18639_v22  ;;  %10356 = vpow2.f32 %v18640_v30  ;;  %v7906_v62 = vmul.f32 %v13882_v58, %v14007_v57  ;;  %v7914_v5 = vmul.f32 %v18645_v44, %v14007_v57  ;;  %v18646_v22 = vld [vmem:[#allocation68_spill] sm:$0xff] }
 0x1f7   :  { %v10339_v63 = vpop.eup %10338  ;;  %v14067_v9 = vmul.f32 %v10337_v14, %v18643_v32  ;;  %10358 = vpow2.f32 %v18644_v16  ;;  %v18648_v52 = vld [vmem:[#allocation152_spill] sm:$0xff]  ;;  %v18649_v14 = vld [vmem:[#allocation191_spill] sm:$0xff]  ;;  %v14087_v44 = vadd.f32 %v13958_v4, %v7850_v31  ;;  %v18655_v4 = vld [vmem:[#allocation37_spill] sm:$0xff] }
 0x1f8   :  { %v10341_v54 = vpop.eup %10340  ;;  %v14075_v30 = vmul.f32 %v10339_v63, %v18646_v22  ;;  %10360 = vpow2.f32 %v18647_v38  ;;  %v7922_v49 = vmul.f32 %v18648_v52, %v14007_v57  ;;  %v7930_v32 = vmul.f32 %v18649_v14, %v14007_v57  ;;  %v18650_v16 = vld [vmem:[#allocation84_spill] sm:$0xff]  ;;  %v18652_v38 = vld [vmem:[#allocation135_spill] sm:$0xff] }
 0x1f9   :  { %v10343_v12 = vpop.eup %10342  ;;  %v14083_v1 = vmul.f32 %v10341_v54, %v18650_v16  ;;  %v18651_v58 = vld [vmem:[#allocation164_spill] sm:$0xff]  ;;  %v14090_v63 = vadd.f32 %v13965_v26, %v7858_v35  ;;  %v18653_v52 = vld [vmem:[#allocation31_spill] sm:$0xff]  ;;  %v14097_v14 = vadd.f32 %v13968_v23, %v7866_v21  ;;  %v14100_v54 = vadd.f32 %v13971_v36, %v7874_v43  ;;  %v18656_v23 = vld [vmem:[#allocation186_spill] sm:$0xff]  ;;  %v14116_v36 = vpop.permute.xlu1 %5525 }
 0x1fa   :  { %10362 = vpow2.f32 %v18651_v58  ;;  %v10345_v22 = vpop.eup %10344  ;;  %v14093_v60 = vmul.f32 %v10343_v12, %v18652_v38  ;;  %v18654_v58 = vld [vmem:[#allocation160_spill] sm:$0xff]  ;;  %v14107_v26 = vadd.f32 %v13974_v0, %v7882_v59  ;;  %v14110_v12 = vadd.f32 %v13977_v42, %v7890_v53  ;;  %18657 = vst [vmem:[#allocation178_spill] sm:$0xff] %v14116_v36  ;;  %v14118_v21 = vpop.permute.xlu0 %5521  ;;  %v18659_v42 = vld [vmem:[#allocation187_spill] sm:$0xff] }
 0x1fb   :  { %10364 = vpow2.f32 %v18653_v52  ;;  %v10347_v16 = vpop.eup %10346  ;;  %v14103_v17 = vmul.f32 %v10345_v22, %v18654_v58  ;;  %18658 = vst [vmem:[#allocation173_spill] sm:$0xff] %v14118_v21  ;;  %v14121_v43 = vadd.f32 %v13980_v55, %v7898_v10  ;;  %v14124_v22 = vadd.f32 %v13983_v47, %v7906_v62  ;;  %v18660_v52 = vld [vmem:[#allocation188_spill] sm:$0xff] }
 0x1fc   :  { %10366 = vpow2.f32 %v18655_v4  ;;  %v10349_v31 = vpop.eup %10348  ;;  %v14113_v35 = vmul.f32 %v10347_v16, %v13790_v27  ;;  %v14128_v53 = vadd.f32 %v13986_v28, %v7914_v5  ;;  %v14131_v27 = vadd.f32 %v13989_v41, %v7922_v49 }
 0x1fd   :  { %10368 = vpow2.f32 %v18656_v23  ;;  %v10351_v0 = vpop.eup %10350  ;;  %v3651_v59 = vadd.f32 1.0, %v10349_v31  ;;  %v14135_v55 = vadd.f32 %v13992_v56, %v7930_v32  ;;  %v14138_v47 = vmul.f32 -1.442695, %v14011_v19  ;;  %v14153_v23 = vpop.permute.xlu1 %5533 }
 0x1fe   :  { %10370 = vpow2.f32 %v18659_v42  ;;  %v10353_v38 = vpop.eup %10352  ;;  %v3565_v16 = vadd.f32 1.0, %v10351_v0  ;;  %v14141_v58 = vmul.f32 -1.442695, %v14016_v45  ;;  %v7851_v49 = vmul.f32 %v13693_v7, %v14020_v8  ;;  %18663 = vst [vmem:[#allocation174_spill] sm:$0xff] %v14153_v23  ;;  %v14155_v0 = vpop.permute.xlu0 %5529  ;;  %v18694_v23 = vld [vmem:[#allocation194_spill] sm:$0xff] }
 0x1ff   :  { %10372 = vpow2.f32 %v18660_v52  ;;  %18661 = vst [vmem:[#allocation102_spill] sm:$0xff] %v14138_v47  ;;  %v10355_v10 = vpop.eup %10354  ;;  %v3573_v62 = vadd.f32 1.0, %v10353_v38  ;;  %v7859_v5 = vmul.f32 %v13710_v2, %v14020_v8  ;;  %v7867_v56 = vmul.f32 %v13713_v34, %v14020_v8  ;;  %18664 = vst [vmem:[#allocation180_spill] sm:$0xff] %v14155_v0  ;;  %v18665_v34 = vld [vmem:[#allocation79_spill] sm:$0xff] }
 0x200   :  { %10374 = vrcp.f32 %v3651_v59  ;;  %18662 = vst [vmem:[#allocation179_spill] sm:$0xff] %v14141_v58  ;;  %v10357_v28 = vpop.eup %10356  ;;  %v3581_v41 = vadd.f32 1.0, %v10355_v10  ;;  %v7875_v4 = vmul.f32 %v13740_v40, %v14020_v8  ;;  %v7883_v45 = vmul.f32 %v13747_v50, %v14020_v8  ;;  %v18666_v40 = vld [vmem:[#allocation78_spill] sm:$0xff]  ;;  %v18667_v50 = vld [vmem:[#allocation41_spill] sm:$0xff]  ;;  %v18703_v47 = vld [vmem:[#allocation207_spill] sm:$0xff] }
 0x201   :  { %10376 = vrcp.f32 %v3565_v16  ;;  %v10359_v19 = vpop.eup %10358  ;;  %v3589_v32 = vadd.f32 1.0, %v10357_v28  ;;  %v7891_v2 = vmul.f32 %v13801_v15, %v14020_v8  ;;  %v7899_v59 = vmul.f32 %v18665_v34, %v14020_v8  ;;  %v18668_v28 = vld [vmem:[#allocation147_spill] sm:$0xff] }
 0x202   :  { %10378 = vrcp.f32 %v3573_v62  ;;  %v10361_v31 = vpop.eup %10360  ;;  %v3597_v7 = vadd.f32 1.0, %v10359_v19  ;;  %v7907_v52 = vmul.f32 %v18666_v40, %v14020_v8  ;;  %v7915_v16 = vmul.f32 %v18667_v50, %v14020_v8  ;;  %v18669_v15 = vld [vmem:[#allocation203_spill] sm:$0xff] }
 0x203   :  { %10380 = vrcp.f32 %v3581_v41  ;;  %v3605_v38 = vadd.f32 1.0, %v10361_v31  ;;  %v7923_v41 = vmul.f32 %v18668_v28, %v14020_v8  ;;  %v7931_v19 = vmul.f32 %v18669_v15, %v14020_v8 }
 0x204   :  { %v10363_v42 = vpop.eup %10362  ;;  %10382 = vrcp.f32 %v3589_v32  ;;  %v14170_v32 = vadd.f32 %v14087_v44, %v7851_v49  ;;  %v14173_v31 = vadd.f32 %v14090_v63, %v7859_v5  ;;  %v14185_v44 = vadd.f32 %v14110_v12, %v7891_v2  ;;  %v14187_v5 = vpop.permute.xlu1 %5541 }
 0x205   :  { %v10365_v10 = vpop.eup %10364  ;;  %v3613_v62 = vadd.f32 1.0, %v10363_v42  ;;  %10384 = vrcp.f32 %v3597_v7  ;;  %v14176_v7 = vadd.f32 %v14097_v14, %v7867_v56  ;;  %v14179_v42 = vadd.f32 %v14100_v54, %v7875_v4  ;;  %18670 = vst [vmem:[#allocation181_spill] sm:$0xff] %v14187_v5 }
 0x206   :  { %v10367_v0 = vpop.eup %10366  ;;  %v3621_v34 = vadd.f32 1.0, %v10365_v10  ;;  %10386 = vrcp.f32 %v3605_v38  ;;  %v14182_v38 = vadd.f32 %v14107_v26, %v7883_v45  ;;  %v14192_v14 = vadd.f32 %v14121_v43, %v7899_v59  ;;  %v18672_v43 = vld [vmem:[#allocation155_spill] sm:$0xff] }
 0x207   :  { %v10369_v40 = vpop.eup %10368  ;;  %v3629_v50 = vadd.f32 1.0, %v10367_v0  ;;  %10388 = vrcp.f32 %v3613_v62  ;;  %v14189_v0 = vpop.permute.xlu0 %5537  ;;  %v14195_v54 = vadd.f32 %v14124_v22, %v7907_v52  ;;  %v14198_v26 = vadd.f32 %v14128_v53, %v7915_v16  ;;  %v18673_v52 = vld [vmem:[#allocation27_spill] sm:$0xff] }
 0x208   :  { %v10371_v28 = vpop.eup %10370  ;;  %v3637_v15 = vadd.f32 1.0, %v10369_v40  ;;  %10390 = vrcp.f32 %v3621_v34  ;;  %18671 = vst [vmem:[#allocation183_spill] sm:$0xff] %v14189_v0  ;;  %v14201_v12 = vadd.f32 %v14131_v27, %v7923_v41  ;;  %v14205_v10 = vadd.f32 %v14135_v55, %v7931_v19  ;;  %v18674_v53 = vld [vmem:[#allocation151_spill] sm:$0xff]  ;;  %v18675_v27 = vld [vmem:[#allocation21_spill] sm:$0xff] }
 0x209   :  { %v10373_v63 = vpop.eup %10372  ;;  %v3645_v49 = vadd.f32 1.0, %v10371_v28  ;;  %10392 = vrcp.f32 %v3629_v50  ;;  %v1615_v22 = vadd.f32 %v18582_v46, %v18672_v43  ;;  %v1614_v16 = vadd.f32 %v18582_v46, %v18674_v53  ;;  %v18676_v41 = vld [vmem:[#allocation69_spill] sm:$0xff]  ;;  %v18677_v40 = vld [vmem:[#allocation35_spill] sm:$0xff]  ;;  %v18681_v46 = vld [vmem:[#allocation190_spill] sm:$0xff] }
 0x20a   :  { %v10375_v56 = vpop.eup %10374  ;;  %v3650_v4 = vadd.f32 1.0, %v10373_v63  ;;  %10394 = vrcp.f32 %v3637_v15  ;;  %v14216_v34 = vrot.slane %v18676_v41, %v18675_v27  ;;  %v18678_v55 = vld [vmem:[#allocation189_spill] sm:$0xff]  ;;  %v18680_v63 = vld [vmem:[#allocation42_spill] sm:$0xff] }
 0x20b   :  { %v10377_v45 = vpop.eup %10376  ;;  %v7427_v2 = vmul.f32 %v10375_v56, %v13960_v29  ;;  %10396 = vrcp.f32 %v3645_v49  ;;  %v14225_v28 = vmul.f32 -1.442695, %v1615_v22  ;;  %v14231_v56 = vmul.f32 -1.442695, %v1614_v16  ;;  %v18688_v16 = vld [vmem:[#allocation137_spill] sm:$0xff] }
 0x20c   :  { %v10379_v59 = vpop.eup %10378  ;;  %10398 = vrcp.f32 %v3650_v4  ;;  %v14210_v62 = vmul.f32 %v10377_v45, %v18673_v52  ;;  %5805 = vbcast.lane.b32.xlu1 %v14216_v34, 264  ;;  %5801 = vbcast.lane.b32.xlu0 %v14216_v34, 256  ;;  %v18683_v4 = vld [vmem:[#allocation168_spill] sm:$0xff]  ;;  %v18691_v0 = vld [vmem:[#allocation57_spill] sm:$0xff] }
 0x20d   :  { %v10381_v29 = vpop.eup %10380  ;;  %v14219_v50 = vmul.f32 %v10379_v59, %v18677_v40  ;;  %10400 = vpow2.f32 %v18678_v55  ;;  %v14223_v19 = vmul.f32 %v7427_v2, %v14020_v8  ;;  %18679 = vst [vmem:[#allocation176_spill] sm:$0xff] %v14225_v28  ;;  %18682 = vst [vmem:[#allocation177_spill] sm:$0xff] %v14231_v56  ;;  %v14237_v45 = vadd.f32 %v18683_v4, %v18579_v3  ;;  %v18684_v59 = vld [vmem:[#allocation49_spill] sm:$0xff]  ;;  %v18685_v52 = vld [vmem:[#allocation192_spill] sm:$0xff]  ;;  %v14245_v40 = vpop.permute.xlu0 %5545 }
 0x20e   :  { %v10383_v15 = vpop.eup %10382  ;;  %v14228_v49 = vmul.f32 %v10381_v29, %v18680_v63  ;;  %10402 = vpow2.f32 %v18681_v46  ;;  %v14243_v29 = vpop.permute.xlu1 %5549  ;;  %18687 = vst [vmem:[#allocation39_spill] sm:$0xff] %v14245_v40  ;;  %v18689_v55 = vld [vmem:[#allocation80_spill] sm:$0xff]  ;;  %v18690_v46 = vld [vmem:[#allocation115_spill] sm:$0xff] }
 0x20f   :  { %v10385_v2 = vpop.eup %10384  ;;  %v14240_v22 = vmul.f32 %v10383_v15, %v18684_v59  ;;  %10404 = vpow2.f32 %v18685_v52  ;;  %18686 = vst [vmem:[#allocation154_spill] sm:$0xff] %v14243_v29  ;;  %v14249_v63 = vadd.f32 %v18689_v55, %v18688_v16  ;;  %v14253_v27 = vadd.f32 %v18689_v55, %v18690_v46  ;;  %v18692_v15 = vld [vmem:[#allocation193_spill] sm:$0xff] }
 0x210   :  { %v10387_v4 = vpop.eup %10386  ;;  %v14256_v8 = vmul.f32 %v10385_v2, %v18691_v0  ;;  %10406 = vpow2.f32 %v18692_v15  ;;  %v7852_v59 = vmul.f32 %v14025_v13, %v14237_v45  ;;  %v7860_v52 = vmul.f32 %v14032_v20, %v14237_v45  ;;  %v18693_v29 = vld [vmem:[#allocation65_spill] sm:$0xff]  ;;  %v18695_v15 = vld [vmem:[#allocation75_spill] sm:$0xff]  ;;  %5813 = vbcast.lane.b32.xlu1 %v14216_v34, 280  ;;  %5809 = vbcast.lane.b32.xlu0 %v14216_v34, 272 }
 0x211   :  { %v10389_v40 = vpop.eup %10388  ;;  %v14264_v5 = vmul.f32 %v10387_v4, %v18693_v29  ;;  %10408 = vpow2.f32 %v18694_v23  ;;  %v7868_v21 = vmul.f32 %v14039_v24, %v14237_v45  ;;  %v7876_v0 = vmul.f32 %v14047_v48, %v14237_v45  ;;  %v18696_v13 = vld [vmem:[#allocation195_spill] sm:$0xff]  ;;  %v18697_v23 = vld [vmem:[#allocation116_spill] sm:$0xff] }
 0x212   :  { %v10391_v2 = vpop.eup %10390  ;;  %v14272_v36 = vmul.f32 %v10389_v40, %v18695_v15  ;;  %10410 = vpow2.f32 %v18696_v13  ;;  %v7884_v20 = vmul.f32 %v14055_v18, %v14237_v45  ;;  %v7892_v29 = vmul.f32 %v14067_v9, %v14237_v45  ;;  %v18698_v48 = vld [vmem:[#allocation196_spill] sm:$0xff]  ;;  %v18699_v13 = vld [vmem:[#allocation150_spill] sm:$0xff]  ;;  %v18700_v9 = vld [vmem:[#allocation197_spill] sm:$0xff] }
 0x213   :  { %v10393_v24 = vpop.eup %10392  ;;  %v14282_v4 = vmul.f32 %v10391_v2, %v18697_v23  ;;  %10412 = vpow2.f32 %v18698_v48  ;;  %v7900_v40 = vmul.f32 %v14075_v30, %v14237_v45  ;;  %v7908_v15 = vmul.f32 %v14083_v1, %v14237_v45  ;;  %v18701_v48 = vld [vmem:[#allocation175_spill] sm:$0xff]  ;;  %v18702_v30 = vld [vmem:[#allocation26_spill] sm:$0xff] }
 0x214   :  { %v10395_v18 = vpop.eup %10394  ;;  %v14290_v56 = vmul.f32 %v10393_v24, %v18699_v13  ;;  %10414 = vpow2.f32 %v18700_v9  ;;  %v7916_v28 = vmul.f32 %v14093_v60, %v14237_v45  ;;  %v7924_v2 = vmul.f32 %v14103_v17, %v14237_v45  ;;  %v14306_v13 = vpop.permute.xlu1 %5560  ;;  %v18704_v17 = vld [vmem:[#allocation198_spill] sm:$0xff]  ;;  %5821 = vbcast.lane.b32.xlu1 %v14216_v34, 296  ;;  %5817 = vbcast.lane.b32.xlu0 %v14216_v34, 288 }
 0x215   :  { %v10397_v23 = vpop.eup %10396  ;;  %v14298_v58 = vmul.f32 %v10395_v18, %v18701_v48  ;;  %10416 = vpow2.f32 %v18702_v30  ;;  %v7932_v1 = vmul.f32 %v14113_v35, %v14237_v45  ;;  %v14304_v24 = vadd.f32 %v14170_v32, %v7852_v59  ;;  %v14308_v9 = vpop.permute.xlu0 %5556  ;;  %v18705_v59 = vld [vmem:[#allocation199_spill] sm:$0xff]  ;;  %v18706_v30 = vld [vmem:[#allocation200_spill] sm:$0xff] }
 0x216   :  { %v10399_v60 = vpop.eup %10398  ;;  %v14311_v51 = vmul.f32 %v10397_v23, %v18703_v47  ;;  %10418 = vpow2.f32 %v18704_v17  ;;  %v14315_v18 = vadd.f32 %v14173_v31, %v7860_v52  ;;  %v14318_v48 = vadd.f32 %v14176_v7, %v7868_v21 }
 0x217   :  { %v10401_v35 = vpop.eup %10400  ;;  %v7426_v32 = vmul.f32 %v10399_v60, %v13962_v37  ;;  %10420 = vpow2.f32 %v18705_v59  ;;  %v14325_v47 = vadd.f32 %v14179_v42, %v7876_v0  ;;  %v14328_v23 = vadd.f32 %v14182_v38, %v7884_v20  ;;  %v18707_v60 = vld [vmem:[#allocation32_spill] sm:$0xff] }
 0x218   :  { %v10403_v31 = vpop.eup %10402  ;;  %v3653_v52 = vadd.f32 1.0, %v10401_v35  ;;  %10422 = vpow2.f32 %v18706_v30  ;;  %v14332_v21 = vadd.f32 %v14185_v44, %v7892_v29  ;;  %v14335_v7 = vadd.f32 %v14192_v14, %v7900_v40  ;;  %5829 = vbcast.lane.b32.xlu1 %v14216_v34, 312  ;;  %5825 = vbcast.lane.b32.xlu0 %v14216_v34, 304  ;;  %v18709_v30 = vld [vmem:[#allocation145_spill] sm:$0xff] }
 0x219   :  { %v10405_v17 = vpop.eup %10404  ;;  %v3652_v37 = vadd.f32 1.0, %v10403_v31  ;;  %10424 = vpow2.f32 %v18707_v60  ;;  %v7938_v42 = vmul.f32 %v7426_v32, %v14007_v57  ;;  %v14340_v0 = vadd.f32 %v14195_v54, %v7908_v15  ;;  %v14354_v15 = vpop.permute.xlu1 %5568 }
 0x21a   :  { %v10407_v38 = vpop.eup %10406  ;;  %10426 = vrcp.f32 %v3653_v52  ;;  %v3566_v20 = vadd.f32 1.0, %v10405_v17  ;;  %v14343_v35 = vadd.f32 %v14198_v26, %v7916_v28  ;;  %v14346_v44 = vadd.f32 %v14201_v12, %v7924_v2  ;;  %v14356_v32 = vpop.permute.xlu0 %5564  ;;  %v18710_v17 = vld [vmem:[#allocation144_spill] sm:$0xff] }
 0x21b   :  { %v10409_v14 = vpop.eup %10408  ;;  %10428 = vrcp.f32 %v3652_v37  ;;  %v3574_v29 = vadd.f32 1.0, %v10407_v38  ;;  %v8512_v40 = vadd.f32 %v14050_v6, %v7938_v42  ;;  %v14352_v54 = vadd.f32 %v14205_v10, %v7932_v1  ;;  %v18708_v10 = vld [vmem:[#allocation169_spill] sm:$0xff] }
 0x21c   :  { %v10411_v26 = vpop.eup %10410  ;;  %v3582_v28 = vadd.f32 1.0, %v10409_v14  ;;  %10430 = vrcp.f32 %v3566_v20  ;;  %v14359_v12 = vmul.f32 -1.442695, %v14249_v63  ;;  %v14362_v34 = vmul.f32 -1.442695, %v14253_v27 }
 0x21d   :  { %v10413_v2 = vpop.eup %10412  ;;  %v3590_v59 = vadd.f32 1.0, %v10411_v26  ;;  %10432 = vrcp.f32 %v3574_v29  ;;  %v14365_v6 = vadd.f32 %v8512_v40, %v14223_v19  ;;  %v14369_v1 = vadd.f32 %v18708_v10, %v18579_v3 }
 0x21e   :  { %v10415_v31 = vpop.eup %10414  ;;  %v3598_v52 = vadd.f32 1.0, %v10413_v2  ;;  %10434 = vrcp.f32 %v3582_v28  ;;  %v14373_v63 = vadd.f32 %v18689_v55, %v18709_v30  ;;  %v14377_v27 = vadd.f32 %v18689_v55, %v18710_v17  ;;  %v14391_v2 = vpop.permute.xlu1 %5576 }
 0x21f   :  { %v10417_v37 = vpop.eup %10416  ;;  %v3606_v60 = vadd.f32 1.0, %v10415_v31  ;;  %10436 = vrcp.f32 %v3590_v59  ;;  %v7853_v19 = vmul.f32 %v14210_v62, %v14369_v1  ;;  %v7861_v42 = vmul.f32 %v14219_v50, %v14369_v1  ;;  %v14393_v50 = vpop.permute.xlu0 %5572 }
 0x220   :  { %v10419_v38 = vpop.eup %10418  ;;  %v3614_v20 = vadd.f32 1.0, %v10417_v37  ;;  %10438 = vrcp.f32 %v3598_v52  ;;  %v7869_v14 = vmul.f32 %v14228_v49, %v14369_v1  ;;  %v7877_v29 = vmul.f32 %v14240_v22, %v14369_v1 }
 0x221   :  { %v10421_v40 = vpop.eup %10420  ;;  %v3622_v26 = vadd.f32 1.0, %v10419_v38  ;;  %10440 = vrcp.f32 %v3606_v60  ;;  %v7885_v28 = vmul.f32 %v14256_v8, %v14369_v1  ;;  %v7893_v62 = vmul.f32 %v14264_v5, %v14369_v1 }
 0x222   :  { %v10423_v59 = vpop.eup %10422  ;;  %v3630_v10 = vadd.f32 1.0, %v10421_v40  ;;  %10442 = vrcp.f32 %v3614_v20  ;;  %v7901_v49 = vmul.f32 %v14272_v36, %v14369_v1  ;;  %v7909_v22 = vmul.f32 %v14282_v4, %v14369_v1 }
 0x223   :  { %v10425_v31 = vpop.eup %10424  ;;  %v3638_v52 = vadd.f32 1.0, %v10423_v59  ;;  %10444 = vrcp.f32 %v3622_v26  ;;  %v7917_v8 = vmul.f32 %v14290_v56, %v14369_v1  ;;  %v7925_v5 = vmul.f32 %v14298_v58, %v14369_v1 }
 0x224   :  { %v10427_v37 = vpop.eup %10426  ;;  %v3646_v60 = vadd.f32 1.0, %v10425_v31  ;;  %10446 = vrcp.f32 %v3630_v10  ;;  %v7933_v38 = vmul.f32 %v14311_v51, %v14369_v1  ;;  %v14406_v36 = vadd.f32 %v14304_v24, %v7853_v19  ;;  %v18711_v19 = vld [vmem:[#allocation30_spill] sm:$0xff]  ;;  %v18712_v10 = vld [vmem:[#allocation64_spill] sm:$0xff] }
 0x225   :  { %v10429_v20 = vpop.eup %10428  ;;  %v7429_v4 = vmul.f32 %v10427_v37, %v14001_v25  ;;  %10448 = vrcp.f32 %v3638_v52  ;;  %v14410_v40 = vadd.f32 %v14315_v18, %v7861_v42  ;;  %v14413_v56 = vadd.f32 %v14318_v48, %v7869_v14  ;;  %v14428_v42 = vpop.permute.xlu1 %5584  ;;  %v18716_v31 = vld [vmem:[#allocation48_spill] sm:$0xff] }
 0x226   :  { %v10431_v58 = vpop.eup %10430  ;;  %v7428_v26 = vmul.f32 %v10429_v20, %v14003_v33  ;;  %10450 = vrcp.f32 %v3646_v60  ;;  %v14417_v59 = vadd.f32 %v14325_v47, %v7877_v29  ;;  %v14420_v51 = vadd.f32 %v14328_v23, %v7885_v28  ;;  %18713 = vst [vmem:[#allocation53_spill] sm:$0xff] %v14428_v42  ;;  %v14430_v33 = vpop.permute.xlu0 %5580  ;;  %v18715_v47 = vld [vmem:[#allocation34_spill] sm:$0xff]  ;;  %v18717_v37 = vld [vmem:[#allocation40_spill] sm:$0xff]  ;;  %v18718_v20 = vld [vmem:[#allocation55_spill] sm:$0xff] }
 0x227   :  { %v10433_v24 = vpop.eup %10432  ;;  %v7342_v25 = vmul.f32 %v10431_v58, %v18711_v19  ;;  %10452 = vpow2.f32 %v18712_v10  ;;  %v7941_v18 = vmul.f32 %v7429_v4, %v14369_v1  ;;  %v14426_v48 = vadd.f32 %v14332_v21, %v7893_v62  ;;  %18714 = vst [vmem:[#allocation141_spill] sm:$0xff] %v14430_v33  ;;  %v18719_v58 = vld [vmem:[#allocation47_spill] sm:$0xff]  ;;  %v18720_v19 = vld [vmem:[#allocation201_spill] sm:$0xff]  ;;  %v18721_v10 = vld [vmem:[#allocation54_spill] sm:$0xff] }
 0x228   :  { %v10435_v14 = vpop.eup %10434  ;;  %v7350_v29 = vmul.f32 %v10433_v24, %v18715_v47  ;;  %10454 = vpow2.f32 %v18716_v31  ;;  %v7940_v23 = vmul.f32 %v7428_v26, %v14237_v45  ;;  %v14436_v28 = vadd.f32 %v14335_v7, %v7901_v49  ;;  %v18722_v47 = vld [vmem:[#allocation202_spill] sm:$0xff]  ;;  %v18737_v33 = vld [vmem:[#allocation208_spill] sm:$0xff] }
 0x229   :  { %v10437_v52 = vpop.eup %10436  ;;  %v7358_v60 = vmul.f32 %v10435_v14, %v18717_v37  ;;  %10456 = vpow2.f32 %v18718_v20  ;;  %v14441_v21 = vadd.f32 %v14340_v0, %v7909_v22  ;;  %v14444_v62 = vadd.f32 %v14343_v35, %v7917_v8  ;;  %v18723_v8 = vld [vmem:[#allocation62_spill] sm:$0xff]  ;;  %v18726_v20 = vld [vmem:[#allocation205_spill] sm:$0xff] }
 0x22a   :  { %v10439_v4 = vpop.eup %10438  ;;  %v7366_v24 = vmul.f32 %v10437_v52, %v18719_v58  ;;  %10458 = vpow2.f32 %v18720_v19  ;;  %v8514_v26 = vadd.f32 %v14365_v6, %v7940_v23  ;;  %v14450_v7 = vadd.f32 %v14346_v44, %v7925_v5  ;;  %v18724_v52 = vld [vmem:[#allocation204_spill] sm:$0xff]  ;;  %v18725_v23 = vld [vmem:[#allocation71_spill] sm:$0xff] }
 0x22b   :  { %v10441_v49 = vpop.eup %10440  ;;  %v7374_v14 = vmul.f32 %v10439_v4, %v18721_v10  ;;  %10460 = vpow2.f32 %v18722_v47  ;;  %v14455_v0 = vadd.f32 %v14352_v54, %v7933_v38  ;;  %v14458_v35 = vmul.f32 -1.442695, %v14373_v63  ;;  %v18727_v54 = vld [vmem:[#allocation74_spill] sm:$0xff]  ;;  %v14477_v4 = vpop.permute.xlu1 %5595 }
 0x22c   :  { %v10443_v22 = vpop.eup %10442  ;;  %v7382_v31 = vmul.f32 %v10441_v49, %v18723_v8  ;;  %10462 = vpow2.f32 %v18724_v52  ;;  %v14462_v6 = vadd.f32 %v8514_v26, %v7941_v18  ;;  %v14465_v44 = vmul.f32 -1.442695, %v14377_v27  ;;  %18728 = vst [vmem:[#allocation184_spill] sm:$0xff] %v14477_v4  ;;  %v14479_v18 = vpop.permute.xlu0 %5591  ;;  %v18730_v27 = vld [vmem:[#allocation96_spill] sm:$0xff]  ;;  %v18733_v52 = vld [vmem:[#allocation206_spill] sm:$0xff] }
 0x22d   :  { %v10445_v5 = vpop.eup %10444  ;;  %v7390_v37 = vmul.f32 %v10443_v22, %v18725_v23  ;;  %10464 = vpow2.f32 %v18726_v20  ;;  %v14471_v38 = vadd.f32 %v18727_v54, %v18579_v3  ;;  %v14475_v63 = vadd.f32 %v18689_v55, %v13523_v61  ;;  %18729 = vst [vmem:[#allocation185_spill] sm:$0xff] %v14479_v18  ;;  %v18731_v26 = vld [vmem:[#allocation56_spill] sm:$0xff]  ;;  %v18732_v22 = vld [vmem:[#allocation143_spill] sm:$0xff]  ;;  %v18734_v54 = vld [vmem:[#allocation165_spill] sm:$0xff] }
 0x22e   :  { %v10447_v58 = vpop.eup %10446  ;;  %v7398_v19 = vmul.f32 %v10445_v5, %v18730_v27  ;;  %10466 = vpow2.f32 %v18731_v26  ;;  %v14485_v49 = vadd.f32 %v18689_v55, %v13447_v39  ;;  %v14489_v10 = vadd.f32 %v14022_v11, %v18579_v3  ;;  %v18735_v26 = vld [vmem:[#allocation61_spill] sm:$0xff]  ;;  %v18736_v11 = vld [vmem:[#allocation66_spill] sm:$0xff] }
 0x22f   :  { %v10449_v47 = vpop.eup %10448  ;;  %v7406_v8 = vmul.f32 %v10447_v58, %v18732_v22  ;;  %10468 = vpow2.f32 %v18733_v52  ;;  %v7854_v23 = vmul.f32 %v7342_v25, %v14471_v38  ;;  %v7862_v20 = vmul.f32 %v7350_v29, %v14471_v38  ;;  %v18738_v52 = vld [vmem:[#allocation58_spill] sm:$0xff] }
 0x230   :  { %v10451_v5 = vpop.eup %10450  ;;  %v7414_v27 = vmul.f32 %v10449_v47, %v18734_v54  ;;  %10470 = vpow2.f32 %v18735_v26  ;;  %v7870_v18 = vmul.f32 %v7358_v60, %v14471_v38  ;;  %v7878_v4 = vmul.f32 %v7366_v24, %v14471_v38  ;;  %v18739_v26 = vld [vmem:[#allocation63_spill] sm:$0xff] }
 0x231   :  { %v10453_v3 = vpop.eup %10452  ;;  %v7422_v39 = vmul.f32 %v10451_v5, %v18736_v11  ;;  %10472 = vpow2.f32 %v18737_v33  ;;  %v7886_v58 = vmul.f32 %v7374_v14, %v14471_v38  ;;  %v7894_v25 = vmul.f32 %v7382_v31, %v14471_v38  ;;  %v14509_v11 = vpop.permute.xlu1 %5603 }
 0x232   :  { %v10455_v22 = vpop.eup %10454  ;;  %v3655_v29 = vadd.f32 1.0, %v10453_v3  ;;  %10474 = vpow2.f32 %v18738_v52  ;;  %v7902_v47 = vmul.f32 %v7390_v37, %v14471_v38  ;;  %v7910_v54 = vmul.f32 %v7398_v19, %v14471_v38  ;;  %18740 = vst [vmem:[#allocation28_spill] sm:$0xff] %v14509_v11  ;;  %v14511_v14 = vpop.permute.xlu0 %5599 }
 0x233   :  { %v10457_v60 = vpop.eup %10456  ;;  %10476 = vpow2.f32 %v18739_v26  ;;  %v3567_v24 = vadd.f32 1.0, %v10455_v22  ;;  %v7918_v5 = vmul.f32 %v7406_v8, %v14471_v38  ;;  %v7926_v33 = vmul.f32 %v7414_v27, %v14471_v38  ;;  %18741 = vst [vmem:[#allocation33_spill] sm:$0xff] %v14511_v14  ;;  %v18757_v14 = vld [vmem:[#allocation170_spill] sm:$0xff] }
 0x234   :  { %v10459_v31 = vpop.eup %10458  ;;  %10478 = vrcp.f32 %v3655_v29  ;;  %v3575_v3 = vadd.f32 1.0, %v10457_v60  ;;  %v7934_v52 = vmul.f32 %v7422_v39, %v14471_v38  ;;  %v14515_v37 = vadd.f32 %v14406_v36, %v7854_v23 }
 0x235   :  { %v10461_v19 = vpop.eup %10460  ;;  %v3583_v42 = vadd.f32 1.0, %v10459_v31  ;;  %10480 = vrcp.f32 %v3567_v24  ;;  %v14518_v22 = vadd.f32 %v14410_v40, %v7862_v20  ;;  %v14521_v8 = vadd.f32 %v14413_v56, %v7870_v18  ;;  %v18744_v31 = vld [vmem:[#allocation22_spill] sm:$0xff] }
 0x236   :  { %v10463_v27 = vpop.eup %10462  ;;  %v3591_v26 = vadd.f32 1.0, %v10461_v19  ;;  %10482 = vrcp.f32 %v3575_v3  ;;  %v14524_v29 = vadd.f32 %v14417_v59, %v7878_v4  ;;  %v14527_v39 = vadd.f32 %v14420_v51, %v7886_v58  ;;  %v14549_v58 = vpop.permute.xlu0 %5607 }
 0x237   :  { %v10465_v36 = vpop.eup %10464  ;;  %v3599_v23 = vadd.f32 1.0, %v10463_v27  ;;  %10484 = vrcp.f32 %v3583_v42  ;;  %v14530_v60 = vadd.f32 %v14426_v48, %v7894_v25  ;;  %v14533_v40 = vadd.f32 %v14436_v28, %v7902_v47  ;;  %v14547_v28 = vpop.permute.xlu1 %5611  ;;  %18743 = vst [vmem:[#allocation43_spill] sm:$0xff] %v14549_v58  ;;  %v18752_v58 = vld [vmem:[#allocation44_spill] sm:$0xff] }
 0x238   :  { %v10467_v56 = vpop.eup %10466  ;;  %v3607_v18 = vadd.f32 1.0, %v10465_v36  ;;  %10486 = vrcp.f32 %v3591_v26  ;;  %v14536_v20 = vadd.f32 %v14441_v21, %v7910_v54  ;;  %v14539_v59 = vadd.f32 %v14444_v62, %v7918_v5  ;;  %18742 = vst [vmem:[#allocation38_spill] sm:$0xff] %v14547_v28  ;;  %v18753_v28 = vld [vmem:[#allocation73_spill] sm:$0xff] }
 0x239   :  { %v10469_v51 = vpop.eup %10468  ;;  %v3615_v4 = vadd.f32 1.0, %v10467_v56  ;;  %10488 = vrcp.f32 %v3599_v23  ;;  %v14542_v42 = vadd.f32 %v14450_v7, %v7926_v33  ;;  %v14545_v48 = vadd.f32 %v14455_v0, %v7934_v52 }
 0x23a   :  { %v10471_v25 = vpop.eup %10470  ;;  %v3623_v47 = vadd.f32 1.0, %v10469_v51  ;;  %10490 = vrcp.f32 %v3607_v18  ;;  %v14552_v21 = vmul.f32 -1.442695, %v14475_v63  ;;  %v14555_v62 = vmul.f32 -1.442695, %v14485_v49  ;;  %v18745_v63 = vld [vmem:[#allocation81_spill] sm:$0xff] }
 0x23b   :  { %v10473_v54 = vpop.eup %10472  ;;  %v3631_v24 = vadd.f32 1.0, %v10471_v25  ;;  %10492 = vrcp.f32 %v3615_v4  ;;  %v1623_v7 = vadd.f32 %v18689_v55, %v18672_v43  ;;  %v1622_v0 = vadd.f32 %v18689_v55, %v18674_v53  ;;  %v18746_v51 = vld [vmem:[#allocation171_spill] sm:$0xff] }
 0x23c   :  { %v10475_v5 = vpop.eup %10474  ;;  %v3639_v33 = vadd.f32 1.0, %v10473_v54  ;;  %10494 = vrcp.f32 %v3623_v47  ;;  %v14563_v3 = vrot.slane %v18676_v41, %v18744_v31  ;;  %v1625_v49 = vadd.f32 %v18745_v63, %v18688_v16  ;;  %v14582_v54 = vpop.permute.xlu1 %5619 }
 0x23d   :  { %v10477_v52 = vpop.eup %10476  ;;  %v3647_v19 = vadd.f32 1.0, %v10475_v5  ;;  %10496 = vrcp.f32 %v3631_v24  ;;  %v14567_v27 = vmul.f32 -1.442695, %v1623_v7  ;;  %v14569_v26 = vmul.f32 -1.442695, %v1622_v0  ;;  %18747 = vst [vmem:[#allocation45_spill] sm:$0xff] %v14582_v54  ;;  %v14584_v24 = vpop.permute.xlu0 %5615 }
 0x23e   :  { %v10479_v36 = vpop.eup %10478  ;;  %v3654_v23 = vadd.f32 1.0, %v10477_v52  ;;  %10498 = vrcp.f32 %v3639_v33  ;;  %5840 = vbcast.lane.b32.xlu1 %v14563_v3, 264  ;;  %5836 = vbcast.lane.b32.xlu0 %v14563_v3, 256  ;;  %v14573_v55 = vmul.f32 -1.442695, %v1625_v49  ;;  %v1624_v56 = vadd.f32 %v18745_v63, %v18690_v46  ;;  %18748 = vst [vmem:[#allocation161_spill] sm:$0xff] %v14584_v24 }
 0x23f   :  { %v10481_v18 = vpop.eup %10480  ;;  %v7431_v4 = vmul.f32 %v10479_v36, %v18746_v51  ;;  %10500 = vrcp.f32 %v3647_v19  ;;  %v1627_v25 = vadd.f32 %v18745_v63, %v18709_v30  ;;  %v1626_v47 = vadd.f32 %v18745_v63, %v18710_v17  ;;  %v18749_v0 = vld [vmem:[#allocation29_spill] sm:$0xff]  ;;  %v18750_v19 = vld [vmem:[#allocation36_spill] sm:$0xff]  ;;  %v18751_v51 = vld [vmem:[#allocation166_spill] sm:$0xff] }
 0x240   :  { %v10483_v7 = vpop.eup %10482  ;;  %10502 = vrcp.f32 %v3654_v23  ;;  %v7343_v5 = vmul.f32 %v10481_v18, %v18749_v0  ;;  %v14587_v33 = vmul.f32 -1.442695, %v1624_v56  ;;  %v1629_v49 = vadd.f32 %v18745_v63, %v13523_v61  ;;  %v18754_v0 = vld [vmem:[#allocation51_spill] sm:$0xff] }
 0x241   :  { %v10485_v52 = vpop.eup %10484  ;;  %v7351_v36 = vmul.f32 %v10483_v7, %v18750_v19  ;;  %10504 = vpow2.f32 %v18751_v51  ;;  %v14594_v31 = vmul.f32 %v7431_v4, %v14489_v10  ;;  %v14596_v54 = vmul.f32 -1.442695, %v1627_v25  ;;  %v18755_v4 = vld [vmem:[#allocation46_spill] sm:$0xff]  ;;  %v18758_v61 = vld [vmem:[#allocation67_spill] sm:$0xff] }
 0x242   :  { %v10487_v24 = vpop.eup %10486  ;;  %v7359_v23 = vmul.f32 %v10485_v52, %v18752_v58  ;;  %10506 = vpow2.f32 %v18753_v28  ;;  %v7855_v56 = vmul.f32 %v7343_v5, %v14489_v10  ;;  %5848 = vbcast.lane.b32.xlu1 %v14563_v3, 280  ;;  %5844 = vbcast.lane.b32.xlu0 %v14563_v3, 272  ;;  %v14603_v18 = vmul.f32 -1.442695, %v1626_v47  ;;  %v18756_v52 = vld [vmem:[#allocation59_spill] sm:$0xff] }
 0x243   :  { %v10489_v7 = vpop.eup %10488  ;;  %v7367_v19 = vmul.f32 %v10487_v24, %v18754_v0  ;;  %10508 = vpow2.f32 %v18755_v4  ;;  %v7863_v25 = vmul.f32 %v7351_v36, %v14489_v10  ;;  %v14608_v51 = vmul.f32 -1.442695, %v1629_v49  ;;  %v18759_v24 = vld [vmem:[#allocation102_spill] sm:$0xff]  ;;  %v14622_v36 = vpop.permute.xlu1 %5630  ;;  %v18762_v4 = vld [vmem:[#allocation83_spill] sm:$0xff] }
 0x244   :  { %v10491_v58 = vpop.eup %10490  ;;  %v7375_v28 = vmul.f32 %v10489_v7, %v18756_v52  ;;  %10510 = vpow2.f32 %v18757_v14  ;;  %v7871_v5 = vmul.f32 %v7359_v23, %v14489_v10  ;;  %v14614_v11 = vadd.f32 %v14515_v37, %v7855_v56  ;;  %18760 = vst [vmem:[#allocation50_spill] sm:$0xff] %v14622_v36  ;;  %v14624_v7 = vpop.permute.xlu0 %5626  ;;  %v18763_v52 = vld [vmem:[#allocation179_spill] sm:$0xff]  ;;  %v18764_v56 = vld [vmem:[#allocation132_spill] sm:$0xff]  ;;  %v18768_v36 = vld [vmem:[#allocation77_spill] sm:$0xff] }
 0x245   :  { %v10493_v47 = vpop.eup %10492  ;;  %v7383_v17 = vmul.f32 %v10491_v58, %v18758_v61  ;;  %10512 = vpow2.f32 %v18759_v24  ;;  %v7879_v0 = vmul.f32 %v7367_v19, %v14489_v10  ;;  %v14620_v49 = vadd.f32 %v14518_v22, %v7863_v25  ;;  %18761 = vst [vmem:[#allocation52_spill] sm:$0xff] %v14624_v7  ;;  %v18765_v25 = vld [vmem:[#allocation176_spill] sm:$0xff] }
 0x246   :  { %v10495_v14 = vpop.eup %10494  ;;  %v7391_v23 = vmul.f32 %v10493_v47, %v18762_v4  ;;  %10514 = vpow2.f32 %v18763_v52  ;;  %v7887_v37 = vmul.f32 %v7375_v28, %v14489_v10  ;;  %v14630_v61 = vadd.f32 %v14521_v8, %v7871_v5  ;;  %5856 = vbcast.lane.b32.xlu1 %v14563_v3, 296  ;;  %5852 = vbcast.lane.b32.xlu0 %v14563_v3, 288  ;;  %v18766_v4 = vld [vmem:[#allocation156_spill] sm:$0xff]  ;;  %v18767_v52 = vld [vmem:[#allocation177_spill] sm:$0xff] }
 0x247   :  { %v10497_v22 = vpop.eup %10496  ;;  %v7399_v19 = vmul.f32 %v10495_v14, %v18764_v56  ;;  %10516 = vpow2.f32 %v18765_v25  ;;  %v7895_v58 = vmul.f32 %v7383_v17, %v14489_v10  ;;  %v14638_v47 = vadd.f32 %v14524_v29, %v7879_v0  ;;  %v18769_v56 = vld [vmem:[#allocation70_spill] sm:$0xff] }
 0x248   :  { %v10499_v24 = vpop.eup %10498  ;;  %v7407_v28 = vmul.f32 %v10497_v22, %v18766_v4  ;;  %10518 = vpow2.f32 %v18767_v52  ;;  %v7903_v8 = vmul.f32 %v7391_v23, %v14489_v10  ;;  %v14644_v5 = vadd.f32 %v14527_v39, %v7887_v37 }
 0x249   :  { %v10501_v7 = vpop.eup %10500  ;;  %v7415_v14 = vmul.f32 %v10499_v24, %v18768_v36  ;;  %10520 = vpow2.f32 %v14359_v12  ;;  %v7911_v17 = vmul.f32 %v7399_v19, %v14489_v10  ;;  %v14650_v29 = vadd.f32 %v14530_v60, %v7895_v58  ;;  %v18770_v36 = vld [vmem:[#allocation76_spill] sm:$0xff]  ;;  %v14668_v19 = vpop.permute.xlu0 %5634 }
 0x24a   :  { %v10503_v0 = vpop.eup %10502  ;;  %v7423_v22 = vmul.f32 %v10501_v7, %v18769_v56  ;;  %10522 = vpow2.f32 %v14362_v34  ;;  %v7919_v23 = vmul.f32 %v7407_v28, %v14489_v10  ;;  %v14656_v39 = vadd.f32 %v14533_v40, %v7903_v8  ;;  %5864 = vbcast.lane.b32.xlu1 %v14563_v3, 312  ;;  %5860 = vbcast.lane.b32.xlu0 %v14563_v3, 304  ;;  %v14666_v34 = vpop.permute.xlu1 %5638 }
 0x24b   :  { %v10505_v12 = vpop.eup %10504  ;;  %v7430_v37 = vmul.f32 %v10503_v0, %v18770_v36  ;;  %10524 = vpow2.f32 %v14458_v35  ;;  %v7927_v60 = vmul.f32 %v7415_v14, %v14489_v10  ;;  %v14664_v7 = vadd.f32 %v14536_v20, %v7911_v17  ;;  %18771 = vst [vmem:[#allocation162_spill] sm:$0xff] %v14666_v34  ;;  %18772 = vst [vmem:[#allocation60_spill] sm:$0xff] %v14668_v19 }
 0x24c   :  { %v10507_v40 = vpop.eup %10506  ;;  %v3657_v25 = vadd.f32 1.0, %v10505_v12  ;;  %10526 = vpow2.f32 %v14465_v44  ;;  %v7935_v3 = vmul.f32 %v7423_v22, %v14489_v10  ;;  %v14673_v58 = vadd.f32 %v14539_v59, %v7919_v23 }
 0x24d   :  { %v10509_v24 = vpop.eup %10508  ;;  %v3656_v35 = vadd.f32 1.0, %v10507_v40  ;;  %v7942_v4 = vmul.f32 %v7430_v37, %v14471_v38  ;;  %10528 = vpow2.f32 %v14552_v21  ;;  %v14678_v20 = vadd.f32 %v14542_v42, %v7927_v60  ;;  %v14692_v60 = vpop.permute.xlu0 %5642 }
 0x24e   :  { %v10511_v28 = vpop.eup %10510  ;;  %10530 = vrcp.f32 %v3657_v25  ;;  %v3659_v52 = vadd.f32 1.0, %v10509_v24  ;;  %v14681_v8 = vadd.f32 %v14545_v48, %v7935_v3  ;;  %v8375_v44 = vrot.slane %v14614_v11, 4  ;;  %v14690_v37 = vpop.permute.xlu1 %5646  ;;  %18774 = vst [vmem:[#allocation119_spill] sm:$0xff] %v14692_v60 }
 0x24f   :  { %v10513_v14 = vpop.eup %10512  ;;  %10532 = vrcp.f32 %v3656_v35  ;;  %v3658_v59 = vadd.f32 1.0, %v10511_v28  ;;  %v8516_v17 = vadd.f32 %v14462_v6, %v7942_v4  ;;  %v8388_v0 = vrot.slane %v14620_v49, 4  ;;  %18773 = vst [vmem:[#allocation163_spill] sm:$0xff] %v14690_v37 }
 0x250   :  { %v10515_v56 = vpop.eup %10514  ;;  %10534 = vrcp.f32 %v3659_v52  ;;  %v3661_v21 = vadd.f32 1.0, %v10513_v14  ;;  %v8401_v42 = vrot.slane %v14630_v61, 4  ;;  %v8414_v22 = vrot.slane %v14638_v47, 4 }
 0x251   :  { %v10517_v23 = vpop.eup %10516  ;;  %10536 = vrcp.f32 %v3658_v59  ;;  %v3660_v48 = vadd.f32 1.0, %v10515_v56  ;;  %v8517_v12 = vadd.f32 %v8516_v17, %v14594_v31  ;;  %v8427_v36 = vrot.slane %v14644_v5, 4 }
 0x252   :  { %v10519_v6 = vpop.eup %10518  ;;  %10538 = vrcp.f32 %v3661_v21  ;;  %v3663_v40 = vadd.f32 1.0, %v10517_v23  ;;  %v8440_v25 = vrot.slane %v14650_v29, 4  ;;  %v8453_v3 = vrot.slane %v14656_v39, 4 }
 0x253   :  { %v10521_v24 = vpop.eup %10520  ;;  %10540 = vrcp.f32 %v3660_v48  ;;  %v3662_v35 = vadd.f32 1.0, %v10519_v6  ;;  %v8466_v4 = vrot.slane %v14664_v7, 4  ;;  %v8479_v31 = vrot.slane %v14673_v58, 4 }
 0x254   :  { %v10523_v28 = vpop.eup %10522  ;;  %10542 = vrcp.f32 %v3663_v40  ;;  %v3665_v52 = vadd.f32 1.0, %v10521_v24  ;;  %v8492_v14 = vrot.slane %v14678_v20, 4  ;;  %v8505_v59 = vrot.slane %v14681_v8, 4 }
 0x255   :  { %v10525_v17 = vpop.eup %10524  ;;  %10544 = vrcp.f32 %v3662_v35  ;;  %v3664_v56 = vadd.f32 1.0, %v10523_v28  ;;  %v8518_v21 = vrot.slane %v8517_v12, 4  ;;  %v14701_v23 = vadd.f32 %v8375_v44, %v14614_v11  ;;  %v14715_v11 = vpop.permute.xlu1 %5654 }
 0x256   :  { %v10527_v48 = vpop.eup %10526  ;;  %10546 = vrcp.f32 %v3665_v52  ;;  %v3667_v6 = vadd.f32 1.0, %v10525_v17  ;;  %v14704_v60 = vadd.f32 %v8388_v0, %v14620_v49  ;;  %v14707_v40 = vadd.f32 %v8401_v42, %v14630_v61  ;;  %18775 = vst [vmem:[#allocation68_spill] sm:$0xff] %v14715_v11  ;;  %v14717_v44 = vpop.permute.xlu0 %5650  ;;  %v18777_v52 = vld [vmem:[#allocation178_spill] sm:$0xff]  ;;  %v18778_v17 = vld [vmem:[#allocation173_spill] sm:$0xff]  ;;  %v18789_v11 = vld [vmem:[#allocation39_spill] sm:$0xff] }
 0x257   :  { %v10529_v24 = vpop.eup %10528  ;;  %10548 = vrcp.f32 %v3664_v56  ;;  %v3666_v37 = vadd.f32 1.0, %v10527_v48  ;;  %v14710_v19 = vadd.f32 %v8414_v22, %v14638_v47  ;;  %v14713_v35 = vadd.f32 %v8427_v36, %v14644_v5  ;;  %18776 = vst [vmem:[#allocation25_spill] sm:$0xff] %v14717_v44 }
 0x258   :  { %v10531_v28 = vpop.eup %10530  ;;  %10550 = vrcp.f32 %v3667_v6  ;;  %v3669_v49 = vadd.f32 1.0, %v10529_v24  ;;  %v14720_v0 = vadd.f32 %v8440_v25, %v14650_v29  ;;  %v14723_v61 = vadd.f32 %v8453_v3, %v14656_v39  ;;  %v18779_v3 = vld [vmem:[#allocation157_spill] sm:$0xff]  ;;  %v18780_v6 = vld [vmem:[#allocation174_spill] sm:$0xff] }
 0x259   :  { %v10533_v42 = vpop.eup %10532  ;;  %v7433_v47 = vmul.f32 %v10531_v28, %v18777_v52  ;;  %10552 = vrcp.f32 %v3666_v37  ;;  %v14727_v5 = vadd.f32 %v8466_v4, %v14664_v7  ;;  %v8480_v22 = vadd.f32 %v8479_v31, %v14673_v58  ;;  %v18781_v58 = vld [vmem:[#allocation72_spill] sm:$0xff] }
 0x25a   :  { %v10535_v36 = vpop.eup %10534  ;;  %v7432_v56 = vmul.f32 %v10533_v42, %v18778_v17  ;;  %10554 = vrcp.f32 %v3669_v49  ;;  %v8493_v29 = vadd.f32 %v8492_v14, %v14678_v20  ;;  %v8506_v25 = vadd.f32 %v8505_v59, %v14681_v8  ;;  %v18782_v31 = vld [vmem:[#allocation180_spill] sm:$0xff]  ;;  %v18783_v8 = vld [vmem:[#allocation181_spill] sm:$0xff]  ;;  %v18784_v49 = vld [vmem:[#allocation158_spill] sm:$0xff] }
 0x25b   :  { %v10537_v39 = vpop.eup %10536  ;;  %v7945_v48 = vmul.f32 %v7433_v47, %v18779_v3  ;;  %v7435_v24 = vmul.f32 %v10535_v36, %v18780_v6  ;;  %10556 = vpow2.f32 %v14555_v62  ;;  %v14736_v7 = vadd.f32 %v8518_v21, %v8517_v12  ;;  %v14744_v62 = vpop.permute.xlu1 %5665  ;;  %v18787_v17 = vld [vmem:[#allocation183_spill] sm:$0xff]  ;;  %v18788_v6 = vld [vmem:[#allocation154_spill] sm:$0xff] }
 0x25c   :  { %v10539_v37 = vpop.eup %10538  ;;  %v7944_v4 = vmul.f32 %v7432_v56, %v18781_v58  ;;  %v7434_v28 = vmul.f32 %v10537_v39, %v18782_v31  ;;  %10558 = vpow2.f32 %v14567_v27  ;;  %v8481_v20 = vrot.slane %v8480_v22, 2  ;;  %18785 = vst [vmem:[#allocation152_spill] sm:$0xff] %v14744_v62  ;;  %v14746_v12 = vpop.permute.xlu0 %5661 }
 0x25d   :  { %v10541_v14 = vpop.eup %10540  ;;  %v7437_v59 = vmul.f32 %v10539_v37, %v18783_v8  ;;  %v7947_v42 = vmul.f32 %v7435_v24, %v18784_v49  ;;  %10560 = vpow2.f32 %v14569_v26  ;;  %v8494_v52 = vrot.slane %v8493_v29, 2  ;;  %18786 = vst [vmem:[#allocation191_spill] sm:$0xff] %v14746_v12 }
 0x25e   :  { %v10543_v21 = vpop.eup %10542  ;;  %v8524_v47 = vadd.f32 %v7945_v48, %v7944_v4  ;;  %v7946_v36 = vmul.f32 %v7434_v28, %v14007_v57  ;;  %v7436_v56 = vmul.f32 %v10541_v14, %v18787_v17  ;;  %v8482_v27 = vadd.f32 %v8481_v20, %v8480_v22 }
 0x25f   :  { %v10545_v39 = vpop.eup %10544  ;;  %v7439_v31 = vmul.f32 %v10543_v21, %v18788_v6  ;;  %v7949_v37 = vmul.f32 %v7437_v59, %v14369_v1  ;;  %v8495_v24 = vadd.f32 %v8494_v52, %v8493_v29  ;;  %v8507_v8 = vrot.slane %v8506_v25, 2 }
 0x260   :  { %v10547_v26 = vpop.eup %10546  ;;  %v8525_v44 = vadd.f32 %v8524_v47, %v7946_v36  ;;  %v7438_v62 = vmul.f32 %v10545_v39, %v18789_v11  ;;  %v7948_v12 = vmul.f32 %v7436_v56, %v14237_v45  ;;  %v8483_v34 = vrot.slane %v8482_v27, 1  ;;  %v14762_v39 = vpop.permute.xlu0 %5669 }
 0x261   :  { %v10549_v48 = vpop.eup %10548  ;;  %v7441_v4 = vmul.f32 %v10547_v26, %v14306_v13  ;;  %v7951_v28 = vmul.f32 %v7439_v31, %v14489_v10  ;;  %v8496_v22 = vrot.slane %v8495_v24, 1  ;;  %v8508_v20 = vadd.f32 %v8507_v8, %v8506_v25  ;;  %v14760_v13 = vpop.permute.xlu1 %5673 }
 0x262   :  { %v10551_v14 = vpop.eup %10550  ;;  %v8526_v21 = vadd.f32 %v8525_v44, %v7947_v42  ;;  %v7440_v29 = vmul.f32 %v10549_v48, %v14308_v9  ;;  %v7950_v59 = vmul.f32 %v7438_v62, %v14471_v38  ;;  %v8484_v52 = vadd.f32 %v8483_v34, %v8482_v27 }
 0x263   :  { %v10553_v47 = vpop.eup %10552  ;;  %v7953_v11 = vmul.f32 %v7441_v4, %v18779_v3  ;;  %v7443_v36 = vmul.f32 %v10551_v14, %v14354_v15  ;;  %v8497_v17 = vadd.f32 %v8496_v22, %v8495_v24  ;;  %v8509_v56 = vrot.slane %v8508_v20, 1 }
 0x264   :  { %v10555_v25 = vpop.eup %10554  ;;  %v8527_v6 = vadd.f32 %v8526_v21, %v7948_v12  ;;  %v7952_v44 = vmul.f32 %v7440_v29, %v18781_v58  ;;  %v7442_v9 = vmul.f32 %v10553_v47, %v14356_v32  ;;  %v8520_v42 = vrot.slane %v14736_v7, 2 }
 0x265   :  { %v10557_v34 = vpop.eup %10556  ;;  %v7955_v62 = vmul.f32 %v7443_v36, %v18784_v49  ;;  %v7445_v27 = vmul.f32 %v10555_v25, %v14391_v2  ;;  %v8510_v15 = vadd.f32 %v8509_v56, %v8508_v20  ;;  %v9278_v31 = vsel %vm9264_vm0, %v8497_v17, %v8484_v52  ;;  %v14780_v36 = vpop.permute.xlu0 %5677 }
 0x266   :  { %v10559_v24 = vpop.eup %10558  ;;  %v8537_v8 = vadd.f32 %v7953_v11, %v7952_v44  ;;  %v8528_v26 = vadd.f32 %v8527_v6, %v7949_v37  ;;  %v7954_v48 = vmul.f32 %v7442_v9, %v14007_v57  ;;  %v3668_v12 = vadd.f32 1.0, %v10557_v34  ;;  %v14778_v11 = vpop.permute.xlu1 %5681 }
 0x267   :  { %v10561_v4 = vpop.eup %10560  ;;  %v14772_v22 = vmul.f32 %v7445_v27, %v14369_v1  ;;  %v3671_v32 = vadd.f32 1.0, %v10559_v24  ;;  %v8521_v14 = vadd.f32 %v8520_v42, %v14736_v7  ;;  %v9279_v21 = vsel %vm9266_vm1, %v8510_v15, %v9278_v31 }
 0x268   :  { %v8538_v29 = vadd.f32 %v8537_v8, %v7954_v48  ;;  %v8529_v2 = vadd.f32 %v8528_v26, %v7950_v59  ;;  %10562 = vrcp.f32 %v3668_v12  ;;  %v3670_v20 = vadd.f32 1.0, %v10561_v4 }
 0x269   :  { %10564 = vrcp.f32 %v3671_v32  ;;  %v8522_v52 = vrot.slane %v8521_v14, 1  ;;  %v8377_v37 = vrot.slane %v14701_v23, 2  ;;  %v8390_v47 = vrot.slane %v14704_v60, 2 }
 0x26a   :  { %v14782_v17 = vadd.f32 %v8538_v29, %v7955_v62  ;;  %v8530_v56 = vadd.f32 %v8529_v2, %v7951_v28  ;;  %10566 = vrcp.f32 %v3670_v20  ;;  %v8403_v7 = vrot.slane %v14707_v40, 2 }
 0x26b   :  { %v8523_v25 = vadd.f32 %v8522_v52, %v8521_v14  ;;  %v8416_v59 = vrot.slane %v14710_v19, 2  ;;  %v8429_v6 = vrot.slane %v14713_v35, 2  ;;  %v8442_v44 = vrot.slane %v14720_v0, 2  ;;  %v14799_v14 = vpop.permute.xlu1 %5689 }
 0x26c   :  { %v8531_v9 = vrot.slane %v8530_v56, 4  ;;  %v8455_v42 = vrot.slane %v14723_v61, 2  ;;  %v8468_v34 = vrot.slane %v14727_v5, 2  ;;  %v8378_v27 = vadd.f32 %v8377_v37, %v14701_v23 }
 0x26d   :  { %v9280_v28 = vsel %vm9268_vm2, %v8523_v25, %v9279_v21  ;;  %v8391_v62 = vadd.f32 %v8390_v47, %v14704_v60  ;;  %v8404_v15 = vadd.f32 %v8403_v7, %v14707_v40  ;;  %v8417_v31 = vadd.f32 %v8416_v59, %v14710_v19  ;;  %v14801_v60 = vpop.permute.xlu0 %5685 }
 0x26e   :  { %v8532_v24 = vadd.f32 %v8531_v9, %v8530_v56  ;;  %v8430_v8 = vadd.f32 %v8429_v6, %v14713_v35  ;;  %v8443_v26 = vadd.f32 %v8442_v44, %v14720_v0  ;;  %v8456_v48 = vadd.f32 %v8455_v42, %v14723_v61  ;;  %v18790_v44 = vld [vmem:[#allocation53_spill] sm:$0xff] }
 0x26f   :  { %v8469_v23 = vadd.f32 %v8468_v34, %v14727_v5  ;;  %v8379_v12 = vrot.slane %v8378_v27, 1  ;;  %v8392_v4 = vrot.slane %v8391_v62, 1  ;;  %v8405_v32 = vrot.slane %v8404_v15, 1 }
 0x270   :  { %v8533_v19 = vrot.slane %v8532_v24, 2  ;;  %v8418_v40 = vrot.slane %v8417_v31, 1  ;;  %v8431_v21 = vrot.slane %v8430_v8, 1  ;;  %v8444_v29 = vrot.slane %v8443_v26, 1 }
 0x271   :  { %v8457_v35 = vrot.slane %v8456_v48, 1  ;;  %v8470_v2 = vrot.slane %v8469_v23, 1  ;;  %10568 = vpow2.f32 %v14573_v55  ;;  %v8380_v0 = vadd.f32 %v8379_v12, %v8378_v27  ;;  %v18791_v27 = vld [vmem:[#allocation141_spill] sm:$0xff] }
 0x272   :  { %v10563_v61 = vpop.eup %10562  ;;  %v8534_v20 = vadd.f32 %v8533_v19, %v8532_v24  ;;  %v8393_v5 = vadd.f32 %v8392_v4, %v8391_v62  ;;  %v8406_v52 = vadd.f32 %v8405_v32, %v8404_v15  ;;  %v8419_v37 = vadd.f32 %v8418_v40, %v8417_v31  ;;  %v14811_v15 = vpop.permute.xlu1 %5700  ;;  %v18792_v4 = vld [vmem:[#allocation172_spill] sm:$0xff] }
 0x273   :  { %v10565_v47 = vpop.eup %10564  ;;  %v7444_v56 = vmul.f32 %v10563_v61, %v14393_v50  ;;  %v8432_v7 = vadd.f32 %v8431_v21, %v8430_v8  ;;  %v8445_v25 = vadd.f32 %v8444_v29, %v8443_v26  ;;  %v8458_v59 = vadd.f32 %v8457_v35, %v8456_v48  ;;  %v14813_v50 = vpop.permute.xlu0 %5696  ;;  %v18793_v21 = vld [vmem:[#allocation23_spill] sm:$0xff] }
 0x274   :  { %v10567_v6 = vpop.eup %10566  ;;  %v7447_v9 = vmul.f32 %v10565_v47, %v18790_v44  ;;  %v8535_v42 = vrot.slane %v8534_v20, 1  ;;  %v8471_v34 = vadd.f32 %v8470_v2, %v8469_v23  ;;  %10570 = vpow2.f32 %v14587_v33  ;;  %v18794_v2 = vld [vmem:[#allocation85_spill] sm:$0xff]  ;;  %v18797_v44 = vld [vmem:[#allocation82_spill] sm:$0xff] }
 0x275   :  { %v7956_v55 = vmul.f32 %v7444_v56, %v14237_v45  ;;  %v7446_v24 = vmul.f32 %v10567_v6, %v18791_v27  ;;  %v9265_v62 = vsel %vm9264_vm0, %v8393_v5, %v8380_v0  ;;  %10572 = vpow2.f32 %v14596_v54  ;;  %v18796_v6 = vld [vmem:[#allocation86_spill] sm:$0xff] }
 0x276   :  { %v7959_v31 = vmul.f32 %v7447_v9, %v14489_v10  ;;  %v8536_v8 = vadd.f32 %v8535_v42, %v8534_v20  ;;  %v9267_v26 = vsel %vm9266_vm1, %v8406_v52, %v9265_v62  ;;  %10574 = vpow2.f32 %v14603_v18  ;;  %v18798_v62 = vld [vmem:[#allocation144_spill] sm:$0xff] }
 0x277   :  { %v8540_v33 = vadd.f32 %v14782_v17, %v7956_v55  ;;  %v7958_v48 = vmul.f32 %v7446_v24, %v14471_v38  ;;  %v9269_v23 = vsel %vm9268_vm2, %v8419_v37, %v9267_v26  ;;  %10576 = vpow2.f32 %v14608_v51  ;;  %v14849_v37 = vpop.permute.xlu1 %5708  ;;  %v14851_v47 = vpop.permute.xlu0 %5704 }
 0x278   :  { %v14823_v54 = vsel %vm9270_vm3, %v8536_v8, %v9280_v28  ;;  %v9271_v12 = vsel %vm9270_vm3, %v8432_v7, %v9269_v23  ;;  %v1628_v32 = vadd.f32 %v18745_v63, %v18792_v4  ;;  %v1631_v19 = vadd.f32 %v18745_v63, %v18672_v43  ;;  %v18795_v7 = vld [vmem:[#allocation148_spill] sm:$0xff] }
 0x279   :  { %v8541_v18 = vadd.f32 %v8540_v33, %v14772_v22  ;;  %v9273_v17 = vsel %vm9272_vm4, %v8445_v25, %v9271_v12  ;;  %v1630_v40 = vadd.f32 %v18745_v63, %v18674_v53  ;;  %v14836_v51 = vrot.slane %v18676_v41, %v18793_v21  ;;  %v10035_v22 = vld [vmem:[%s18186_s7] ss:$0 sm:$0xff] }
 0x27a   :  { %v9275_v28 = vsel %vm9274_vm5, %v8458_v59, %v9273_v17  ;;  %v9639_v29 = vmul.f32 -1.442695, %v1628_v32  ;;  %v9642_v35 = vmul.f32 -1.442695, %v1631_v19  ;;  %v1633_v0 = vadd.f32 %v18794_v2, %v18688_v16  ;;  %v10036_v33 = vld [vmem:[%s18184_s5] ss:$0 sm:$0xff] }
 0x27b   :  { %v10569_v61 = vpop.eup %10568  ;;  %v8542_v20 = vadd.f32 %v8541_v18, %v7958_v48  ;;  %v9277_v5 = vsel %vm9276_vm6, %v8471_v34, %v9275_v28  ;;  %v9641_v63 = vmul.f32 -1.442695, %v1630_v40  ;;  %5875 = vbcast.lane.b32.xlu1 %v14836_v51, 264  ;;  %5871 = vbcast.lane.b32.xlu0 %v14836_v51, 256  ;;  %v1632_v52 = vadd.f32 %v18794_v2, %v18690_v46  ;;  %v18800_v18 = vld [vmem:[#allocation167_spill] sm:$0xff] }
 0x27c   :  { %v3673_v56 = vadd.f32 1.0, %v10569_v61  ;;  %v9335_v25 = vadd.f32 %v9277_v5, %v18795_v7  ;;  %10578 = vpow2.f32 %v9639_v29  ;;  %v9644_v59 = vmul.f32 -1.442695, %v1633_v0  ;;  %v10037_v29 = vld [vmem:[%s18185_s6] ss:$0 sm:$0xff] }
 0x27d   :  { %v14856_v9 = vadd.f32 %v18797_v44, %v18796_v6  ;;  %v8543_v42 = vadd.f32 %v8542_v20, %v7959_v31  ;;  %10580 = vpow2.f32 %v9642_v35  ;;  %v1635_v34 = vadd.f32 %v18794_v2, %v18709_v30  ;;  %v18799_v31 = vld [vmem:[#allocation131_spill] sm:$0xff]  ;;  %v14875_v20 = vpop.permute.xlu0 %5712 }
 0x27e   :  { %v10571_v55 = vpop.eup %10570  ;;  %10582 = vrcp.f32 %v3673_v56  ;;  %v9372_v27 = vsub.f32 %v9335_v25, %v10035_v22  ;;  %v9643_v24 = vmul.f32 -1.442695, %v1632_v52  ;;  %v1634_v8 = vadd.f32 %v18794_v2, %v18798_v62  ;;  %v14873_v22 = vpop.permute.xlu1 %5716  ;;  %18801 = vst [vmem:[#allocation84_spill] sm:$0xff] %v14875_v20  ;;  %v18829_v20 = vld [vmem:[#allocation119_spill] sm:$0xff] }
 0x27f   :  { %v10573_v26 = vpop.eup %10572  ;;  %v8544_v48 = vrot.slane %v8543_v42, 4  ;;  %v3672_v23 = vadd.f32 1.0, %v10571_v55  ;;  %10584 = vpow2.f32 %v9641_v63  ;;  %5883 = vbcast.lane.b32.xlu1 %v14836_v51, 280  ;;  %5879 = vbcast.lane.b32.xlu0 %v14836_v51, 272  ;;  %v1637_v12 = vadd.f32 %v18794_v2, %v18799_v31 }
 0x280   :  { %v10575_v32 = vpop.eup %10574  ;;  %v3675_v19 = vadd.f32 1.0, %v10573_v26  ;;  %v9386_v17 = vmul.f32 %v18800_v18, %v9372_v27  ;;  %10586 = vpow2.f32 %v9644_v59  ;;  %v9646_v40 = vmul.f32 -1.442695, %v1635_v34  ;;  %v18802_v27 = vld [vmem:[#allocation24_spill] sm:$0xff] }
 0x281   :  { %v10577_v28 = vpop.eup %10576  ;;  %v8545_v35 = vadd.f32 %v8544_v48, %v8543_v42  ;;  %10588 = vrcp.f32 %v3672_v23  ;;  %v3674_v0 = vadd.f32 1.0, %v10575_v32  ;;  %v9645_v61 = vmul.f32 -1.442695, %v1634_v8  ;;  %v18803_v48 = vld [vmem:[#allocation88_spill] sm:$0xff] }
 0x282   :  { %10590 = vrcp.f32 %v3675_v19  ;;  %v3677_v5 = vadd.f32 1.0, %v10577_v28  ;;  %v9401_v63 = vmul.f32 %v10036_v33, %v9386_v17  ;;  %v1636_v52 = vadd.f32 %v18794_v2, %v18792_v4 }
 0x283   :  { %v8546_v56 = vrot.slane %v8545_v35, 2  ;;  %10592 = vrcp.f32 %v3674_v0  ;;  %5891 = vbcast.lane.b32.xlu1 %v14836_v51, 296  ;;  %5887 = vbcast.lane.b32.xlu0 %v14836_v51, 288  ;;  %v9648_v7 = vmul.f32 -1.442695, %v1637_v12  ;;  %v1639_v25 = vadd.f32 %v18794_v2, %v18672_v43 }
 0x284   :  { %10594 = vrcp.f32 %v3677_v5  ;;  %v9416_v59 = vadd.f32 %v10037_v29, %v9401_v63  ;;  %v9647_v44 = vmul.f32 -1.442695, %v1636_v52  ;;  %v1638_v42 = vadd.f32 %v18794_v2, %v18674_v53  ;;  %v14897_v2 = vpop.permute.xlu1 %5724 }
 0x285   :  { %v8547_v34 = vadd.f32 %v8546_v56, %v8545_v35  ;;  %10596 = vpow2.f32 %v9643_v24  ;;  %v9650_v55 = vmul.f32 -1.442695, %v1639_v25  ;;  %v14887_v8 = vrot.slane %v18676_v41, %v18802_v27  ;;  %18804 = vst [vmem:[#allocation164_spill] sm:$0xff] %v14897_v2  ;;  %v14899_v24 = vpop.permute.xlu0 %5720 }
 0x286   :  { %v10579_v26 = vpop.eup %10578  ;;  %v9424_v33 = vmax.f32 %v9416_v59, 0.0  ;;  %10598 = vpow2.f32 %v9646_v40  ;;  %v1641_v23 = vadd.f32 %v18803_v48, %v18688_v16  ;;  %v1640_v12 = vadd.f32 %v18803_v48, %v18690_v46  ;;  %18805 = vst [vmem:[#allocation135_spill] sm:$0xff] %v14899_v24 }
 0x287   :  { %v10581_v32 = vpop.eup %10580  ;;  %v8548_v19 = vrot.slane %v8547_v34, 1  ;;  %v3676_v17 = vadd.f32 1.0, %v10579_v26  ;;  %10600 = vpow2.f32 %v9645_v61  ;;  %5899 = vbcast.lane.b32.xlu1 %v14836_v51, 312  ;;  %5895 = vbcast.lane.b32.xlu0 %v14836_v51, 304  ;;  %v1643_v41 = vadd.f32 %v18803_v48, %v18709_v30  ;;  %v18806_v61 = vld [vmem:[#allocation184_spill] sm:$0xff] }
 0x288   :  { %v10583_v40 = vpop.eup %10582  ;;  %v3679_v28 = vadd.f32 1.0, %v10581_v32  ;;  %9432 = vst [vmem:[#allocation12] sm:$0xff] %v9424_v33  ;;  %10602 = vpow2.f32 %v9648_v7  ;;  %v9649_v29 = vmul.f32 -1.442695, %v1638_v42  ;;  %v9652_v35 = vmul.f32 -1.442695, %v1641_v23 }
 0x289   :  { %v10585_v0 = vpop.eup %10584  ;;  %v8549_v5 = vadd.f32 %v8548_v19, %v8547_v34  ;;  %v7449_v63 = vmul.f32 %v10583_v40, %v18806_v61  ;;  %10604 = vrcp.f32 %v3676_v17  ;;  %v9651_v52 = vmul.f32 -1.442695, %v1640_v12  ;;  %v18807_v12 = vld [vmem:[#allocation185_spill] sm:$0xff]  ;;  %v18808_v40 = vld [vmem:[#allocation28_spill] sm:$0xff] }
 0x28a   :  { %v10587_v51 = vpop.eup %10586  ;;  %10606 = vrcp.f32 %v3679_v28  ;;  %v3678_v56 = vadd.f32 1.0, %v10585_v0  ;;  %v1642_v25 = vadd.f32 %v18803_v48, %v18798_v62  ;;  %v1645_v59 = vadd.f32 %v18803_v48, %v18799_v31  ;;  %v14919_v0 = vpop.permute.xlu1 %5735 }
 0x28b   :  { %v10589_v26 = vpop.eup %10588  ;;  %v14908_v7 = vsel %vm9272_vm4, %v8549_v5, %v14823_v54  ;;  %v3681_v42 = vadd.f32 1.0, %v10587_v51  ;;  %10608 = vpow2.f32 %v9647_v44  ;;  %5910 = vbcast.lane.b32.xlu1 %v14887_v8, 264  ;;  %5906 = vbcast.lane.b32.xlu0 %v14887_v8, 256  ;;  %v9654_v34 = vmul.f32 -1.442695, %v1643_v41  ;;  %18809 = vst [vmem:[#allocation31_spill] sm:$0xff] %v14919_v0  ;;  %v14921_v5 = vpop.permute.xlu0 %5731 }
 0x28c   :  { %v10591_v33 = vpop.eup %10590  ;;  %v7961_v23 = vmul.f32 %v7449_v63, %v18779_v3  ;;  %v7448_v32 = vmul.f32 %v10589_v26, %v18807_v12  ;;  %10610 = vrcp.f32 %v3678_v56  ;;  %v9653_v19 = vmul.f32 -1.442695, %v1642_v25  ;;  %18810 = vst [vmem:[#allocation160_spill] sm:$0xff] %v14921_v5  ;;  %v18811_v63 = vld [vmem:[#allocation33_spill] sm:$0xff]  ;;  %v18812_v26 = vld [vmem:[#allocation38_spill] sm:$0xff] }
 0x28d   :  { %v10593_v17 = vpop.eup %10592  ;;  %v7451_v28 = vmul.f32 %v10591_v33, %v18808_v40  ;;  %10612 = vrcp.f32 %v3681_v42  ;;  %v14915_v54 = vmul.f32 -1.442695, %v1645_v59  ;;  %v1644_v44 = vadd.f32 %v18803_v48, %v18792_v4 }
 0x28e   :  { %v10595_v41 = vpop.eup %10594  ;;  %v7960_v61 = vmul.f32 %v7448_v32, %v18781_v58  ;;  %v7450_v51 = vmul.f32 %v10593_v17, %v18811_v63  ;;  %10614 = vpow2.f32 %v9650_v55  ;;  %v1647_v56 = vadd.f32 %v18803_v48, %v18672_v43 }
 0x28f   :  { %v10597_v25 = vpop.eup %10596  ;;  %v7963_v59 = vmul.f32 %v7451_v28, %v18784_v49  ;;  %v7453_v42 = vmul.f32 %v10595_v41, %v18812_v26  ;;  %10616 = vpow2.f32 %v9649_v29  ;;  %5918 = vbcast.lane.b32.xlu1 %v14887_v8, 280  ;;  %5914 = vbcast.lane.b32.xlu0 %v14887_v8, 272  ;;  %v1646_v33 = vadd.f32 %v18803_v48, %v18674_v53 }
 0x290   :  { %v10599_v12 = vpop.eup %10598  ;;  %v8550_v32 = vadd.f32 %v7961_v23, %v7960_v61  ;;  %v7962_v55 = vmul.f32 %v7450_v51, %v14007_v57  ;;  %v3680_v17 = vadd.f32 1.0, %v10597_v25  ;;  %10618 = vpow2.f32 %v9652_v35  ;;  %v12168_v35 = vld [vmem:[#allocation9 + $0x8] sm:$0xff]   ;;  %v18813_v61 = vld [vmem:[#allocation89_spill] sm:$0xff]  ;;  %v14945_v51 = vpop.permute.xlu0 %5739 }
 0x291   :  { %v10601_v40 = vpop.eup %10600  ;;  %v7965_v63 = vmul.f32 %v7453_v42, %v14369_v1  ;;  %v3683_v28 = vadd.f32 1.0, %v10599_v12  ;;  %10620 = vpow2.f32 %v9651_v52  ;;  %v9655_v41 = vmul.f32 -1.442695, %v1644_v44  ;;  %v14943_v44 = vpop.permute.xlu1 %5743  ;;  %18815 = vst [vmem:[#allocation186_spill] sm:$0xff] %v14945_v51 }
 0x292   :  { %v10603_v29 = vpop.eup %10602  ;;  %v8551_v26 = vadd.f32 %v8550_v32, %v7962_v55  ;;  %10622 = vrcp.f32 %v3680_v17  ;;  %v3682_v18 = vadd.f32 1.0, %v10601_v40  ;;  %v14935_v27 = vmul.f32 -1.442695, %v1647_v56  ;;  %18814 = vst [vmem:[#allocation37_spill] sm:$0xff] %v14943_v44  ;;  %v18816_v56 = vld [vmem:[#allocation43_spill] sm:$0xff]  ;;  %v18817_v17 = vld [vmem:[#allocation45_spill] sm:$0xff] }
 0x293   :  { %v10605_v21 = vpop.eup %10604  ;;  %10624 = vrcp.f32 %v3683_v28  ;;  %v3685_v48 = vadd.f32 1.0, %v10603_v29  ;;  %5926 = vbcast.lane.b32.xlu1 %v14887_v8, 296  ;;  %5922 = vbcast.lane.b32.xlu0 %v14887_v8, 288  ;;  %v14939_v23 = vunpack.c.h.bf16 %v12168_v35  ;;  %v1649_v52 = vadd.f32 %v18813_v61, %v18688_v16  ;;  %v18818_v29 = vld [vmem:[#allocation17_spill] sm:$0xff] }
 0x294   :  { %v10607_v25 = vpop.eup %10606  ;;  %v7452_v42 = vmul.f32 %v10605_v21, %v18816_v56  ;;  %v8552_v12 = vadd.f32 %v8551_v26, %v7963_v59  ;;  %10626 = vrcp.f32 %v3682_v18  ;;  %v1648_v32 = vadd.f32 %v18813_v61, %v18690_v46  ;;  %v18819_v59 = vld [vmem:[#allocation161_spill] sm:$0xff] }
 0x295   :  { %v10609_v55 = vpop.eup %10608  ;;  %v7455_v40 = vmul.f32 %v10607_v25, %v18817_v17  ;;  %10628 = vrcp.f32 %v3685_v48  ;;  %v14951_v28 = vmul.f32 -1.442695, %v1646_v33  ;;  %v14955_v35 = vrot.slane %v14939_v23, %v18818_v29 }
 0x296   :  { %v10611_v44 = vpop.eup %10610  ;;  %v7964_v51 = vmul.f32 %v7452_v42, %v14237_v45  ;;  %v3684_v5 = vadd.f32 1.0, %v10609_v55  ;;  %10630 = vpow2.f32 %v9654_v34  ;;  %v14958_v21 = vmul.f32 -1.442695, %v1649_v52  ;;  %v18820_v55 = vld [vmem:[#allocation50_spill] sm:$0xff] }
 0x297   :  { %v10613_v18 = vpop.eup %10612  ;;  %v7454_v26 = vmul.f32 %v10611_v44, %v18819_v59  ;;  %10632 = vpow2.f32 %v9653_v19  ;;  %5934 = vbcast.lane.b32.xlu1 %v14887_v8, 312  ;;  %5930 = vbcast.lane.b32.xlu0 %v14887_v8, 304  ;;  %v9659_v33 = vmul.f32 -1.442695, %v1648_v32  ;;  %v1651_v48 = vadd.f32 %v18813_v61, %v18709_v30  ;;  %v14971_v19 = vpop.permute.xlu1 %5751 }
 0x298   :  { %v10615_v25 = vpop.eup %10614  ;;  %v8553_v56 = vadd.f32 %v8552_v12, %v7964_v51  ;;  %v7967_v42 = vmul.f32 %v7455_v40, %v14489_v10  ;;  %v7457_v34 = vmul.f32 %v10613_v18, %v18820_v55  ;;  %10634 = vrcp.f32 %v3684_v5  ;;  %18821 = vst [vmem:[#allocation187_spill] sm:$0xff] %v14971_v19  ;;  %v14973_v32 = vpop.permute.xlu0 %5747  ;;  %v18824_v19 = vld [vmem:[#allocation162_spill] sm:$0xff] }
 0x299   :  { %v10617_v52 = vpop.eup %10616  ;;  %v7966_v17 = vmul.f32 %v7454_v26, %v14471_v38  ;;  %v3687_v44 = vadd.f32 1.0, %v10615_v25  ;;  %10636 = vpow2.f32 %v14915_v54  ;;  %v1650_v8 = vadd.f32 %v18813_v61, %v18798_v62  ;;  %18822 = vst [vmem:[#allocation188_spill] sm:$0xff] %v14973_v32 }
 0x29a   :  { %v10619_v59 = vpop.eup %10618  ;;  %v8554_v51 = vadd.f32 %v8553_v56, %v7965_v63  ;;  %v3686_v12 = vadd.f32 1.0, %v10617_v52  ;;  %10638 = vpow2.f32 %v9655_v41  ;;  %v9662_v40 = vmul.f32 -1.442695, %v1651_v48  ;;  %v18823_v48 = vld [vmem:[#allocation52_spill] sm:$0xff] }
 0x29b   :  { %v10621_v18 = vpop.eup %10620  ;;  %v7969_v5 = vmul.f32 %v7457_v34, %v18779_v3  ;;  %10640 = vrcp.f32 %v3687_v44  ;;  %v3689_v26 = vadd.f32 1.0, %v10619_v59  ;;  %5945 = vbcast.lane.b32.xlu1 %v14955_v35, 264  ;;  %5941 = vbcast.lane.b32.xlu0 %v14955_v35, 256  ;;  %v1653_v54 = vadd.f32 %v18813_v61, %v18799_v31 }
 0x29c   :  { %v10623_v25 = vpop.eup %10622  ;;  %v8555_v55 = vadd.f32 %v8554_v51, %v7966_v17  ;;  %10642 = vrcp.f32 %v3686_v12  ;;  %v3688_v32 = vadd.f32 1.0, %v10621_v18  ;;  %v1652_v63 = vadd.f32 %v18813_v61, %v18792_v4  ;;  %v18825_v18 = vld [vmem:[#allocation60_spill] sm:$0xff] }
 0x29d   :  { %v10625_v41 = vpop.eup %10624  ;;  %v7456_v56 = vmul.f32 %v10623_v25, %v18823_v48  ;;  %10644 = vrcp.f32 %v3689_v26  ;;  %v14983_v34 = vmul.f32 -1.442695, %v1650_v8  ;;  %v14985_v52 = vmul.f32 -1.442695, %v1653_v54  ;;  %v14995_v26 = vpop.permute.xlu1 %5759  ;;  %v18828_v25 = vld [vmem:[#allocation163_spill] sm:$0xff] }
 0x29e   :  { %v10627_v44 = vpop.eup %10626  ;;  %v8556_v59 = vadd.f32 %v8555_v55, %v7967_v42  ;;  %v7459_v0 = vmul.f32 %v10625_v41, %v18824_v19  ;;  %10646 = vrcp.f32 %v3688_v32  ;;  %v1655_v17 = vadd.f32 %v18813_v61, %v18672_v43  ;;  %18826 = vst [vmem:[#allocation79_spill] sm:$0xff] %v14995_v26  ;;  %v14997_v42 = vpop.permute.xlu0 %5755 }
 0x29f   :  { %v10629_v51 = vpop.eup %10628  ;;  %v7968_v12 = vmul.f32 %v7456_v56, %v18781_v58  ;;  %v7458_v24 = vmul.f32 %v10627_v44, %v18825_v18  ;;  %10648 = vpow2.f32 %v14935_v27  ;;  %5953 = vbcast.lane.b32.xlu1 %v14955_v35, 280  ;;  %5949 = vbcast.lane.b32.xlu0 %v14955_v35, 272  ;;  %v9663_v8 = vmul.f32 -1.442695, %v1652_v63  ;;  %18827 = vst [vmem:[#allocation78_spill] sm:$0xff] %v14997_v42 }
 0x2a0   :  { %v10631_v19 = vpop.eup %10630  ;;  %v8557_v32 = vrot.slane %v8556_v59, 4  ;;  %v7971_v54 = vmul.f32 %v7459_v0, %v18784_v49  ;;  %v7461_v55 = vmul.f32 %v10629_v51, %v18828_v25  ;;  %10650 = vpow2.f32 %v14951_v28 }
 0x2a1   :  { %v10633_v41 = vpop.eup %10632  ;;  %v8563_v48 = vadd.f32 %v7969_v5, %v7968_v12  ;;  %v7970_v27 = vmul.f32 %v7458_v24, %v14007_v57  ;;  %v3691_v56 = vadd.f32 1.0, %v10631_v19  ;;  %10652 = vpow2.f32 %v14958_v21  ;;  %v15011_v19 = vpop.permute.xlu1 %5770 }
 0x2a2   :  { %v10635_v63 = vpop.eup %10634  ;;  %v8558_v44 = vadd.f32 %v8557_v32, %v8556_v59  ;;  %v3690_v18 = vadd.f32 1.0, %v10633_v41  ;;  %10654 = vpow2.f32 %v9659_v33  ;;  %v9666_v42 = vmul.f32 -1.442695, %v1655_v17 }
 0x2a3   :  { %v10637_v26 = vpop.eup %10636  ;;  %v8564_v2 = vadd.f32 %v8563_v48, %v7970_v27  ;;  %v7973_v0 = vmul.f32 %v7461_v55, %v14369_v1  ;;  %v7460_v51 = vmul.f32 %v10635_v63, %v18829_v20  ;;  %10656 = vrcp.f32 %v3691_v56  ;;  %5961 = vbcast.lane.b32.xlu1 %v14955_v35, 296  ;;  %5957 = vbcast.lane.b32.xlu0 %v14955_v35, 288  ;;  %v15013_v20 = vpop.permute.xlu0 %5766  ;;  %v18830_v55 = vld [vmem:[#allocation68_spill] sm:$0xff]  ;;  %v18831_v48 = vld [vmem:[#allocation18_spill] sm:$0xff]  ;;  %v18832_v56 = vld [vmem:[#allocation25_spill] sm:$0xff] }
 0x2a4   :  { %v10639_v24 = vpop.eup %10638  ;;  %v8559_v28 = vrot.slane %v8558_v44, 2  ;;  %10658 = vrcp.f32 %v3690_v18  ;;  %v3693_v21 = vadd.f32 1.0, %v10637_v26  ;;  %v1654_v5 = vadd.f32 %v18813_v61, %v18674_v53 }
 0x2a5   :  { %v10641_v33 = vpop.eup %10640  ;;  %v7972_v59 = vmul.f32 %v7460_v51, %v14237_v45  ;;  %v8565_v17 = vadd.f32 %v8564_v2, %v7971_v54  ;;  %v3692_v12 = vadd.f32 1.0, %v10639_v24  ;;  %10660 = vpow2.f32 %v9662_v40  ;;  %v18833_v2 = vld [vmem:[#allocation90_spill] sm:$0xff]  ;;  %v18834_v51 = vld [vmem:[#allocation152_spill] sm:$0xff] }
 0x2a6   :  { %v10643_v32 = vpop.eup %10642  ;;  %v8560_v25 = vadd.f32 %v8559_v28, %v8558_v44  ;;  %v7463_v41 = vmul.f32 %v10641_v33, %v18830_v55  ;;  %10662 = vrcp.f32 %v3693_v21  ;;  %v15018_v26 = vrot.slane %v14939_v23, %v18831_v48 }
 0x2a7   :  { %v10645_v61 = vpop.eup %10644  ;;  %v8566_v27 = vadd.f32 %v8565_v17, %v7972_v59  ;;  %v7462_v63 = vmul.f32 %v10643_v32, %v18832_v56  ;;  %10664 = vrcp.f32 %v3692_v12  ;;  %5969 = vbcast.lane.b32.xlu1 %v14955_v35, 312  ;;  %5965 = vbcast.lane.b32.xlu0 %v14955_v35, 304  ;;  %v1657_v40 = vadd.f32 %v18833_v2, %v18688_v16  ;;  %v18835_v59 = vld [vmem:[#allocation191_spill] sm:$0xff] }
 0x2a8   :  { %v10647_v54 = vpop.eup %10646  ;;  %v8561_v44 = vrot.slane %v8560_v25, 1  ;;  %v7975_v18 = vmul.f32 %v7463_v41, %v14489_v10  ;;  %v7465_v24 = vmul.f32 %v10645_v61, %v18834_v51  ;;  %10666 = vpow2.f32 %v14983_v34  ;;  %v15035_v34 = vpop.permute.xlu1 %5778 }
 0x2a9   :  { %v10649_v28 = vpop.eup %10648  ;;  %v7974_v21 = vmul.f32 %v7462_v63, %v14471_v38  ;;  %v8567_v33 = vadd.f32 %v8566_v27, %v7973_v0  ;;  %v7464_v17 = vmul.f32 %v10647_v54, %v18835_v59  ;;  %10668 = vpow2.f32 %v14985_v52  ;;  %v15037_v0 = vpop.permute.xlu0 %5774 }
 0x2aa   :  { %v10651_v35 = vpop.eup %10650  ;;  %v8562_v12 = vadd.f32 %v8561_v44, %v8560_v25  ;;  %v7977_v32 = vmul.f32 %v7465_v24, %v18779_v3  ;;  %v3695_v55 = vadd.f32 1.0, %v10649_v28  ;;  %10670 = vpow2.f32 %v9663_v8 }
 0x2ab   :  { %v10653_v56 = vpop.eup %10652  ;;  %v8568_v41 = vadd.f32 %v8567_v33, %v7974_v21  ;;  %v7976_v61 = vmul.f32 %v7464_v17, %v18781_v58  ;;  %v3694_v51 = vadd.f32 1.0, %v10651_v35  ;;  %10672 = vpow2.f32 %v9666_v42  ;;  %5980 = vbcast.lane.b32.xlu1 %v15018_v26, 264  ;;  %5976 = vbcast.lane.b32.xlu0 %v15018_v26, 256 }
 0x2ac   :  { %v10655_v52 = vpop.eup %10654  ;;  %v15041_v25 = vsel %vm9274_vm5, %v8562_v12, %v14908_v7  ;;  %10674 = vrcp.f32 %v3695_v55  ;;  %v3697_v8 = vadd.f32 1.0, %v10653_v56  ;;  %v9665_v27 = vmul.f32 -1.442695, %v1654_v5 }
 0x2ad   :  { %v10657_v63 = vpop.eup %10656  ;;  %v8569_v54 = vadd.f32 %v8568_v41, %v7975_v18  ;;  %10676 = vrcp.f32 %v3694_v51  ;;  %v3696_v42 = vadd.f32 1.0, %v10655_v52  ;;  %v9668_v44 = vmul.f32 -1.442695, %v1657_v40 }
 0x2ae   :  { %v10659_v24 = vpop.eup %10658  ;;  %v7467_v28 = vmul.f32 %v10657_v63, %v14760_v13  ;;  %10678 = vrcp.f32 %v3697_v8  ;;  %v1656_v21 = vadd.f32 %v18833_v2, %v18690_v46  ;;  %v1659_v33 = vadd.f32 %v18833_v2, %v18709_v30 }
 0x2af   :  { %v10661_v7 = vpop.eup %10660  ;;  %v8570_v59 = vrot.slane %v8569_v54, 4  ;;  %v8576_v17 = vadd.f32 %v7977_v32, %v7976_v61  ;;  %v7466_v5 = vmul.f32 %v10659_v24, %v14762_v39  ;;  %10680 = vrcp.f32 %v3696_v42  ;;  %5988 = vbcast.lane.b32.xlu1 %v15018_v26, 280  ;;  %5984 = vbcast.lane.b32.xlu0 %v15018_v26, 272  ;;  %v15054_v32 = vpop.permute.xlu1 %5786 }
 0x2b0   :  { %v10663_v40 = vpop.eup %10662  ;;  %v7979_v13 = vmul.f32 %v7467_v28, %v18784_v49  ;;  %v3699_v18 = vadd.f32 1.0, %v10661_v7  ;;  %10682 = vpow2.f32 %v9665_v27  ;;  %v9667_v35 = vmul.f32 -1.442695, %v1656_v21  ;;  %v15056_v39 = vpop.permute.xlu0 %5782 }
 0x2b1   :  { %v10665_v12 = vpop.eup %10664  ;;  %v8571_v55 = vadd.f32 %v8570_v59, %v8569_v54  ;;  %v7978_v56 = vmul.f32 %v7466_v5, %v14007_v57  ;;  %v7469_v41 = vmul.f32 %v10663_v40, %v14778_v11  ;;  %10684 = vpow2.f32 %v9668_v44 }
 0x2b2   :  { %v10667_v61 = vpop.eup %10666  ;;  %v7468_v51 = vmul.f32 %v10665_v12, %v14780_v36  ;;  %10686 = vrcp.f32 %v3699_v18  ;;  %v9670_v52 = vmul.f32 -1.442695, %v1659_v33  ;;  %v1658_v8 = vadd.f32 %v18833_v2, %v18798_v62 }
 0x2b3   :  { %v10669_v27 = vpop.eup %10668  ;;  %v8572_v63 = vrot.slane %v8571_v55, 2  ;;  %v8577_v54 = vadd.f32 %v8576_v17, %v7978_v56  ;;  %v7981_v42 = vmul.f32 %v7469_v41, %v14369_v1  ;;  %v3698_v24 = vadd.f32 1.0, %v10667_v61  ;;  %5996 = vbcast.lane.b32.xlu1 %v15018_v26, 296  ;;  %5992 = vbcast.lane.b32.xlu0 %v15018_v26, 288 }
 0x2b4   :  { %v10671_v11 = vpop.eup %10670  ;;  %v7980_v44 = vmul.f32 %v7468_v51, %v14237_v45  ;;  %v3701_v28 = vadd.f32 1.0, %v10669_v27  ;;  %10688 = vpow2.f32 %v9667_v35  ;;  %v1661_v36 = vadd.f32 %v18833_v2, %v18799_v31 }
 0x2b5   :  { %v10673_v21 = vpop.eup %10672  ;;  %v8573_v33 = vadd.f32 %v8572_v63, %v8571_v55  ;;  %v8578_v7 = vadd.f32 %v8577_v54, %v7979_v13  ;;  %10690 = vrcp.f32 %v3698_v24  ;;  %v3700_v59 = vadd.f32 1.0, %v10671_v11  ;;  %v15072_v13 = vpop.permute.xlu1 %5794 }
 0x2b6   :  { %v10675_v17 = vpop.eup %10674  ;;  %10692 = vrcp.f32 %v3701_v28  ;;  %v3703_v5 = vadd.f32 1.0, %v10673_v21  ;;  %v9669_v40 = vmul.f32 -1.442695, %v1658_v8  ;;  %v1660_v18 = vadd.f32 %v18833_v2, %v18792_v4  ;;  %v15074_v55 = vpop.permute.xlu0 %5790 }
 0x2b7   :  { %v10677_v12 = vpop.eup %10676  ;;  %v8574_v56 = vrot.slane %v8573_v33, 1  ;;  %v8579_v41 = vadd.f32 %v8578_v7, %v7980_v44  ;;  %v7471_v35 = vmul.f32 %v10675_v17, %v14799_v14  ;;  %10694 = vrcp.f32 %v3700_v59  ;;  %6004 = vbcast.lane.b32.xlu1 %v15018_v26, 312  ;;  %6000 = vbcast.lane.b32.xlu0 %v15018_v26, 304 }
 0x2b8   :  { %v10679_v61 = vpop.eup %10678  ;;  %v7470_v51 = vmul.f32 %v10677_v12, %v14801_v60  ;;  %10696 = vrcp.f32 %v3703_v5  ;;  %v9672_v8 = vmul.f32 -1.442695, %v1661_v36  ;;  %v9671_v27 = vmul.f32 -1.442695, %v1660_v18  ;;  %v18837_v18 = vld [vmem:[#allocation118_spill] sm:$0xff] }
 0x2b9   :  { %v10681_v63 = vpop.eup %10680  ;;  %v8575_v54 = vadd.f32 %v8574_v56, %v8573_v33  ;;  %v8580_v24 = vadd.f32 %v8579_v41, %v7981_v42  ;;  %v7473_v14 = vmul.f32 %v10679_v61, %v14811_v15  ;;  %v1663_v11 = vadd.f32 %v18833_v2, %v18672_v43  ;;  %v18840_v41 = vld [vmem:[#allocation87_spill] sm:$0xff] }
 0x2ba   :  { %v10683_v44 = vpop.eup %10682  ;;  %v7983_v26 = vmul.f32 %v7471_v35, %v14489_v10  ;;  %v7982_v28 = vmul.f32 %v7470_v51, %v14471_v38  ;;  %v7472_v21 = vmul.f32 %v10681_v63, %v14813_v50  ;;  %10698 = vpow2.f32 %v9670_v52  ;;  %v18839_v52 = vld [vmem:[#allocation19_spill] sm:$0xff] }
 0x2bb   :  { %v10685_v60 = vpop.eup %10684  ;;  %v9284_v36 = vsel %vm9276_vm6, %v8575_v54, %v15041_v25  ;;  %v7985_v33 = vmul.f32 %v7473_v14, %v18779_v3  ;;  %v3702_v42 = vadd.f32 1.0, %v10683_v44  ;;  %10700 = vpow2.f32 %v9669_v40  ;;  %v15100_v40 = vpop.permute.xlu1 %5805 }
 0x2bc   :  { %v10687_v15 = vpop.eup %10686  ;;  %v15087_v7 = vadd.f32 %v9284_v36, %v14856_v9  ;;  %v8581_v59 = vadd.f32 %v8580_v24, %v7982_v28  ;;  %v7984_v17 = vmul.f32 %v7472_v21, %v18781_v58  ;;  %v3705_v5 = vadd.f32 1.0, %v10685_v60  ;;  %v15102_v9 = vpop.permute.xlu0 %5801 }
 0x2bd   :  { %v15092_v50 = vrot.slane %v18837_v18, %v18818_v29  ;;  %10702 = vrcp.f32 %v3702_v42  ;;  %v1662_v25 = vadd.f32 %v18833_v2, %v18674_v53  ;;  %v15098_v12 = vrot.slane %v14939_v23, %v18839_v52  ;;  %v18855_v29 = vld [vmem:[#allocation79_spill] sm:$0xff] }
 0x2be   :  { %18836 = vst [vmem:[#allocation41_spill] sm:$0xff] %v15087_v7  ;;  %v10689_v56 = vpop.eup %10688  ;;  %v15106_v35 = vadd.f32 %v18840_v41, %v18796_v6  ;;  %v8582_v61 = vadd.f32 %v8581_v59, %v7983_v26  ;;  %v7475_v51 = vmul.f32 %v10687_v15, %v14849_v37  ;;  %10704 = vrcp.f32 %v3705_v5  ;;  %v18842_v37 = vld [vmem:[#allocation92_spill] sm:$0xff] }
 0x2bf   :  { %18838 = vst [vmem:[#allocation147_spill] sm:$0xff] %v15092_v50  ;;  %v10691_v63 = vpop.eup %10690  ;;  %v8589_v54 = vadd.f32 %v7985_v33, %v7984_v17  ;;  %v3704_v2 = vadd.f32 1.0, %v10689_v56  ;;  %10706 = vpow2.f32 %v9672_v8  ;;  %v9674_v24 = vmul.f32 -1.442695, %v1663_v11  ;;  %6015 = vbcast.lane.b32.xlu1 %v15098_v12, 264  ;;  %6011 = vbcast.lane.b32.xlu0 %v15098_v12, 256 }
 0x2c0   :  { %18841 = vst [vmem:[#allocation203_spill] sm:$0xff] %v15106_v35  ;;  %v10693_v14 = vpop.eup %10692  ;;  %v8583_v44 = vrot.slane %v8582_v61, 4  ;;  %v7474_v28 = vmul.f32 %v10691_v63, %v14851_v47  ;;  %10708 = vpow2.f32 %v9671_v27  ;;  %v9673_v21 = vmul.f32 -1.442695, %v1662_v25  ;;  %v18843_v59 = vld [vmem:[#allocation84_spill] sm:$0xff]  ;;  %v15124_v25 = vpop.permute.xlu1 %5813 }
 0x2c1   :  { %v10695_v60 = vpop.eup %10694  ;;  %v7477_v26 = vmul.f32 %v10693_v14, %v14873_v22  ;;  %10710 = vrcp.f32 %v3704_v2  ;;  %v1665_v36 = vadd.f32 %v18842_v37, %v18688_v16  ;;  %v1664_v8 = vadd.f32 %v18842_v37, %v18690_v46  ;;  %v18844_v17 = vld [vmem:[#allocation164_spill] sm:$0xff]  ;;  %v15126_v56 = vpop.permute.xlu0 %5809 }
 0x2c2   :  { %v10697_v11 = vpop.eup %10696  ;;  %v8584_v33 = vadd.f32 %v8583_v44, %v8582_v61  ;;  %v7987_v42 = vmul.f32 %v7475_v51, %v18784_v49  ;;  %v7986_v15 = vmul.f32 %v7474_v28, %v14007_v57  ;;  %v7476_v47 = vmul.f32 %v10695_v60, %v18843_v59  ;;  %v18845_v59 = vld [vmem:[#allocation135_spill] sm:$0xff] }
 0x2c3   :  { %v7989_v27 = vmul.f32 %v7477_v26, %v14369_v1  ;;  %v7479_v5 = vmul.f32 %v10697_v11, %v18844_v17  ;;  %10712 = vpow2.f32 %v9674_v24  ;;  %v9676_v22 = vmul.f32 -1.442695, %v1665_v36  ;;  %6023 = vbcast.lane.b32.xlu1 %v15098_v12, 280  ;;  %6019 = vbcast.lane.b32.xlu0 %v15098_v12, 272 }
 0x2c4   :  { %v10699_v41 = vpop.eup %10698  ;;  %v8585_v61 = vrot.slane %v8584_v33, 2  ;;  %v8590_v51 = vadd.f32 %v8589_v54, %v7986_v15  ;;  %v7988_v63 = vmul.f32 %v7476_v47, %v14237_v45  ;;  %10714 = vpow2.f32 %v9673_v21 }
 0x2c5   :  { %v10701_v2 = vpop.eup %10700  ;;  %v7991_v14 = vmul.f32 %v7479_v5, %v14489_v10  ;;  %v3707_v44 = vadd.f32 1.0, %v10699_v41  ;;  %10716 = vpow2.f32 %v9676_v22  ;;  %v9675_v24 = vmul.f32 -1.442695, %v1664_v8  ;;  %v18846_v5 = vld [vmem:[#allocation31_spill] sm:$0xff] }
 0x2c6   :  { %v8586_v28 = vadd.f32 %v8585_v61, %v8584_v33  ;;  %v8591_v60 = vadd.f32 %v8590_v51, %v7987_v42  ;;  %v3706_v26 = vadd.f32 1.0, %v10701_v2  ;;  %v1667_v36 = vadd.f32 %v18842_v37, %v18709_v30  ;;  %v15142_v51 = vpop.permute.xlu1 %5821  ;;  %v15144_v2 = vpop.permute.xlu0 %5817 }
 0x2c7   :  { %v10703_v11 = vpop.eup %10702  ;;  %10718 = vrcp.f32 %v3707_v44  ;;  %v1666_v54 = vadd.f32 %v18842_v37, %v18798_v62  ;;  %6031 = vbcast.lane.b32.xlu1 %v15098_v12, 296  ;;  %6027 = vbcast.lane.b32.xlu0 %v15098_v12, 288  ;;  %v1669_v21 = vadd.f32 %v18842_v37, %v18799_v31  ;;  %v1668_v8 = vadd.f32 %v18842_v37, %v18792_v4 }
 0x2c8   :  { %v10705_v33 = vpop.eup %10704  ;;  %v8587_v42 = vrot.slane %v8586_v28, 1  ;;  %v8592_v15 = vadd.f32 %v8591_v60, %v7988_v63  ;;  %v7478_v47 = vmul.f32 %v10703_v11, %v18845_v59  ;;  %10720 = vrcp.f32 %v3706_v26  ;;  %v18848_v59 = vld [vmem:[#allocation20_spill] sm:$0xff] }
 0x2c9   :  { %v10707_v17 = vpop.eup %10706  ;;  %v7481_v22 = vmul.f32 %v10705_v33, %v18846_v5  ;;  %10722 = vpow2.f32 %v9675_v24  ;;  %v9678_v41 = vmul.f32 -1.442695, %v1667_v36  ;;  %v9677_v61 = vmul.f32 -1.442695, %v1666_v54  ;;  %v18847_v36 = vld [vmem:[#allocation160_spill] sm:$0xff] }
 0x2ca   :  { %v10709_v44 = vpop.eup %10708  ;;  %v15146_v50 = vadd.f32 %v8587_v42, %v8586_v28  ;;  %v7990_v7 = vmul.f32 %v7478_v47, %v14471_v38  ;;  %v8593_v18 = vadd.f32 %v8592_v15, %v7989_v27  ;;  %v3709_v63 = vadd.f32 1.0, %v10707_v17 }
 0x2cb   :  { %v10711_v60 = vpop.eup %10710  ;;  %v7993_v26 = vmul.f32 %v7481_v22, %v18779_v3  ;;  %v3708_v11 = vadd.f32 1.0, %v10709_v44  ;;  %10724 = vpow2.f32 %v9678_v41  ;;  %v9680_v33 = vmul.f32 -1.442695, %v1669_v21  ;;  %6039 = vbcast.lane.b32.xlu1 %v15098_v12, 312  ;;  %6035 = vbcast.lane.b32.xlu0 %v15098_v12, 304  ;;  %v15163_v41 = vpop.permute.xlu1 %5829 }
 0x2cc   :  { %v8594_v24 = vadd.f32 %v8593_v18, %v7990_v7  ;;  %v7480_v54 = vmul.f32 %v10711_v60, %v18847_v36  ;;  %10726 = vrcp.f32 %v3709_v63  ;;  %v9679_v28 = vmul.f32 -1.442695, %v1668_v8 }
 0x2cd   :  { %v10713_v42 = vpop.eup %10712  ;;  %10728 = vrcp.f32 %v3708_v11  ;;  %v1671_v27 = vadd.f32 %v18842_v37, %v18672_v43  ;;  %v1670_v15 = vadd.f32 %v18842_v37, %v18674_v53  ;;  %v15159_v21 = vrot.slane %v14939_v23, %v18848_v59  ;;  %v15165_v37 = vpop.permute.xlu0 %5825 }
 0x2ce   :  { %v10715_v47 = vpop.eup %10714  ;;  %v8595_v17 = vadd.f32 %v8594_v24, %v7991_v14  ;;  %v7992_v7 = vmul.f32 %v7480_v54, %v18781_v58  ;;  %v3711_v18 = vadd.f32 1.0, %v10713_v42  ;;  %10730 = vpow2.f32 %v9677_v61  ;;  %v18849_v61 = vld [vmem:[#allocation91_spill] sm:$0xff]  ;;  %v18850_v42 = vld [vmem:[#allocation37_spill] sm:$0xff] }
 0x2cf   :  { %v10717_v12 = vpop.eup %10716  ;;  %v3710_v8 = vadd.f32 1.0, %v10715_v47  ;;  %10732 = vpow2.f32 %v9680_v33  ;;  %v9682_v5 = vmul.f32 -1.442695, %v1671_v27  ;;  %v9681_v22 = vmul.f32 -1.442695, %v1670_v15  ;;  %6050 = vbcast.lane.b32.xlu1 %v15159_v21, 264 }
 0x2d0   :  { %v8596_v44 = vrot.slane %v8595_v17, 4  ;;  %v8602_v63 = vadd.f32 %v7993_v26, %v7992_v7  ;;  %10734 = vrcp.f32 %v3711_v18  ;;  %v3713_v60 = vadd.f32 1.0, %v10717_v12  ;;  %6046 = vbcast.lane.b32.xlu0 %v15159_v21, 256  ;;  %v18851_v47 = vld [vmem:[#allocation186_spill] sm:$0xff] }
 0x2d1   :  { %v10719_v14 = vpop.eup %10718  ;;  %10736 = vrcp.f32 %v3710_v8  ;;  %v1673_v11 = vadd.f32 %v18849_v61, %v18688_v16  ;;  %v1672_v33 = vadd.f32 %v18849_v61, %v18690_v46  ;;  %v1675_v24 = vadd.f32 %v18849_v61, %v18709_v30 }
 0x2d2   :  { %v10721_v36 = vpop.eup %10720  ;;  %v8597_v54 = vadd.f32 %v8596_v44, %v8595_v17  ;;  %v7483_v27 = vmul.f32 %v10719_v14, %v18850_v42  ;;  %10738 = vrcp.f32 %v3713_v60  ;;  %v1674_v26 = vadd.f32 %v18849_v61, %v18798_v62  ;;  %v15182_v42 = vpop.permute.xlu1 %5840 }
 0x2d3   :  { %v10723_v15 = vpop.eup %10722  ;;  %v7482_v7 = vmul.f32 %v10721_v36, %v18851_v47  ;;  %10740 = vpow2.f32 %v9679_v28  ;;  %v9684_v18 = vmul.f32 -1.442695, %v1673_v11  ;;  %v9683_v12 = vmul.f32 -1.442695, %v1672_v33  ;;  %6058 = vbcast.lane.b32.xlu1 %v15159_v21, 280  ;;  %v15184_v28 = vpop.permute.xlu0 %5836  ;;  %v18853_v47 = vld [vmem:[#allocation187_spill] sm:$0xff] }
 0x2d4   :  { %v8598_v8 = vrot.slane %v8597_v54, 2  ;;  %v7995_v6 = vmul.f32 %v7483_v27, %v18784_v49  ;;  %v3712_v59 = vadd.f32 1.0, %v10723_v15  ;;  %10742 = vpow2.f32 %v9682_v5  ;;  %6054 = vbcast.lane.b32.xlu0 %v15159_v21, 272  ;;  %18852 = vst [vmem:[#allocation27_spill] sm:$0xff] %v15184_v28 }
 0x2d5   :  { %v10725_v17 = vpop.eup %10724  ;;  %v7994_v44 = vmul.f32 %v7482_v7, %v14007_v57  ;;  %10744 = vpow2.f32 %v9681_v22  ;;  %v9686_v60 = vmul.f32 -1.442695, %v1675_v24  ;;  %v9685_v14 = vmul.f32 -1.442695, %v1674_v26  ;;  %v18854_v7 = vld [vmem:[#allocation188_spill] sm:$0xff] }
 0x2d6   :  { %v10727_v11 = vpop.eup %10726  ;;  %v8599_v33 = vadd.f32 %v8598_v8, %v8597_v54  ;;  %10746 = vrcp.f32 %v3712_v59  ;;  %v3715_v36 = vadd.f32 1.0, %v10725_v17  ;;  %v1677_v27 = vadd.f32 %v18849_v61, %v18799_v31 }
 0x2d7   :  { %v10729_v5 = vpop.eup %10728  ;;  %v8603_v15 = vadd.f32 %v8602_v63, %v7994_v44  ;;  %v7485_v52 = vmul.f32 %v10727_v11, %v18853_v47  ;;  %10748 = vpow2.f32 %v9684_v18  ;;  %6066 = vbcast.lane.b32.xlu1 %v15159_v21, 296  ;;  %v1676_v22 = vadd.f32 %v18849_v61, %v18792_v4 }
 0x2d8   :  { %v10731_v24 = vpop.eup %10730  ;;  %v8600_v26 = vrot.slane %v8599_v33, 1  ;;  %v7484_v35 = vmul.f32 %v10729_v5, %v18854_v7  ;;  %10750 = vrcp.f32 %v3715_v36  ;;  %6062 = vbcast.lane.b32.xlu0 %v15159_v21, 288  ;;  %v9688_v59 = vmul.f32 -1.442695, %v1677_v27 }
 0x2d9   :  { %v10733_v54 = vpop.eup %10732  ;;  %v7997_v8 = vmul.f32 %v7485_v52, %v14369_v1  ;;  %v8604_v63 = vadd.f32 %v8603_v15, %v7995_v6  ;;  %v3714_v17 = vadd.f32 1.0, %v10731_v24  ;;  %10752 = vpow2.f32 %v9683_v12  ;;  %v15200_v52 = vpop.permute.xlu1 %5848 }
 0x2da   :  { %v10735_v18 = vpop.eup %10734  ;;  %v8601_v44 = vadd.f32 %v8600_v26, %v8599_v33  ;;  %v7996_v11 = vmul.f32 %v7484_v35, %v14237_v45  ;;  %v3717_v47 = vadd.f32 1.0, %v10733_v54  ;;  %10754 = vpow2.f32 %v9686_v60  ;;  %v15202_v6 = vpop.permute.xlu0 %5844  ;;  %v18856_v33 = vld [vmem:[#allocation78_spill] sm:$0xff] }
 0x2db   :  { %v10737_v48 = vpop.eup %10736  ;;  %v7487_v28 = vmul.f32 %v10735_v18, %v18855_v29  ;;  %10756 = vrcp.f32 %v3714_v17  ;;  %v9687_v36 = vmul.f32 -1.442695, %v1676_v22  ;;  %6074 = vbcast.lane.b32.xlu1 %v15159_v21, 312  ;;  %v1679_v27 = vadd.f32 %v18849_v61, %v18672_v43 }
 0x2dc   :  { %v10739_v12 = vpop.eup %10738  ;;  %v15206_v35 = vsel %vm9264_vm0, %v8601_v44, %v15146_v50  ;;  %v8605_v60 = vadd.f32 %v8604_v63, %v7996_v11  ;;  %v7486_v5 = vmul.f32 %v10737_v48, %v18856_v33  ;;  %10758 = vrcp.f32 %v3717_v47  ;;  %6070 = vbcast.lane.b32.xlu0 %v15159_v21, 304  ;;  %v18858_v47 = vld [vmem:[#allocation93_spill] sm:$0xff] }
 0x2dd   :  { %v10741_v29 = vpop.eup %10740  ;;  %v7999_v15 = vmul.f32 %v7487_v28, %v14489_v10  ;;  %v7489_v22 = vmul.f32 %v10739_v12, %v15011_v19  ;;  %10760 = vpow2.f32 %v9685_v14  ;;  %v9690_v24 = vmul.f32 -1.442695, %v1679_v27  ;;  %v18857_v14 = vld [vmem:[#allocation21_spill] sm:$0xff] }
 0x2de   :  { %v10743_v26 = vpop.eup %10742  ;;  %v7998_v7 = vmul.f32 %v7486_v5, %v14471_v38  ;;  %v8606_v54 = vadd.f32 %v8605_v60, %v7997_v8  ;;  %v3716_v17 = vadd.f32 1.0, %v10741_v29  ;;  %10762 = vpow2.f32 %v9688_v59  ;;  %v15225_v12 = vpop.permute.xlu0 %5852 }
 0x2df   :  { %v10745_v50 = vpop.eup %10744  ;;  %v8001_v63 = vmul.f32 %v7489_v22, %v18779_v3  ;;  %v3719_v48 = vadd.f32 1.0, %v10743_v26  ;;  %10764 = vpow2.f32 %v9687_v36  ;;  %v1678_v21 = vadd.f32 %v18849_v61, %v18674_v53  ;;  %v15223_v36 = vpop.permute.xlu1 %5856 }
 0x2e0   :  { %v10747_v18 = vpop.eup %10746  ;;  %v8607_v28 = vadd.f32 %v8606_v54, %v7998_v7  ;;  %10766 = vrcp.f32 %v3716_v17  ;;  %v3718_v19 = vadd.f32 1.0, %v10745_v50  ;;  %v15218_v44 = vrot.slane %v14939_v23, %v18857_v14 }
 0x2e1   :  { %v10749_v11 = vpop.eup %10748  ;;  %v7488_v8 = vmul.f32 %v10747_v18, %v15013_v20  ;;  %10768 = vrcp.f32 %v3719_v48  ;;  %v9689_v59 = vmul.f32 -1.442695, %v1678_v21  ;;  %v1681_v27 = vadd.f32 %v18858_v47, %v18688_v16 }
 0x2e2   :  { %v10751_v61 = vpop.eup %10750  ;;  %v8608_v60 = vadd.f32 %v8607_v28, %v7999_v15  ;;  %10770 = vrcp.f32 %v3718_v19  ;;  %v3721_v33 = vadd.f32 1.0, %v10749_v11  ;;  %6085 = vbcast.lane.b32.xlu1 %v15218_v44, 264  ;;  %6081 = vbcast.lane.b32.xlu0 %v15218_v44, 256  ;;  %v1680_v20 = vadd.f32 %v18858_v47, %v18690_v46 }
 0x2e3   :  { %v10753_v5 = vpop.eup %10752  ;;  %v8000_v29 = vmul.f32 %v7488_v8, %v18781_v58  ;;  %v7491_v22 = vmul.f32 %v10751_v61, %v15035_v34  ;;  %10772 = vpow2.f32 %v9690_v24  ;;  %v9692_v26 = vmul.f32 -1.442695, %v1681_v27  ;;  %v15244_v27 = vpop.permute.xlu1 %5864 }
 0x2e4   :  { %v10755_v7 = vpop.eup %10754  ;;  %v8609_v54 = vrot.slane %v8608_v60, 4  ;;  %10774 = vrcp.f32 %v3721_v33  ;;  %v3720_v15 = vadd.f32 1.0, %v10753_v5  ;;  %v9691_v17 = vmul.f32 -1.442695, %v1680_v20 }
 0x2e5   :  { %v10757_v50 = vpop.eup %10756  ;;  %v8615_v48 = vadd.f32 %v8001_v63, %v8000_v29  ;;  %v8003_v21 = vmul.f32 %v7491_v22, %v18784_v49  ;;  %v3723_v18 = vadd.f32 1.0, %v10755_v7  ;;  %10776 = vpow2.f32 %v9689_v59 }
 0x2e6   :  { %v10759_v28 = vpop.eup %10758  ;;  %v8610_v19 = vadd.f32 %v8609_v54, %v8608_v60  ;;  %v7490_v11 = vmul.f32 %v10757_v50, %v15037_v0  ;;  %10778 = vrcp.f32 %v3720_v15  ;;  %6093 = vbcast.lane.b32.xlu1 %v15218_v44, 280  ;;  %6089 = vbcast.lane.b32.xlu0 %v15218_v44, 272  ;;  %v1683_v34 = vadd.f32 %v18858_v47, %v18709_v30  ;;  %v15246_v0 = vpop.permute.xlu0 %5860 }
 0x2e7   :  { %v10761_v24 = vpop.eup %10760  ;;  %v7493_v8 = vmul.f32 %v10759_v28, %v15054_v32  ;;  %10780 = vrcp.f32 %v3723_v18  ;;  %v1682_v63 = vadd.f32 %v18858_v47, %v18798_v62  ;;  %v1685_v59 = vadd.f32 %v18858_v47, %v18799_v31 }
 0x2e8   :  { %v10763_v61 = vpop.eup %10762  ;;  %v8611_v60 = vrot.slane %v8610_v19, 2  ;;  %v8002_v33 = vmul.f32 %v7490_v11, %v14007_v57  ;;  %v3722_v20 = vadd.f32 1.0, %v10761_v24  ;;  %10782 = vpow2.f32 %v9692_v26 }
 0x2e9   :  { %v10765_v5 = vpop.eup %10764  ;;  %v8005_v32 = vmul.f32 %v7493_v8, %v14369_v1  ;;  %v3725_v29 = vadd.f32 1.0, %v10763_v61  ;;  %10784 = vpow2.f32 %v9691_v17  ;;  %v9694_v22 = vmul.f32 -1.442695, %v1683_v34 }
 0x2ea   :  { %v10767_v7 = vpop.eup %10766  ;;  %v8612_v54 = vadd.f32 %v8611_v60, %v8610_v19  ;;  %v8616_v15 = vadd.f32 %v8615_v48, %v8002_v33  ;;  %10786 = vrcp.f32 %v3722_v20  ;;  %v3724_v50 = vadd.f32 1.0, %v10765_v5  ;;  %6101 = vbcast.lane.b32.xlu1 %v15218_v44, 296  ;;  %6097 = vbcast.lane.b32.xlu0 %v15218_v44, 288 }
 0x2eb   :  { %v10769_v18 = vpop.eup %10768  ;;  %v7492_v28 = vmul.f32 %v10767_v7, %v15056_v39  ;;  %10788 = vrcp.f32 %v3725_v29  ;;  %v9693_v26 = vmul.f32 -1.442695, %v1682_v63  ;;  %v9696_v11 = vmul.f32 -1.442695, %v1685_v59 }
 0x2ec   :  { %v10771_v24 = vpop.eup %10770  ;;  %v8613_v8 = vrot.slane %v8612_v54, 1  ;;  %v8617_v61 = vadd.f32 %v8616_v15, %v8003_v21  ;;  %v7495_v17 = vmul.f32 %v10769_v18, %v15072_v13  ;;  %10790 = vrcp.f32 %v3724_v50 }
 0x2ed   :  { %v10773_v19 = vpop.eup %10772  ;;  %v8004_v48 = vmul.f32 %v7492_v28, %v14237_v45  ;;  %v7494_v34 = vmul.f32 %v10771_v24, %v15074_v55  ;;  %10792 = vpow2.f32 %v9694_v22  ;;  %v1684_v60 = vadd.f32 %v18858_v47, %v18792_v4  ;;  %v15258_v33 = vpop.permute.xlu1 %5875 }
 0x2ee   :  { %v15260_v39 = vpop.permute.xlu0 %5871  ;;  %v10775_v63 = vpop.eup %10774  ;;  %v8614_v59 = vadd.f32 %v8613_v8, %v8612_v54  ;;  %v8007_v21 = vmul.f32 %v7495_v17, %v14489_v10  ;;  %v3727_v20 = vadd.f32 1.0, %v10773_v19  ;;  %10794 = vpow2.f32 %v9693_v26  ;;  %6109 = vbcast.lane.b32.xlu1 %v15218_v44, 312  ;;  %6105 = vbcast.lane.b32.xlu0 %v15218_v44, 304 }
 0x2ef   :  { %v10777_v13 = vpop.eup %10776  ;;  %v8618_v55 = vadd.f32 %v8617_v61, %v8004_v48  ;;  %v8006_v5 = vmul.f32 %v7494_v34, %v14471_v38  ;;  %v7497_v29 = vmul.f32 %v10775_v63, %v15100_v40  ;;  %10796 = vpow2.f32 %v9696_v11  ;;  %v18859_v61 = vld [vmem:[#allocation22_spill] sm:$0xff] }
 0x2f0   :  { %v10779_v22 = vpop.eup %10778  ;;  %v15269_v7 = vsel %vm9266_vm1, %v8614_v59, %v15206_v35  ;;  %10798 = vrcp.f32 %v3727_v20  ;;  %v3726_v54 = vadd.f32 1.0, %v10777_v13  ;;  %v9695_v15 = vmul.f32 -1.442695, %v1684_v60 }
 0x2f1   :  { %v10781_v50 = vpop.eup %10780  ;;  %v8619_v18 = vadd.f32 %v8618_v55, %v8005_v32  ;;  %v8009_v28 = vmul.f32 %v7497_v29, %v18779_v3  ;;  %v7496_v44 = vmul.f32 %v10779_v22, %v15102_v9  ;;  %v1687_v26 = vadd.f32 %v18858_v47, %v18672_v43  ;;  %v15275_v24 = vpop.permute.xlu1 %5883 }
 0x2f2   :  { %v15277_v40 = vpop.permute.xlu0 %5879  ;;  %v10783_v11 = vpop.eup %10782  ;;  %v7499_v35 = vmul.f32 %v10781_v50, %v15124_v25  ;;  %10800 = vrcp.f32 %v3726_v54  ;;  %v1686_v8 = vadd.f32 %v18858_v47, %v18674_v53  ;;  %v15284_v32 = vrot.slane %v14939_v23, %v18859_v61 }
 0x2f3   :  { %v10785_v17 = vpop.eup %10784  ;;  %v8620_v9 = vadd.f32 %v8619_v18, %v8006_v5  ;;  %v8008_v19 = vmul.f32 %v7496_v44, %v18781_v58  ;;  %v3729_v48 = vadd.f32 1.0, %v10783_v11  ;;  %10802 = vpow2.f32 %v9695_v15  ;;  %v18860_v15 = vld [vmem:[#allocation94_spill] sm:$0xff] }
 0x2f4   :  { %v10787_v34 = vpop.eup %10786  ;;  %v8011_v60 = vmul.f32 %v7499_v35, %v18784_v49  ;;  %v3728_v63 = vadd.f32 1.0, %v10785_v17  ;;  %v9698_v59 = vmul.f32 -1.442695, %v1687_v26  ;;  %v9697_v25 = vmul.f32 -1.442695, %v1686_v8  ;;  %6120 = vbcast.lane.b32.xlu1 %v15284_v32, 264 }
 0x2f5   :  { %v10789_v20 = vpop.eup %10788  ;;  %v8621_v47 = vadd.f32 %v8620_v9, %v8007_v21  ;;  %v8628_v13 = vadd.f32 %v8009_v28, %v8008_v19  ;;  %v7498_v55 = vmul.f32 %v10787_v34, %v15126_v56  ;;  %10804 = vrcp.f32 %v3729_v48  ;;  %6116 = vbcast.lane.b32.xlu0 %v15284_v32, 256  ;;  %v15291_v5 = vpop.permute.xlu1 %5891 }
 0x2f6   :  { %v15293_v29 = vpop.permute.xlu0 %5887  ;;  %v10791_v22 = vpop.eup %10790  ;;  %v7501_v54 = vmul.f32 %v10789_v20, %v15142_v51  ;;  %10806 = vrcp.f32 %v3728_v63  ;;  %v1689_v50 = vadd.f32 %v18860_v15, %v18688_v16  ;;  %v1688_v21 = vadd.f32 %v18860_v15, %v18690_v46 }
 0x2f7   :  { %v10793_v18 = vpop.eup %10792  ;;  %v8622_v28 = vrot.slane %v8621_v47, 4  ;;  %v8010_v56 = vmul.f32 %v7498_v55, %v14007_v57  ;;  %v7500_v44 = vmul.f32 %v10791_v22, %v15144_v2  ;;  %10808 = vpow2.f32 %v9698_v59 }
 0x2f8   :  { %v10795_v26 = vpop.eup %10794  ;;  %v8013_v11 = vmul.f32 %v7501_v54, %v14369_v1  ;;  %v3731_v35 = vadd.f32 1.0, %v10793_v18  ;;  %10810 = vpow2.f32 %v9697_v25  ;;  %v9700_v51 = vmul.f32 -1.442695, %v1689_v50  ;;  %6128 = vbcast.lane.b32.xlu1 %v15284_v32, 280 }
 0x2f9   :  { %v10797_v8 = vpop.eup %10796  ;;  %v8623_v17 = vadd.f32 %v8622_v28, %v8621_v47  ;;  %v8629_v9 = vadd.f32 %v8628_v13, %v8010_v56  ;;  %v8012_v19 = vmul.f32 %v7500_v44, %v14237_v45  ;;  %v3730_v48 = vadd.f32 1.0, %v10795_v26  ;;  %6124 = vbcast.lane.b32.xlu0 %v15284_v32, 272  ;;  %v15306_v34 = vpop.permute.xlu1 %5899 }
 0x2fa   :  { %v15308_v2 = vpop.permute.xlu0 %5895  ;;  %v10799_v63 = vpop.eup %10798  ;;  %10812 = vrcp.f32 %v3731_v35  ;;  %v3733_v59 = vadd.f32 1.0, %v10797_v8  ;;  %v9699_v20 = vmul.f32 -1.442695, %v1688_v21  ;;  %v1691_v25 = vadd.f32 %v18860_v15, %v18709_v30 }
 0x2fb   :  { %v8624_v55 = vrot.slane %v8623_v17, 2  ;;  %v8630_v22 = vadd.f32 %v8629_v9, %v8011_v60  ;;  %v7503_v47 = vmul.f32 %v10799_v63, %v15163_v41  ;;  %10814 = vrcp.f32 %v3730_v48 }
 0x2fc   :  { %v10801_v13 = vpop.eup %10800  ;;  %10816 = vrcp.f32 %v3733_v59  ;;  %v9702_v54 = vmul.f32 -1.442695, %v1691_v25  ;;  %v1690_v50 = vadd.f32 %v18860_v15, %v18798_v62  ;;  %6136 = vbcast.lane.b32.xlu1 %v15284_v32, 296  ;;  %v1693_v18 = vadd.f32 %v18860_v15, %v18799_v31 }
 0x2fd   :  { %v10803_v21 = vpop.eup %10802  ;;  %v8625_v28 = vadd.f32 %v8624_v55, %v8623_v17  ;;  %v8631_v56 = vadd.f32 %v8630_v22, %v8012_v19  ;;  %v8015_v44 = vmul.f32 %v7503_v47, %v14489_v10  ;;  %v7502_v60 = vmul.f32 %v10801_v13, %v15165_v37  ;;  %6132 = vbcast.lane.b32.xlu0 %v15284_v32, 288  ;;  %v15321_v41 = vpop.permute.xlu1 %5910  ;;  %v18861_v13 = vld [vmem:[#allocation27_spill] sm:$0xff] }
 0x2fe   :  { %v15323_v26 = vpop.permute.xlu0 %5906  ;;  %v3732_v35 = vadd.f32 1.0, %v10803_v21  ;;  %10818 = vpow2.f32 %v9700_v51  ;;  %v9701_v8 = vmul.f32 -1.442695, %v1690_v50  ;;  %v9704_v9 = vmul.f32 -1.442695, %v1693_v18 }
 0x2ff   :  { %v10805_v48 = vpop.eup %10804  ;;  %v8626_v63 = vrot.slane %v8625_v28, 1  ;;  %v8014_v59 = vmul.f32 %v7502_v60, %v14471_v38  ;;  %v8632_v17 = vadd.f32 %v8631_v56, %v8013_v11  ;;  %10820 = vpow2.f32 %v9699_v20 }
 0x300   :  { %v10807_v19 = vpop.eup %10806  ;;  %v7505_v25 = vmul.f32 %v10805_v48, %v15182_v42  ;;  %10822 = vrcp.f32 %v3732_v35  ;;  %v1692_v37 = vadd.f32 %v18860_v15, %v18792_v4  ;;  %6144 = vbcast.lane.b32.xlu1 %v15284_v32, 312  ;;  %v1695_v51 = vadd.f32 %v18860_v15, %v18672_v43 }
 0x301   :  { %v10809_v55 = vpop.eup %10808  ;;  %v8627_v22 = vadd.f32 %v8626_v63, %v8625_v28  ;;  %v8633_v47 = vadd.f32 %v8632_v17, %v8014_v59  ;;  %v7504_v50 = vmul.f32 %v10807_v19, %v18861_v13  ;;  %10824 = vpow2.f32 %v9702_v54  ;;  %6140 = vbcast.lane.b32.xlu0 %v15284_v32, 304  ;;  %v15334_v11 = vpop.permute.xlu1 %5918  ;;  %v18862_v59 = vld [vmem:[#allocation23_spill] sm:$0xff] }
 0x302   :  { %v15336_v42 = vpop.permute.xlu0 %5914  ;;  %v10811_v20 = vpop.eup %10810  ;;  %v8017_v18 = vmul.f32 %v7505_v25, %v18779_v3  ;;  %v3735_v21 = vadd.f32 1.0, %v10809_v55  ;;  %10826 = vpow2.f32 %v9701_v8  ;;  %v9703_v56 = vmul.f32 -1.442695, %v1692_v37 }
 0x303   :  { %v15341_v60 = vsel %vm9268_vm2, %v8627_v22, %v15269_v7  ;;  %v8634_v28 = vadd.f32 %v8633_v47, %v8015_v44  ;;  %v8016_v35 = vmul.f32 %v7504_v50, %v18781_v58  ;;  %v3734_v54 = vadd.f32 1.0, %v10811_v20 }
 0x304   :  { %v10813_v48 = vpop.eup %10812  ;;  %10828 = vrcp.f32 %v3735_v21  ;;  %v9706_v32 = vmul.f32 -1.442695, %v1695_v51  ;;  %v1694_v63 = vadd.f32 %v18860_v15, %v18674_v53  ;;  %v15348_v17 = vrot.slane %v14939_v23, %v18862_v59  ;;  %v18863_v15 = vld [vmem:[#allocation97_spill] sm:$0xff] }
 0x305   :  { %v10815_v8 = vpop.eup %10814  ;;  %v8635_v19 = vrot.slane %v8634_v28, 4  ;;  %v8641_v25 = vadd.f32 %v8017_v18, %v8016_v35  ;;  %v7507_v7 = vmul.f32 %v10813_v48, %v15200_v52  ;;  %10830 = vrcp.f32 %v3734_v54  ;;  %v15351_v44 = vpop.permute.xlu1 %5926 }
 0x306   :  { %v15353_v37 = vpop.permute.xlu0 %5922  ;;  %v10817_v55 = vpop.eup %10816  ;;  %v7506_v51 = vmul.f32 %v10815_v8, %v15202_v6  ;;  %10832 = vpow2.f32 %v9704_v9  ;;  %v9705_v22 = vmul.f32 -1.442695, %v1694_v63  ;;  %6155 = vbcast.lane.b32.xlu1 %v15348_v17, 264  ;;  %6151 = vbcast.lane.b32.xlu0 %v15348_v17, 256  ;;  %v1697_v47 = vadd.f32 %v18863_v15, %v18688_v16 }
 0x307   :  { %v8636_v13 = vadd.f32 %v8635_v19, %v8634_v28  ;;  %v8019_v52 = vmul.f32 %v7507_v7, %v18784_v49  ;;  %v7509_v50 = vmul.f32 %v10817_v55, %v15223_v36  ;;  %10834 = vpow2.f32 %v9703_v56 }
 0x308   :  { %v10819_v20 = vpop.eup %10818  ;;  %v8018_v18 = vmul.f32 %v7506_v51, %v14007_v57  ;;  %10836 = vpow2.f32 %v9706_v32  ;;  %v9708_v6 = vmul.f32 -1.442695, %v1697_v47  ;;  %v1696_v9 = vadd.f32 %v18863_v15, %v18690_v46 }
 0x309   :  { %v10821_v21 = vpop.eup %10820  ;;  %v8637_v35 = vrot.slane %v8636_v13, 2  ;;  %v8021_v54 = vmul.f32 %v7509_v50, %v14369_v1  ;;  %v3737_v48 = vadd.f32 1.0, %v10819_v20  ;;  %10838 = vpow2.f32 %v9705_v22  ;;  %v15366_v28 = vpop.permute.xlu1 %5934 }
 0x30a   :  { %v15368_v63 = vpop.permute.xlu0 %5930  ;;  %v10823_v36 = vpop.eup %10822  ;;  %v8642_v56 = vadd.f32 %v8641_v25, %v8018_v18  ;;  %v3736_v8 = vadd.f32 1.0, %v10821_v21  ;;  %10840 = vpow2.f32 %v9708_v6  ;;  %v9707_v19 = vmul.f32 -1.442695, %v1696_v9  ;;  %6163 = vbcast.lane.b32.xlu1 %v15348_v17, 280  ;;  %6159 = vbcast.lane.b32.xlu0 %v15348_v17, 272 }
 0x30b   :  { %v10825_v32 = vpop.eup %10824  ;;  %v8638_v7 = vadd.f32 %v8637_v35, %v8636_v13  ;;  %v7508_v55 = vmul.f32 %v10823_v36, %v15225_v12  ;;  %10842 = vrcp.f32 %v3737_v48  ;;  %v1699_v51 = vadd.f32 %v18863_v15, %v18709_v30 }
 0x30c   :  { %v10827_v22 = vpop.eup %10826  ;;  %v8643_v47 = vadd.f32 %v8642_v56, %v8019_v52  ;;  %10844 = vrcp.f32 %v3736_v8  ;;  %v3739_v50 = vadd.f32 1.0, %v10825_v32  ;;  %v1698_v25 = vadd.f32 %v18863_v15, %v18798_v62 }
 0x30d   :  { %v8639_v20 = vrot.slane %v8638_v7, 1  ;;  %v8020_v18 = vmul.f32 %v7508_v55, %v14237_v45  ;;  %v3738_v6 = vadd.f32 1.0, %v10827_v22  ;;  %10846 = vpow2.f32 %v9707_v19  ;;  %v15378_v9 = vpop.permute.xlu1 %5945 }
 0x30e   :  { %v15380_v13 = vpop.permute.xlu0 %5941  ;;  %v10829_v12 = vpop.eup %10828  ;;  %10848 = vrcp.f32 %v3739_v50  ;;  %v9710_v21 = vmul.f32 -1.442695, %v1699_v51  ;;  %v9709_v35 = vmul.f32 -1.442695, %v1698_v25  ;;  %6171 = vbcast.lane.b32.xlu1 %v15348_v17, 296  ;;  %6167 = vbcast.lane.b32.xlu0 %v15348_v17, 288  ;;  %v1701_v52 = vadd.f32 %v18863_v15, %v18799_v31 }
 0x30f   :  { %v10831_v48 = vpop.eup %10830  ;;  %v8640_v36 = vadd.f32 %v8639_v20, %v8638_v7  ;;  %v8644_v56 = vadd.f32 %v8643_v47, %v8020_v18  ;;  %v7511_v8 = vmul.f32 %v10829_v12, %v15244_v27  ;;  %10850 = vrcp.f32 %v3738_v6 }
 0x310   :  { %v10833_v19 = vpop.eup %10832  ;;  %v7510_v32 = vmul.f32 %v10831_v48, %v15246_v0  ;;  %10852 = vpow2.f32 %v9710_v21  ;;  %v9712_v55 = vmul.f32 -1.442695, %v1701_v52  ;;  %v1700_v51 = vadd.f32 %v18863_v15, %v18792_v4 }
 0x311   :  { %v10835_v22 = vpop.eup %10834  ;;  %v15392_v50 = vsel %vm9270_vm3, %v8640_v36, %v15341_v60  ;;  %v8023_v25 = vmul.f32 %v7511_v8, %v14489_v10  ;;  %v8645_v7 = vadd.f32 %v8644_v56, %v8021_v54  ;;  %v3741_v47 = vadd.f32 1.0, %v10833_v19  ;;  %v15395_v20 = vpop.permute.xlu1 %5953  ;;  %v18864_v8 = vld [vmem:[#allocation24_spill] sm:$0xff] }
 0x312   :  { %v15397_v27 = vpop.permute.xlu0 %5949  ;;  %v10837_v18 = vpop.eup %10836  ;;  %v8022_v0 = vmul.f32 %v7510_v32, %v14471_v38  ;;  %v3740_v6 = vadd.f32 1.0, %v10835_v22  ;;  %10854 = vpow2.f32 %v9709_v35  ;;  %v9711_v12 = vmul.f32 -1.442695, %v1700_v51  ;;  %6179 = vbcast.lane.b32.xlu1 %v15348_v17, 312  ;;  %6175 = vbcast.lane.b32.xlu0 %v15348_v17, 304 }
 0x313   :  { %v10839_v60 = vpop.eup %10838  ;;  %10856 = vrcp.f32 %v3741_v47  ;;  %v3743_v21 = vadd.f32 1.0, %v10837_v18  ;;  %v1703_v54 = vadd.f32 %v18863_v15, %v18672_v43  ;;  %v1702_v52 = vadd.f32 %v18863_v15, %v18674_v53 }
 0x314   :  { %v10841_v48 = vpop.eup %10840  ;;  %v8646_v36 = vadd.f32 %v8645_v7, %v8022_v0  ;;  %10858 = vrcp.f32 %v3740_v6  ;;  %v3742_v56 = vadd.f32 1.0, %v10839_v60  ;;  %v15408_v35 = vrot.slane %v14939_v23, %v18864_v8  ;;  %v18865_v23 = vld [vmem:[#allocation98_spill] sm:$0xff] }
 0x315   :  { %v10843_v19 = vpop.eup %10842  ;;  %10860 = vrcp.f32 %v3743_v21  ;;  %v3745_v17 = vadd.f32 1.0, %v10841_v48  ;;  %v9714_v32 = vmul.f32 -1.442695, %v1703_v54  ;;  %v9713_v51 = vmul.f32 -1.442695, %v1702_v52  ;;  %v15410_v22 = vpop.permute.xlu1 %5961 }
 0x316   :  { %v15412_v47 = vpop.permute.xlu0 %5957  ;;  %v10845_v18 = vpop.eup %10844  ;;  %v8647_v59 = vadd.f32 %v8646_v36, %v8023_v25  ;;  %v7513_v15 = vmul.f32 %v10843_v19, %v15258_v33  ;;  %10862 = vrcp.f32 %v3742_v56  ;;  %6190 = vbcast.lane.b32.xlu1 %v15408_v35, 264  ;;  %6186 = vbcast.lane.b32.xlu0 %v15408_v35, 256  ;;  %v1705_v7 = vadd.f32 %v18865_v23, %v18688_v16 }
 0x317   :  { %v10847_v0 = vpop.eup %10846  ;;  %v7512_v6 = vmul.f32 %v10845_v18, %v15260_v39  ;;  %10864 = vrcp.f32 %v3745_v17  ;;  %v1704_v60 = vadd.f32 %v18865_v23, %v18690_v46  ;;  %v1707_v25 = vadd.f32 %v18865_v23, %v18709_v30 }
 0x318   :  { %v10849_v21 = vpop.eup %10848  ;;  %v8648_v33 = vrot.slane %v8647_v59, 4  ;;  %v8025_v54 = vmul.f32 %v7513_v15, %v18779_v3  ;;  %v3744_v52 = vadd.f32 1.0, %v10847_v0  ;;  %10866 = vpow2.f32 %v9712_v55 }
 0x319   :  { %v10851_v48 = vpop.eup %10850  ;;  %v8024_v36 = vmul.f32 %v7512_v6, %v18781_v58  ;;  %v7515_v56 = vmul.f32 %v10849_v21, %v15275_v24  ;;  %10868 = vpow2.f32 %v9711_v12  ;;  %v9716_v39 = vmul.f32 -1.442695, %v1705_v7  ;;  %v15427_v19 = vpop.permute.xlu1 %5969 }
 0x31a   :  { %v15429_v17 = vpop.permute.xlu0 %5965  ;;  %v10853_v18 = vpop.eup %10852  ;;  %v8649_v8 = vadd.f32 %v8648_v33, %v8647_v59  ;;  %v7514_v61 = vmul.f32 %v10851_v48, %v15277_v40  ;;  %10870 = vrcp.f32 %v3744_v52  ;;  %v9715_v14 = vmul.f32 -1.442695, %v1704_v60  ;;  %6198 = vbcast.lane.b32.xlu1 %v15408_v35, 280  ;;  %6194 = vbcast.lane.b32.xlu0 %v15408_v35, 272 }
 0x31b   :  { %v8654_v55 = vadd.f32 %v8025_v54, %v8024_v36  ;;  %v8027_v15 = vmul.f32 %v7515_v56, %v18784_v49  ;;  %v3747_v24 = vadd.f32 1.0, %v10853_v18  ;;  %10872 = vpow2.f32 %v9714_v32 }
 0x31c   :  { %v10855_v12 = vpop.eup %10854  ;;  %v8650_v7 = vrot.slane %v8649_v8, 2  ;;  %v8026_v0 = vmul.f32 %v7514_v61, %v14007_v57  ;;  %10874 = vpow2.f32 %v9713_v51  ;;  %v9718_v6 = vmul.f32 -1.442695, %v1707_v25 }
 0x31d   :  { %v10857_v59 = vpop.eup %10856  ;;  %10876 = vrcp.f32 %v3747_v24  ;;  %v3746_v40 = vadd.f32 1.0, %v10855_v12  ;;  %v1706_v60 = vadd.f32 %v18865_v23, %v18798_v62  ;;  %v1709_v21 = vadd.f32 %v18865_v23, %v18799_v31  ;;  %v15440_v33 = vpop.permute.xlu1 %5980 }
 0x31e   :  { %v15442_v54 = vpop.permute.xlu0 %5976  ;;  %v10859_v32 = vpop.eup %10858  ;;  %v8651_v52 = vadd.f32 %v8650_v7, %v8649_v8  ;;  %v8655_v48 = vadd.f32 %v8654_v55, %v8026_v0  ;;  %v7517_v61 = vmul.f32 %v10857_v59, %v15291_v5  ;;  %10878 = vpow2.f32 %v9716_v39  ;;  %6206 = vbcast.lane.b32.xlu1 %v15408_v35, 296  ;;  %6202 = vbcast.lane.b32.xlu0 %v15408_v35, 288 }
 0x31f   :  { %18866 = vst [vmem:[#allocation69_spill] sm:$0xff] %v15442_v54  ;;  %v10861_v51 = vpop.eup %10860  ;;  %v7516_v25 = vmul.f32 %v10859_v32, %v15293_v29  ;;  %10880 = vrcp.f32 %v3746_v40  ;;  %v9717_v36 = vmul.f32 -1.442695, %v1706_v60  ;;  %v9720_v56 = vmul.f32 -1.442695, %v1709_v21 }
 0x320   :  { %v10863_v18 = vpop.eup %10862  ;;  %v8652_v24 = vrot.slane %v8651_v52, 1  ;;  %v8029_v12 = vmul.f32 %v7517_v61, %v14369_v1  ;;  %v8656_v54 = vadd.f32 %v8655_v48, %v8027_v15  ;;  %v7519_v8 = vmul.f32 %v10861_v51, %v15306_v34 }
 0x321   :  { %v10865_v55 = vpop.eup %10864  ;;  %v8028_v5 = vmul.f32 %v7516_v25, %v14237_v45  ;;  %v7518_v39 = vmul.f32 %v10863_v18, %v15308_v2  ;;  %10882 = vpow2.f32 %v9715_v14  ;;  %v1708_v7 = vadd.f32 %v18865_v23, %v18792_v4  ;;  %v15454_v29 = vpop.permute.xlu1 %5988 }
 0x322   :  { %v15456_v0 = vpop.permute.xlu0 %5984  ;;  %v10867_v59 = vpop.eup %10866  ;;  %v8653_v40 = vadd.f32 %v8652_v24, %v8651_v52  ;;  %v8031_v60 = vmul.f32 %v7519_v8, %v14489_v10  ;;  %v7521_v15 = vmul.f32 %v10865_v55, %v15321_v41  ;;  %10884 = vpow2.f32 %v9718_v6  ;;  %6214 = vbcast.lane.b32.xlu1 %v15408_v35, 312  ;;  %6210 = vbcast.lane.b32.xlu0 %v15408_v35, 304  ;;  %v10055_v55 = vld [vmem:[#allocation9 + $0x10] sm:$0xff]  }
 0x323   :  { %v10869_v34 = vpop.eup %10868  ;;  %v8657_v14 = vadd.f32 %v8656_v54, %v8028_v5  ;;  %v8030_v2 = vmul.f32 %v7518_v39, %v14471_v38  ;;  %v3749_v21 = vadd.f32 1.0, %v10867_v59  ;;  %10886 = vpow2.f32 %v9717_v36 }
 0x324   :  { %v10871_v32 = vpop.eup %10870  ;;  %v15465_v48 = vsel %vm9272_vm4, %v8653_v40, %v15392_v50  ;;  %v8033_v52 = vmul.f32 %v7521_v15, %v18779_v3  ;;  %v3748_v61 = vadd.f32 1.0, %v10869_v34  ;;  %10888 = vpow2.f32 %v9720_v56 }
 0x325   :  { %v10873_v41 = vpop.eup %10872  ;;  %v8658_v6 = vadd.f32 %v8657_v14, %v8029_v12  ;;  %v7520_v51 = vmul.f32 %v10871_v32, %v15323_v26  ;;  %10890 = vrcp.f32 %v3749_v21  ;;  %v9719_v35 = vmul.f32 -1.442695, %v1708_v7  ;;  %v15469_v54 = vpop.permute.xlu1 %5996 }
 0x326   :  { %v15471_v25 = vpop.permute.xlu0 %5992  ;;  %v10875_v36 = vpop.eup %10874  ;;  %10892 = vrcp.f32 %v3748_v61  ;;  %v3751_v18 = vadd.f32 1.0, %v10873_v41  ;;  %v1711_v50 = vadd.f32 %v18865_v23, %v18672_v43  ;;  %v1710_v24 = vadd.f32 %v18865_v23, %v18674_v53 }
 0x327   :  { %v10877_v56 = vpop.eup %10876  ;;  %v8659_v8 = vadd.f32 %v8658_v6, %v8030_v2  ;;  %v8032_v12 = vmul.f32 %v7520_v51, %v18781_v58  ;;  %v3750_v26 = vadd.f32 1.0, %v10875_v36  ;;  %10894 = vpow2.f32 %v9719_v35  ;;  %v18868_v36 = vld [vmem:[#allocation17_spill] sm:$0xff] }
 0x328   :  { %v10879_v5 = vpop.eup %10878  ;;  %v7523_v39 = vmul.f32 %v10877_v56, %v15334_v11  ;;  %10896 = vrcp.f32 %v3751_v18  ;;  %v9722_v7 = vmul.f32 -1.442695, %v1711_v50  ;;  %v9721_v59 = vmul.f32 -1.442695, %v1710_v24  ;;  %v18867_v11 = vld [vmem:[#allocation99_spill] sm:$0xff] }
 0x329   :  { %v10881_v40 = vpop.eup %10880  ;;  %v8660_v15 = vadd.f32 %v8659_v8, %v8031_v60  ;;  %v8667_v34 = vadd.f32 %v8033_v52, %v8032_v12  ;;  %10898 = vrcp.f32 %v3750_v26  ;;  %v3753_v14 = vadd.f32 1.0, %v10879_v5  ;;  %v15487_v60 = vpop.permute.xlu1 %6004 }
 0x32a   :  { %v8035_v23 = vmul.f32 %v7523_v39, %v18784_v49  ;;  %v7522_v2 = vmul.f32 %v10881_v40, %v15336_v42  ;;  %10900 = vpow2.f32 %v9722_v7  ;;  %v15481_v21 = vunpack.c.l.bf16 %v10055_v55  ;;  %v15489_v52 = vpop.permute.xlu0 %6000 }
 0x32b   :  { %v10883_v32 = vpop.eup %10882  ;;  %v8661_v61 = vrot.slane %v8660_v15, 4  ;;  %10902 = vrcp.f32 %v3753_v14  ;;  %v1713_v41 = vadd.f32 %v18867_v11, %v18688_v16  ;;  %v1712_v6 = vadd.f32 %v18867_v11, %v18690_v46 }
 0x32c   :  { %v10885_v51 = vpop.eup %10884  ;;  %v8034_v35 = vmul.f32 %v7522_v2, %v14007_v57  ;;  %v3752_v42 = vadd.f32 1.0, %v10883_v32  ;;  %10904 = vpow2.f32 %v9721_v59  ;;  %v15494_v18 = vrot.slane %v15481_v21, %v18868_v36 }
 0x32d   :  { %v10887_v50 = vpop.eup %10886  ;;  %v8662_v24 = vadd.f32 %v8661_v61, %v8660_v15  ;;  %v3755_v56 = vadd.f32 1.0, %v10885_v51  ;;  %v9724_v8 = vmul.f32 -1.442695, %v1713_v41  ;;  %v9723_v12 = vmul.f32 -1.442695, %v1712_v6 }
 0x32e   :  { %v10889_v26 = vpop.eup %10888  ;;  %v8668_v55 = vadd.f32 %v8667_v34, %v8034_v35  ;;  %10906 = vrcp.f32 %v3752_v42  ;;  %v3754_v5 = vadd.f32 1.0, %v10887_v50  ;;  %6225 = vbcast.lane.b32.xlu1 %v15494_v18, 264  ;;  %6221 = vbcast.lane.b32.xlu0 %v15494_v18, 256  ;;  %v1715_v39 = vadd.f32 %v18867_v11, %v18709_v30 }
 0x32f   :  { %v10891_v7 = vpop.eup %10890  ;;  %v8663_v59 = vrot.slane %v8662_v24, 2  ;;  %10908 = vrcp.f32 %v3755_v56  ;;  %v3757_v40 = vadd.f32 1.0, %v10889_v26  ;;  %v1714_v15 = vadd.f32 %v18867_v11, %v18798_v62 }
 0x330   :  { %v10893_v14 = vpop.eup %10892  ;;  %v7525_v2 = vmul.f32 %v10891_v7, %v15351_v44  ;;  %v8669_v34 = vadd.f32 %v8668_v55, %v8035_v23  ;;  %10910 = vrcp.f32 %v3754_v5  ;;  %v9726_v32 = vmul.f32 -1.442695, %v1715_v39 }
 0x331   :  { %v10895_v61 = vpop.eup %10894  ;;  %v8664_v41 = vadd.f32 %v8663_v59, %v8662_v24  ;;  %v7524_v6 = vmul.f32 %v10893_v14, %v15353_v37  ;;  %10912 = vrcp.f32 %v3757_v40  ;;  %v9725_v51 = vmul.f32 -1.442695, %v1714_v15  ;;  %v15504_v35 = vpop.permute.xlu1 %6015 }
 0x332   :  { %v15506_v42 = vpop.permute.xlu0 %6011  ;;  %v10897_v50 = vpop.eup %10896  ;;  %v8037_v56 = vmul.f32 %v7525_v2, %v14369_v1  ;;  %v3756_v26 = vadd.f32 1.0, %v10895_v61  ;;  %10914 = vpow2.f32 %v9724_v8  ;;  %6233 = vbcast.lane.b32.xlu1 %v15494_v18, 280  ;;  %6229 = vbcast.lane.b32.xlu0 %v15494_v18, 272  ;;  %v1717_v44 = vadd.f32 %v18867_v11, %v18799_v31 }
 0x333   :  { %v10899_v23 = vpop.eup %10898  ;;  %v8665_v37 = vrot.slane %v8664_v41, 1  ;;  %v8036_v24 = vmul.f32 %v7524_v6, %v14237_v45  ;;  %v7527_v55 = vmul.f32 %v10897_v50, %v15366_v28  ;;  %10916 = vpow2.f32 %v9723_v12 }
 0x334   :  { %v10901_v5 = vpop.eup %10900  ;;  %v7526_v39 = vmul.f32 %v10899_v23, %v15368_v63  ;;  %10918 = vrcp.f32 %v3756_v26  ;;  %v9728_v7 = vmul.f32 -1.442695, %v1717_v44  ;;  %v1716_v8 = vadd.f32 %v18867_v11, %v18792_v4 }
 0x335   :  { %v10903_v59 = vpop.eup %10902  ;;  %v8666_v40 = vadd.f32 %v8665_v37, %v8664_v41  ;;  %v8670_v15 = vadd.f32 %v8669_v34, %v8036_v24  ;;  %v8039_v14 = vmul.f32 %v7527_v55, %v14489_v10  ;;  %v3759_v2 = vadd.f32 1.0, %v10901_v5  ;;  %v15519_v61 = vpop.permute.xlu1 %6023 }
 0x336   :  { %v15521_v6 = vpop.permute.xlu0 %6019  ;;  %v10905_v28 = vpop.eup %10904  ;;  %v8038_v12 = vmul.f32 %v7526_v39, %v14471_v38  ;;  %v7529_v63 = vmul.f32 %v10903_v59, %v15378_v9  ;;  %10920 = vpow2.f32 %v9726_v32  ;;  %6241 = vbcast.lane.b32.xlu1 %v15494_v18, 296  ;;  %6237 = vbcast.lane.b32.xlu0 %v15494_v18, 288  ;;  %v9727_v50 = vmul.f32 -1.442695, %v1716_v8 }
 0x337   :  { %v15529_v34 = vsel %vm9274_vm5, %v8666_v40, %v15465_v48  ;;  %v8671_v41 = vadd.f32 %v8670_v15, %v8037_v56  ;;  %10922 = vrcp.f32 %v3759_v2  ;;  %v3758_v26 = vadd.f32 1.0, %v10905_v28  ;;  %v18869_v48 = vld [vmem:[#allocation18_spill] sm:$0xff] }
 0x338   :  { %v10907_v44 = vpop.eup %10906  ;;  %v8041_v23 = vmul.f32 %v7529_v63, %v18779_v3  ;;  %10924 = vpow2.f32 %v9725_v51  ;;  %v1719_v9 = vadd.f32 %v18867_v11, %v18672_v43  ;;  %v1718_v32 = vadd.f32 %v18867_v11, %v18674_v53 }
 0x339   :  { %v10909_v37 = vpop.eup %10908  ;;  %v8672_v24 = vadd.f32 %v8671_v41, %v8038_v12  ;;  %v7528_v55 = vmul.f32 %v10907_v44, %v15380_v13  ;;  %10926 = vrcp.f32 %v3758_v26  ;;  %v15539_v56 = vrot.slane %v15481_v21, %v18869_v48  ;;  %v15541_v5 = vpop.permute.xlu1 %6031 }
 0x33a   :  { %v15543_v39 = vpop.permute.xlu0 %6027  ;;  %v10911_v51 = vpop.eup %10910  ;;  %v7531_v8 = vmul.f32 %v10909_v37, %v15395_v20  ;;  %10928 = vpow2.f32 %v9728_v7  ;;  %6249 = vbcast.lane.b32.xlu1 %v15494_v18, 312  ;;  %6245 = vbcast.lane.b32.xlu0 %v15494_v18, 304  ;;  %v9730_v11 = vmul.f32 -1.442695, %v1719_v9  ;;  %v9729_v59 = vmul.f32 -1.442695, %v1718_v32 }
 0x33b   :  { %v10913_v13 = vpop.eup %10912  ;;  %v8673_v40 = vadd.f32 %v8672_v24, %v8039_v14  ;;  %v8040_v15 = vmul.f32 %v7528_v55, %v18781_v58  ;;  %v7530_v2 = vmul.f32 %v10911_v51, %v15397_v27  ;;  %10930 = vpow2.f32 %v9727_v50  ;;  %v18870_v20 = vld [vmem:[#allocation100_spill] sm:$0xff] }
 0x33c   :  { %v10915_v28 = vpop.eup %10914  ;;  %v8043_v12 = vmul.f32 %v7531_v8, %v18784_v49  ;;  %v7533_v63 = vmul.f32 %v10913_v13, %v15410_v22  ;;  %10932 = vpow2.f32 %v9730_v11  ;;  %v1721_v7 = vadd.f32 %v18870_v20, %v18688_v16 }
 0x33d   :  { %v10917_v41 = vpop.eup %10916  ;;  %v8674_v18 = vrot.slane %v8673_v40, 4  ;;  %v8680_v26 = vadd.f32 %v8041_v23, %v8040_v15  ;;  %v8042_v44 = vmul.f32 %v7530_v2, %v14007_v57  ;;  %v3761_v14 = vadd.f32 1.0, %v10915_v28  ;;  %v15555_v9 = vpop.permute.xlu1 %6039 }
 0x33e   :  { %v15557_v32 = vpop.permute.xlu0 %6035  ;;  %v10919_v27 = vpop.eup %10918  ;;  %v8045_v50 = vmul.f32 %v7533_v63, %v14369_v1  ;;  %v3760_v37 = vadd.f32 1.0, %v10917_v41  ;;  %10934 = vpow2.f32 %v9729_v59  ;;  %6260 = vbcast.lane.b32.xlu1 %v15539_v56, 264  ;;  %6256 = vbcast.lane.b32.xlu0 %v15539_v56, 256  ;;  %v9732_v22 = vmul.f32 -1.442695, %v1721_v7 }
 0x33f   :  { %v8675_v24 = vadd.f32 %v8674_v18, %v8673_v40  ;;  %v8681_v55 = vadd.f32 %v8680_v26, %v8042_v44  ;;  %v7532_v23 = vmul.f32 %v10919_v27, %v15412_v47  ;;  %10936 = vrcp.f32 %v3761_v14 }
 0x340   :  { %v10921_v51 = vpop.eup %10920  ;;  %10938 = vrcp.f32 %v3760_v37  ;;  %v1720_v8 = vadd.f32 %v18870_v20, %v18690_v46  ;;  %v1723_v11 = vadd.f32 %v18870_v20, %v18709_v30  ;;  %v1722_v59 = vadd.f32 %v18870_v20, %v18798_v62 }
 0x341   :  { %v10923_v13 = vpop.eup %10922  ;;  %v8676_v15 = vrot.slane %v8675_v24, 2  ;;  %v8044_v2 = vmul.f32 %v7532_v23, %v14237_v45  ;;  %v8682_v40 = vadd.f32 %v8681_v55, %v8043_v12  ;;  %v3763_v28 = vadd.f32 1.0, %v10921_v51  ;;  %v15570_v63 = vpop.permute.xlu1 %6050 }
 0x342   :  { %v10925_v47 = vpop.eup %10924  ;;  %v7535_v7 = vmul.f32 %v10923_v13, %v15427_v19  ;;  %10940 = vpow2.f32 %v9732_v22  ;;  %v9731_v41 = vmul.f32 -1.442695, %v1720_v8  ;;  %6268 = vbcast.lane.b32.xlu1 %v15539_v56, 280  ;;  %6264 = vbcast.lane.b32.xlu0 %v15539_v56, 272  ;;  %v9734_v18 = vmul.f32 -1.442695, %v1723_v11  ;;  %v15575_v26 = vpop.permute.xlu0 %6046 }
 0x343   :  { %v10927_v44 = vpop.eup %10926  ;;  %v8677_v14 = vadd.f32 %v8676_v15, %v8675_v24  ;;  %v8683_v27 = vadd.f32 %v8682_v40, %v8044_v2  ;;  %10942 = vrcp.f32 %v3763_v28  ;;  %v3762_v12 = vadd.f32 1.0, %v10925_v47 }
 0x344   :  { %v10929_v37 = vpop.eup %10928  ;;  %v8047_v55 = vmul.f32 %v7535_v7, %v14489_v10  ;;  %v7534_v23 = vmul.f32 %v10927_v44, %v15429_v17  ;;  %10944 = vpow2.f32 %v9731_v41  ;;  %v9733_v19 = vmul.f32 -1.442695, %v1722_v59 }
 0x345   :  { %v10931_v22 = vpop.eup %10930  ;;  %v8678_v51 = vrot.slane %v8677_v14, 1  ;;  %v8684_v8 = vadd.f32 %v8683_v27, %v8045_v50  ;;  %10946 = vrcp.f32 %v3762_v12  ;;  %v3765_v13 = vadd.f32 1.0, %v10929_v37  ;;  %v15579_v11 = vpop.permute.xlu1 %6058  ;;  %v18871_v37 = vld [vmem:[#allocation203_spill] sm:$0xff] }
 0x346   :  { %v10933_v48 = vpop.eup %10932  ;;  %v8046_v24 = vmul.f32 %v7534_v23, %v14471_v38  ;;  %v3764_v15 = vadd.f32 1.0, %v10931_v22  ;;  %10948 = vpow2.f32 %v9734_v18  ;;  %6276 = vbcast.lane.b32.xlu1 %v15539_v56, 296  ;;  %6272 = vbcast.lane.b32.xlu0 %v15539_v56, 288  ;;  %v1725_v17 = vadd.f32 %v18870_v20, %v18799_v31  ;;  %v15586_v59 = vpop.permute.xlu0 %6054 }
 0x347   :  { %v8679_v2 = vadd.f32 %v8678_v51, %v8677_v14  ;;  %10950 = vrcp.f32 %v3765_v13  ;;  %v3767_v50 = vadd.f32 1.0, %v10933_v48  ;;  %v1724_v40 = vadd.f32 %v18870_v20, %v18792_v4 }
 0x348   :  { %v10935_v28 = vpop.eup %10934  ;;  %v8685_v47 = vadd.f32 %v8684_v8, %v8046_v24  ;;  %10952 = vrcp.f32 %v3764_v15  ;;  %v9736_v7 = vmul.f32 -1.442695, %v1725_v17  ;;  %v1727_v41 = vadd.f32 %v18870_v20, %v18672_v43 }
 0x349   :  { %v10937_v18 = vpop.eup %10936  ;;  %v9291_v44 = vsel %vm9276_vm6, %v8679_v2, %v15529_v34  ;;  %10954 = vrcp.f32 %v3767_v50  ;;  %v3766_v27 = vadd.f32 1.0, %v10935_v28  ;;  %v9735_v12 = vmul.f32 -1.442695, %v1724_v40  ;;  %v15594_v14 = vpop.permute.xlu1 %6066  ;;  %v18873_v34 = vld [vmem:[#allocation69_spill] sm:$0xff]  ;;  %v18874_v2 = vld [vmem:[#allocation122_spill] sm:$0xff] }
 0x34a   :  { %v10939_v48 = vpop.eup %10938  ;;  %v15597_v23 = vadd.f32 %v9291_v44, %v18871_v37  ;;  %v8686_v22 = vadd.f32 %v8685_v47, %v8047_v55  ;;  %v7537_v51 = vmul.f32 %v10937_v18, %v15440_v33  ;;  %10956 = vpow2.f32 %v9733_v19  ;;  %6284 = vbcast.lane.b32.xlu1 %v15539_v56, 312  ;;  %6280 = vbcast.lane.b32.xlu0 %v15539_v56, 304  ;;  %v15602_v8 = vpop.permute.xlu0 %6062 }
 0x34b   :  { %v7536_v13 = vmul.f32 %v10939_v48, %v18873_v34  ;;  %10958 = vrcp.f32 %v3766_v27  ;;  %v9738_v24 = vmul.f32 -1.442695, %v1727_v41  ;;  %v1726_v15 = vadd.f32 %v18870_v20, %v18674_v53  ;;  %v18877_v34 = vld [vmem:[#allocation19_spill] sm:$0xff] }
 0x34c   :  { %18872 = vst [vmem:[#allocation35_spill] sm:$0xff] %v15597_v23  ;;  %v10941_v17 = vpop.eup %10940  ;;  %v8687_v50 = vrot.slane %v8686_v22, 4  ;;  %v8049_v33 = vmul.f32 %v7537_v51, %v18779_v3  ;;  %10960 = vpow2.f32 %v9736_v7  ;;  %v15612_v56 = vrot.slane %v18874_v2, %v18868_v36 }
 0x34d   :  { %v10943_v19 = vpop.eup %10942  ;;  %v8048_v40 = vmul.f32 %v7536_v13, %v18781_v58  ;;  %v3769_v28 = vadd.f32 1.0, %v10941_v17  ;;  %10962 = vpow2.f32 %v9735_v12  ;;  %v9737_v18 = vmul.f32 -1.442695, %v1726_v15  ;;  %v15616_v44 = vpop.permute.xlu1 %6074 }
 0x34e   :  { %18875 = vst [vmem:[#allocation189_spill] sm:$0xff] %v15612_v56  ;;  %v10945_v47 = vpop.eup %10944  ;;  %v8688_v41 = vadd.f32 %v8687_v50, %v8686_v22  ;;  %v7539_v20 = vmul.f32 %v10943_v19, %v15454_v29  ;;  %10964 = vpow2.f32 %v9738_v24  ;;  %v15618_v27 = vpop.permute.xlu0 %6070  ;;  %v15624_v13 = vrot.slane %v15481_v21, %v18877_v34  ;;  %v18878_v19 = vld [vmem:[#allocation103_spill] sm:$0xff] }
 0x34f   :  { %v10947_v7 = vpop.eup %10946  ;;  %10966 = vrcp.f32 %v3769_v28  ;;  %v3768_v51 = vadd.f32 1.0, %v10945_v47  ;;  %v8693_v17 = vadd.f32 %v8049_v33, %v8048_v40  ;;  %v1729_v28 = vadd.f32 %v18878_v19, %v18688_v16 }
 0x350   :  { %v10949_v12 = vpop.eup %10948  ;;  %v8689_v22 = vrot.slane %v8688_v41, 2  ;;  %v8051_v29 = vmul.f32 %v7539_v20, %v18784_v49  ;;  %v7538_v24 = vmul.f32 %v10947_v7, %v15456_v0  ;;  %6295 = vbcast.lane.b32.xlu1 %v15624_v13, 264  ;;  %6291 = vbcast.lane.b32.xlu0 %v15624_v13, 256  ;;  %v1728_v47 = vadd.f32 %v18878_v19, %v18690_v46 }
 0x351   :  { %v10951_v15 = vpop.eup %10950  ;;  %10968 = vrcp.f32 %v3768_v51  ;;  %v3771_v50 = vadd.f32 1.0, %v10949_v12  ;;  %v9740_v7 = vmul.f32 -1.442695, %v1729_v28 }
 0x352   :  { %v10953_v37 = vpop.eup %10952  ;;  %v8690_v55 = vadd.f32 %v8689_v22, %v8688_v41  ;;  %v8050_v33 = vmul.f32 %v7538_v24, %v14007_v57  ;;  %v7541_v40 = vmul.f32 %v10951_v15, %v15469_v54  ;;  %10970 = vpow2.f32 %v9737_v18 }
 0x353   :  { %v10955_v0 = vpop.eup %10954  ;;  %v7540_v20 = vmul.f32 %v10953_v37, %v15471_v25  ;;  %10972 = vrcp.f32 %v3771_v50  ;;  %v9739_v51 = vmul.f32 -1.442695, %v1728_v47  ;;  %v1731_v25 = vadd.f32 %v18878_v19, %v18709_v30 }
 0x354   :  { %v10957_v12 = vpop.eup %10956  ;;  %v8691_v56 = vrot.slane %v8690_v55, 1  ;;  %v8694_v23 = vadd.f32 %v8693_v17, %v8050_v33  ;;  %v8053_v2 = vmul.f32 %v7541_v40, %v14369_v1  ;;  %v7543_v48 = vmul.f32 %v10955_v0, %v15487_v60  ;;  %v15639_v34 = vpop.permute.xlu1 %6085  ;;  %6303 = vbcast.lane.b32.xlu1 %v15624_v13, 280  ;;  %6299 = vbcast.lane.b32.xlu0 %v15624_v13, 272 }
 0x355   :  { %v15641_v41 = vpop.permute.xlu0 %6081  ;;  %v10959_v22 = vpop.eup %10958  ;;  %v8052_v54 = vmul.f32 %v7540_v20, %v14237_v45  ;;  %v3770_v18 = vadd.f32 1.0, %v10957_v12  ;;  %10974 = vpow2.f32 %v9740_v7  ;;  %v9742_v47 = vmul.f32 -1.442695, %v1731_v25 }
 0x356   :  { %v10961_v37 = vpop.eup %10960  ;;  %v15648_v17 = vadd.f32 %v8691_v56, %v8690_v55  ;;  %v8695_v60 = vadd.f32 %v8694_v23, %v8051_v29  ;;  %v8055_v24 = vmul.f32 %v7543_v48, %v14489_v10  ;;  %v7542_v15 = vmul.f32 %v10959_v22, %v15489_v52 }
 0x357   :  { %v10963_v50 = vpop.eup %10962  ;;  %10976 = vrcp.f32 %v3770_v18  ;;  %v3773_v28 = vadd.f32 1.0, %v10961_v37  ;;  %v1730_v33 = vadd.f32 %v18878_v19, %v18798_v62  ;;  %v1733_v29 = vadd.f32 %v18878_v19, %v18799_v31 }
 0x358   :  { %v10965_v40 = vpop.eup %10964  ;;  %v8696_v0 = vadd.f32 %v8695_v60, %v8052_v54  ;;  %v8054_v20 = vmul.f32 %v7542_v15, %v14471_v38  ;;  %v3772_v7 = vadd.f32 1.0, %v10963_v50  ;;  %10978 = vpow2.f32 %v9739_v51  ;;  %v15655_v55 = vpop.permute.xlu1 %6093  ;;  %6311 = vbcast.lane.b32.xlu1 %v15624_v13, 296  ;;  %6307 = vbcast.lane.b32.xlu0 %v15624_v13, 288 }
 0x359   :  { %v15657_v23 = vpop.permute.xlu0 %6089  ;;  %v10967_v56 = vpop.eup %10966  ;;  %10980 = vrcp.f32 %v3773_v28  ;;  %v3775_v52 = vadd.f32 1.0, %v10965_v40  ;;  %v9741_v48 = vmul.f32 -1.442695, %v1730_v33  ;;  %v1732_v51 = vadd.f32 %v18878_v19, %v18792_v4 }
 0x35a   :  { %v8697_v12 = vadd.f32 %v8696_v0, %v8053_v2  ;;  %v7545_v22 = vmul.f32 %v10967_v56, %v15504_v35  ;;  %10982 = vrcp.f32 %v3772_v7  ;;  %v9744_v18 = vmul.f32 -1.442695, %v1733_v29 }
 0x35b   :  { %v10969_v54 = vpop.eup %10968  ;;  %10984 = vrcp.f32 %v3775_v52  ;;  %v1735_v25 = vadd.f32 %v18878_v19, %v18672_v43  ;;  %v1734_v37 = vadd.f32 %v18878_v19, %v18674_v53  ;;  %v9743_v0 = vmul.f32 -1.442695, %v1732_v51  ;;  %v18879_v19 = vld [vmem:[#allocation20_spill] sm:$0xff] }
 0x35c   :  { %v10971_v60 = vpop.eup %10970  ;;  %v8698_v15 = vadd.f32 %v8697_v12, %v8054_v20  ;;  %v8057_v50 = vmul.f32 %v7545_v22, %v18779_v3  ;;  %v7544_v2 = vmul.f32 %v10969_v54, %v15506_v42  ;;  %10986 = vpow2.f32 %v9742_v47  ;;  %v15672_v35 = vpop.permute.xlu1 %6101  ;;  %6319 = vbcast.lane.b32.xlu1 %v15624_v13, 312  ;;  %6315 = vbcast.lane.b32.xlu0 %v15624_v13, 304 }
 0x35d   :  { %v15674_v28 = vpop.permute.xlu0 %6097  ;;  %v10973_v33 = vpop.eup %10972  ;;  %v3774_v40 = vadd.f32 1.0, %v10971_v60  ;;  %10988 = vpow2.f32 %v9741_v48  ;;  %v15680_v20 = vrot.slane %v15481_v21, %v18879_v19  ;;  %v9746_v52 = vmul.f32 -1.442695, %v1735_v25  ;;  %v18880_v48 = vld [vmem:[#allocation101_spill] sm:$0xff] }
 0x35e   :  { %v8699_v7 = vadd.f32 %v8698_v15, %v8055_v24  ;;  %v8056_v42 = vmul.f32 %v7544_v2, %v18781_v58  ;;  %v7547_v47 = vmul.f32 %v10973_v33, %v15519_v61  ;;  %10990 = vpow2.f32 %v9744_v18 }
 0x35f   :  { %v10975_v56 = vpop.eup %10974  ;;  %10992 = vrcp.f32 %v3774_v40  ;;  %v9745_v29 = vmul.f32 -1.442695, %v1734_v37  ;;  %v1737_v12 = vadd.f32 %v18880_v48, %v18688_v16  ;;  %v1736_v18 = vadd.f32 %v18880_v48, %v18690_v46 }
 0x360   :  { %v8700_v22 = vrot.slane %v8699_v7, 4  ;;  %v8706_v51 = vadd.f32 %v8057_v50, %v8056_v42  ;;  %v8059_v13 = vmul.f32 %v7547_v47, %v18784_v49  ;;  %v3777_v54 = vadd.f32 1.0, %v10975_v56  ;;  %v15687_v60 = vpop.permute.xlu1 %6109  ;;  %6330 = vbcast.lane.b32.xlu1 %v15680_v20, 264  ;;  %6326 = vbcast.lane.b32.xlu0 %v15680_v20, 256 }
 0x361   :  { %v10977_v24 = vpop.eup %10976  ;;  %10994 = vpow2.f32 %v9743_v0  ;;  %v9748_v61 = vmul.f32 -1.442695, %v1737_v12  ;;  %v1739_v25 = vadd.f32 %v18880_v48, %v18709_v30  ;;  %v15695_v37 = vpop.permute.xlu0 %6105  ;;  %v1738_v33 = vadd.f32 %v18880_v48, %v18798_v62 }
 0x362   :  { %18881 = vst [vmem:[#allocation42_spill] sm:$0xff] %v15695_v37  ;;  %v10979_v15 = vpop.eup %10978  ;;  %v8701_v50 = vadd.f32 %v8700_v22, %v8699_v7  ;;  %v7546_v2 = vmul.f32 %v10977_v24, %v15521_v6  ;;  %10996 = vrcp.f32 %v3777_v54  ;;  %v9747_v42 = vmul.f32 -1.442695, %v1736_v18 }
 0x363   :  { %v10981_v40 = vpop.eup %10980  ;;  %v3776_v0 = vadd.f32 1.0, %v10979_v15  ;;  %10998 = vpow2.f32 %v9746_v52  ;;  %v15700_v47 = vmul.f32 -1.442695, %v1739_v25  ;;  %v15707_v22 = vmul.f32 -1.442695, %v1738_v33 }
 0x364   :  { %v10983_v56 = vpop.eup %10982  ;;  %v8702_v12 = vrot.slane %v8701_v50, 2  ;;  %v8058_v19 = vmul.f32 %v7546_v2, %v14007_v57  ;;  %v7549_v36 = vmul.f32 %v10981_v40, %v15541_v5  ;;  %11000 = vpow2.f32 %v9745_v29  ;;  %6338 = vbcast.lane.b32.xlu1 %v15680_v20, 280  ;;  %6334 = vbcast.lane.b32.xlu0 %v15680_v20, 272 }
 0x365   :  { %v10985_v7 = vpop.eup %10984  ;;  %v7548_v6 = vmul.f32 %v10983_v56, %v15543_v39  ;;  %11002 = vrcp.f32 %v3776_v0  ;;  %v1741_v52 = vadd.f32 %v18880_v48, %v18799_v31 }
 0x366   :  { %v10987_v54 = vpop.eup %10986  ;;  %v8703_v24 = vadd.f32 %v8702_v12, %v8701_v50  ;;  %v8707_v18 = vadd.f32 %v8706_v51, %v8058_v19  ;;  %v8061_v25 = vmul.f32 %v7549_v36, %v14369_v1  ;;  %v7551_v5 = vmul.f32 %v10985_v7, %v15555_v9  ;;  %v15713_v29 = vpop.permute.xlu1 %6120 }
 0x367   :  { %v10989_v39 = vpop.eup %10988  ;;  %v8060_v15 = vmul.f32 %v7548_v6, %v14237_v45  ;;  %v3779_v2 = vadd.f32 1.0, %v10987_v54  ;;  %11004 = vpow2.f32 %v9748_v61  ;;  %v15716_v40 = vmul.f32 -1.442695, %v1741_v52  ;;  %v15718_v33 = vpop.permute.xlu0 %6116 }
 0x368   :  { %v10991_v0 = vpop.eup %10990  ;;  %v8704_v56 = vrot.slane %v8703_v24, 1  ;;  %v8708_v37 = vadd.f32 %v8707_v18, %v8059_v13  ;;  %v8063_v19 = vmul.f32 %v7551_v5, %v14489_v10  ;;  %v3778_v51 = vadd.f32 1.0, %v10989_v39  ;;  %6346 = vbcast.lane.b32.xlu1 %v15680_v20, 296  ;;  %6342 = vbcast.lane.b32.xlu0 %v15680_v20, 288 }
 0x369   :  { %v10993_v36 = vpop.eup %10992  ;;  %11006 = vrcp.f32 %v3779_v2  ;;  %v3781_v9 = vadd.f32 1.0, %v10991_v0  ;;  %v1740_v61 = vadd.f32 %v18880_v48, %v18792_v4  ;;  %v1743_v50 = vadd.f32 %v18880_v48, %v18672_v43 }
 0x36a   :  { %v8705_v12 = vadd.f32 %v8704_v56, %v8703_v24  ;;  %v8709_v7 = vadd.f32 %v8708_v37, %v8060_v15  ;;  %v7550_v13 = vmul.f32 %v10993_v36, %v15557_v32  ;;  %11008 = vrcp.f32 %v3778_v51  ;;  %v15728_v6 = vpop.permute.xlu1 %6128  ;;  %v18882_v51 = vld [vmem:[#allocation21_spill] sm:$0xff] }
 0x36b   :  { %v10995_v52 = vpop.eup %10994  ;;  %11010 = vrcp.f32 %v3781_v9  ;;  %v9751_v54 = vmul.f32 -1.442695, %v1740_v61  ;;  %v15730_v18 = vmul.f32 -1.442695, %v1743_v50  ;;  %v1742_v5 = vadd.f32 %v18880_v48, %v18674_v53  ;;  %v15734_v39 = vpop.permute.xlu0 %6124 }
 0x36c   :  { %v10997_v2 = vpop.eup %10996  ;;  %v15738_v24 = vsel %vm9264_vm0, %v8705_v12, %v15648_v17  ;;  %v8062_v32 = vmul.f32 %v7550_v13, %v14471_v38  ;;  %v8710_v37 = vadd.f32 %v8709_v7, %v8061_v25  ;;  %v3780_v15 = vadd.f32 1.0, %v10995_v52  ;;  %6354 = vbcast.lane.b32.xlu1 %v15680_v20, 312  ;;  %6350 = vbcast.lane.b32.xlu0 %v15680_v20, 304  ;;  %v18883_v25 = vld [vmem:[#allocation104_spill] sm:$0xff] }
 0x36d   :  { %v10999_v0 = vpop.eup %10998  ;;  %v7553_v56 = vmul.f32 %v10997_v2, %v15570_v63  ;;  %11012 = vpow2.f32 %v9747_v42  ;;  %v9753_v48 = vmul.f32 -1.442695, %v1742_v5  ;;  %v15746_v36 = vrot.slane %v15481_v21, %v18882_v51 }
 0x36e   :  { %v11001_v9 = vpop.eup %11000  ;;  %v8711_v17 = vadd.f32 %v8710_v37, %v8062_v32  ;;  %11014 = vrcp.f32 %v3780_v15  ;;  %v3783_v61 = vadd.f32 1.0, %v10999_v0  ;;  %v1745_v50 = vadd.f32 %v18883_v25, %v18688_v16  ;;  %v15750_v12 = vpop.permute.xlu1 %6136 }
 0x36f   :  { %v11003_v63 = vpop.eup %11002  ;;  %v8065_v42 = vmul.f32 %v7553_v56, %v18779_v3  ;;  %v3782_v7 = vadd.f32 1.0, %v11001_v9  ;;  %11016 = vpow2.f32 %v15700_v47  ;;  %v1744_v20 = vadd.f32 %v18883_v25, %v18690_v46  ;;  %v15756_v13 = vpop.permute.xlu0 %6132 }
 0x370   :  { %v8712_v52 = vadd.f32 %v8711_v17, %v8063_v19  ;;  %v7552_v5 = vmul.f32 %v11003_v63, %v15575_v26  ;;  %11018 = vrcp.f32 %v3783_v61  ;;  %v9756_v2 = vmul.f32 -1.442695, %v1745_v50  ;;  %6365 = vbcast.lane.b32.xlu1 %v15746_v36, 264  ;;  %6361 = vbcast.lane.b32.xlu0 %v15746_v36, 256 }
 0x371   :  { %v11005_v32 = vpop.eup %11004  ;;  %11020 = vrcp.f32 %v3782_v7  ;;  %v9755_v37 = vmul.f32 -1.442695, %v1744_v20  ;;  %v1747_v47 = vadd.f32 %v18883_v25, %v18709_v30  ;;  %v1746_v15 = vadd.f32 %v18883_v25, %v18798_v62 }
 0x372   :  { %v8713_v0 = vrot.slane %v8712_v52, 4  ;;  %v8064_v19 = vmul.f32 %v7552_v5, %v18781_v58  ;;  %v3785_v56 = vadd.f32 1.0, %v11005_v32  ;;  %11022 = vpow2.f32 %v15707_v22  ;;  %v15767_v26 = vpop.permute.xlu1 %6144 }
 0x373   :  { %v11007_v9 = vpop.eup %11006  ;;  %11024 = vpow2.f32 %v15716_v40  ;;  %v9758_v17 = vmul.f32 -1.442695, %v1747_v47  ;;  %v9757_v61 = vmul.f32 -1.442695, %v1746_v15  ;;  %v1749_v50 = vadd.f32 %v18883_v25, %v18799_v31  ;;  %v15772_v63 = vpop.permute.xlu0 %6140 }
 0x374   :  { %18884 = vst [vmem:[#allocation190_spill] sm:$0xff] %v15772_v63  ;;  %v11009_v7 = vpop.eup %11008  ;;  %v8714_v20 = vadd.f32 %v8713_v0, %v8712_v52  ;;  %v8719_v51 = vadd.f32 %v8065_v42, %v8064_v19  ;;  %v7555_v5 = vmul.f32 %v11007_v9, %v15579_v11  ;;  %11026 = vrcp.f32 %v3785_v56  ;;  %6373 = vbcast.lane.b32.xlu1 %v15746_v36, 280 }
 0x375   :  { %v11011_v32 = vpop.eup %11010  ;;  %v7554_v22 = vmul.f32 %v11009_v7, %v15586_v59  ;;  %11028 = vpow2.f32 %v9751_v54  ;;  %6369 = vbcast.lane.b32.xlu0 %v15746_v36, 272  ;;  %v9760_v40 = vmul.f32 -1.442695, %v1749_v50  ;;  %v1748_v47 = vadd.f32 %v18883_v25, %v18792_v4 }
 0x376   :  { %v8715_v15 = vrot.slane %v8714_v20, 2  ;;  %v8067_v63 = vmul.f32 %v7555_v5, %v18784_v49  ;;  %v7557_v42 = vmul.f32 %v11011_v32, %v15594_v14  ;;  %11030 = vpow2.f32 %v15730_v18 }
 0x377   :  { %v11013_v11 = vpop.eup %11012  ;;  %v8066_v52 = vmul.f32 %v7554_v22, %v14007_v57  ;;  %11032 = vpow2.f32 %v9753_v48  ;;  %v9759_v59 = vmul.f32 -1.442695, %v1748_v47  ;;  %v1751_v54 = vadd.f32 %v18883_v25, %v18672_v43 }
 0x378   :  { %v11015_v0 = vpop.eup %11014  ;;  %v8716_v19 = vadd.f32 %v8715_v15, %v8714_v20  ;;  %v8069_v56 = vmul.f32 %v7557_v42, %v14369_v1  ;;  %v3784_v9 = vadd.f32 1.0, %v11013_v11  ;;  %11034 = vpow2.f32 %v9756_v2  ;;  %v15787_v50 = vpop.permute.xlu1 %6155  ;;  %6381 = vbcast.lane.b32.xlu1 %v15746_v36, 296 }
 0x379   :  { %v15789_v7 = vpop.permute.xlu0 %6151  ;;  %v11017_v14 = vpop.eup %11016  ;;  %v8720_v18 = vadd.f32 %v8719_v51, %v8066_v52  ;;  %v7556_v5 = vmul.f32 %v11015_v0, %v15602_v8  ;;  %11036 = vpow2.f32 %v9755_v37  ;;  %6377 = vbcast.lane.b32.xlu0 %v15746_v36, 288  ;;  %v15794_v48 = vmul.f32 -1.442695, %v1751_v54 }
 0x37a   :  { %v11019_v20 = vpop.eup %11018  ;;  %v8717_v32 = vrot.slane %v8716_v19, 1  ;;  %11038 = vrcp.f32 %v3784_v9  ;;  %v3787_v22 = vadd.f32 1.0, %v11017_v14  ;;  %v1750_v2 = vadd.f32 %v18883_v25, %v18674_v53 }
 0x37b   :  { %v11021_v47 = vpop.eup %11020  ;;  %v8068_v15 = vmul.f32 %v7556_v5, %v14237_v45  ;;  %v8721_v51 = vadd.f32 %v8720_v18, %v8067_v63  ;;  %v7559_v8 = vmul.f32 %v11019_v20, %v15616_v44  ;;  %11040 = vpow2.f32 %v9758_v17 }
 0x37c   :  { %v11023_v37 = vpop.eup %11022  ;;  %v8718_v42 = vadd.f32 %v8717_v32, %v8716_v19  ;;  %v7558_v11 = vmul.f32 %v11021_v47, %v15618_v27  ;;  %11042 = vrcp.f32 %v3787_v22  ;;  %v15801_v52 = vmul.f32 -1.442695, %v1750_v2  ;;  %v15803_v54 = vpop.permute.xlu1 %6163  ;;  %6389 = vbcast.lane.b32.xlu1 %v15746_v36, 312  ;;  %v18885_v32 = vld [vmem:[#allocation22_spill] sm:$0xff]  ;;  %v18886_v2 = vld [vmem:[#allocation105_spill] sm:$0xff] }
 0x37d   :  { %v15805_v0 = vpop.permute.xlu0 %6159  ;;  %v11025_v9 = vpop.eup %11024  ;;  %v8722_v25 = vadd.f32 %v8721_v51, %v8068_v15  ;;  %v8071_v14 = vmul.f32 %v7559_v8, %v14489_v10  ;;  %v3786_v5 = vadd.f32 1.0, %v11023_v37  ;;  %11044 = vpow2.f32 %v9757_v61  ;;  %6385 = vbcast.lane.b32.xlu0 %v15746_v36, 304 }
 0x37e   :  { %v11027_v44 = vpop.eup %11026  ;;  %v15812_v27 = vsel %vm9266_vm1, %v8718_v42, %v15738_v24  ;;  %v8070_v17 = vmul.f32 %v7558_v11, %v14471_v38  ;;  %v3789_v63 = vadd.f32 1.0, %v11025_v9  ;;  %11046 = vpow2.f32 %v9760_v40 }
 0x37f   :  { %v11029_v19 = vpop.eup %11028  ;;  %v8723_v18 = vadd.f32 %v8722_v25, %v8069_v56  ;;  %v7561_v20 = vmul.f32 %v11027_v44, %v15639_v34  ;;  %11048 = vrcp.f32 %v3786_v5  ;;  %v15818_v61 = vrot.slane %v15481_v21, %v18885_v32 }
 0x380   :  { %v11031_v22 = vpop.eup %11030  ;;  %11050 = vrcp.f32 %v3789_v63  ;;  %v3788_v36 = vadd.f32 1.0, %v11029_v19  ;;  %v1753_v24 = vadd.f32 %v18886_v2, %v18688_v16  ;;  %v1752_v47 = vadd.f32 %v18886_v2, %v18690_v46  ;;  %v15824_v15 = vpop.permute.xlu1 %6171 }
 0x381   :  { %v15826_v40 = vpop.permute.xlu0 %6167  ;;  %v11033_v56 = vpop.eup %11032  ;;  %v8724_v34 = vadd.f32 %v8723_v18, %v8070_v17  ;;  %v8073_v51 = vmul.f32 %v7561_v20, %v18779_v3  ;;  %v3791_v8 = vadd.f32 1.0, %v11031_v22  ;;  %11052 = vpow2.f32 %v9759_v59  ;;  %6400 = vbcast.lane.b32.xlu1 %v15818_v61, 264  ;;  %6396 = vbcast.lane.b32.xlu0 %v15818_v61, 256 }
 0x382   :  { %v11035_v37 = vpop.eup %11034  ;;  %11054 = vrcp.f32 %v3788_v36  ;;  %v3790_v42 = vadd.f32 1.0, %v11033_v56  ;;  %v15831_v11 = vmul.f32 -1.442695, %v1753_v24  ;;  %v15833_v9 = vmul.f32 -1.442695, %v1752_v47 }
 0x383   :  { %v11037_v25 = vpop.eup %11036  ;;  %v8725_v5 = vadd.f32 %v8724_v34, %v8071_v14  ;;  %11056 = vrcp.f32 %v3791_v8  ;;  %v3793_v44 = vadd.f32 1.0, %v11035_v37  ;;  %v1755_v17 = vadd.f32 %v18886_v2, %v18709_v30 }
 0x384   :  { %v11039_v63 = vpop.eup %11038  ;;  %11058 = vrcp.f32 %v3790_v42  ;;  %v3792_v59 = vadd.f32 1.0, %v11037_v25  ;;  %v1754_v19 = vadd.f32 %v18886_v2, %v18798_v62  ;;  %v1757_v18 = vadd.f32 %v18886_v2, %v18799_v31  ;;  %v15841_v20 = vpop.permute.xlu1 %6179 }
 0x385   :  { %18887 = vst [vmem:[#allocation168_spill] sm:$0xff] %v15841_v20  ;;  %v15843_v22 = vpop.permute.xlu0 %6175  ;;  %v11041_v36 = vpop.eup %11040  ;;  %v8726_v14 = vrot.slane %v8725_v5, 4  ;;  %v7560_v24 = vmul.f32 %v11039_v63, %v15641_v41  ;;  %11060 = vrcp.f32 %v3793_v44  ;;  %6408 = vbcast.lane.b32.xlu1 %v15818_v61, 280  ;;  %6404 = vbcast.lane.b32.xlu0 %v15818_v61, 272  ;;  %v15848_v47 = vmul.f32 -1.442695, %v1755_v17 }
 0x386   :  { %18888 = vst [vmem:[#allocation49_spill] sm:$0xff] %v15843_v22  ;;  %v11043_v56 = vpop.eup %11042  ;;  %11062 = vrcp.f32 %v3792_v59  ;;  %v3795_v34 = vadd.f32 1.0, %v11041_v36  ;;  %v15850_v8 = vmul.f32 -1.442695, %v1754_v19  ;;  %v15852_v37 = vmul.f32 -1.442695, %v1757_v18 }
 0x387   :  { %v11045_v42 = vpop.eup %11044  ;;  %v8727_v25 = vadd.f32 %v8726_v14, %v8725_v5  ;;  %v8072_v32 = vmul.f32 %v7560_v24, %v18781_v58  ;;  %v7563_v41 = vmul.f32 %v11043_v56, %v15655_v55  ;;  %11064 = vpow2.f32 %v15794_v48  ;;  %v18891_v20 = vld [vmem:[#allocation23_spill] sm:$0xff] }
 0x388   :  { %v11047_v44 = vpop.eup %11046  ;;  %11066 = vrcp.f32 %v3795_v34  ;;  %v3794_v63 = vadd.f32 1.0, %v11045_v42  ;;  %v1756_v17 = vadd.f32 %v18886_v2, %v18792_v4  ;;  %v1759_v59 = vadd.f32 %v18886_v2, %v18672_v43  ;;  %v15861_v19 = vpop.permute.xlu1 %6190 }
 0x389   :  { %18889 = vst [vmem:[#allocation192_spill] sm:$0xff] %v15861_v19  ;;  %v15863_v18 = vpop.permute.xlu0 %6186  ;;  %v11049_v5 = vpop.eup %11048  ;;  %v8728_v36 = vrot.slane %v8727_v25, 2  ;;  %v8732_v14 = vadd.f32 %v8073_v51, %v8072_v32  ;;  %v8075_v55 = vmul.f32 %v7563_v41, %v18784_v49  ;;  %v3797_v24 = vadd.f32 1.0, %v11047_v44  ;;  %6416 = vbcast.lane.b32.xlu1 %v15818_v61, 296  ;;  %6412 = vbcast.lane.b32.xlu0 %v15818_v61, 288 }
 0x38a   :  { %18890 = vst [vmem:[#allocation137_spill] sm:$0xff] %v15863_v18  ;;  %v11051_v48 = vpop.eup %11050  ;;  %v7562_v56 = vmul.f32 %v11049_v5, %v15657_v23  ;;  %11068 = vrcp.f32 %v3794_v63  ;;  %v9767_v34 = vmul.f32 -1.442695, %v1756_v17  ;;  %v9770_v42 = vmul.f32 -1.442695, %v1759_v59 }
 0x38b   :  { %v11053_v22 = vpop.eup %11052  ;;  %v8729_v19 = vadd.f32 %v8728_v36, %v8727_v25  ;;  %v7565_v18 = vmul.f32 %v11051_v48, %v15672_v35  ;;  %11070 = vrcp.f32 %v3797_v24  ;;  %v1758_v32 = vadd.f32 %v18886_v2, %v18674_v53  ;;  %v18892_v48 = vld [vmem:[#allocation42_spill] sm:$0xff] }
 0x38c   :  { %v11055_v51 = vpop.eup %11054  ;;  %v8074_v41 = vmul.f32 %v7562_v56, %v14007_v57  ;;  %v3796_v44 = vadd.f32 1.0, %v11053_v22  ;;  %11072 = vpow2.f32 %v15801_v52  ;;  %v15876_v23 = vrot.slane %v15481_v21, %v18891_v20  ;;  %v15884_v5 = vpop.permute.xlu1 %6198 }
 0x38d   :  { %v11057_v63 = vpop.eup %11056  ;;  %v8730_v17 = vrot.slane %v8729_v19, 1  ;;  %v8077_v25 = vmul.f32 %v7565_v18, %v14369_v1  ;;  %v7564_v35 = vmul.f32 %v11055_v51, %v15674_v28  ;;  %11074 = vpow2.f32 %v15831_v11  ;;  %6424 = vbcast.lane.b32.xlu1 %v15818_v61, 312  ;;  %6420 = vbcast.lane.b32.xlu0 %v15818_v61, 304  ;;  %v15886_v36 = vpop.permute.xlu0 %6194 }
 0x38e   :  { %v11059_v2 = vpop.eup %11058  ;;  %v8733_v22 = vadd.f32 %v8732_v14, %v8074_v41  ;;  %v7567_v52 = vmul.f32 %v11057_v63, %v15687_v60  ;;  %11076 = vrcp.f32 %v3796_v44  ;;  %v9769_v59 = vmul.f32 -1.442695, %v1758_v32 }
 0x38f   :  { %v11061_v24 = vpop.eup %11060  ;;  %v8731_v18 = vadd.f32 %v8730_v17, %v8729_v19  ;;  %v8076_v28 = vmul.f32 %v7564_v35, %v14237_v45  ;;  %v7566_v11 = vmul.f32 %v11059_v2, %v18892_v48  ;;  %11078 = vpow2.f32 %v15833_v9 }
 0x390   :  { %v11063_v56 = vpop.eup %11062  ;;  %v8734_v61 = vadd.f32 %v8733_v22, %v8075_v55  ;;  %v8079_v14 = vmul.f32 %v7567_v52, %v14489_v10  ;;  %v7569_v60 = vmul.f32 %v11061_v24, %v15713_v29  ;;  %11080 = vpow2.f32 %v15848_v47  ;;  %v15913_v22 = vpop.permute.xlu1 %6206 }
 0x391   :  { %v11065_v32 = vpop.eup %11064  ;;  %v15896_v51 = vsel %vm9268_vm2, %v8731_v18, %v15812_v27  ;;  %v8078_v19 = vmul.f32 %v7566_v11, %v14471_v38  ;;  %v7568_v41 = vmul.f32 %v11063_v56, %v15718_v33  ;;  %11082 = vpow2.f32 %v15850_v8  ;;  %6435 = vbcast.lane.b32.xlu1 %v15876_v23, 264  ;;  %6431 = vbcast.lane.b32.xlu0 %v15876_v23, 256  ;;  %v18893_v33 = vld [vmem:[#allocation106_spill] sm:$0xff] }
 0x392   :  { %v11067_v9 = vpop.eup %11066  ;;  %v8735_v55 = vadd.f32 %v8734_v61, %v8076_v28  ;;  %v8081_v29 = vmul.f32 %v7569_v60, %v18779_v3  ;;  %v3799_v47 = vadd.f32 1.0, %v11065_v32  ;;  %11084 = vpow2.f32 %v15852_v37  ;;  %v15915_v37 = vpop.permute.xlu0 %6202 }
 0x393   :  { %v8080_v27 = vmul.f32 %v7568_v41, %v18781_v58  ;;  %v7571_v44 = vmul.f32 %v11067_v9, %v15728_v6  ;;  %11086 = vpow2.f32 %v9767_v34  ;;  %v1761_v63 = vadd.f32 %v18893_v33, %v18688_v16 }
 0x394   :  { %v11069_v8 = vpop.eup %11068  ;;  %v8736_v17 = vadd.f32 %v8735_v55, %v8077_v25  ;;  %11088 = vrcp.f32 %v3799_v47  ;;  %v1760_v35 = vadd.f32 %v18893_v33, %v18690_v46  ;;  %v1763_v2 = vadd.f32 %v18893_v33, %v18709_v30 }
 0x395   :  { %v11071_v52 = vpop.eup %11070  ;;  %v8745_v24 = vadd.f32 %v8081_v29, %v8080_v27  ;;  %v8083_v6 = vmul.f32 %v7571_v44, %v18784_v49  ;;  %v7570_v34 = vmul.f32 %v11069_v8, %v15734_v39  ;;  %11090 = vpow2.f32 %v9770_v42  ;;  %6443 = vbcast.lane.b32.xlu1 %v15876_v23, 280  ;;  %6439 = vbcast.lane.b32.xlu0 %v15876_v23, 272  ;;  %v15931_v44 = vpop.permute.xlu1 %6214 }
 0x396   :  { %v11073_v25 = vpop.eup %11072  ;;  %v8737_v18 = vadd.f32 %v8736_v17, %v8078_v19  ;;  %v7573_v28 = vmul.f32 %v11071_v52, %v15750_v12  ;;  %11092 = vpow2.f32 %v9769_v59  ;;  %v9772_v48 = vmul.f32 -1.442695, %v1761_v63  ;;  %v15933_v63 = vpop.permute.xlu0 %6210 }
 0x397   :  { %v11075_v11 = vpop.eup %11074  ;;  %v8082_v56 = vmul.f32 %v7570_v34, %v14007_v57  ;;  %v3798_v61 = vadd.f32 1.0, %v11073_v25  ;;  %v9771_v60 = vmul.f32 -1.442695, %v1760_v35  ;;  %v9774_v32 = vmul.f32 -1.442695, %v1763_v2 }
 0x398   :  { %v11077_v41 = vpop.eup %11076  ;;  %v8738_v9 = vadd.f32 %v8737_v18, %v8079_v14  ;;  %v8085_v39 = vmul.f32 %v7573_v28, %v14369_v1  ;;  %v3801_v42 = vadd.f32 1.0, %v11075_v11  ;;  %11094 = vpow2.f32 %v9772_v48 }
 0x399   :  { %v11079_v55 = vpop.eup %11078  ;;  %v8746_v29 = vadd.f32 %v8745_v24, %v8082_v56  ;;  %v7572_v19 = vmul.f32 %v11077_v41, %v15756_v13  ;;  %11096 = vrcp.f32 %v3798_v61  ;;  %v1762_v12 = vadd.f32 %v18893_v33, %v18798_v62  ;;  %6451 = vbcast.lane.b32.xlu1 %v15876_v23, 296  ;;  %6447 = vbcast.lane.b32.xlu0 %v15876_v23, 288 }
 0x39a   :  { %v11081_v59 = vpop.eup %11080  ;;  %v8739_v47 = vrot.slane %v8738_v9, 4  ;;  %11098 = vrcp.f32 %v3801_v42  ;;  %v3800_v14 = vadd.f32 1.0, %v11079_v55  ;;  %v1765_v27 = vadd.f32 %v18893_v33, %v18799_v31 }
 0x39b   :  { %v11083_v13 = vpop.eup %11082  ;;  %v8084_v8 = vmul.f32 %v7572_v19, %v14237_v45  ;;  %v8747_v17 = vadd.f32 %v8746_v29, %v8083_v6  ;;  %v3803_v35 = vadd.f32 1.0, %v11081_v59  ;;  %11100 = vpow2.f32 %v9771_v60 }
 0x39c   :  { %v11085_v2 = vpop.eup %11084  ;;  %v8740_v52 = vadd.f32 %v8739_v47, %v8738_v9  ;;  %11102 = vrcp.f32 %v3800_v14  ;;  %v3802_v24 = vadd.f32 1.0, %v11083_v13  ;;  %v9773_v34 = vmul.f32 -1.442695, %v1762_v12 }
 0x39d   :  { %v11087_v25 = vpop.eup %11086  ;;  %v8748_v18 = vadd.f32 %v8747_v17, %v8084_v8  ;;  %11104 = vrcp.f32 %v3803_v35  ;;  %v3805_v28 = vadd.f32 1.0, %v11085_v2  ;;  %v9776_v48 = vmul.f32 -1.442695, %v1765_v27  ;;  %6459 = vbcast.lane.b32.xlu1 %v15876_v23, 312  ;;  %6455 = vbcast.lane.b32.xlu0 %v15876_v23, 304  ;;  %v18894_v8 = vld [vmem:[#allocation24_spill] sm:$0xff] }
 0x39e   :  { %v11089_v11 = vpop.eup %11088  ;;  %v8741_v56 = vrot.slane %v8740_v52, 2  ;;  %11106 = vrcp.f32 %v3802_v24  ;;  %v3804_v6 = vadd.f32 1.0, %v11087_v25  ;;  %v1764_v61 = vadd.f32 %v18893_v33, %v18792_v4 }
 0x39f   :  { %v11091_v60 = vpop.eup %11090  ;;  %v7575_v41 = vmul.f32 %v11089_v11, %v15767_v26  ;;  %v8749_v9 = vadd.f32 %v8748_v18, %v8085_v39  ;;  %11108 = vrcp.f32 %v3805_v28  ;;  %v1767_v42 = vadd.f32 %v18893_v33, %v18672_v43  ;;  %v18896_v28 = vld [vmem:[#allocation190_spill] sm:$0xff] }
 0x3a0   :  { %v11093_v55 = vpop.eup %11092  ;;  %v8742_v29 = vadd.f32 %v8741_v56, %v8740_v52  ;;  %11110 = vrcp.f32 %v3804_v6  ;;  %v3807_v19 = vadd.f32 1.0, %v11091_v60  ;;  %v9775_v23 = vmul.f32 -1.442695, %v1764_v61  ;;  %v15943_v12 = vpop.permute.xlu1 %6225  ;;  %v18895_v52 = vld [vmem:[#allocation107_spill] sm:$0xff] }
 0x3a1   :  { %v15945_v59 = vpop.permute.xlu0 %6221  ;;  %v8087_v47 = vmul.f32 %v7575_v41, %v14489_v10  ;;  %v3806_v14 = vadd.f32 1.0, %v11093_v55  ;;  %11112 = vpow2.f32 %v9774_v32  ;;  %v9778_v27 = vmul.f32 -1.442695, %v1767_v42 }
 0x3a2   :  { %v11095_v26 = vpop.eup %11094  ;;  %v8743_v39 = vrot.slane %v8742_v29, 1  ;;  %11114 = vrcp.f32 %v3807_v19  ;;  %v1766_v13 = vadd.f32 %v18893_v33, %v18674_v53  ;;  %v15952_v17 = vrot.slane %v15481_v21, %v18894_v8 }
 0x3a3   :  { %v11097_v35 = vpop.eup %11096  ;;  %11116 = vrcp.f32 %v3806_v14  ;;  %v3809_v2 = vadd.f32 1.0, %v11095_v26  ;;  %v1769_v24 = vadd.f32 %v18895_v52, %v18688_v16  ;;  %v1768_v32 = vadd.f32 %v18895_v52, %v18690_v46 }
 0x3a4   :  { %v11099_v25 = vpop.eup %11098  ;;  %v8744_v18 = vadd.f32 %v8743_v39, %v8742_v29  ;;  %v7574_v11 = vmul.f32 %v11097_v35, %v18896_v28  ;;  %11118 = vpow2.f32 %v9773_v34  ;;  %v9777_v56 = vmul.f32 -1.442695, %v1766_v13  ;;  %6470 = vbcast.lane.b32.xlu1 %v15952_v17, 264  ;;  %6466 = vbcast.lane.b32.xlu0 %v15952_v17, 256  ;;  %v15961_v21 = vpop.permute.xlu1 %6233 }
 0x3a5   :  { %v15963_v33 = vpop.permute.xlu0 %6229  ;;  %v11101_v6 = vpop.eup %11100  ;;  %v7577_v61 = vmul.f32 %v11099_v25, %v15787_v50  ;;  %11120 = vrcp.f32 %v3809_v2  ;;  %v9780_v60 = vmul.f32 -1.442695, %v1769_v24  ;;  %v9779_v41 = vmul.f32 -1.442695, %v1768_v32 }
 0x3a6   :  { %v11103_v42 = vpop.eup %11102  ;;  %v15968_v55 = vsel %vm9270_vm3, %v8744_v18, %v15896_v51  ;;  %v8086_v34 = vmul.f32 %v7574_v11, %v14471_v38  ;;  %v3808_v29 = vadd.f32 1.0, %v11101_v6  ;;  %11122 = vpow2.f32 %v9776_v48 }
 0x3a7   :  { %v11105_v19 = vpop.eup %11104  ;;  %v8089_v14 = vmul.f32 %v7577_v61, %v18779_v3  ;;  %v7576_v26 = vmul.f32 %v11103_v42, %v15789_v7  ;;  %11124 = vpow2.f32 %v9775_v23  ;;  %v1771_v50 = vadd.f32 %v18895_v52, %v18709_v30 }
 0x3a8   :  { %v11107_v39 = vpop.eup %11106  ;;  %v8750_v13 = vadd.f32 %v8749_v9, %v8086_v34  ;;  %v7579_v35 = vmul.f32 %v11105_v19, %v15803_v54  ;;  %11126 = vrcp.f32 %v3808_v29  ;;  %6478 = vbcast.lane.b32.xlu1 %v15952_v17, 280  ;;  %6474 = vbcast.lane.b32.xlu0 %v15952_v17, 272  ;;  %v1770_v51 = vadd.f32 %v18895_v52, %v18798_v62  ;;  %v15980_v48 = vpop.permute.xlu1 %6241 }
 0x3a9   :  { %v15982_v2 = vpop.permute.xlu0 %6237  ;;  %v11109_v7 = vpop.eup %11108  ;;  %v8088_v23 = vmul.f32 %v7576_v26, %v18781_v58  ;;  %v7578_v24 = vmul.f32 %v11107_v39, %v15805_v0  ;;  %11128 = vpow2.f32 %v9778_v27  ;;  %v9782_v9 = vmul.f32 -1.442695, %v1771_v50  ;;  %v18898_v50 = vld [vmem:[#allocation49_spill] sm:$0xff] }
 0x3aa   :  { %v11111_v54 = vpop.eup %11110  ;;  %v8751_v32 = vadd.f32 %v8750_v13, %v8087_v47  ;;  %v8091_v25 = vmul.f32 %v7579_v35, %v18784_v49  ;;  %v7581_v18 = vmul.f32 %v11109_v7, %v15824_v15  ;;  %11130 = vpow2.f32 %v9777_v56 }
 0x3ab   :  { %v11113_v28 = vpop.eup %11112  ;;  %v8758_v11 = vadd.f32 %v8089_v14, %v8088_v23  ;;  %v8090_v6 = vmul.f32 %v7578_v24, %v14007_v57  ;;  %v7580_v61 = vmul.f32 %v11111_v54, %v15826_v40  ;;  %11132 = vpow2.f32 %v9780_v60  ;;  %v18897_v40 = vld [vmem:[#allocation168_spill] sm:$0xff] }
 0x3ac   :  { %v11115_v42 = vpop.eup %11114  ;;  %v8752_v34 = vrot.slane %v8751_v32, 4  ;;  %v8093_v0 = vmul.f32 %v7581_v18, %v14369_v1  ;;  %v3811_v27 = vadd.f32 1.0, %v11113_v28  ;;  %11134 = vpow2.f32 %v9779_v41  ;;  %6486 = vbcast.lane.b32.xlu1 %v15952_v17, 296  ;;  %6482 = vbcast.lane.b32.xlu0 %v15952_v17, 288  ;;  %v15993_v47 = vpop.permute.xlu1 %6249 }
 0x3ad   :  { %v15995_v15 = vpop.permute.xlu0 %6245  ;;  %v11117_v56 = vpop.eup %11116  ;;  %v8759_v29 = vadd.f32 %v8758_v11, %v8090_v6  ;;  %v8092_v19 = vmul.f32 %v7580_v61, %v14237_v45  ;;  %v7583_v60 = vmul.f32 %v11115_v42, %v18897_v40  ;;  %11136 = vpow2.f32 %v9782_v9  ;;  %v18899_v11 = vld [vmem:[#allocation192_spill] sm:$0xff] }
 0x3ae   :  { %v11119_v14 = vpop.eup %11118  ;;  %v8753_v26 = vadd.f32 %v8752_v34, %v8751_v32  ;;  %v7582_v39 = vmul.f32 %v11117_v56, %v18898_v50  ;;  %11138 = vrcp.f32 %v3811_v27  ;;  %v9781_v41 = vmul.f32 -1.442695, %v1770_v51 }
 0x3af   :  { %v11121_v13 = vpop.eup %11120  ;;  %v8760_v35 = vadd.f32 %v8759_v29, %v8091_v25  ;;  %v8095_v7 = vmul.f32 %v7583_v60, %v14489_v10  ;;  %v3810_v23 = vadd.f32 1.0, %v11119_v14  ;;  %v1773_v24 = vadd.f32 %v18895_v52, %v18799_v31 }
 0x3b0   :  { %v11123_v54 = vpop.eup %11122  ;;  %v8754_v18 = vrot.slane %v8753_v26, 2  ;;  %v8094_v28 = vmul.f32 %v7582_v39, %v14471_v38  ;;  %v7585_v9 = vmul.f32 %v11121_v13, %v18899_v11  ;;  %11140 = vpow2.f32 %v9781_v41  ;;  %6494 = vbcast.lane.b32.xlu1 %v15952_v17, 312  ;;  %6490 = vbcast.lane.b32.xlu0 %v15952_v17, 304  ;;  %v16007_v51 = vpop.permute.xlu1 %6260  ;;  %v18900_v17 = vld [vmem:[#allocation137_spill] sm:$0xff] }
 0x3b1   :  { %v16009_v32 = vpop.permute.xlu0 %6256  ;;  %v11125_v25 = vpop.eup %11124  ;;  %v8761_v6 = vadd.f32 %v8760_v35, %v8092_v19  ;;  %11142 = vrcp.f32 %v3810_v23  ;;  %v3813_v61 = vadd.f32 1.0, %v11123_v54  ;;  %v9784_v42 = vmul.f32 -1.442695, %v1773_v24 }
 0x3b2   :  { %v11127_v34 = vpop.eup %11126  ;;  %v8755_v27 = vadd.f32 %v8754_v18, %v8753_v26  ;;  %v8097_v56 = vmul.f32 %v7585_v9, %v18779_v3  ;;  %v3812_v29 = vadd.f32 1.0, %v11125_v25  ;;  %v1772_v40 = vadd.f32 %v18895_v52, %v18792_v4 }
 0x3b3   :  { %v11129_v60 = vpop.eup %11128  ;;  %v8762_v14 = vadd.f32 %v8761_v6, %v8093_v0  ;;  %v7584_v50 = vmul.f32 %v11127_v34, %v18900_v17  ;;  %11144 = vrcp.f32 %v3813_v61  ;;  %v1775_v39 = vadd.f32 %v18895_v52, %v18672_v43 }
 0x3b4   :  { %v11131_v19 = vpop.eup %11130  ;;  %v8756_v41 = vrot.slane %v8755_v27, 1  ;;  %11146 = vrcp.f32 %v3812_v29  ;;  %v3815_v13 = vadd.f32 1.0, %v11129_v60  ;;  %v9783_v35 = vmul.f32 -1.442695, %v1772_v40  ;;  %v16017_v26 = vpop.permute.xlu1 %6268 }
 0x3b5   :  { %v16019_v23 = vpop.permute.xlu0 %6264  ;;  %v11133_v24 = vpop.eup %11132  ;;  %v8763_v54 = vadd.f32 %v8762_v14, %v8094_v28  ;;  %v8096_v18 = vmul.f32 %v7584_v50, %v18781_v58  ;;  %v3814_v0 = vadd.f32 1.0, %v11131_v19  ;;  %11148 = vpow2.f32 %v9784_v42 }
 0x3b6   :  { %v11135_v11 = vpop.eup %11134  ;;  %v8757_v9 = vadd.f32 %v8756_v41, %v8755_v27  ;;  %11150 = vrcp.f32 %v3815_v13  ;;  %v3817_v25 = vadd.f32 1.0, %v11133_v24  ;;  %v9786_v6 = vmul.f32 -1.442695, %v1775_v39  ;;  %v18901_v41 = vld [vmem:[#allocation108_spill] sm:$0xff] }
 0x3b7   :  { %v11137_v61 = vpop.eup %11136  ;;  %v8764_v34 = vadd.f32 %v8763_v54, %v8095_v7  ;;  %v8771_v29 = vadd.f32 %v8097_v56, %v8096_v18  ;;  %11152 = vrcp.f32 %v3814_v0  ;;  %v3816_v40 = vadd.f32 1.0, %v11135_v11  ;;  %v12169_v56 = vld [vmem:[#allocation9 + $0x10] sm:$0xff]   ;;  %v18902_v11 = vld [vmem:[#allocation17_spill] sm:$0xff] }
 0x3b8   :  { %v11139_v60 = vpop.eup %11138  ;;  %v16024_v17 = vsel %vm9272_vm4, %v8757_v9, %v15968_v55  ;;  %11154 = vrcp.f32 %v3817_v25  ;;  %v3819_v28 = vadd.f32 1.0, %v11137_v61  ;;  %v1774_v42 = vadd.f32 %v18895_v52, %v18674_v53  ;;  %v16028_v14 = vpop.permute.xlu1 %6276 }
 0x3b9   :  { %v16030_v27 = vpop.permute.xlu0 %6272  ;;  %v8765_v50 = vrot.slane %v8764_v34, 4  ;;  %v7587_v7 = vmul.f32 %v11139_v60, %v15884_v5  ;;  %11156 = vrcp.f32 %v3816_v40  ;;  %v16033_v39 = vunpack.c.h.bf16 %v12169_v56 }
 0x3ba   :  { %v11141_v19 = vpop.eup %11140  ;;  %11158 = vrcp.f32 %v3819_v28  ;;  %v9785_v55 = vmul.f32 -1.442695, %v1774_v42  ;;  %v1777_v13 = vadd.f32 %v18901_v41, %v18688_v16  ;;  %v1776_v52 = vadd.f32 %v18901_v41, %v18690_v46 }
 0x3bb   :  { %v11143_v24 = vpop.eup %11142  ;;  %v8766_v54 = vadd.f32 %v8765_v50, %v8764_v34  ;;  %v8099_v18 = vmul.f32 %v7587_v7, %v18784_v49  ;;  %v3818_v0 = vadd.f32 1.0, %v11141_v19  ;;  %11160 = vpow2.f32 %v9783_v35 }
 0x3bc   :  { %v7586_v5 = vmul.f32 %v11143_v24, %v15886_v36  ;;  %11162 = vpow2.f32 %v9786_v6  ;;  %v16043_v9 = vrot.slane %v16033_v39, %v18902_v11  ;;  %v9788_v25 = vmul.f32 -1.442695, %v1777_v13  ;;  %v16047_v34 = vpop.permute.xlu1 %6284 }
 0x3bd   :  { %v11145_v61 = vpop.eup %11144  ;;  %v8767_v40 = vrot.slane %v8766_v54, 2  ;;  %11164 = vrcp.f32 %v3818_v0  ;;  %v9787_v60 = vmul.f32 -1.442695, %v1776_v52  ;;  %v1779_v28 = vadd.f32 %v18901_v41, %v18709_v30  ;;  %v16049_v42 = vpop.permute.xlu0 %6280 }
 0x3be   :  { %18903 = vst [vmem:[#allocation80_spill] sm:$0xff] %v16049_v42  ;;  %v11147_v35 = vpop.eup %11146  ;;  %v8098_v36 = vmul.f32 %v7586_v5, %v14007_v57  ;;  %v7589_v6 = vmul.f32 %v11145_v61, %v15913_v22  ;;  %11166 = vpow2.f32 %v9785_v55  ;;  %6505 = vbcast.lane.b32.xlu1 %v16043_v9, 264  ;;  %6501 = vbcast.lane.b32.xlu0 %v16043_v9, 256 }
 0x3bf   :  { %v1778_v50 = vadd.f32 %v18901_v41, %v18798_v62  ;;  %v11149_v7 = vpop.eup %11148  ;;  %v8768_v56 = vadd.f32 %v8767_v40, %v8766_v54  ;;  %v7588_v19 = vmul.f32 %v11147_v35, %v15915_v37  ;;  %11168 = vpow2.f32 %v9788_v25 }
 0x3c0   :  { %v9790_v13 = vmul.f32 -1.442695, %v1779_v28  ;;  %v11151_v52 = vpop.eup %11150  ;;  %v8772_v24 = vadd.f32 %v8771_v29, %v8098_v36  ;;  %v8101_v0 = vmul.f32 %v7589_v6, %v14369_v1  ;;  %v3821_v5 = vadd.f32 1.0, %v11149_v7 }
 0x3c1   :  { %11170 = vpow2.f32 %v9787_v60  ;;  %v11153_v22 = vpop.eup %11152  ;;  %v8769_v55 = vrot.slane %v8768_v56, 1  ;;  %v8100_v61 = vmul.f32 %v7588_v19, %v14237_v45  ;;  %v7591_v8 = vmul.f32 %v11151_v52, %v15931_v44 }
 0x3c2   :  { %11172 = vpow2.f32 %v9790_v13  ;;  %v11155_v20 = vpop.eup %11154  ;;  %v8773_v42 = vadd.f32 %v8772_v24, %v8099_v18  ;;  %v7590_v54 = vmul.f32 %v11153_v22, %v15933_v63  ;;  %6513 = vbcast.lane.b32.xlu1 %v16043_v9, 280  ;;  %6509 = vbcast.lane.b32.xlu0 %v16043_v9, 272  ;;  %v9789_v37 = vmul.f32 -1.442695, %v1778_v50  ;;  %v16068_v28 = vpop.permute.xlu1 %6295 }
 0x3c3   :  { %11174 = vrcp.f32 %v3821_v5  ;;  %v11157_v29 = vpop.eup %11156  ;;  %v8770_v25 = vadd.f32 %v8769_v55, %v8768_v56  ;;  %v8103_v40 = vmul.f32 %v7591_v8, %v14489_v10  ;;  %v7593_v60 = vmul.f32 %v11155_v20, %v15943_v12  ;;  %v16070_v18 = vpop.permute.xlu0 %6291 }
 0x3c4   :  { %v1781_v44 = vadd.f32 %v18901_v41, %v18799_v31  ;;  %v11159_v63 = vpop.eup %11158  ;;  %v8774_v35 = vadd.f32 %v8773_v42, %v8100_v61  ;;  %v8102_v36 = vmul.f32 %v7590_v54, %v14471_v38  ;;  %v7592_v6 = vmul.f32 %v11157_v29, %v15945_v59 }
 0x3c5   :  { %11176 = vpow2.f32 %v9789_v37  ;;  %v11161_v50 = vpop.eup %11160  ;;  %v16076_v8 = vsel %vm9274_vm5, %v8770_v25, %v16024_v17  ;;  %v8105_v20 = vmul.f32 %v7593_v60, %v18779_v3  ;;  %v7595_v12 = vmul.f32 %v11159_v63, %v15961_v21 }
 0x3c6   :  { %v9792_v7 = vmul.f32 -1.442695, %v1781_v44  ;;  %v11163_v56 = vpop.eup %11162  ;;  %v8775_v19 = vadd.f32 %v8774_v35, %v8101_v0  ;;  %v8104_v13 = vmul.f32 %v7592_v6, %v18781_v58  ;;  %v3820_v42 = vadd.f32 1.0, %v11161_v50  ;;  %6521 = vbcast.lane.b32.xlu1 %v16043_v9, 296  ;;  %6517 = vbcast.lane.b32.xlu0 %v16043_v9, 288  ;;  %v16088_v5 = vpop.permute.xlu1 %6303 }
 0x3c7   :  { %v1780_v59 = vadd.f32 %v18901_v41, %v18792_v4  ;;  %v11165_v52 = vpop.eup %11164  ;;  %v8107_v17 = vmul.f32 %v7595_v12, %v18784_v49  ;;  %v3823_v24 = vadd.f32 1.0, %v11163_v56  ;;  %v1783_v21 = vadd.f32 %v18901_v41, %v18672_v43  ;;  %v16090_v0 = vpop.permute.xlu0 %6299 }
 0x3c8   :  { %11178 = vpow2.f32 %v9792_v7  ;;  %v11167_v22 = vpop.eup %11166  ;;  %v8776_v55 = vadd.f32 %v8775_v19, %v8102_v36  ;;  %v8784_v61 = vadd.f32 %v8105_v20, %v8104_v13  ;;  %v7594_v54 = vmul.f32 %v11165_v52, %v15963_v33  ;;  %v18904_v20 = vld [vmem:[#allocation18_spill] sm:$0xff] }
 0x3c9   :  { %11180 = vrcp.f32 %v3820_v42  ;;  %v11169_v37 = vpop.eup %11168  ;;  %v3822_v29 = vadd.f32 1.0, %v11167_v22  ;;  %v9791_v25 = vmul.f32 -1.442695, %v1780_v59  ;;  %v9794_v60 = vmul.f32 -1.442695, %v1783_v21  ;;  %v18905_v7 = vld [vmem:[#allocation110_spill] sm:$0xff] }
 0x3ca   :  { %11182 = vrcp.f32 %v3823_v24  ;;  %v8777_v63 = vadd.f32 %v8776_v55, %v8103_v40  ;;  %v8106_v35 = vmul.f32 %v7594_v54, %v14007_v57  ;;  %v3825_v6 = vadd.f32 1.0, %v11169_v37  ;;  %6529 = vbcast.lane.b32.xlu1 %v16043_v9, 312  ;;  %6525 = vbcast.lane.b32.xlu0 %v16043_v9, 304  ;;  %v16104_v56 = vpop.permute.xlu1 %6311  ;;  %v18907_v52 = vld [vmem:[#allocation146_spill] sm:$0xff] }
 0x3cb   :  { %v11171_v44 = vpop.eup %11170  ;;  %v1782_v36 = vadd.f32 %v18901_v41, %v18674_v53  ;;  %11184 = vrcp.f32 %v3822_v29  ;;  %v16100_v12 = vrot.slane %v16033_v39, %v18904_v20  ;;  %v1785_v40 = vadd.f32 %v18905_v7, %v18688_v16  ;;  %v16106_v19 = vpop.permute.xlu0 %6307  ;;  %v18906_v41 = vld [vmem:[#allocation86_spill] sm:$0xff] }
 0x3cc   :  { %v11173_v50 = vpop.eup %11172  ;;  %v3824_v33 = vadd.f32 1.0, %v11171_v44  ;;  %v8778_v42 = vrot.slane %v8777_v63, 4  ;;  %v8785_v9 = vadd.f32 %v8784_v61, %v8106_v35  ;;  %11186 = vrcp.f32 %v3825_v6 }
 0x3cd   :  { %v11175_v13 = vpop.eup %11174  ;;  %v3827_v59 = vadd.f32 1.0, %v11173_v50  ;;  %v16110_v24 = vadd.f32 %v18907_v52, %v18906_v41  ;;  %v9793_v22 = vmul.f32 -1.442695, %v1782_v36  ;;  %v9796_v37 = vmul.f32 -1.442695, %v1785_v40 }
 0x3ce   :  { %v7597_v21 = vmul.f32 %v11175_v13, %v15980_v48  ;;  %11188 = vrcp.f32 %v3824_v33  ;;  %v8779_v54 = vadd.f32 %v8778_v42, %v8777_v63  ;;  %6540 = vbcast.lane.b32.xlu1 %v16100_v12, 264  ;;  %6536 = vbcast.lane.b32.xlu0 %v16100_v12, 256  ;;  %v1784_v61 = vadd.f32 %v18905_v7, %v18690_v46  ;;  %v16119_v48 = vpop.permute.xlu1 %6319 }
 0x3cf   :  { %v11177_v55 = vpop.eup %11176  ;;  %11190 = vrcp.f32 %v3827_v59  ;;  %v8786_v29 = vadd.f32 %v8785_v9, %v8107_v17  ;;  %v1787_v35 = vadd.f32 %v18905_v7, %v18709_v30  ;;  %v16121_v6 = vpop.permute.xlu0 %6315  ;;  %v1786_v50 = vadd.f32 %v18905_v7, %v18798_v62 }
 0x3d0   :  { %v3826_v44 = vadd.f32 1.0, %v11177_v55  ;;  %11192 = vpow2.f32 %v9791_v25  ;;  %v8780_v63 = vrot.slane %v8779_v54, 2  ;;  %v8109_v36 = vmul.f32 %v7597_v21, %v14369_v1 }
 0x3d1   :  { %11194 = vpow2.f32 %v9794_v60  ;;  %v9795_v40 = vmul.f32 -1.442695, %v1784_v61  ;;  %v1789_v17 = vadd.f32 %v18905_v7, %v18799_v31  ;;  %v1788_v25 = vadd.f32 %v18905_v7, %v18792_v4 }
 0x3d2   :  { %v11179_v33 = vpop.eup %11178  ;;  %11196 = vrcp.f32 %v3826_v44  ;;  %v8781_v42 = vadd.f32 %v8780_v63, %v8779_v54  ;;  %6548 = vbcast.lane.b32.xlu1 %v16100_v12, 280  ;;  %6544 = vbcast.lane.b32.xlu0 %v16100_v12, 272  ;;  %v9798_v60 = vmul.f32 -1.442695, %v1787_v35  ;;  %v9797_v21 = vmul.f32 -1.442695, %v1786_v50  ;;  %v16133_v61 = vpop.permute.xlu1 %6330 }
 0x3d3   :  { %v11181_v13 = vpop.eup %11180  ;;  %v3829_v9 = vadd.f32 1.0, %v11179_v33  ;;  %11198 = vpow2.f32 %v9793_v22  ;;  %v9800_v55 = vmul.f32 -1.442695, %v1789_v17  ;;  %v16135_v44 = vpop.permute.xlu0 %6326  ;;  %v9799_v22 = vmul.f32 -1.442695, %v1788_v25 }
 0x3d4   :  { %v11183_v59 = vpop.eup %11182  ;;  %v7596_v52 = vmul.f32 %v11181_v13, %v15982_v2  ;;  %11200 = vpow2.f32 %v9796_v37  ;;  %v8782_v20 = vrot.slane %v8781_v42, 1  ;;  %v1791_v35 = vadd.f32 %v18905_v7, %v18672_v43 }
 0x3d5   :  { %v7599_v54 = vmul.f32 %v11183_v59, %v15993_v47  ;;  %11202 = vrcp.f32 %v3829_v9  ;;  %v11185_v63 = vpop.eup %11184  ;;  %v1790_v2 = vadd.f32 %v18905_v7, %v18674_v53  ;;  %v18908_v47 = vld [vmem:[#allocation19_spill] sm:$0xff] }
 0x3d6   :  { %v8108_v33 = vmul.f32 %v7596_v52, %v14237_v45  ;;  %11204 = vpow2.f32 %v9795_v40  ;;  %v11187_v37 = vpop.eup %11186  ;;  %v8783_v50 = vadd.f32 %v8782_v20, %v8781_v42  ;;  %v7598_v17 = vmul.f32 %v11185_v63, %v15995_v15  ;;  %6556 = vbcast.lane.b32.xlu1 %v16100_v12, 296  ;;  %6552 = vbcast.lane.b32.xlu0 %v16100_v12, 288  ;;  %v16152_v7 = vpop.permute.xlu1 %6338 }
 0x3d7   :  { %11206 = vpow2.f32 %v9798_v60  ;;  %v16148_v25 = vrot.slane %v16033_v39, %v18908_v47  ;;  %v8111_v9 = vmul.f32 %v7599_v54, %v14489_v10  ;;  %v7601_v59 = vmul.f32 %v11187_v37, %v16007_v51  ;;  %v16154_v20 = vpop.permute.xlu0 %6334 }
 0x3d8   :  { %v11189_v40 = vpop.eup %11188  ;;  %v8787_v13 = vadd.f32 %v8786_v29, %v8108_v33  ;;  %11208 = vpow2.f32 %v9797_v21  ;;  %18909 = vst [vmem:[#allocation115_spill] sm:$0xff] %v16154_v20  ;;  %v9298_v42 = vsel %vm9276_vm6, %v8783_v50, %v16076_v8  ;;  %v8110_v60 = vmul.f32 %v7598_v17, %v14471_v38  ;;  %v18911_v8 = vld [vmem:[#allocation125_spill] sm:$0xff] }
 0x3d9   :  { %v11191_v15 = vpop.eup %11190  ;;  %v7600_v52 = vmul.f32 %v11189_v40, %v16009_v32  ;;  %11210 = vpow2.f32 %v9800_v55  ;;  %v16161_v29 = vadd.f32 %v9298_v42, %v16110_v24  ;;  %v9802_v21 = vmul.f32 -1.442695, %v1791_v35 }
 0x3da   :  { %v11193_v63 = vpop.eup %11192  ;;  %v8788_v54 = vadd.f32 %v8787_v13, %v8109_v36  ;;  %v7603_v51 = vmul.f32 %v11191_v15, %v16017_v26  ;;  %v8113_v37 = vmul.f32 %v7601_v59, %v18779_v3  ;;  %11212 = vpow2.f32 %v9799_v22  ;;  %6564 = vbcast.lane.b32.xlu1 %v16100_v12, 312  ;;  %6560 = vbcast.lane.b32.xlu0 %v16100_v12, 304  ;;  %v18913_v36 = vld [vmem:[#allocation149_spill] sm:$0xff]  ;;  %v16176_v50 = vpop.permute.xlu1 %6346 }
 0x3db   :  { %18910 = vst [vmem:[#allocation57_spill] sm:$0xff] %v16161_v29  ;;  %v11195_v33 = vpop.eup %11194  ;;  %v8112_v47 = vmul.f32 %v7600_v52, %v18781_v58  ;;  %v3828_v20 = vadd.f32 1.0, %v11193_v63  ;;  %v16170_v24 = vrot.slane %v18911_v8, %v18902_v11  ;;  %v16174_v26 = vadd.f32 %v18913_v36, %v18906_v41  ;;  %v16178_v17 = vpop.permute.xlu0 %6342  ;;  %v18915_v13 = vld [vmem:[#allocation113_spill] sm:$0xff] }
 0x3dc   :  { %v11197_v32 = vpop.eup %11196  ;;  %v8789_v55 = vadd.f32 %v8788_v54, %v8110_v60  ;;  %v3831_v35 = vadd.f32 1.0, %v11195_v33  ;;  %v9801_v12 = vmul.f32 -1.442695, %v1790_v2  ;;  %v1793_v59 = vadd.f32 %v18915_v13, %v18688_v16 }
 0x3dd   :  { %18912 = vst [vmem:[#allocation193_spill] sm:$0xff] %v16170_v24  ;;  %18914 = vst [vmem:[#allocation65_spill] sm:$0xff] %v16174_v26  ;;  %v11199_v22 = vpop.eup %11198  ;;  %v7602_v40 = vmul.f32 %v11197_v32, %v16019_v23  ;;  %11214 = vrcp.f32 %v3828_v20  ;;  %v8115_v52 = vmul.f32 %v7603_v51, %v18784_v49  ;;  %v8797_v54 = vadd.f32 %v8113_v37, %v8112_v47 }
 0x3de   :  { %v11201_v15 = vpop.eup %11200  ;;  %v8790_v42 = vadd.f32 %v8789_v55, %v8111_v9  ;;  %11216 = vrcp.f32 %v3831_v35  ;;  %v3830_v63 = vadd.f32 1.0, %v11199_v22  ;;  %6575 = vbcast.lane.b32.xlu1 %v16148_v25, 264  ;;  %6571 = vbcast.lane.b32.xlu0 %v16148_v25, 256  ;;  %v9804_v9 = vmul.f32 -1.442695, %v1793_v59  ;;  %v16188_v32 = vpop.permute.xlu1 %6354 }
 0x3df   :  { %v11203_v60 = vpop.eup %11202  ;;  %v8114_v33 = vmul.f32 %v7602_v40, %v14007_v57  ;;  %v3833_v36 = vadd.f32 1.0, %v11201_v15  ;;  %11218 = vpow2.f32 %v9802_v21  ;;  %v16190_v51 = vpop.permute.xlu0 %6350  ;;  %v1792_v21 = vadd.f32 %v18915_v13, %v18690_v46 }
 0x3e0   :  { %v11205_v23 = vpop.eup %11204  ;;  %v8791_v2 = vrot.slane %v8790_v42, 4  ;;  %v7605_v20 = vmul.f32 %v11203_v60, %v16028_v14  ;;  %11220 = vrcp.f32 %v3830_v63 }
 0x3e1   :  { %v11207_v55 = vpop.eup %11206  ;;  %v8798_v47 = vadd.f32 %v8797_v54, %v8114_v33  ;;  %11222 = vrcp.f32 %v3833_v36  ;;  %v3832_v37 = vadd.f32 1.0, %v11205_v23  ;;  %v9803_v60 = vmul.f32 -1.442695, %v1792_v21 }
 0x3e2   :  { %v11209_v35 = vpop.eup %11208  ;;  %v8792_v22 = vadd.f32 %v8791_v2, %v8790_v42  ;;  %v16195_v40 = vmul.f32 %v7605_v20, %v14369_v1  ;;  %v3835_v15 = vadd.f32 1.0, %v11207_v55  ;;  %11224 = vpow2.f32 %v9801_v12  ;;  %6583 = vbcast.lane.b32.xlu1 %v16148_v25, 280  ;;  %6579 = vbcast.lane.b32.xlu0 %v16148_v25, 272  ;;  %v16201_v36 = vpop.permute.xlu1 %6365 }
 0x3e3   :  { %v11211_v14 = vpop.eup %11210  ;;  %v8799_v59 = vadd.f32 %v8798_v47, %v8115_v52  ;;  %11226 = vrcp.f32 %v3832_v37  ;;  %v3834_v63 = vadd.f32 1.0, %v11209_v35  ;;  %v1795_v42 = vadd.f32 %v18915_v13, %v18709_v30  ;;  %v16203_v23 = vpop.permute.xlu0 %6361 }
 0x3e4   :  { %v8793_v54 = vrot.slane %v8792_v22, 2  ;;  %11228 = vrcp.f32 %v3835_v15  ;;  %v3837_v33 = vadd.f32 1.0, %v11211_v14  ;;  %v11213_v12 = vpop.eup %11212  ;;  %v1794_v52 = vadd.f32 %v18915_v13, %v18798_v62 }
 0x3e5   :  { %11230 = vrcp.f32 %v3834_v63  ;;  %v1797_v2 = vadd.f32 %v18915_v13, %v18799_v31  ;;  %v1796_v20 = vadd.f32 %v18915_v13, %v18792_v4  ;;  %v3836_v47 = vadd.f32 1.0, %v11213_v12 }
 0x3e6   :  { %v8794_v55 = vadd.f32 %v8793_v54, %v8792_v22  ;;  %11232 = vrcp.f32 %v3837_v33  ;;  %v9806_v37 = vmul.f32 -1.442695, %v1795_v42  ;;  %v9805_v35 = vmul.f32 -1.442695, %v1794_v52  ;;  %6591 = vbcast.lane.b32.xlu1 %v16148_v25, 296  ;;  %6587 = vbcast.lane.b32.xlu0 %v16148_v25, 288  ;;  %v16216_v54 = vpop.permute.xlu1 %6373 }
 0x3e7   :  { %v11215_v21 = vpop.eup %11214  ;;  %11234 = vpow2.f32 %v9804_v9  ;;  %v9808_v15 = vmul.f32 -1.442695, %v1797_v2  ;;  %v1799_v14 = vadd.f32 %v18915_v13, %v18672_v43  ;;  %v9807_v22 = vmul.f32 -1.442695, %v1796_v20  ;;  %v16218_v33 = vpop.permute.xlu0 %6369 }
 0x3e8   :  { %v11217_v63 = vpop.eup %11216  ;;  %v8795_v24 = vrot.slane %v8794_v55, 1  ;;  %v7604_v29 = vmul.f32 %v11215_v21, %v16030_v27  ;;  %11236 = vrcp.f32 %v3836_v47  ;;  %v1798_v52 = vadd.f32 %v18915_v13, %v18674_v53  ;;  %v18916_v21 = vld [vmem:[#allocation80_spill] sm:$0xff] }
 0x3e9   :  { %v11219_v9 = vpop.eup %11218  ;;  %v7607_v42 = vmul.f32 %v11217_v63, %v16047_v34  ;;  %11238 = vpow2.f32 %v9803_v60  ;;  %v9810_v12 = vmul.f32 -1.442695, %v1799_v14 }
 0x3ea   :  { %v11221_v2 = vpop.eup %11220  ;;  %v16223_v8 = vadd.f32 %v8795_v24, %v8794_v55  ;;  %v8116_v41 = vmul.f32 %v7604_v29, %v14237_v45  ;;  %v3839_v27 = vadd.f32 1.0, %v11219_v9  ;;  %11240 = vpow2.f32 %v9806_v37  ;;  %6599 = vbcast.lane.b32.xlu1 %v16148_v25, 312  ;;  %6595 = vbcast.lane.b32.xlu0 %v16148_v25, 304  ;;  %v18917_v55 = vld [vmem:[#allocation20_spill] sm:$0xff]  ;;  %v16235_v37 = vpop.permute.xlu1 %6381  ;;  %v18918_v25 = vld [vmem:[#allocation109_spill] sm:$0xff] }
 0x3eb   :  { %v11223_v20 = vpop.eup %11222  ;;  %v8119_v47 = vmul.f32 %v7607_v42, %v14489_v10  ;;  %v7606_v26 = vmul.f32 %v11221_v2, %v18916_v21  ;;  %11242 = vpow2.f32 %v9805_v35  ;;  %v9809_v34 = vmul.f32 -1.442695, %v1798_v52  ;;  %v16237_v14 = vpop.permute.xlu0 %6377 }
 0x3ec   :  { %v11225_v60 = vpop.eup %11224  ;;  %v8800_v13 = vadd.f32 %v8799_v59, %v8116_v41  ;;  %v7609_v24 = vmul.f32 %v11223_v20, %v16068_v28  ;;  %11244 = vrcp.f32 %v3839_v27  ;;  %v16233_v29 = vrot.slane %v16033_v39, %v18917_v55 }
 0x3ed   :  { %v11227_v63 = vpop.eup %11226  ;;  %v8118_v35 = vmul.f32 %v7606_v26, %v14471_v38  ;;  %v3838_v9 = vadd.f32 1.0, %v11225_v60  ;;  %11246 = vpow2.f32 %v9808_v15  ;;  %v1801_v42 = vadd.f32 %v18918_v25, %v18688_v16 }
 0x3ee   :  { %v11229_v41 = vpop.eup %11228  ;;  %v8801_v28 = vadd.f32 %v8800_v13, %v16195_v40  ;;  %v8121_v59 = vmul.f32 %v7609_v24, %v18779_v3  ;;  %v7608_v52 = vmul.f32 %v11227_v63, %v16070_v18  ;;  %11248 = vpow2.f32 %v9807_v22  ;;  %6610 = vbcast.lane.b32.xlu1 %v16233_v29, 264  ;;  %6606 = vbcast.lane.b32.xlu0 %v16233_v29, 256  ;;  %v16252_v18 = vpop.permute.xlu1 %6389 }
 0x3ef   :  { %v11231_v2 = vpop.eup %11230  ;;  %v7611_v27 = vmul.f32 %v11229_v41, %v16088_v5  ;;  %11250 = vrcp.f32 %v3838_v9  ;;  %v9812_v26 = vmul.f32 -1.442695, %v1801_v42  ;;  %v1800_v15 = vadd.f32 %v18918_v25, %v18690_v46  ;;  %v16254_v22 = vpop.permute.xlu0 %6385 }
 0x3f0   :  { %v11233_v20 = vpop.eup %11232  ;;  %v8802_v21 = vadd.f32 %v8801_v28, %v8118_v35  ;;  %v8120_v40 = vmul.f32 %v7608_v52, %v18781_v58  ;;  %v7610_v60 = vmul.f32 %v11231_v2, %v16090_v0  ;;  %11252 = vpow2.f32 %v9810_v12 }
 0x3f1   :  { %v11235_v5 = vpop.eup %11234  ;;  %v8123_v13 = vmul.f32 %v7611_v27, %v18784_v49  ;;  %v7613_v24 = vmul.f32 %v11233_v20, %v16104_v56  ;;  %11254 = vpow2.f32 %v9809_v34  ;;  %v9811_v63 = vmul.f32 -1.442695, %v1800_v15 }
 0x3f2   :  { %v11237_v9 = vpop.eup %11236  ;;  %v8803_v42 = vadd.f32 %v8802_v21, %v8119_v47  ;;  %v8810_v41 = vadd.f32 %v8121_v59, %v8120_v40  ;;  %v8122_v35 = vmul.f32 %v7610_v60, %v14007_v57  ;;  %v3841_v28 = vadd.f32 1.0, %v11235_v5  ;;  %6618 = vbcast.lane.b32.xlu1 %v16233_v29, 280  ;;  %6614 = vbcast.lane.b32.xlu0 %v16233_v29, 272 }
 0x3f3   :  { %v11239_v52 = vpop.eup %11238  ;;  %v8125_v0 = vmul.f32 %v7613_v24, %v14369_v1  ;;  %v7612_v12 = vmul.f32 %v11237_v9, %v16106_v19  ;;  %11256 = vpow2.f32 %v9812_v26  ;;  %v1803_v56 = vadd.f32 %v18918_v25, %v18709_v30  ;;  %v16265_v27 = vpop.permute.xlu1 %6400 }
 0x3f4   :  { %v11241_v34 = vpop.eup %11240  ;;  %v8804_v2 = vrot.slane %v8803_v42, 4  ;;  %v8811_v47 = vadd.f32 %v8810_v41, %v8122_v35  ;;  %11258 = vrcp.f32 %v3841_v28  ;;  %v3840_v59 = vadd.f32 1.0, %v11239_v52  ;;  %v16267_v15 = vpop.permute.xlu0 %6396 }
 0x3f5   :  { %v11243_v20 = vpop.eup %11242  ;;  %v8124_v19 = vmul.f32 %v7612_v12, %v14237_v45  ;;  %v3843_v26 = vadd.f32 1.0, %v11241_v34  ;;  %11260 = vpow2.f32 %v9811_v63  ;;  %v9814_v21 = vmul.f32 -1.442695, %v1803_v56 }
 0x3f6   :  { %v11245_v40 = vpop.eup %11244  ;;  %v8805_v60 = vadd.f32 %v8804_v2, %v8803_v42  ;;  %v8812_v5 = vadd.f32 %v8811_v47, %v8123_v13  ;;  %11262 = vrcp.f32 %v3840_v59  ;;  %v3842_v24 = vadd.f32 1.0, %v11243_v20  ;;  %6626 = vbcast.lane.b32.xlu1 %v16233_v29, 296  ;;  %6622 = vbcast.lane.b32.xlu0 %v16233_v29, 288 }
 0x3f7   :  { %v11247_v9 = vpop.eup %11246  ;;  %v7615_v41 = vmul.f32 %v11245_v40, %v16119_v48  ;;  %11264 = vrcp.f32 %v3843_v26  ;;  %v1802_v35 = vadd.f32 %v18918_v25, %v18798_v62  ;;  %v1805_v63 = vadd.f32 %v18918_v25, %v18799_v31  ;;  %v16277_v12 = vpop.permute.xlu1 %6408 }
 0x3f8   :  { %v11249_v28 = vpop.eup %11248  ;;  %v8806_v52 = vrot.slane %v8805_v60, 2  ;;  %v8813_v42 = vadd.f32 %v8812_v5, %v8124_v19  ;;  %11266 = vrcp.f32 %v3842_v24  ;;  %v3845_v13 = vadd.f32 1.0, %v11247_v9  ;;  %v16279_v56 = vpop.permute.xlu0 %6404 }
 0x3f9   :  { %v11251_v48 = vpop.eup %11250  ;;  %v8127_v34 = vmul.f32 %v7615_v41, %v14489_v10  ;;  %v3844_v2 = vadd.f32 1.0, %v11249_v28  ;;  %11268 = vpow2.f32 %v9814_v21  ;;  %v9813_v47 = vmul.f32 -1.442695, %v1802_v35 }
 0x3fa   :  { %v11253_v59 = vpop.eup %11252  ;;  %v8807_v20 = vadd.f32 %v8806_v52, %v8805_v60  ;;  %v7614_v26 = vmul.f32 %v11251_v48, %v16121_v6  ;;  %v8814_v40 = vadd.f32 %v8813_v42, %v8125_v0  ;;  %11270 = vrcp.f32 %v3845_v13  ;;  %6634 = vbcast.lane.b32.xlu1 %v16233_v29, 312  ;;  %6630 = vbcast.lane.b32.xlu0 %v16233_v29, 304 }
 0x3fb   :  { %v11255_v55 = vpop.eup %11254  ;;  %11272 = vrcp.f32 %v3844_v2  ;;  %v3847_v19 = vadd.f32 1.0, %v11253_v59  ;;  %v9816_v5 = vmul.f32 -1.442695, %v1805_v63  ;;  %v1804_v24 = vadd.f32 %v18918_v25, %v18792_v4  ;;  %v16288_v60 = vpop.permute.xlu1 %6416 }
 0x3fc   :  { %v8808_v9 = vrot.slane %v8807_v20, 1  ;;  %v8126_v21 = vmul.f32 %v7614_v26, %v14471_v38  ;;  %v3846_v41 = vadd.f32 1.0, %v11255_v55  ;;  %11274 = vpow2.f32 %v9813_v47  ;;  %v16290_v6 = vpop.permute.xlu0 %6412 }
 0x3fd   :  { %v11257_v0 = vpop.eup %11256  ;;  %11276 = vrcp.f32 %v3847_v19  ;;  %v9815_v35 = vmul.f32 -1.442695, %v1804_v24  ;;  %v1807_v63 = vadd.f32 %v18918_v25, %v18672_v43  ;;  %v1806_v28 = vadd.f32 %v18918_v25, %v18674_v53 }
 0x3fe   :  { %v11259_v52 = vpop.eup %11258  ;;  %v8809_v29 = vadd.f32 %v8808_v9, %v8807_v20  ;;  %v8815_v42 = vadd.f32 %v8814_v40, %v8126_v21  ;;  %11278 = vrcp.f32 %v3846_v41  ;;  %v3849_v13 = vadd.f32 1.0, %v11257_v0  ;;  %v18920_v0 = vld [vmem:[#allocation111_spill] sm:$0xff] }
 0x3ff   :  { %v11261_v55 = vpop.eup %11260  ;;  %v7617_v48 = vmul.f32 %v11259_v52, %v16133_v61  ;;  %11280 = vpow2.f32 %v9816_v5  ;;  %v9818_v2 = vmul.f32 -1.442695, %v1807_v63  ;;  %v9817_v47 = vmul.f32 -1.442695, %v1806_v28  ;;  %v16301_v25 = vpop.permute.xlu1 %6424  ;;  %v18919_v5 = vld [vmem:[#allocation21_spill] sm:$0xff] }
 0x400   :  { %v11263_v59 = vpop.eup %11262  ;;  %v16299_v26 = vsel %vm9264_vm0, %v8809_v29, %v16223_v8  ;;  %v8816_v19 = vadd.f32 %v8815_v42, %v8127_v34  ;;  %11282 = vrcp.f32 %v3849_v13  ;;  %v3848_v24 = vadd.f32 1.0, %v11261_v55  ;;  %v16303_v20 = vpop.permute.xlu0 %6420  ;;  %v18921_v29 = vld [vmem:[#allocation115_spill] sm:$0xff] }
 0x401   :  { %v11265_v40 = vpop.eup %11264  ;;  %v8129_v9 = vmul.f32 %v7617_v48, %v18779_v3  ;;  %v7616_v61 = vmul.f32 %v11263_v59, %v16135_v44  ;;  %11284 = vpow2.f32 %v9815_v35  ;;  %v16309_v21 = vrot.slane %v16033_v39, %v18919_v5 }
 0x402   :  { %v11267_v41 = vpop.eup %11266  ;;  %v8817_v8 = vrot.slane %v8816_v19, 4  ;;  %v7619_v34 = vmul.f32 %v11265_v40, %v16152_v7  ;;  %11286 = vrcp.f32 %v3848_v24  ;;  %v1809_v63 = vadd.f32 %v18920_v0, %v18688_v16 }
 0x403   :  { %v11269_v28 = vpop.eup %11268  ;;  %v8128_v52 = vmul.f32 %v7616_v61, %v18781_v58  ;;  %v7618_v42 = vmul.f32 %v11267_v41, %v18921_v29  ;;  %11288 = vpow2.f32 %v9818_v2  ;;  %6645 = vbcast.lane.b32.xlu1 %v16309_v21, 264  ;;  %6641 = vbcast.lane.b32.xlu0 %v16309_v21, 256  ;;  %v1808_v44 = vadd.f32 %v18920_v0, %v18690_v46  ;;  %v16321_v48 = vpop.permute.xlu1 %6435 }
 0x404   :  { %v11271_v35 = vpop.eup %11270  ;;  %v8818_v13 = vadd.f32 %v8817_v8, %v8816_v19  ;;  %v8131_v7 = vmul.f32 %v7619_v34, %v18784_v49  ;;  %v3851_v55 = vadd.f32 1.0, %v11269_v28  ;;  %11290 = vpow2.f32 %v9817_v47  ;;  %v16323_v59 = vpop.permute.xlu0 %6431 }
 0x405   :  { %v11273_v24 = vpop.eup %11272  ;;  %v8823_v40 = vadd.f32 %v8129_v9, %v8128_v52  ;;  %v8130_v2 = vmul.f32 %v7618_v42, %v14007_v57  ;;  %v7621_v61 = vmul.f32 %v11271_v35, %v16176_v50  ;;  %v9820_v41 = vmul.f32 -1.442695, %v1809_v63 }
 0x406   :  { %v11275_v29 = vpop.eup %11274  ;;  %v8819_v5 = vrot.slane %v8818_v13, 2  ;;  %v7620_v11 = vmul.f32 %v11273_v24, %v16178_v17  ;;  %11292 = vrcp.f32 %v3851_v55  ;;  %v9819_v19 = vmul.f32 -1.442695, %v1808_v44 }
 0x407   :  { %v11277_v8 = vpop.eup %11276  ;;  %v8824_v34 = vadd.f32 %v8823_v40, %v8130_v2  ;;  %v8133_v47 = vmul.f32 %v7621_v61, %v14369_v1  ;;  %v3850_v28 = vadd.f32 1.0, %v11275_v29  ;;  %11294 = vpow2.f32 %v9820_v41  ;;  %6653 = vbcast.lane.b32.xlu1 %v16309_v21, 280  ;;  %6649 = vbcast.lane.b32.xlu0 %v16309_v21, 272  ;;  %v16333_v17 = vpop.permute.xlu1 %6443 }
 0x408   :  { %v11279_v9 = vpop.eup %11278  ;;  %v8820_v52 = vadd.f32 %v8819_v5, %v8818_v13  ;;  %v8132_v50 = vmul.f32 %v7620_v11, %v14237_v45  ;;  %v7623_v63 = vmul.f32 %v11277_v8, %v16188_v32  ;;  %11296 = vpow2.f32 %v9819_v19  ;;  %v16335_v42 = vpop.permute.xlu0 %6439 }
 0x409   :  { %v11281_v44 = vpop.eup %11280  ;;  %v8825_v35 = vadd.f32 %v8824_v34, %v8131_v7  ;;  %v7622_v55 = vmul.f32 %v11279_v9, %v16190_v51  ;;  %11298 = vrcp.f32 %v3850_v28  ;;  %v1811_v24 = vadd.f32 %v18920_v0, %v18709_v30 }
 0x40a   :  { %v11283_v40 = vpop.eup %11282  ;;  %v8821_v2 = vrot.slane %v8820_v52, 1  ;;  %v8135_v5 = vmul.f32 %v7623_v63, %v14489_v10  ;;  %v3853_v11 = vadd.f32 1.0, %v11281_v44  ;;  %v1810_v32 = vadd.f32 %v18920_v0, %v18798_v62 }
 0x40b   :  { %v11285_v13 = vpop.eup %11284  ;;  %v8826_v61 = vadd.f32 %v8825_v35, %v8132_v50  ;;  %v8134_v41 = vmul.f32 %v7622_v55, %v14471_v38  ;;  %v7625_v7 = vmul.f32 %v11283_v40, %v16201_v36  ;;  %v9822_v29 = vmul.f32 -1.442695, %v1811_v24  ;;  %6661 = vbcast.lane.b32.xlu1 %v16309_v21, 296  ;;  %6657 = vbcast.lane.b32.xlu0 %v16309_v21, 288  ;;  %v16349_v44 = vpop.permute.xlu1 %6451 }
 0x40c   :  { %v11287_v51 = vpop.eup %11286  ;;  %v8822_v19 = vadd.f32 %v8821_v2, %v8820_v52  ;;  %11300 = vrcp.f32 %v3853_v11  ;;  %v3852_v8 = vadd.f32 1.0, %v11285_v13  ;;  %v9821_v34 = vmul.f32 -1.442695, %v1810_v32  ;;  %v16351_v36 = vpop.permute.xlu0 %6447 }
 0x40d   :  { %v11289_v28 = vpop.eup %11288  ;;  %v8827_v9 = vadd.f32 %v8826_v61, %v8133_v47  ;;  %v8137_v63 = vmul.f32 %v7625_v7, %v18779_v3  ;;  %v7624_v50 = vmul.f32 %v11287_v51, %v16203_v23  ;;  %11302 = vpow2.f32 %v9822_v29 }
 0x40e   :  { %v11291_v35 = vpop.eup %11290  ;;  %v16355_v55 = vsel %vm9266_vm1, %v8822_v19, %v16299_v26  ;;  %11304 = vrcp.f32 %v3852_v8  ;;  %v3855_v52 = vadd.f32 1.0, %v11289_v28  ;;  %v1813_v24 = vadd.f32 %v18920_v0, %v18799_v31 }
 0x40f   :  { %v8828_v47 = vadd.f32 %v8827_v9, %v8134_v41  ;;  %v8136_v40 = vmul.f32 %v7624_v50, %v18781_v58  ;;  %v3854_v2 = vadd.f32 1.0, %v11291_v35  ;;  %11306 = vpow2.f32 %v9821_v34  ;;  %6669 = vbcast.lane.b32.xlu1 %v16309_v21, 312  ;;  %6665 = vbcast.lane.b32.xlu0 %v16309_v21, 304  ;;  %v16370_v35 = vpop.permute.xlu1 %6459 }
 0x410   :  { %v11293_v23 = vpop.eup %11292  ;;  %11308 = vrcp.f32 %v3855_v52  ;;  %v9824_v11 = vmul.f32 -1.442695, %v1813_v24  ;;  %v1812_v26 = vadd.f32 %v18920_v0, %v18792_v4  ;;  %v1815_v32 = vadd.f32 %v18920_v0, %v18672_v43  ;;  %v18924_v24 = vld [vmem:[#allocation112_spill] sm:$0xff] }
 0x411   :  { %v11295_v13 = vpop.eup %11294  ;;  %v8829_v61 = vadd.f32 %v8828_v47, %v8135_v5  ;;  %v8836_v41 = vadd.f32 %v8137_v63, %v8136_v40  ;;  %v7627_v7 = vmul.f32 %v11293_v23, %v16216_v54  ;;  %11310 = vrcp.f32 %v3854_v2  ;;  %v16372_v5 = vpop.permute.xlu0 %6455  ;;  %v18923_v63 = vld [vmem:[#allocation22_spill] sm:$0xff] }
 0x412   :  { %v11297_v29 = vpop.eup %11296  ;;  %v3857_v51 = vadd.f32 1.0, %v11295_v13  ;;  %11312 = vpow2.f32 %v9824_v11  ;;  %v9823_v19 = vmul.f32 -1.442695, %v1812_v26  ;;  %v9826_v21 = vmul.f32 -1.442695, %v1815_v32  ;;  %18922 = vst [vmem:[#allocation194_spill] sm:$0xff] %v16372_v5 }
 0x413   :  { %v11299_v8 = vpop.eup %11298  ;;  %v8830_v34 = vrot.slane %v8829_v61, 4  ;;  %v8139_v28 = vmul.f32 %v7627_v7, %v18784_v49  ;;  %v3856_v9 = vadd.f32 1.0, %v11297_v29  ;;  %v1814_v50 = vadd.f32 %v18920_v0, %v18674_v53 }
 0x414   :  { %v7626_v54 = vmul.f32 %v11299_v8, %v16218_v33  ;;  %11314 = vrcp.f32 %v3857_v51  ;;  %v16377_v52 = vrot.slane %v16033_v39, %v18923_v63  ;;  %v1817_v47 = vadd.f32 %v18924_v24, %v18688_v16 }
 0x415   :  { %v8831_v40 = vadd.f32 %v8830_v34, %v8829_v61  ;;  %11316 = vrcp.f32 %v3856_v9  ;;  %v9825_v2 = vmul.f32 -1.442695, %v1814_v50  ;;  %v1816_v0 = vadd.f32 %v18924_v24, %v18690_v46 }
 0x416   :  { %v11301_v23 = vpop.eup %11300  ;;  %v8138_v11 = vmul.f32 %v7626_v54, %v14007_v57  ;;  %11318 = vpow2.f32 %v9823_v19  ;;  %6680 = vbcast.lane.b32.xlu1 %v16377_v52, 264  ;;  %6676 = vbcast.lane.b32.xlu0 %v16377_v52, 256  ;;  %v9828_v33 = vmul.f32 -1.442695, %v1817_v47  ;;  %v1819_v26 = vadd.f32 %v18924_v24, %v18709_v30  ;;  %v16391_v47 = vpop.permute.xlu1 %6470 }
 0x417   :  { %v11303_v32 = vpop.eup %11302  ;;  %v8832_v13 = vrot.slane %v8831_v40, 2  ;;  %v7629_v61 = vmul.f32 %v11301_v23, %v16235_v37  ;;  %11320 = vpow2.f32 %v9826_v21  ;;  %v9827_v7 = vmul.f32 -1.442695, %v1816_v0  ;;  %v16393_v63 = vpop.permute.xlu0 %6466 }
 0x418   :  { %v11305_v29 = vpop.eup %11304  ;;  %v8837_v51 = vadd.f32 %v8836_v41, %v8138_v11  ;;  %v3859_v8 = vadd.f32 1.0, %v11303_v32  ;;  %11322 = vpow2.f32 %v9825_v2  ;;  %v9830_v34 = vmul.f32 -1.442695, %v1819_v26 }
 0x419   :  { %v11307_v19 = vpop.eup %11306  ;;  %v8833_v9 = vadd.f32 %v8832_v13, %v8831_v40  ;;  %v8141_v50 = vmul.f32 %v7629_v61, %v14369_v1  ;;  %v7628_v54 = vmul.f32 %v11305_v29, %v16237_v14  ;;  %11324 = vpow2.f32 %v9828_v33 }
 0x41a   :  { %v11309_v5 = vpop.eup %11308  ;;  %v8838_v37 = vadd.f32 %v8837_v51, %v8139_v28  ;;  %11326 = vrcp.f32 %v3859_v8  ;;  %v3858_v21 = vadd.f32 1.0, %v11307_v19  ;;  %6688 = vbcast.lane.b32.xlu1 %v16377_v52, 280  ;;  %6684 = vbcast.lane.b32.xlu0 %v16377_v52, 272  ;;  %v1818_v41 = vadd.f32 %v18924_v24, %v18798_v62 }
 0x41b   :  { %v11311_v40 = vpop.eup %11310  ;;  %v8834_v2 = vrot.slane %v8833_v9, 1  ;;  %v8140_v14 = vmul.f32 %v7628_v54, %v14237_v45  ;;  %v7631_v0 = vmul.f32 %v11309_v5, %v16252_v18  ;;  %11328 = vpow2.f32 %v9827_v7 }
 0x41c   :  { %v11313_v23 = vpop.eup %11312  ;;  %v7630_v11 = vmul.f32 %v11311_v40, %v16254_v22  ;;  %11330 = vrcp.f32 %v3858_v21  ;;  %v9829_v28 = vmul.f32 -1.442695, %v1818_v41  ;;  %v1821_v33 = vadd.f32 %v18924_v24, %v18799_v31 }
 0x41d   :  { %v8835_v26 = vadd.f32 %v8834_v2, %v8833_v9  ;;  %v8839_v32 = vadd.f32 %v8838_v37, %v8140_v14  ;;  %v8143_v13 = vmul.f32 %v7631_v0, %v14489_v10  ;;  %v3861_v61 = vadd.f32 1.0, %v11313_v23  ;;  %v16415_v9 = vpop.permute.xlu1 %6478 }
 0x41e   :  { %v11315_v29 = vpop.eup %11314  ;;  %v8142_v51 = vmul.f32 %v7630_v11, %v14471_v38  ;;  %11332 = vpow2.f32 %v9830_v34  ;;  %6696 = vbcast.lane.b32.xlu1 %v16377_v52, 296  ;;  %6692 = vbcast.lane.b32.xlu0 %v16377_v52, 288  ;;  %v9832_v18 = vmul.f32 -1.442695, %v1821_v33  ;;  %v1820_v22 = vadd.f32 %v18924_v24, %v18792_v4  ;;  %v16417_v34 = vpop.permute.xlu0 %6474 }
 0x41f   :  { %v11317_v5 = vpop.eup %11316  ;;  %v16412_v7 = vsel %vm9268_vm2, %v8835_v26, %v16355_v55  ;;  %v8840_v8 = vadd.f32 %v8839_v32, %v8141_v50  ;;  %v7633_v19 = vmul.f32 %v11315_v29, %v16265_v27  ;;  %11334 = vrcp.f32 %v3861_v61  ;;  %v18925_v29 = vld [vmem:[#allocation23_spill] sm:$0xff] }
 0x420   :  { %v11319_v54 = vpop.eup %11318  ;;  %v7632_v37 = vmul.f32 %v11317_v5, %v16267_v15  ;;  %11336 = vpow2.f32 %v9829_v28  ;;  %v9831_v21 = vmul.f32 -1.442695, %v1820_v22  ;;  %v1823_v41 = vadd.f32 %v18924_v24, %v18672_v43 }
 0x421   :  { %v11321_v40 = vpop.eup %11320  ;;  %v8841_v2 = vadd.f32 %v8840_v8, %v8142_v51  ;;  %v8145_v55 = vmul.f32 %v7633_v19, %v18779_v3  ;;  %v3860_v50 = vadd.f32 1.0, %v11319_v54  ;;  %11338 = vpow2.f32 %v9832_v18  ;;  %v18926_v54 = vld [vmem:[#allocation114_spill] sm:$0xff] }
 0x422   :  { %v11323_v27 = vpop.eup %11322  ;;  %v8144_v14 = vmul.f32 %v7632_v37, %v18781_v58  ;;  %v3863_v0 = vadd.f32 1.0, %v11321_v40  ;;  %11340 = vpow2.f32 %v9831_v21  ;;  %6704 = vbcast.lane.b32.xlu1 %v16377_v52, 312  ;;  %6700 = vbcast.lane.b32.xlu0 %v16377_v52, 304  ;;  %v9834_v15 = vmul.f32 -1.442695, %v1823_v41  ;;  %v16435_v8 = vpop.permute.xlu0 %6482 }
 0x423   :  { %v11325_v23 = vpop.eup %11324  ;;  %v8842_v11 = vadd.f32 %v8841_v2, %v8143_v13  ;;  %11342 = vrcp.f32 %v3860_v50  ;;  %v3862_v28 = vadd.f32 1.0, %v11323_v27  ;;  %v1822_v33 = vadd.f32 %v18924_v24, %v18674_v53  ;;  %v16433_v13 = vpop.permute.xlu1 %6486 }
 0x424   :  { %v11327_v26 = vpop.eup %11326  ;;  %v8849_v32 = vadd.f32 %v8145_v55, %v8144_v14  ;;  %11344 = vrcp.f32 %v3863_v0  ;;  %v3865_v61 = vadd.f32 1.0, %v11325_v23  ;;  %v16430_v51 = vrot.slane %v16033_v39, %v18925_v29 }
 0x425   :  { %v11329_v18 = vpop.eup %11328  ;;  %v8843_v22 = vrot.slane %v8842_v11, 4  ;;  %v7635_v52 = vmul.f32 %v11327_v26, %v16277_v12  ;;  %11346 = vrcp.f32 %v3862_v28  ;;  %v9833_v5 = vmul.f32 -1.442695, %v1822_v33 }
 0x426   :  { %v11331_v19 = vpop.eup %11330  ;;  %11348 = vrcp.f32 %v3865_v61  ;;  %v3864_v24 = vadd.f32 1.0, %v11329_v18  ;;  %6715 = vbcast.lane.b32.xlu1 %v16430_v51, 264  ;;  %6711 = vbcast.lane.b32.xlu0 %v16430_v51, 256  ;;  %v1825_v37 = vadd.f32 %v18926_v54, %v18688_v16  ;;  %v1824_v21 = vadd.f32 %v18926_v54, %v18690_v46 }
 0x427   :  { %v8844_v12 = vadd.f32 %v8843_v22, %v8842_v11  ;;  %v8147_v41 = vmul.f32 %v7635_v52, %v18784_v49  ;;  %v7634_v40 = vmul.f32 %v11331_v19, %v16279_v56  ;;  %11350 = vpow2.f32 %v9834_v15  ;;  %v16453_v52 = vpop.permute.xlu1 %6494 }
 0x428   :  { %v11333_v2 = vpop.eup %11332  ;;  %11352 = vrcp.f32 %v3864_v24  ;;  %v9836_v55 = vmul.f32 -1.442695, %v1825_v37  ;;  %v9835_v50 = vmul.f32 -1.442695, %v1824_v21  ;;  %v1827_v27 = vadd.f32 %v18926_v54, %v18709_v30 }
 0x429   :  { %v11335_v14 = vpop.eup %11334  ;;  %v8845_v0 = vrot.slane %v8844_v12, 2  ;;  %v8146_v23 = vmul.f32 %v7634_v40, %v14007_v57  ;;  %v3867_v28 = vadd.f32 1.0, %v11333_v2  ;;  %11354 = vpow2.f32 %v9833_v5  ;;  %v16455_v5 = vpop.permute.xlu0 %6490 }
 0x42a   :  { %v11337_v33 = vpop.eup %11336  ;;  %v7637_v11 = vmul.f32 %v11335_v14, %v16288_v60  ;;  %11356 = vpow2.f32 %v9836_v55  ;;  %6723 = vbcast.lane.b32.xlu1 %v16430_v51, 280  ;;  %6719 = vbcast.lane.b32.xlu0 %v16430_v51, 272  ;;  %v9838_v56 = vmul.f32 -1.442695, %v1827_v27  ;;  %v1826_v15 = vadd.f32 %v18926_v54, %v18798_v62 }
 0x42b   :  { %v11339_v26 = vpop.eup %11338  ;;  %v8846_v61 = vadd.f32 %v8845_v0, %v8844_v12  ;;  %v8850_v18 = vadd.f32 %v8849_v32, %v8146_v23  ;;  %11358 = vrcp.f32 %v3867_v28  ;;  %v3866_v22 = vadd.f32 1.0, %v11337_v33 }
 0x42c   :  { %v11341_v19 = vpop.eup %11340  ;;  %v8149_v60 = vmul.f32 %v7637_v11, %v14369_v1  ;;  %v3869_v24 = vadd.f32 1.0, %v11339_v26  ;;  %11360 = vpow2.f32 %v9835_v50  ;;  %v9837_v37 = vmul.f32 -1.442695, %v1826_v15 }
 0x42d   :  { %v11343_v21 = vpop.eup %11342  ;;  %v8847_v40 = vrot.slane %v8846_v61, 1  ;;  %v8851_v2 = vadd.f32 %v8850_v18, %v8147_v41  ;;  %11362 = vrcp.f32 %v3866_v22  ;;  %v3868_v55 = vadd.f32 1.0, %v11341_v19 }
 0x42e   :  { %v11345_v27 = vpop.eup %11344  ;;  %v7636_v32 = vmul.f32 %v11343_v21, %v16290_v6  ;;  %11364 = vrcp.f32 %v3869_v24  ;;  %6731 = vbcast.lane.b32.xlu1 %v16430_v51, 296  ;;  %6727 = vbcast.lane.b32.xlu0 %v16430_v51, 288  ;;  %v1829_v12 = vadd.f32 %v18926_v54, %v18799_v31  ;;  %v1828_v50 = vadd.f32 %v18926_v54, %v18792_v4 }
 0x42f   :  { %v11347_v14 = vpop.eup %11346  ;;  %v8848_v0 = vadd.f32 %v8847_v40, %v8846_v61  ;;  %v7639_v41 = vmul.f32 %v11345_v27, %v16301_v25  ;;  %11366 = vrcp.f32 %v3868_v55  ;;  %v1831_v23 = vadd.f32 %v18926_v54, %v18672_v43 }
 0x430   :  { %v11349_v6 = vpop.eup %11348  ;;  %v8148_v28 = vmul.f32 %v7636_v32, %v14237_v45  ;;  %v7638_v33 = vmul.f32 %v11347_v14, %v16303_v20  ;;  %11368 = vpow2.f32 %v9838_v56  ;;  %v9840_v11 = vmul.f32 -1.442695, %v1829_v12  ;;  %v16476_v18 = vpop.permute.xlu1 %6505 }
 0x431   :  { %v11351_v15 = vpop.eup %11350  ;;  %v16472_v26 = vsel %vm9270_vm3, %v8848_v0, %v16412_v7  ;;  %v8151_v61 = vmul.f32 %v7639_v41, %v14489_v10  ;;  %v7641_v25 = vmul.f32 %v11349_v6, %v16321_v48  ;;  %11370 = vpow2.f32 %v9837_v37  ;;  %v16478_v22 = vpop.permute.xlu0 %6501 }
 0x432   :  { %v11353_v19 = vpop.eup %11352  ;;  %v8852_v24 = vadd.f32 %v8851_v2, %v8148_v28  ;;  %v8150_v20 = vmul.f32 %v7638_v33, %v14471_v38  ;;  %v3871_v56 = vadd.f32 1.0, %v11351_v15  ;;  %11372 = vpow2.f32 %v9840_v11  ;;  %6739 = vbcast.lane.b32.xlu1 %v16430_v51, 312  ;;  %6735 = vbcast.lane.b32.xlu0 %v16430_v51, 304  ;;  %v18927_v51 = vld [vmem:[#allocation24_spill] sm:$0xff] }
 0x433   :  { %v11355_v7 = vpop.eup %11354  ;;  %v8153_v21 = vmul.f32 %v7641_v25, %v18779_v3  ;;  %v7640_v48 = vmul.f32 %v11353_v19, %v16323_v59  ;;  %v9839_v37 = vmul.f32 -1.442695, %v1828_v50  ;;  %v9842_v40 = vmul.f32 -1.442695, %v1831_v23 }
 0x434   :  { %v11357_v55 = vpop.eup %11356  ;;  %v8853_v27 = vadd.f32 %v8852_v24, %v8149_v60  ;;  %11374 = vrcp.f32 %v3871_v56  ;;  %v3870_v32 = vadd.f32 1.0, %v11355_v7  ;;  %v1830_v2 = vadd.f32 %v18926_v54, %v18674_v53  ;;  %v16492_v6 = vpop.permute.xlu1 %6513 }
 0x435   :  { %v11359_v12 = vpop.eup %11358  ;;  %v8152_v14 = vmul.f32 %v7640_v48, %v18781_v58  ;;  %v3873_v0 = vadd.f32 1.0, %v11357_v55  ;;  %11376 = vpow2.f32 %v9839_v37  ;;  %v16490_v41 = vrot.slane %v16033_v39, %v18927_v51  ;;  %v16494_v59 = vpop.permute.xlu0 %6509  ;;  %v18928_v39 = vld [vmem:[#allocation117_spill] sm:$0xff] }
 0x436   :  { %v11361_v50 = vpop.eup %11360  ;;  %v8854_v60 = vadd.f32 %v8853_v27, %v8150_v20  ;;  %v7643_v23 = vmul.f32 %v11359_v12, %v16333_v17  ;;  %11378 = vrcp.f32 %v3870_v32  ;;  %v9841_v28 = vmul.f32 -1.442695, %v1830_v2 }
 0x437   :  { %v11363_v54 = vpop.eup %11362  ;;  %v8862_v33 = vadd.f32 %v8153_v21, %v8152_v14  ;;  %11380 = vrcp.f32 %v3873_v0  ;;  %v3872_v11 = vadd.f32 1.0, %v11361_v50  ;;  %6750 = vbcast.lane.b32.xlu1 %v16490_v41, 264  ;;  %6746 = vbcast.lane.b32.xlu0 %v16490_v41, 256  ;;  %v1833_v15 = vadd.f32 %v18928_v39, %v18688_v16 }
 0x438   :  { %v11365_v25 = vpop.eup %11364  ;;  %v8855_v19 = vadd.f32 %v8854_v60, %v8151_v61  ;;  %v8155_v24 = vmul.f32 %v7643_v23, %v18784_v49  ;;  %v7642_v20 = vmul.f32 %v11363_v54, %v16335_v42  ;;  %11382 = vpow2.f32 %v9842_v40  ;;  %v16506_v48 = vpop.permute.xlu1 %6521 }
 0x439   :  { %v11367_v17 = vpop.eup %11366  ;;  %v7645_v56 = vmul.f32 %v11365_v25, %v16349_v44  ;;  %11384 = vrcp.f32 %v3872_v11  ;;  %v9844_v7 = vmul.f32 -1.442695, %v1833_v15  ;;  %v1832_v21 = vadd.f32 %v18928_v39, %v18690_v46  ;;  %v16508_v37 = vpop.permute.xlu0 %6517 }
 0x43a   :  { %v11369_v55 = vpop.eup %11368  ;;  %v8856_v27 = vrot.slane %v8855_v19, 4  ;;  %v8154_v61 = vmul.f32 %v7642_v20, %v14007_v57  ;;  %v7644_v32 = vmul.f32 %v11367_v17, %v16351_v36  ;;  %11386 = vpow2.f32 %v9841_v28 }
 0x43b   :  { %v11371_v42 = vpop.eup %11370  ;;  %v8157_v40 = vmul.f32 %v7645_v56, %v14369_v1  ;;  %v3875_v44 = vadd.f32 1.0, %v11369_v55  ;;  %11388 = vpow2.f32 %v9844_v7  ;;  %v9843_v2 = vmul.f32 -1.442695, %v1832_v21  ;;  %6758 = vbcast.lane.b32.xlu1 %v16490_v41, 280  ;;  %6754 = vbcast.lane.b32.xlu0 %v16490_v41, 272 }
 0x43c   :  { %v11373_v12 = vpop.eup %11372  ;;  %v8857_v14 = vadd.f32 %v8856_v27, %v8855_v19  ;;  %v8863_v0 = vadd.f32 %v8862_v33, %v8154_v61  ;;  %v8156_v50 = vmul.f32 %v7644_v32, %v14237_v45  ;;  %v3874_v60 = vadd.f32 1.0, %v11371_v42  ;;  %v16520_v54 = vpop.permute.xlu1 %6529  ;;  %v18929_v42 = vld [vmem:[#allocation194_spill] sm:$0xff] }
 0x43d   :  { %11390 = vrcp.f32 %v3875_v44  ;;  %v3877_v23 = vadd.f32 1.0, %v11373_v12  ;;  %v1835_v36 = vadd.f32 %v18928_v39, %v18709_v30  ;;  %v1834_v28 = vadd.f32 %v18928_v39, %v18798_v62  ;;  %v16522_v11 = vpop.permute.xlu0 %6525 }
 0x43e   :  { %v11375_v15 = vpop.eup %11374  ;;  %v8858_v25 = vrot.slane %v8857_v14, 2  ;;  %v8864_v20 = vadd.f32 %v8863_v0, %v8155_v24  ;;  %11392 = vrcp.f32 %v3874_v60  ;;  %v1837_v33 = vadd.f32 %v18928_v39, %v18799_v31 }
 0x43f   :  { %v11377_v19 = vpop.eup %11376  ;;  %v7647_v17 = vmul.f32 %v11375_v15, %v16370_v35  ;;  %11394 = vrcp.f32 %v3877_v23  ;;  %v9846_v56 = vmul.f32 -1.442695, %v1835_v36  ;;  %v9845_v7 = vmul.f32 -1.442695, %v1834_v28  ;;  %6766 = vbcast.lane.b32.xlu1 %v16490_v41, 296  ;;  %6762 = vbcast.lane.b32.xlu0 %v16490_v41, 288 }
 0x440   :  { %v11379_v21 = vpop.eup %11378  ;;  %v8859_v55 = vadd.f32 %v8858_v25, %v8857_v14  ;;  %v8865_v27 = vadd.f32 %v8864_v20, %v8156_v50  ;;  %v3876_v61 = vadd.f32 1.0, %v11377_v19  ;;  %11396 = vpow2.f32 %v9843_v2  ;;  %v16531_v35 = vpop.permute.xlu1 %6540 }
 0x441   :  { %v11381_v24 = vpop.eup %11380  ;;  %v8159_v32 = vmul.f32 %v7647_v17, %v14489_v10  ;;  %v7646_v44 = vmul.f32 %v11379_v21, %v18929_v42  ;;  %11398 = vpow2.f32 %v9846_v56  ;;  %v9848_v12 = vmul.f32 -1.442695, %v1837_v33  ;;  %v16533_v0 = vpop.permute.xlu0 %6536 }
 0x442   :  { %v11383_v60 = vpop.eup %11382  ;;  %v8860_v23 = vrot.slane %v8859_v55, 1  ;;  %v8866_v36 = vadd.f32 %v8865_v27, %v8157_v40  ;;  %v7649_v28 = vmul.f32 %v11381_v24, %v16391_v47  ;;  %11400 = vrcp.f32 %v3876_v61  ;;  %v10056_v47 = vld [vmem:[#allocation9 + $0x18] sm:$0xff]  }
 0x443   :  { %v11385_v14 = vpop.eup %11384  ;;  %v8158_v2 = vmul.f32 %v7646_v44, %v14471_v38  ;;  %v3879_v50 = vadd.f32 1.0, %v11383_v60  ;;  %11402 = vpow2.f32 %v9845_v7  ;;  %v1836_v15 = vadd.f32 %v18928_v39, %v18792_v4  ;;  %6774 = vbcast.lane.b32.xlu1 %v16490_v41, 312  ;;  %6770 = vbcast.lane.b32.xlu0 %v16490_v41, 304 }
 0x444   :  { %v11387_v25 = vpop.eup %11386  ;;  %v8861_v20 = vadd.f32 %v8860_v23, %v8859_v55  ;;  %v8161_v33 = vmul.f32 %v7649_v28, %v18779_v3  ;;  %v7648_v40 = vmul.f32 %v11385_v14, %v16393_v63  ;;  %11404 = vpow2.f32 %v9848_v12  ;;  %v16543_v21 = vpop.permute.xlu1 %6548 }
 0x445   :  { %v11389_v19 = vpop.eup %11388  ;;  %v8867_v17 = vadd.f32 %v8866_v36, %v8158_v2  ;;  %11406 = vrcp.f32 %v3879_v50  ;;  %v3878_v56 = vadd.f32 1.0, %v11387_v25  ;;  %v9847_v7 = vmul.f32 -1.442695, %v1836_v15  ;;  %v16545_v27 = vpop.permute.xlu0 %6544 }
 0x446   :  { %v16549_v41 = vsel %vm9272_vm4, %v8861_v20, %v16472_v26  ;;  %v8160_v55 = vmul.f32 %v7648_v40, %v18781_v58  ;;  %v3881_v61 = vadd.f32 1.0, %v11389_v19  ;;  %v1839_v63 = vadd.f32 %v18928_v39, %v18672_v43 }
 0x447   :  { %v11391_v24 = vpop.eup %11390  ;;  %v8868_v42 = vadd.f32 %v8867_v17, %v8159_v32  ;;  %11408 = vrcp.f32 %v3878_v56  ;;  %v1838_v44 = vadd.f32 %v18928_v39, %v18674_v53  ;;  %v16556_v12 = vunpack.c.l.bf16 %v10056_v47 }
 0x448   :  { %v11393_v60 = vpop.eup %11392  ;;  %v8875_v23 = vadd.f32 %v8161_v33, %v8160_v55  ;;  %v7651_v36 = vmul.f32 %v11391_v24, %v16415_v9  ;;  %11410 = vrcp.f32 %v3881_v61  ;;  %v9850_v26 = vmul.f32 -1.442695, %v1839_v63  ;;  %v16560_v15 = vpop.permute.xlu1 %6556  ;;  %v18930_v33 = vld [vmem:[#allocation17_spill] sm:$0xff] }
 0x449   :  { %v11395_v28 = vpop.eup %11394  ;;  %v8869_v14 = vrot.slane %v8868_v42, 4  ;;  %v7650_v2 = vmul.f32 %v11393_v60, %v16417_v34  ;;  %11412 = vpow2.f32 %v9847_v7  ;;  %v9849_v50 = vmul.f32 -1.442695, %v1838_v44  ;;  %v16562_v32 = vpop.permute.xlu0 %6552 }
 0x44a   :  { %v11397_v25 = vpop.eup %11396  ;;  %v8163_v39 = vmul.f32 %v7651_v36, %v18784_v49  ;;  %v7653_v20 = vmul.f32 %v11395_v28, %v16433_v13  ;;  %11414 = vpow2.f32 %v9850_v26  ;;  %v16568_v9 = vrot.slane %v16556_v12, %v18930_v33  ;;  %v18931_v13 = vld [vmem:[#allocation120_spill] sm:$0xff] }
 0x44b   :  { %v11399_v40 = vpop.eup %11398  ;;  %v8870_v47 = vadd.f32 %v8869_v14, %v8868_v42  ;;  %v8162_v34 = vmul.f32 %v7650_v2, %v14007_v57  ;;  %v3880_v19 = vadd.f32 1.0, %v11397_v25  ;;  %11416 = vpow2.f32 %v9849_v50 }
 0x44c   :  { %v11401_v17 = vpop.eup %11400  ;;  %v8165_v56 = vmul.f32 %v7653_v20, %v14369_v1  ;;  %v3883_v7 = vadd.f32 1.0, %v11399_v40  ;;  %6785 = vbcast.lane.b32.xlu1 %v16568_v9, 264  ;;  %6781 = vbcast.lane.b32.xlu0 %v16568_v9, 256  ;;  %v1841_v55 = vadd.f32 %v18931_v13, %v18688_v16  ;;  %v1840_v61 = vadd.f32 %v18931_v13, %v18690_v46  ;;  %v16579_v60 = vpop.permute.xlu1 %6564 }
 0x44d   :  { %v11403_v63 = vpop.eup %11402  ;;  %v8871_v24 = vrot.slane %v8870_v47, 2  ;;  %v8876_v42 = vadd.f32 %v8875_v23, %v8162_v34  ;;  %v7652_v44 = vmul.f32 %v11401_v17, %v16435_v8  ;;  %11418 = vrcp.f32 %v3880_v19  ;;  %v16581_v36 = vpop.permute.xlu0 %6560 }
 0x44e   :  { %v11405_v26 = vpop.eup %11404  ;;  %11420 = vrcp.f32 %v3883_v7  ;;  %v3882_v28 = vadd.f32 1.0, %v11403_v63  ;;  %v9852_v14 = vmul.f32 -1.442695, %v1841_v55  ;;  %v9851_v2 = vmul.f32 -1.442695, %v1840_v61 }
 0x44f   :  { %v11407_v50 = vpop.eup %11406  ;;  %v8872_v25 = vadd.f32 %v8871_v24, %v8870_v47  ;;  %v8164_v20 = vmul.f32 %v7652_v44, %v14237_v45  ;;  %v8877_v40 = vadd.f32 %v8876_v42, %v8163_v39  ;;  %v3885_v51 = vadd.f32 1.0, %v11405_v26 }
 0x450   :  { %v7655_v23 = vmul.f32 %v11407_v50, %v16453_v52  ;;  %11422 = vrcp.f32 %v3882_v28  ;;  %6793 = vbcast.lane.b32.xlu1 %v16568_v9, 280  ;;  %6789 = vbcast.lane.b32.xlu0 %v16568_v9, 272  ;;  %v1843_v8 = vadd.f32 %v18931_v13, %v18709_v30  ;;  %v1842_v34 = vadd.f32 %v18931_v13, %v18798_v62  ;;  %v16593_v7 = vpop.permute.xlu1 %6575 }
 0x451   :  { %v11409_v19 = vpop.eup %11408  ;;  %v8873_v17 = vrot.slane %v8872_v25, 1  ;;  %v8878_v47 = vadd.f32 %v8877_v40, %v8164_v20  ;;  %11424 = vrcp.f32 %v3885_v51  ;;  %v1845_v39 = vadd.f32 %v18931_v13, %v18799_v31  ;;  %v16595_v52 = vpop.permute.xlu0 %6571 }
 0x452   :  { %v11411_v55 = vpop.eup %11410  ;;  %v8167_v61 = vmul.f32 %v7655_v23, %v14489_v10  ;;  %v7654_v63 = vmul.f32 %v11409_v19, %v16455_v5  ;;  %11426 = vpow2.f32 %v9852_v14  ;;  %v9854_v24 = vmul.f32 -1.442695, %v1843_v8 }
 0x453   :  { %v11413_v42 = vpop.eup %11412  ;;  %v8874_v44 = vadd.f32 %v8873_v17, %v8872_v25  ;;  %v8879_v26 = vadd.f32 %v8878_v47, %v8165_v56  ;;  %v7657_v28 = vmul.f32 %v11411_v55, %v16476_v18  ;;  %11428 = vpow2.f32 %v9851_v2  ;;  %v18932_v55 = vld [vmem:[#allocation18_spill] sm:$0xff] }
 0x454   :  { %v11415_v51 = vpop.eup %11414  ;;  %v8166_v50 = vmul.f32 %v7654_v63, %v14471_v38  ;;  %v3884_v20 = vadd.f32 1.0, %v11413_v42  ;;  %11430 = vpow2.f32 %v9854_v24  ;;  %v9853_v40 = vmul.f32 -1.442695, %v1842_v34  ;;  %6801 = vbcast.lane.b32.xlu1 %v16568_v9, 296  ;;  %6797 = vbcast.lane.b32.xlu0 %v16568_v9, 288  ;;  %v16608_v2 = vpop.permute.xlu1 %6583 }
 0x455   :  { %v11417_v23 = vpop.eup %11416  ;;  %v16605_v5 = vsel %vm9274_vm5, %v8874_v44, %v16549_v41  ;;  %v8169_v56 = vmul.f32 %v7657_v28, %v18779_v3  ;;  %v3887_v14 = vadd.f32 1.0, %v11415_v51  ;;  %v9856_v18 = vmul.f32 -1.442695, %v1845_v39  ;;  %v16610_v25 = vpop.permute.xlu0 %6579 }
 0x456   :  { %v8880_v8 = vadd.f32 %v8879_v26, %v8166_v50  ;;  %11432 = vrcp.f32 %v3884_v20  ;;  %v3886_v34 = vadd.f32 1.0, %v11417_v23  ;;  %v1844_v19 = vadd.f32 %v18931_v13, %v18792_v4 }
 0x457   :  { %v11419_v17 = vpop.eup %11418  ;;  %11434 = vrcp.f32 %v3887_v14  ;;  %v1847_v41 = vadd.f32 %v18931_v13, %v18672_v43  ;;  %v1846_v47 = vadd.f32 %v18931_v13, %v18674_v53  ;;  %v16620_v39 = vrot.slane %v16556_v12, %v18932_v55 }
 0x458   :  { %v11421_v63 = vpop.eup %11420  ;;  %v8881_v24 = vadd.f32 %v8880_v8, %v8167_v61  ;;  %v7656_v42 = vmul.f32 %v11419_v17, %v16478_v22  ;;  %11436 = vrcp.f32 %v3886_v34  ;;  %v9855_v44 = vmul.f32 -1.442695, %v1844_v19  ;;  %6809 = vbcast.lane.b32.xlu1 %v16568_v9, 312  ;;  %6805 = vbcast.lane.b32.xlu0 %v16568_v9, 304  ;;  %v16626_v13 = vpop.permute.xlu1 %6591  ;;  %v18933_v22 = vld [vmem:[#allocation123_spill] sm:$0xff] }
 0x459   :  { %v7659_v26 = vmul.f32 %v11421_v63, %v16492_v6  ;;  %11438 = vpow2.f32 %v9853_v40  ;;  %v9858_v28 = vmul.f32 -1.442695, %v1847_v41  ;;  %v9857_v51 = vmul.f32 -1.442695, %v1846_v47  ;;  %v16628_v50 = vpop.permute.xlu0 %6587 }
 0x45a   :  { %v11423_v20 = vpop.eup %11422  ;;  %v8882_v23 = vrot.slane %v8881_v24, 4  ;;  %v8168_v61 = vmul.f32 %v7656_v42, %v18781_v58  ;;  %11440 = vpow2.f32 %v9856_v18  ;;  %v1849_v14 = vadd.f32 %v18933_v22, %v18688_v16 }
 0x45b   :  { %v11425_v8 = vpop.eup %11424  ;;  %v8171_v9 = vmul.f32 %v7659_v26, %v18784_v49  ;;  %v7658_v6 = vmul.f32 %v11423_v20, %v16494_v59  ;;  %11442 = vpow2.f32 %v9855_v44  ;;  %v1848_v40 = vadd.f32 %v18933_v22, %v18690_v46 }
 0x45c   :  { %v11427_v34 = vpop.eup %11426  ;;  %v8883_v19 = vadd.f32 %v8882_v23, %v8881_v24  ;;  %v8888_v17 = vadd.f32 %v8169_v56, %v8168_v61  ;;  %v7661_v41 = vmul.f32 %v11425_v8, %v16506_v48  ;;  %11444 = vpow2.f32 %v9858_v28  ;;  %6820 = vbcast.lane.b32.xlu1 %v16620_v39, 264  ;;  %6816 = vbcast.lane.b32.xlu0 %v16620_v39, 256  ;;  %v16641_v42 = vpop.permute.xlu1 %6599 }
 0x45d   :  { %v11429_v18 = vpop.eup %11428  ;;  %v8170_v47 = vmul.f32 %v7658_v6, %v14007_v57  ;;  %v3889_v63 = vadd.f32 1.0, %v11427_v34  ;;  %11446 = vpow2.f32 %v9857_v51  ;;  %v9860_v59 = vmul.f32 -1.442695, %v1849_v14  ;;  %v16643_v44 = vpop.permute.xlu0 %6595 }
 0x45e   :  { %v11431_v26 = vpop.eup %11430  ;;  %v8884_v24 = vrot.slane %v8883_v19, 2  ;;  %v8173_v56 = vmul.f32 %v7661_v41, %v14369_v1  ;;  %v3888_v48 = vadd.f32 1.0, %v11429_v18  ;;  %v9859_v28 = vmul.f32 -1.442695, %v1848_v40 }
 0x45f   :  { %v8889_v20 = vadd.f32 %v8888_v17, %v8170_v47  ;;  %11448 = vrcp.f32 %v3889_v63  ;;  %v3891_v23 = vadd.f32 1.0, %v11431_v26  ;;  %v1851_v61 = vadd.f32 %v18933_v22, %v18709_v30 }
 0x460   :  { %v11433_v8 = vpop.eup %11432  ;;  %v8885_v6 = vadd.f32 %v8884_v24, %v8883_v19  ;;  %11450 = vrcp.f32 %v3888_v48  ;;  %6828 = vbcast.lane.b32.xlu1 %v16620_v39, 280  ;;  %6824 = vbcast.lane.b32.xlu0 %v16620_v39, 272  ;;  %v1850_v51 = vadd.f32 %v18933_v22, %v18798_v62  ;;  %v1853_v14 = vadd.f32 %v18933_v22, %v18799_v31  ;;  %v16655_v18 = vpop.permute.xlu1 %6610 }
 0x461   :  { %v11435_v40 = vpop.eup %11434  ;;  %v7660_v34 = vmul.f32 %v11433_v8, %v16508_v37  ;;  %v8890_v17 = vadd.f32 %v8889_v20, %v8171_v9  ;;  %11452 = vrcp.f32 %v3891_v23  ;;  %v9862_v41 = vmul.f32 -1.442695, %v1851_v61  ;;  %v16657_v19 = vpop.permute.xlu0 %6606 }
 0x462   :  { %v11437_v47 = vpop.eup %11436  ;;  %v8886_v63 = vrot.slane %v8885_v6, 1  ;;  %v7663_v26 = vmul.f32 %v11435_v40, %v16520_v54  ;;  %11454 = vpow2.f32 %v9860_v59  ;;  %v9861_v24 = vmul.f32 -1.442695, %v1850_v51 }
 0x463   :  { %v11439_v48 = vpop.eup %11438  ;;  %v8172_v55 = vmul.f32 %v7660_v34, %v14237_v45  ;;  %v7662_v29 = vmul.f32 %v11437_v47, %v16522_v11  ;;  %11456 = vpow2.f32 %v9859_v28  ;;  %v9864_v37 = vmul.f32 -1.442695, %v1853_v14  ;;  %v18934_v47 = vld [vmem:[#allocation65_spill] sm:$0xff] }
 0x464   :  { %v11441_v9 = vpop.eup %11440  ;;  %v8887_v20 = vadd.f32 %v8886_v63, %v8885_v6  ;;  %v8175_v23 = vmul.f32 %v7663_v26, %v14489_v10  ;;  %v3890_v61 = vadd.f32 1.0, %v11439_v48  ;;  %11458 = vpow2.f32 %v9862_v41  ;;  %6836 = vbcast.lane.b32.xlu1 %v16620_v39, 296  ;;  %6832 = vbcast.lane.b32.xlu0 %v16620_v39, 288  ;;  %v16666_v40 = vpop.permute.xlu1 %6618  ;;  %v18936_v48 = vld [vmem:[#allocation118_spill] sm:$0xff] }
 0x465   :  { %v11443_v54 = vpop.eup %11442  ;;  %v8891_v59 = vadd.f32 %v8890_v17, %v8172_v55  ;;  %v8174_v8 = vmul.f32 %v7662_v29, %v14471_v38  ;;  %v3893_v51 = vadd.f32 1.0, %v11441_v9  ;;  %11460 = vpow2.f32 %v9861_v24  ;;  %v16668_v11 = vpop.permute.xlu0 %6614 }
 0x466   :  { %v11445_v28 = vpop.eup %11444  ;;  %v9305_v6 = vsel %vm9276_vm6, %v8887_v20, %v16605_v5  ;;  %11462 = vrcp.f32 %v3890_v61  ;;  %v3892_v14 = vadd.f32 1.0, %v11443_v54  ;;  %v1852_v34 = vadd.f32 %v18933_v22, %v18792_v4 }
 0x467   :  { %v11447_v41 = vpop.eup %11446  ;;  %v16675_v55 = vadd.f32 %v9305_v6, %v18934_v47  ;;  %v8892_v29 = vadd.f32 %v8891_v59, %v8173_v56  ;;  %11464 = vrcp.f32 %v3893_v51  ;;  %v3895_v17 = vadd.f32 1.0, %v11445_v28  ;;  %v18939_v6 = vld [vmem:[#allocation19_spill] sm:$0xff] }
 0x468   :  { %11466 = vrcp.f32 %v3892_v14  ;;  %v3894_v63 = vadd.f32 1.0, %v11447_v41  ;;  %v9863_v26 = vmul.f32 -1.442695, %v1852_v34  ;;  %6844 = vbcast.lane.b32.xlu1 %v16620_v39, 312  ;;  %6840 = vbcast.lane.b32.xlu0 %v16620_v39, 304  ;;  %v1855_v5 = vadd.f32 %v18933_v22, %v18672_v43  ;;  %v16689_v54 = vpop.permute.xlu1 %6626 }
 0x469   :  { %18935 = vst [vmem:[#allocation75_spill] sm:$0xff] %v16675_v55  ;;  %v11449_v24 = vpop.eup %11448  ;;  %v18937_v9 = vcombine.high %v18936_v48, %v18936_v48  ;;  %v8893_v56 = vadd.f32 %v8892_v29, %v8174_v8  ;;  %11468 = vrcp.f32 %v3895_v17  ;;  %v1854_v61 = vadd.f32 %v18933_v22, %v18674_v53  ;;  %v16691_v59 = vpop.permute.xlu0 %6622  ;;  %v18941_v17 = vld [vmem:[#allocation86_spill] sm:$0xff]  ;;  %v18942_v48 = vld [vmem:[#allocation153_spill] sm:$0xff] }
 0x46a   :  { %v11451_v39 = vpop.eup %11450  ;;  %v7665_v51 = vmul.f32 %v11449_v24, %v16531_v35  ;;  %11470 = vrcp.f32 %v3894_v63  ;;  %v9866_v28 = vmul.f32 -1.442695, %v1855_v5  ;;  %v16696_v14 = vrot.slane %v16556_v12, %v18939_v6 }
 0x46b   :  { %v16685_v20 = vrot.slane %v18937_v9, %v18930_v33  ;;  %v11453_v34 = vpop.eup %11452  ;;  %v8894_v47 = vadd.f32 %v8893_v56, %v8175_v23  ;;  %v7664_v22 = vmul.f32 %v11451_v39, %v16533_v0  ;;  %11472 = vpow2.f32 %v9864_v37 }
 0x46c   :  { %v11455_v29 = vpop.eup %11454  ;;  %v16703_v9 = vadd.f32 %v18942_v48, %v18941_v17  ;;  %v8177_v35 = vmul.f32 %v7665_v51, %v18779_v3  ;;  %v7667_v63 = vmul.f32 %v11453_v34, %v16543_v21  ;;  %11474 = vpow2.f32 %v9863_v26  ;;  %6855 = vbcast.lane.b32.xlu1 %v16696_v14, 264  ;;  %6851 = vbcast.lane.b32.xlu0 %v16696_v14, 256  ;;  %v18944_v51 = vld [vmem:[#allocation126_spill] sm:$0xff] }
 0x46d   :  { %18938 = vst [vmem:[#allocation195_spill] sm:$0xff] %v16685_v20  ;;  %v11457_v5 = vpop.eup %11456  ;;  %v8895_v24 = vrot.slane %v8894_v47, 4  ;;  %v8176_v23 = vmul.f32 %v7664_v22, %v18781_v58  ;;  %v3897_v0 = vadd.f32 1.0, %v11455_v29  ;;  %v9865_v37 = vmul.f32 -1.442695, %v1854_v61  ;;  %v16713_v20 = vpop.permute.xlu1 %6634 }
 0x46e   :  { %18943 = vst [vmem:[#allocation116_spill] sm:$0xff] %v16703_v9  ;;  %v11459_v56 = vpop.eup %11458  ;;  %v8179_v39 = vmul.f32 %v7667_v63, %v18784_v49  ;;  %v3896_v48 = vadd.f32 1.0, %v11457_v5  ;;  %11476 = vpow2.f32 %v9866_v28  ;;  %v1857_v8 = vadd.f32 %v18944_v51, %v18688_v16  ;;  %v16715_v17 = vpop.permute.xlu0 %6630 }
 0x46f   :  { %v11461_v21 = vpop.eup %11460  ;;  %v8896_v26 = vadd.f32 %v8895_v24, %v8894_v47  ;;  %v8901_v34 = vadd.f32 %v8177_v35, %v8176_v23  ;;  %11478 = vrcp.f32 %v3897_v0  ;;  %v3899_v55 = vadd.f32 1.0, %v11459_v56 }
 0x470   :  { %v11463_v22 = vpop.eup %11462  ;;  %11480 = vrcp.f32 %v3896_v48  ;;  %v3898_v61 = vadd.f32 1.0, %v11461_v21  ;;  %v9868_v29 = vmul.f32 -1.442695, %v1857_v8  ;;  %v1856_v63 = vadd.f32 %v18944_v51, %v18690_v46  ;;  %6863 = vbcast.lane.b32.xlu1 %v16696_v14, 280  ;;  %6859 = vbcast.lane.b32.xlu0 %v16696_v14, 272 }
 0x471   :  { %v11465_v28 = vpop.eup %11464  ;;  %v8897_v47 = vrot.slane %v8896_v26, 2  ;;  %v7666_v35 = vmul.f32 %v11463_v22, %v16545_v27  ;;  %11482 = vrcp.f32 %v3899_v55  ;;  %v1859_v5 = vadd.f32 %v18944_v51, %v18709_v30 }
 0x472   :  { %v11467_v24 = vpop.eup %11466  ;;  %v7669_v23 = vmul.f32 %v11465_v28, %v16560_v15  ;;  %11484 = vrcp.f32 %v3898_v61  ;;  %v9867_v8 = vmul.f32 -1.442695, %v1856_v63  ;;  %v1858_v0 = vadd.f32 %v18944_v51, %v18798_v62 }
 0x473   :  { %v11469_v56 = vpop.eup %11468  ;;  %v8898_v48 = vadd.f32 %v8897_v47, %v8896_v26  ;;  %v8178_v21 = vmul.f32 %v7666_v35, %v14007_v57  ;;  %v7668_v41 = vmul.f32 %v11467_v24, %v16562_v32  ;;  %11486 = vpow2.f32 %v9865_v37 }
 0x474   :  { %v11471_v27 = vpop.eup %11470  ;;  %v8181_v55 = vmul.f32 %v7669_v23, %v14369_v1  ;;  %v7671_v22 = vmul.f32 %v11469_v56, %v16579_v60  ;;  %11488 = vpow2.f32 %v9868_v29  ;;  %v9870_v9 = vmul.f32 -1.442695, %v1859_v5  ;;  %6871 = vbcast.lane.b32.xlu1 %v16696_v14, 296  ;;  %6867 = vbcast.lane.b32.xlu0 %v16696_v14, 288 }
 0x475   :  { %v11473_v15 = vpop.eup %11472  ;;  %v8899_v61 = vrot.slane %v8898_v48, 1  ;;  %v8902_v63 = vadd.f32 %v8901_v34, %v8178_v21  ;;  %v8180_v26 = vmul.f32 %v7668_v41, %v14237_v45  ;;  %v7670_v28 = vmul.f32 %v11471_v27, %v16581_v36  ;;  %v16735_v32 = vpop.permute.xlu1 %6645 }
 0x476   :  { %v16737_v37 = vpop.permute.xlu0 %6641  ;;  %v11475_v47 = vpop.eup %11474  ;;  %v8183_v60 = vmul.f32 %v7671_v22, %v14489_v10  ;;  %v3901_v29 = vadd.f32 1.0, %v11473_v15  ;;  %11490 = vpow2.f32 %v9867_v8  ;;  %v9869_v35 = vmul.f32 -1.442695, %v1858_v0 }
 0x477   :  { %v16740_v5 = vadd.f32 %v8899_v61, %v8898_v48  ;;  %v8903_v24 = vadd.f32 %v8902_v63, %v8179_v39  ;;  %v8182_v23 = vmul.f32 %v7670_v28, %v14471_v38  ;;  %v3900_v34 = vadd.f32 1.0, %v11475_v47 }
 0x478   :  { %v11477_v56 = vpop.eup %11476  ;;  %11492 = vrcp.f32 %v3901_v29  ;;  %v1861_v36 = vadd.f32 %v18944_v51, %v18799_v31  ;;  %v1860_v41 = vadd.f32 %v18944_v51, %v18792_v4  ;;  %6879 = vbcast.lane.b32.xlu1 %v16696_v14, 312  ;;  %6875 = vbcast.lane.b32.xlu0 %v16696_v14, 304  ;;  %v1863_v8 = vadd.f32 %v18944_v51, %v18672_v43 }
 0x479   :  { %v11479_v0 = vpop.eup %11478  ;;  %v8904_v39 = vadd.f32 %v8903_v24, %v8180_v26  ;;  %11494 = vrcp.f32 %v3900_v34  ;;  %v3903_v48 = vadd.f32 1.0, %v11477_v56  ;;  %v1862_v21 = vadd.f32 %v18944_v51, %v18674_v53  ;;  %v16753_v27 = vpop.permute.xlu1 %6653 }
 0x47a   :  { %v16755_v22 = vpop.permute.xlu0 %6649  ;;  %v11481_v15 = vpop.eup %11480  ;;  %v7673_v61 = vmul.f32 %v11479_v0, %v16593_v7  ;;  %11496 = vpow2.f32 %v9870_v9  ;;  %v9872_v63 = vmul.f32 -1.442695, %v1861_v36  ;;  %v9871_v14 = vmul.f32 -1.442695, %v1860_v41  ;;  %v18945_v0 = vld [vmem:[#allocation20_spill] sm:$0xff] }
 0x47b   :  { %v11483_v28 = vpop.eup %11482  ;;  %v8905_v47 = vadd.f32 %v8904_v39, %v8181_v55  ;;  %v7672_v29 = vmul.f32 %v11481_v15, %v16595_v52  ;;  %11498 = vrcp.f32 %v3903_v48  ;;  %v9874_v26 = vmul.f32 -1.442695, %v1863_v8 }
 0x47c   :  { %v11485_v24 = vpop.eup %11484  ;;  %v8185_v34 = vmul.f32 %v7673_v61, %v18779_v3  ;;  %v7675_v51 = vmul.f32 %v11483_v28, %v16608_v2  ;;  %11500 = vpow2.f32 %v9869_v35  ;;  %v9873_v56 = vmul.f32 -1.442695, %v1862_v21  ;;  %v18946_v21 = vld [vmem:[#allocation121_spill] sm:$0xff] }
 0x47d   :  { %v11487_v6 = vpop.eup %11486  ;;  %v8906_v33 = vadd.f32 %v8905_v47, %v8182_v23  ;;  %v8184_v7 = vmul.f32 %v7672_v29, %v18781_v58  ;;  %v7674_v9 = vmul.f32 %v11485_v24, %v16610_v25  ;;  %11502 = vpow2.f32 %v9872_v63  ;;  %v16763_v36 = vpop.permute.xlu1 %6661 }
 0x47e   :  { %v16765_v55 = vpop.permute.xlu0 %6657  ;;  %v11489_v52 = vpop.eup %11488  ;;  %v8187_v41 = vmul.f32 %v7675_v51, %v18784_v49  ;;  %v3902_v8 = vadd.f32 1.0, %v11487_v6  ;;  %11504 = vpow2.f32 %v9871_v14  ;;  %v16770_v2 = vrot.slane %v16556_v12, %v18945_v0 }
 0x47f   :  { %v8907_v35 = vadd.f32 %v8906_v33, %v8183_v60  ;;  %v8914_v23 = vadd.f32 %v8185_v34, %v8184_v7  ;;  %v8186_v39 = vmul.f32 %v7674_v9, %v14007_v57  ;;  %v3905_v48 = vadd.f32 1.0, %v11489_v52 }
 0x480   :  { %v11491_v25 = vpop.eup %11490  ;;  %11506 = vrcp.f32 %v3902_v8  ;;  %6890 = vbcast.lane.b32.xlu1 %v16770_v2, 264  ;;  %6886 = vbcast.lane.b32.xlu0 %v16770_v2, 256  ;;  %v1865_v15 = vadd.f32 %v18946_v21, %v18688_v16  ;;  %v1864_v6 = vadd.f32 %v18946_v21, %v18690_v46  ;;  %v1867_v61 = vadd.f32 %v18946_v21, %v18709_v30 }
 0x481   :  { %v8908_v33 = vrot.slane %v8907_v35, 4  ;;  %v8915_v60 = vadd.f32 %v8914_v23, %v8186_v39  ;;  %11508 = vrcp.f32 %v3905_v48  ;;  %v3904_v63 = vadd.f32 1.0, %v11491_v25  ;;  %v16781_v24 = vpop.permute.xlu1 %6669 }
 0x482   :  { %v11493_v14 = vpop.eup %11492  ;;  %11510 = vpow2.f32 %v9874_v26  ;;  %v9876_v28 = vmul.f32 -1.442695, %v1865_v15  ;;  %v9875_v47 = vmul.f32 -1.442695, %v1864_v6  ;;  %v9878_v29 = vmul.f32 -1.442695, %v1867_v61  ;;  %v16783_v34 = vpop.permute.xlu0 %6665 }
 0x483   :  { %v11495_v51 = vpop.eup %11494  ;;  %v8909_v7 = vadd.f32 %v8908_v33, %v8907_v35  ;;  %v7677_v9 = vmul.f32 %v11493_v14, %v16626_v13  ;;  %v8916_v52 = vadd.f32 %v8915_v60, %v8187_v41  ;;  %11512 = vrcp.f32 %v3904_v63 }
 0x484   :  { %v11497_v8 = vpop.eup %11496  ;;  %v7676_v23 = vmul.f32 %v11495_v51, %v16628_v50  ;;  %11514 = vpow2.f32 %v9873_v56  ;;  %6898 = vbcast.lane.b32.xlu1 %v16770_v2, 280  ;;  %6894 = vbcast.lane.b32.xlu0 %v16770_v2, 272  ;;  %v1866_v26 = vadd.f32 %v18946_v21, %v18798_v62  ;;  %v1869_v39 = vadd.f32 %v18946_v21, %v18799_v31 }
 0x485   :  { %v11499_v48 = vpop.eup %11498  ;;  %v8910_v35 = vrot.slane %v8909_v7, 2  ;;  %v8189_v13 = vmul.f32 %v7677_v9, %v14369_v1  ;;  %v3907_v41 = vadd.f32 1.0, %v11497_v8  ;;  %11516 = vpow2.f32 %v9876_v28 }
 0x486   :  { %v11501_v25 = vpop.eup %11500  ;;  %v8188_v50 = vmul.f32 %v7676_v23, %v14237_v45  ;;  %v7679_v56 = vmul.f32 %v11499_v48, %v16641_v42  ;;  %11518 = vpow2.f32 %v9875_v47  ;;  %v9877_v15 = vmul.f32 -1.442695, %v1866_v26 }
 0x487   :  { %v11503_v6 = vpop.eup %11502  ;;  %v8911_v61 = vadd.f32 %v8910_v35, %v8909_v7  ;;  %11520 = vrcp.f32 %v3907_v41  ;;  %v3906_v33 = vadd.f32 1.0, %v11501_v25  ;;  %v9880_v60 = vmul.f32 -1.442695, %v1869_v39 }
 0x488   :  { %v11505_v63 = vpop.eup %11504  ;;  %v8917_v14 = vadd.f32 %v8916_v52, %v8188_v50  ;;  %v8191_v51 = vmul.f32 %v7679_v56, %v14489_v10  ;;  %v3909_v0 = vadd.f32 1.0, %v11503_v6  ;;  %11522 = vpow2.f32 %v9878_v29  ;;  %6906 = vbcast.lane.b32.xlu1 %v16770_v2, 296  ;;  %6902 = vbcast.lane.b32.xlu0 %v16770_v2, 288  ;;  %v16799_v28 = vpop.permute.xlu1 %6680 }
 0x489   :  { %v16801_v42 = vpop.permute.xlu0 %6676  ;;  %v8912_v47 = vrot.slane %v8911_v61, 1  ;;  %11524 = vrcp.f32 %v3906_v33  ;;  %v3908_v7 = vadd.f32 1.0, %v11505_v63  ;;  %v1868_v9 = vadd.f32 %v18946_v21, %v18792_v4  ;;  %v18947_v33 = vld [vmem:[#allocation21_spill] sm:$0xff] }
 0x48a   :  { %v11507_v8 = vpop.eup %11506  ;;  %v8918_v52 = vadd.f32 %v8917_v14, %v8189_v13  ;;  %11526 = vrcp.f32 %v3909_v0  ;;  %v1871_v29 = vadd.f32 %v18946_v21, %v18672_v43  ;;  %v1870_v23 = vadd.f32 %v18946_v21, %v18674_v53 }
 0x48b   :  { %v11509_v26 = vpop.eup %11508  ;;  %v8913_v39 = vadd.f32 %v8912_v47, %v8911_v61  ;;  %v7678_v48 = vmul.f32 %v11507_v8, %v16643_v44  ;;  %11528 = vrcp.f32 %v3908_v7  ;;  %v9879_v35 = vmul.f32 -1.442695, %v1868_v9 }
 0x48c   :  { %v11511_v41 = vpop.eup %11510  ;;  %v7681_v25 = vmul.f32 %v11509_v26, %v16655_v18  ;;  %11530 = vpow2.f32 %v9877_v15  ;;  %6914 = vbcast.lane.b32.xlu1 %v16770_v2, 312  ;;  %6910 = vbcast.lane.b32.xlu0 %v16770_v2, 304  ;;  %v9882_v0 = vmul.f32 -1.442695, %v1871_v29  ;;  %v9881_v13 = vmul.f32 -1.442695, %v1870_v23  ;;  %v16813_v50 = vpop.permute.xlu1 %6688 }
 0x48d   :  { %v16815_v56 = vpop.permute.xlu0 %6684  ;;  %v11513_v21 = vpop.eup %11512  ;;  %v16819_v44 = vsel %vm9264_vm0, %v8913_v39, %v16740_v5  ;;  %v8190_v6 = vmul.f32 %v7678_v48, %v14471_v38  ;;  %v3911_v61 = vadd.f32 1.0, %v11511_v41  ;;  %11532 = vpow2.f32 %v9880_v60  ;;  %v18948_v5 = vld [vmem:[#allocation124_spill] sm:$0xff] }
 0x48e   :  { %v11515_v18 = vpop.eup %11514  ;;  %v8193_v15 = vmul.f32 %v7681_v25, %v18779_v3  ;;  %v7680_v2 = vmul.f32 %v11513_v21, %v16657_v19  ;;  %11534 = vpow2.f32 %v9879_v35  ;;  %v16826_v63 = vrot.slane %v16556_v12, %v18947_v33 }
 0x48f   :  { %v11517_v14 = vpop.eup %11516  ;;  %v8919_v47 = vadd.f32 %v8918_v52, %v8190_v6  ;;  %11536 = vrcp.f32 %v3911_v61  ;;  %v3910_v7 = vadd.f32 1.0, %v11515_v18  ;;  %v1873_v9 = vadd.f32 %v18948_v5, %v18688_v16 }
 0x490   :  { %v11519_v8 = vpop.eup %11518  ;;  %v8192_v60 = vmul.f32 %v7680_v2, %v18781_v58  ;;  %v3913_v29 = vadd.f32 1.0, %v11517_v14  ;;  %11538 = vpow2.f32 %v9882_v0  ;;  %6925 = vbcast.lane.b32.xlu1 %v16826_v63, 264  ;;  %6921 = vbcast.lane.b32.xlu0 %v16826_v63, 256  ;;  %v1872_v19 = vadd.f32 %v18948_v5, %v18690_v46  ;;  %v16835_v23 = vpop.permute.xlu1 %6696 }
 0x491   :  { %v16837_v52 = vpop.permute.xlu0 %6692  ;;  %v11521_v26 = vpop.eup %11520  ;;  %v8920_v39 = vadd.f32 %v8919_v47, %v8191_v51  ;;  %11540 = vrcp.f32 %v3910_v7  ;;  %v3912_v48 = vadd.f32 1.0, %v11519_v8  ;;  %v9884_v35 = vmul.f32 -1.442695, %v1873_v9 }
 0x492   :  { %v11523_v41 = vpop.eup %11522  ;;  %v8927_v25 = vadd.f32 %v8193_v15, %v8192_v60  ;;  %v7683_v0 = vmul.f32 %v11521_v26, %v16666_v40  ;;  %11542 = vrcp.f32 %v3913_v29  ;;  %v9883_v21 = vmul.f32 -1.442695, %v1872_v19 }
 0x493   :  { %v11525_v6 = vpop.eup %11524  ;;  %v8921_v61 = vrot.slane %v8920_v39, 4  ;;  %11544 = vrcp.f32 %v3912_v48  ;;  %v3915_v18 = vadd.f32 1.0, %v11523_v41  ;;  %v1875_v2 = vadd.f32 %v18948_v5, %v18709_v30 }
 0x494   :  { %v11527_v14 = vpop.eup %11526  ;;  %v8195_v33 = vmul.f32 %v7683_v0, %v18784_v49  ;;  %v7682_v51 = vmul.f32 %v11525_v6, %v16668_v11  ;;  %11546 = vpow2.f32 %v9881_v13  ;;  %6933 = vbcast.lane.b32.xlu1 %v16826_v63, 280  ;;  %6929 = vbcast.lane.b32.xlu0 %v16826_v63, 272  ;;  %v1874_v40 = vadd.f32 %v18948_v5, %v18798_v62  ;;  %v16848_v15 = vpop.permute.xlu1 %6704 }
 0x495   :  { %v16850_v47 = vpop.permute.xlu0 %6700  ;;  %v11529_v7 = vpop.eup %11528  ;;  %v8922_v9 = vadd.f32 %v8921_v61, %v8920_v39  ;;  %v7685_v8 = vmul.f32 %v11527_v14, %v16689_v54  ;;  %11548 = vrcp.f32 %v3915_v18  ;;  %v9886_v60 = vmul.f32 -1.442695, %v1875_v2 }
 0x496   :  { %18949 = vst [vmem:[#allocation196_spill] sm:$0xff] %v16850_v47  ;;  %v11531_v29 = vpop.eup %11530  ;;  %v8194_v11 = vmul.f32 %v7682_v51, %v14007_v57  ;;  %v7684_v13 = vmul.f32 %v11529_v7, %v16691_v59  ;;  %11550 = vpow2.f32 %v9884_v35  ;;  %v9885_v19 = vmul.f32 -1.442695, %v1874_v40 }
 0x497   :  { %v11533_v26 = vpop.eup %11532  ;;  %v8923_v48 = vrot.slane %v8922_v9, 2  ;;  %v8197_v41 = vmul.f32 %v7685_v8, %v14369_v1  ;;  %v3914_v0 = vadd.f32 1.0, %v11531_v29  ;;  %11552 = vpow2.f32 %v9883_v21 }
 0x498   :  { %v11535_v6 = vpop.eup %11534  ;;  %v8928_v47 = vadd.f32 %v8927_v25, %v8194_v11  ;;  %v8196_v39 = vmul.f32 %v7684_v13, %v14237_v45  ;;  %v3917_v54 = vadd.f32 1.0, %v11533_v26  ;;  %11554 = vpow2.f32 %v9886_v60  ;;  %6941 = vbcast.lane.b32.xlu1 %v16826_v63, 296  ;;  %6937 = vbcast.lane.b32.xlu0 %v16826_v63, 288  ;;  %v16859_v61 = vpop.permute.xlu1 %6715 }
 0x499   :  { %v16861_v59 = vpop.permute.xlu0 %6711  ;;  %v11537_v35 = vpop.eup %11536  ;;  %v8924_v18 = vadd.f32 %v8923_v48, %v8922_v9  ;;  %11556 = vrcp.f32 %v3914_v0  ;;  %v3916_v2 = vadd.f32 1.0, %v11535_v6  ;;  %v1877_v21 = vadd.f32 %v18948_v5, %v18799_v31 }
 0x49a   :  { %v11539_v25 = vpop.eup %11538  ;;  %v8929_v14 = vadd.f32 %v8928_v47, %v8195_v33  ;;  %v7687_v51 = vmul.f32 %v11537_v35, %v16713_v20  ;;  %11558 = vrcp.f32 %v3917_v54  ;;  %v1876_v40 = vadd.f32 %v18948_v5, %v18792_v4 }
 0x49b   :  { %v11541_v7 = vpop.eup %11540  ;;  %v8925_v8 = vrot.slane %v8924_v18, 1  ;;  %11560 = vrcp.f32 %v3916_v2  ;;  %v3919_v60 = vadd.f32 1.0, %v11539_v25  ;;  %v9888_v29 = vmul.f32 -1.442695, %v1877_v21 }
 0x49c   :  { %v11543_v11 = vpop.eup %11542  ;;  %v8930_v9 = vadd.f32 %v8929_v14, %v8196_v39  ;;  %v8199_v13 = vmul.f32 %v7687_v51, %v14489_v10  ;;  %v7686_v26 = vmul.f32 %v11541_v7, %v16715_v17  ;;  %11562 = vpow2.f32 %v9885_v19  ;;  %6949 = vbcast.lane.b32.xlu1 %v16826_v63, 312  ;;  %6945 = vbcast.lane.b32.xlu0 %v16826_v63, 304  ;;  %v16872_v20 = vpop.permute.xlu1 %6723 }
 0x49d   :  { %v16874_v33 = vpop.permute.xlu0 %6719  ;;  %v11545_v47 = vpop.eup %11544  ;;  %v8926_v48 = vadd.f32 %v8925_v8, %v8924_v18  ;;  %v7689_v0 = vmul.f32 %v11543_v11, %v16735_v32  ;;  %11564 = vrcp.f32 %v3919_v60  ;;  %v9887_v6 = vmul.f32 -1.442695, %v1876_v40  ;;  %v18950_v8 = vld [vmem:[#allocation22_spill] sm:$0xff] }
 0x49e   :  { %v11547_v39 = vpop.eup %11546  ;;  %v8198_v54 = vmul.f32 %v7686_v26, %v14471_v38  ;;  %v8931_v35 = vadd.f32 %v8930_v9, %v8197_v41  ;;  %v7688_v17 = vmul.f32 %v11545_v47, %v16737_v37  ;;  %11566 = vpow2.f32 %v9888_v29 }
 0x49f   :  { %v11549_v19 = vpop.eup %11548  ;;  %v16881_v63 = vsel %vm9266_vm1, %v8926_v48, %v16819_v44  ;;  %v8201_v2 = vmul.f32 %v7689_v0, %v18779_v3  ;;  %v3918_v21 = vadd.f32 1.0, %v11547_v39  ;;  %11568 = vpow2.f32 %v9887_v6 }
 0x4a0   :  { %v11551_v18 = vpop.eup %11550  ;;  %v8932_v32 = vadd.f32 %v8931_v35, %v8198_v54  ;;  %v8200_v25 = vmul.f32 %v7688_v17, %v18781_v58  ;;  %v7691_v14 = vmul.f32 %v11549_v19, %v16753_v27  ;;  %v1879_v41 = vadd.f32 %v18948_v5, %v18672_v43  ;;  %v16888_v37 = vpop.permute.xlu1 %6731 }
 0x4a1   :  { %v16890_v51 = vpop.permute.xlu0 %6727  ;;  %v11553_v40 = vpop.eup %11552  ;;  %11570 = vrcp.f32 %v3918_v21  ;;  %v3921_v44 = vadd.f32 1.0, %v11551_v18  ;;  %v1878_v7 = vadd.f32 %v18948_v5, %v18674_v53  ;;  %v16896_v60 = vrot.slane %v16556_v12, %v18950_v8 }
 0x4a2   :  { %v11555_v29 = vpop.eup %11554  ;;  %v8933_v11 = vadd.f32 %v8932_v32, %v8199_v13  ;;  %v8940_v27 = vadd.f32 %v8201_v2, %v8200_v25  ;;  %v8203_v9 = vmul.f32 %v7691_v14, %v18784_v49  ;;  %v3920_v26 = vadd.f32 1.0, %v11553_v40  ;;  %v18951_v13 = vld [vmem:[#allocation127_spill] sm:$0xff] }
 0x4a3   :  { %v11557_v47 = vpop.eup %11556  ;;  %11572 = vrcp.f32 %v3921_v44  ;;  %v3923_v48 = vadd.f32 1.0, %v11555_v29  ;;  %v9890_v0 = vmul.f32 -1.442695, %v1879_v41  ;;  %v9889_v6 = vmul.f32 -1.442695, %v1878_v7  ;;  %6960 = vbcast.lane.b32.xlu1 %v16896_v60, 264 }
 0x4a4   :  { %v11559_v39 = vpop.eup %11558  ;;  %v8934_v54 = vrot.slane %v8933_v11, 4  ;;  %v7690_v5 = vmul.f32 %v11557_v47, %v16755_v22  ;;  %11574 = vrcp.f32 %v3920_v26  ;;  %6956 = vbcast.lane.b32.xlu0 %v16896_v60, 256  ;;  %v1881_v35 = vadd.f32 %v18951_v13, %v18688_v16  ;;  %v16904_v17 = vpop.permute.xlu1 %6739 }
 0x4a5   :  { %v16906_v19 = vpop.permute.xlu0 %6735  ;;  %v11561_v2 = vpop.eup %11560  ;;  %v7693_v21 = vmul.f32 %v11559_v39, %v16763_v36  ;;  %11576 = vrcp.f32 %v3923_v48  ;;  %v1880_v18 = vadd.f32 %v18951_v13, %v18690_v46  ;;  %v1883_v22 = vadd.f32 %v18951_v13, %v18709_v30 }
 0x4a6   :  { %v11563_v32 = vpop.eup %11562  ;;  %v8935_v25 = vadd.f32 %v8934_v54, %v8933_v11  ;;  %v8202_v14 = vmul.f32 %v7690_v5, %v14007_v57  ;;  %v7692_v41 = vmul.f32 %v11561_v2, %v16765_v55  ;;  %11578 = vpow2.f32 %v9890_v0 }
 0x4a7   :  { %v11565_v40 = vpop.eup %11564  ;;  %v8205_v44 = vmul.f32 %v7693_v21, %v14369_v1  ;;  %v3922_v7 = vadd.f32 1.0, %v11563_v32  ;;  %11580 = vpow2.f32 %v9889_v6  ;;  %v9892_v36 = vmul.f32 -1.442695, %v1881_v35  ;;  %6968 = vbcast.lane.b32.xlu1 %v16896_v60, 280 }
 0x4a8   :  { %v11567_v29 = vpop.eup %11566  ;;  %v8936_v26 = vrot.slane %v8935_v25, 2  ;;  %v8941_v47 = vadd.f32 %v8940_v27, %v8202_v14  ;;  %v8204_v48 = vmul.f32 %v7692_v41, %v14237_v45  ;;  %v7695_v11 = vmul.f32 %v11565_v40, %v16781_v24  ;;  %6964 = vbcast.lane.b32.xlu0 %v16896_v60, 272 }
 0x4a9   :  { %v11569_v39 = vpop.eup %11568  ;;  %11582 = vrcp.f32 %v3922_v7  ;;  %v3925_v55 = vadd.f32 1.0, %v11567_v29  ;;  %v9891_v0 = vmul.f32 -1.442695, %v1880_v18  ;;  %v9894_v54 = vmul.f32 -1.442695, %v1883_v22  ;;  %v16920_v5 = vpop.permute.xlu1 %6750 }
 0x4aa   :  { %v16922_v6 = vpop.permute.xlu0 %6746  ;;  %v8937_v35 = vadd.f32 %v8936_v26, %v8935_v25  ;;  %v8942_v2 = vadd.f32 %v8941_v47, %v8203_v9  ;;  %v8207_v21 = vmul.f32 %v7695_v11, %v14489_v10  ;;  %v3924_v27 = vadd.f32 1.0, %v11569_v39 }
 0x4ab   :  { %v11571_v32 = vpop.eup %11570  ;;  %11584 = vrcp.f32 %v3925_v55  ;;  %v1882_v24 = vadd.f32 %v18951_v13, %v18798_v62  ;;  %6976 = vbcast.lane.b32.xlu1 %v16896_v60, 296  ;;  %v1885_v18 = vadd.f32 %v18951_v13, %v18799_v31  ;;  %v1884_v22 = vadd.f32 %v18951_v13, %v18792_v4 }
 0x4ac   :  { %v8938_v14 = vrot.slane %v8937_v35, 1  ;;  %v8943_v41 = vadd.f32 %v8942_v2, %v8204_v48  ;;  %v7694_v9 = vmul.f32 %v11571_v32, %v16783_v34  ;;  %11586 = vrcp.f32 %v3924_v27  ;;  %6972 = vbcast.lane.b32.xlu0 %v16896_v60, 288 }
 0x4ad   :  { %v11573_v25 = vpop.eup %11572  ;;  %11588 = vpow2.f32 %v9892_v36  ;;  %v9893_v40 = vmul.f32 -1.442695, %v1882_v24  ;;  %v9896_v7 = vmul.f32 -1.442695, %v1885_v18  ;;  %v9895_v29 = vmul.f32 -1.442695, %v1884_v22  ;;  %v16934_v26 = vpop.permute.xlu1 %6758 }
 0x4ae   :  { %v16936_v47 = vpop.permute.xlu0 %6754  ;;  %v11575_v11 = vpop.eup %11574  ;;  %v8939_v39 = vadd.f32 %v8938_v14, %v8937_v35  ;;  %v8206_v55 = vmul.f32 %v7694_v9, %v14471_v38  ;;  %v8944_v8 = vadd.f32 %v8943_v41, %v8205_v44  ;;  %v7697_v48 = vmul.f32 %v11573_v25, %v16799_v28 }
 0x4af   :  { %v11577_v34 = vpop.eup %11576  ;;  %v7696_v2 = vmul.f32 %v11575_v11, %v16801_v42  ;;  %11590 = vpow2.f32 %v9891_v0  ;;  %6984 = vbcast.lane.b32.xlu1 %v16896_v60, 312  ;;  %v1887_v36 = vadd.f32 %v18951_v13, %v18672_v43  ;;  %v1886_v27 = vadd.f32 %v18951_v13, %v18674_v53 }
 0x4b0   :  { %v11579_v32 = vpop.eup %11578  ;;  %v16948_v35 = vsel %vm9268_vm2, %v8939_v39, %v16881_v63  ;;  %v8945_v44 = vadd.f32 %v8944_v8, %v8206_v55  ;;  %v8209_v28 = vmul.f32 %v7697_v48, %v18779_v3  ;;  %v7699_v24 = vmul.f32 %v11577_v34, %v16813_v50  ;;  %6980 = vbcast.lane.b32.xlu0 %v16896_v60, 304  ;;  %v18952_v60 = vld [vmem:[#allocation23_spill] sm:$0xff] }
 0x4b1   :  { %v11581_v42 = vpop.eup %11580  ;;  %v8208_v0 = vmul.f32 %v7696_v2, %v18781_v58  ;;  %v3927_v18 = vadd.f32 1.0, %v11579_v32  ;;  %11592 = vpow2.f32 %v9894_v54  ;;  %v9898_v22 = vmul.f32 -1.442695, %v1887_v36  ;;  %v16955_v63 = vpop.permute.xlu1 %6766 }
 0x4b2   :  { %v8946_v14 = vadd.f32 %v8945_v44, %v8207_v21  ;;  %v8211_v13 = vmul.f32 %v7699_v24, %v18784_v49  ;;  %v3926_v41 = vadd.f32 1.0, %v11581_v42  ;;  %11594 = vpow2.f32 %v9893_v40  ;;  %v16957_v8 = vpop.permute.xlu0 %6762  ;;  %v18953_v21 = vld [vmem:[#allocation129_spill] sm:$0xff] }
 0x4b3   :  { %v11583_v9 = vpop.eup %11582  ;;  %v8953_v25 = vadd.f32 %v8209_v28, %v8208_v0  ;;  %11596 = vrcp.f32 %v3927_v18  ;;  %v9897_v50 = vmul.f32 -1.442695, %v1886_v27  ;;  %v16961_v11 = vrot.slane %v16556_v12, %v18952_v60 }
 0x4b4   :  { %v8947_v39 = vrot.slane %v8946_v14, 4  ;;  %v7698_v54 = vmul.f32 %v11583_v9, %v16815_v56  ;;  %11598 = vrcp.f32 %v3926_v41  ;;  %v1889_v55 = vadd.f32 %v18953_v21, %v18688_v16 }
 0x4b5   :  { %v11585_v40 = vpop.eup %11584  ;;  %11600 = vpow2.f32 %v9896_v7  ;;  %6995 = vbcast.lane.b32.xlu1 %v16961_v11, 264  ;;  %6991 = vbcast.lane.b32.xlu0 %v16961_v11, 256  ;;  %v1888_v48 = vadd.f32 %v18953_v21, %v18690_v46  ;;  %v1891_v34 = vadd.f32 %v18953_v21, %v18709_v30  ;;  %v1890_v2 = vadd.f32 %v18953_v21, %v18798_v62  ;;  %v16978_v9 = vpop.permute.xlu1 %6774 }
 0x4b6   :  { %v11587_v56 = vpop.eup %11586  ;;  %v8948_v36 = vadd.f32 %v8947_v39, %v8946_v14  ;;  %v8210_v27 = vmul.f32 %v7698_v54, %v14007_v57  ;;  %v7701_v32 = vmul.f32 %v11585_v40, %v16835_v23  ;;  %11602 = vpow2.f32 %v9895_v29  ;;  %v16980_v60 = vpop.permute.xlu0 %6770 }
 0x4b7   :  { %v11589_v7 = vpop.eup %11588  ;;  %v7700_v44 = vmul.f32 %v11587_v56, %v16837_v52  ;;  %11604 = vpow2.f32 %v9898_v22  ;;  %v9900_v28 = vmul.f32 -1.442695, %v1889_v55  ;;  %v9899_v24 = vmul.f32 -1.442695, %v1888_v48 }
 0x4b8   :  { %v8949_v42 = vrot.slane %v8948_v36, 2  ;;  %v8954_v0 = vadd.f32 %v8953_v25, %v8210_v27  ;;  %v8213_v18 = vmul.f32 %v7701_v32, %v14369_v1  ;;  %v3929_v41 = vadd.f32 1.0, %v11589_v7 }
 0x4b9   :  { %v11591_v14 = vpop.eup %11590  ;;  %v8212_v39 = vmul.f32 %v7700_v44, %v14237_v45  ;;  %11606 = vpow2.f32 %v9897_v50  ;;  %7003 = vbcast.lane.b32.xlu1 %v16961_v11, 280  ;;  %6999 = vbcast.lane.b32.xlu0 %v16961_v11, 272  ;;  %v9902_v23 = vmul.f32 -1.442695, %v1891_v34  ;;  %v9901_v52 = vmul.f32 -1.442695, %v1890_v2 }
 0x4ba   :  { %v8950_v29 = vadd.f32 %v8949_v42, %v8948_v36  ;;  %v8955_v22 = vadd.f32 %v8954_v0, %v8211_v13  ;;  %11608 = vrcp.f32 %v3929_v41  ;;  %v3928_v25 = vadd.f32 1.0, %v11591_v14 }
 0x4bb   :  { %v11593_v54 = vpop.eup %11592  ;;  %11610 = vpow2.f32 %v9900_v28  ;;  %v1893_v55 = vadd.f32 %v18953_v21, %v18799_v31  ;;  %v1892_v40 = vadd.f32 %v18953_v21, %v18792_v4  ;;  %v1895_v50 = vadd.f32 %v18953_v21, %v18672_v43 }
 0x4bc   :  { %v11595_v48 = vpop.eup %11594  ;;  %v8951_v56 = vrot.slane %v8950_v29, 1  ;;  %v8956_v27 = vadd.f32 %v8955_v22, %v8212_v39  ;;  %11612 = vrcp.f32 %v3928_v25  ;;  %v3931_v34 = vadd.f32 1.0, %v11593_v54 }
 0x4bd   :  { %v11597_v2 = vpop.eup %11596  ;;  %v3930_v13 = vadd.f32 1.0, %v11595_v48  ;;  %11614 = vpow2.f32 %v9899_v24  ;;  %7011 = vbcast.lane.b32.xlu1 %v16961_v11, 296  ;;  %7007 = vbcast.lane.b32.xlu0 %v16961_v11, 288  ;;  %v9904_v36 = vmul.f32 -1.442695, %v1893_v55  ;;  %v1894_v32 = vadd.f32 %v18953_v21, %v18674_v53  ;;  %v18954_v24 = vld [vmem:[#allocation196_spill] sm:$0xff] }
 0x4be   :  { %v11599_v7 = vpop.eup %11598  ;;  %v8952_v44 = vadd.f32 %v8951_v56, %v8950_v29  ;;  %v7703_v28 = vmul.f32 %v11597_v2, %v16848_v15  ;;  %v8957_v42 = vadd.f32 %v8956_v27, %v8213_v18  ;;  %11616 = vrcp.f32 %v3931_v34  ;;  %v16996_v0 = vpop.permute.xlu1 %6785  ;;  %v18955_v56 = vld [vmem:[#allocation24_spill] sm:$0xff]  ;;  %v18956_v27 = vld [vmem:[#allocation130_spill] sm:$0xff] }
 0x4bf   :  { %v16998_v41 = vpop.permute.xlu0 %6781  ;;  %v11601_v14 = vpop.eup %11600  ;;  %v7702_v39 = vmul.f32 %v11599_v7, %v18954_v24  ;;  %11618 = vrcp.f32 %v3930_v13  ;;  %v9903_v22 = vmul.f32 -1.442695, %v1892_v40  ;;  %v9906_v25 = vmul.f32 -1.442695, %v1895_v50 }
 0x4c0   :  { %v11603_v54 = vpop.eup %11602  ;;  %v17003_v21 = vsel %vm9270_vm3, %v8952_v44, %v16948_v35  ;;  %v8215_v29 = vmul.f32 %v7703_v28, %v14489_v10  ;;  %v3933_v15 = vadd.f32 1.0, %v11601_v14  ;;  %11620 = vpow2.f32 %v9902_v23 }
 0x4c1   :  { %v11605_v18 = vpop.eup %11604  ;;  %v8214_v55 = vmul.f32 %v7702_v39, %v14471_v38  ;;  %v3932_v48 = vadd.f32 1.0, %v11603_v54  ;;  %11622 = vpow2.f32 %v9901_v52  ;;  %7019 = vbcast.lane.b32.xlu1 %v16961_v11, 312  ;;  %7015 = vbcast.lane.b32.xlu0 %v16961_v11, 304  ;;  %v9905_v40 = vmul.f32 -1.442695, %v1894_v32 }
 0x4c2   :  { %11624 = vrcp.f32 %v3933_v15  ;;  %v3935_v50 = vadd.f32 1.0, %v11605_v18  ;;  %v17011_v35 = vrot.slane %v16556_v12, %v18955_v56  ;;  %v1897_v34 = vadd.f32 %v18956_v27, %v18688_v16  ;;  %v17015_v23 = vpop.permute.xlu1 %6793 }
 0x4c3   :  { %v17017_v2 = vpop.permute.xlu0 %6789  ;;  %v11607_v13 = vpop.eup %11606  ;;  %v8958_v52 = vadd.f32 %v8957_v42, %v8214_v55  ;;  %11626 = vrcp.f32 %v3932_v48  ;;  %v1896_v11 = vadd.f32 %v18956_v27, %v18690_v46  ;;  %v1899_v32 = vadd.f32 %v18956_v27, %v18709_v30 }
 0x4c4   :  { %v11609_v7 = vpop.eup %11608  ;;  %11628 = vrcp.f32 %v3935_v50  ;;  %v3934_v12 = vadd.f32 1.0, %v11607_v13  ;;  %v17023_v44 = vmul.f32 -1.442695, %v1897_v34  ;;  %v1898_v28 = vadd.f32 %v18956_v27, %v18798_v62 }
 0x4c5   :  { %v11611_v14 = vpop.eup %11610  ;;  %v8959_v24 = vadd.f32 %v8958_v52, %v8215_v29  ;;  %v7705_v39 = vmul.f32 %v11609_v7, %v16859_v61  ;;  %11630 = vpow2.f32 %v9904_v36  ;;  %7030 = vbcast.lane.b32.xlu1 %v17011_v35, 264  ;;  %7026 = vbcast.lane.b32.xlu0 %v17011_v35, 256  ;;  %v17030_v42 = vmul.f32 -1.442695, %v1896_v11 }
 0x4c6   :  { %v11613_v54 = vpop.eup %11612  ;;  %11632 = vrcp.f32 %v3934_v12  ;;  %v3937_v15 = vadd.f32 1.0, %v11611_v14  ;;  %v17032_v18 = vmul.f32 -1.442695, %v1899_v32  ;;  %v17034_v55 = vmul.f32 -1.442695, %v1898_v28  ;;  %v17036_v48 = vpop.permute.xlu1 %6801 }
 0x4c7   :  { %v17038_v50 = vpop.permute.xlu0 %6797  ;;  %v11615_v29 = vpop.eup %11614  ;;  %v8960_v61 = vrot.slane %v8959_v24, 4  ;;  %v8217_v36 = vmul.f32 %v7705_v39, %v18779_v3  ;;  %v7704_v34 = vmul.f32 %v11613_v54, %v16861_v59  ;;  %11634 = vpow2.f32 %v9903_v22 }
 0x4c8   :  { %18957 = vst [vmem:[#allocation150_spill] sm:$0xff] %v17038_v50  ;;  %v11617_v13 = vpop.eup %11616  ;;  %11636 = vrcp.f32 %v3937_v15  ;;  %v3936_v52 = vadd.f32 1.0, %v11615_v29  ;;  %v1901_v11 = vadd.f32 %v18956_v27, %v18799_v31  ;;  %v1900_v32 = vadd.f32 %v18956_v27, %v18792_v4 }
 0x4c9   :  { %v11619_v7 = vpop.eup %11618  ;;  %v8961_v12 = vadd.f32 %v8960_v61, %v8959_v24  ;;  %v8216_v28 = vmul.f32 %v7704_v34, %v18781_v58  ;;  %v7707_v14 = vmul.f32 %v11617_v13, %v16872_v20  ;;  %11638 = vpow2.f32 %v9906_v25  ;;  %7038 = vbcast.lane.b32.xlu1 %v17011_v35, 280  ;;  %7034 = vbcast.lane.b32.xlu0 %v17011_v35, 272 }
 0x4ca   :  { %v11621_v59 = vpop.eup %11620  ;;  %v7706_v22 = vmul.f32 %v11619_v7, %v16874_v33  ;;  %11640 = vrcp.f32 %v3936_v52  ;;  %v17051_v39 = vmul.f32 -1.442695, %v1901_v11  ;;  %v17053_v54 = vmul.f32 -1.442695, %v1900_v32  ;;  %v17055_v15 = vpop.permute.xlu1 %6809 }
 0x4cb   :  { %v17057_v24 = vpop.permute.xlu0 %6805  ;;  %v11623_v29 = vpop.eup %11622  ;;  %v8962_v61 = vrot.slane %v8961_v12, 2  ;;  %v8966_v20 = vadd.f32 %v8217_v36, %v8216_v28  ;;  %v8219_v25 = vmul.f32 %v7707_v14, %v18784_v49  ;;  %v3939_v34 = vadd.f32 1.0, %v11621_v59 }
 0x4cc   :  { %v11625_v13 = vpop.eup %11624  ;;  %v8218_v56 = vmul.f32 %v7706_v22, %v14007_v57  ;;  %v3938_v50 = vadd.f32 1.0, %v11623_v29  ;;  %11642 = vpow2.f32 %v9905_v40  ;;  %v1903_v33 = vadd.f32 %v18956_v27, %v18672_v43 }
 0x4cd   :  { %v11627_v52 = vpop.eup %11626  ;;  %v8963_v11 = vadd.f32 %v8962_v61, %v8961_v12  ;;  %v7709_v32 = vmul.f32 %v11625_v13, %v16888_v37  ;;  %11644 = vrcp.f32 %v3939_v34  ;;  %7046 = vbcast.lane.b32.xlu1 %v17011_v35, 296  ;;  %7042 = vbcast.lane.b32.xlu0 %v17011_v35, 288  ;;  %v1902_v36 = vadd.f32 %v18956_v27, %v18674_v53 }
 0x4ce   :  { %v11629_v7 = vpop.eup %11628  ;;  %v8967_v28 = vadd.f32 %v8966_v20, %v8218_v56  ;;  %v7708_v14 = vmul.f32 %v11627_v52, %v16890_v51  ;;  %11646 = vrcp.f32 %v3938_v50  ;;  %v9914_v40 = vmul.f32 -1.442695, %v1903_v33  ;;  %v17069_v59 = vpop.permute.xlu1 %6820 }
 0x4cf   :  { %v17071_v22 = vpop.permute.xlu0 %6816  ;;  %v11631_v12 = vpop.eup %11630  ;;  %v8964_v37 = vrot.slane %v8963_v11, 1  ;;  %v8221_v29 = vmul.f32 %v7709_v32, %v14369_v1  ;;  %v7711_v61 = vmul.f32 %v11629_v7, %v16904_v17  ;;  %11648 = vpow2.f32 %v17023_v44 }
 0x4d0   :  { %v11633_v34 = vpop.eup %11632  ;;  %v8220_v27 = vmul.f32 %v7708_v14, %v14237_v45  ;;  %v8968_v56 = vadd.f32 %v8967_v28, %v8219_v25  ;;  %v3941_v20 = vadd.f32 1.0, %v11631_v12  ;;  %11650 = vpow2.f32 %v17030_v42 }
 0x4d1   :  { %v11635_v51 = vpop.eup %11634  ;;  %v8965_v50 = vadd.f32 %v8964_v37, %v8963_v11  ;;  %v8223_v13 = vmul.f32 %v7711_v61, %v14489_v10  ;;  %v7710_v33 = vmul.f32 %v11633_v34, %v16906_v19  ;;  %11652 = vpow2.f32 %v17032_v18  ;;  %7054 = vbcast.lane.b32.xlu1 %v17011_v35, 312  ;;  %7050 = vbcast.lane.b32.xlu0 %v17011_v35, 304 }
 0x4d2   :  { %v11637_v17 = vpop.eup %11636  ;;  %v8969_v44 = vadd.f32 %v8968_v56, %v8220_v27  ;;  %11654 = vrcp.f32 %v3941_v20  ;;  %v3940_v52 = vadd.f32 1.0, %v11635_v51  ;;  %v9913_v25 = vmul.f32 -1.442695, %v1902_v36  ;;  %v17083_v32 = vpop.permute.xlu1 %6828  ;;  %v12170_v36 = vld [vmem:[#allocation9 + $0x18] sm:$0xff]  }
 0x4d3   :  { %v17085_v42 = vpop.permute.xlu0 %6824  ;;  %v11639_v11 = vpop.eup %11638  ;;  %v17089_v7 = vsel %vm9272_vm4, %v8965_v50, %v17003_v21  ;;  %v8222_v19 = vmul.f32 %v7710_v33, %v14471_v38  ;;  %v7713_v18 = vmul.f32 %v11637_v17, %v16920_v5  ;;  %11656 = vpow2.f32 %v17034_v55  ;;  %v18958_v21 = vld [vmem:[#allocation133_spill] sm:$0xff] }
 0x4d4   :  { %v11641_v35 = vpop.eup %11640  ;;  %v8970_v28 = vadd.f32 %v8969_v44, %v8221_v29  ;;  %11658 = vrcp.f32 %v3940_v52  ;;  %v3943_v14 = vadd.f32 1.0, %v11639_v11  ;;  %v17094_v12 = vunpack.c.h.bf16 %v12170_v36  ;;  %v18959_v55 = vld [vmem:[#allocation17_spill] sm:$0xff] }
 0x4d5   :  { %v8225_v37 = vmul.f32 %v7713_v18, %v18779_v3  ;;  %v7712_v61 = vmul.f32 %v11641_v35, %v16922_v6  ;;  %11660 = vpow2.f32 %v17051_v39  ;;  %v1905_v34 = vadd.f32 %v18958_v21, %v18688_v16 }
 0x4d6   :  { %v11643_v27 = vpop.eup %11642  ;;  %v8971_v5 = vadd.f32 %v8970_v28, %v8222_v19  ;;  %11662 = vrcp.f32 %v3943_v14  ;;  %v17103_v29 = vrot.slane %v17094_v12, %v18959_v55  ;;  %v1904_v56 = vadd.f32 %v18958_v21, %v18690_v46  ;;  %v17107_v20 = vpop.permute.xlu1 %6836 }
 0x4d7   :  { %v17109_v51 = vpop.permute.xlu0 %6832  ;;  %v11645_v6 = vpop.eup %11644  ;;  %v8224_v39 = vmul.f32 %v7712_v61, %v18781_v58  ;;  %v3942_v50 = vadd.f32 1.0, %v11643_v27  ;;  %11664 = vpow2.f32 %v17053_v54  ;;  %v9916_v33 = vmul.f32 -1.442695, %v1905_v34 }
 0x4d8   :  { %v11647_v17 = vpop.eup %11646  ;;  %v8972_v44 = vadd.f32 %v8971_v5, %v8223_v13  ;;  %v7715_v52 = vmul.f32 %v11645_v6, %v16934_v26  ;;  %11666 = vpow2.f32 %v9914_v40  ;;  %7065 = vbcast.lane.b32.xlu1 %v17103_v29, 264  ;;  %7061 = vbcast.lane.b32.xlu0 %v17103_v29, 256  ;;  %v9915_v11 = vmul.f32 -1.442695, %v1904_v56 }
 0x4d9   :  { %v11649_v19 = vpop.eup %11648  ;;  %v8979_v18 = vadd.f32 %v8225_v37, %v8224_v39  ;;  %v7714_v35 = vmul.f32 %v11647_v17, %v16936_v47  ;;  %11668 = vrcp.f32 %v3942_v50  ;;  %v1907_v28 = vadd.f32 %v18958_v21, %v18709_v30 }
 0x4da   :  { %v11651_v54 = vpop.eup %11650  ;;  %v8973_v14 = vrot.slane %v8972_v44, 4  ;;  %v8227_v13 = vmul.f32 %v7715_v52, %v18784_v49  ;;  %v3945_v36 = vadd.f32 1.0, %v11649_v19  ;;  %11670 = vpow2.f32 %v9913_v25  ;;  %v17120_v26 = vpop.permute.xlu1 %6844 }
 0x4db   :  { %v17122_v40 = vpop.permute.xlu0 %6840  ;;  %v11653_v61 = vpop.eup %11652  ;;  %v8226_v34 = vmul.f32 %v7714_v35, %v14007_v57  ;;  %v3944_v37 = vadd.f32 1.0, %v11651_v54  ;;  %11672 = vpow2.f32 %v9916_v33  ;;  %v9918_v47 = vmul.f32 -1.442695, %v1907_v28 }
 0x4dc   :  { %v11655_v27 = vpop.eup %11654  ;;  %v8974_v5 = vadd.f32 %v8973_v14, %v8972_v44  ;;  %11674 = vrcp.f32 %v3945_v36  ;;  %v3947_v56 = vadd.f32 1.0, %v11653_v61  ;;  %7073 = vbcast.lane.b32.xlu1 %v17103_v29, 280  ;;  %7069 = vbcast.lane.b32.xlu0 %v17103_v29, 272  ;;  %v1906_v25 = vadd.f32 %v18958_v21, %v18798_v62 }
 0x4dd   :  { %v11657_v6 = vpop.eup %11656  ;;  %v8980_v39 = vadd.f32 %v8979_v18, %v8226_v34  ;;  %v7717_v50 = vmul.f32 %v11655_v27, %v16955_v63  ;;  %11676 = vrcp.f32 %v3944_v37  ;;  %v1909_v33 = vadd.f32 %v18958_v21, %v18799_v31 }
 0x4de   :  { %v11659_v17 = vpop.eup %11658  ;;  %v8975_v52 = vrot.slane %v8974_v5, 2  ;;  %11678 = vrcp.f32 %v3947_v56  ;;  %v3946_v44 = vadd.f32 1.0, %v11657_v6  ;;  %v9917_v19 = vmul.f32 -1.442695, %v1906_v25  ;;  %v17132_v35 = vpop.permute.xlu1 %6855 }
 0x4df   :  { %v17134_v28 = vpop.permute.xlu0 %6851  ;;  %v11661_v54 = vpop.eup %11660  ;;  %v8229_v14 = vmul.f32 %v7717_v50, %v14369_v1  ;;  %v7716_v18 = vmul.f32 %v11659_v17, %v16957_v8  ;;  %v8981_v36 = vadd.f32 %v8980_v39, %v8227_v13  ;;  %11680 = vpow2.f32 %v9915_v11 }
 0x4e0   :  { %v11663_v63 = vpop.eup %11662  ;;  %v8976_v61 = vadd.f32 %v8975_v52, %v8974_v5  ;;  %11682 = vrcp.f32 %v3946_v44  ;;  %v3949_v34 = vadd.f32 1.0, %v11661_v54  ;;  %7081 = vbcast.lane.b32.xlu1 %v17103_v29, 296  ;;  %7077 = vbcast.lane.b32.xlu0 %v17103_v29, 288  ;;  %v9920_v37 = vmul.f32 -1.442695, %v1909_v33 }
 0x4e1   :  { %v11665_v27 = vpop.eup %11664  ;;  %v8228_v56 = vmul.f32 %v7716_v18, %v14237_v45  ;;  %v7719_v25 = vmul.f32 %v11663_v63, %v16978_v9  ;;  %11684 = vpow2.f32 %v9918_v47  ;;  %v1908_v8 = vadd.f32 %v18958_v21, %v18792_v4 }
 0x4e2   :  { %v11667_v13 = vpop.eup %11666  ;;  %v8977_v11 = vrot.slane %v8976_v61, 1  ;;  %11686 = vrcp.f32 %v3949_v34  ;;  %v3948_v5 = vadd.f32 1.0, %v11665_v27  ;;  %v1911_v6 = vadd.f32 %v18958_v21, %v18672_v43  ;;  %v17146_v39 = vpop.permute.xlu1 %6863 }
 0x4e3   :  { %v17148_v50 = vpop.permute.xlu0 %6859  ;;  %v11669_v33 = vpop.eup %11668  ;;  %v8982_v17 = vadd.f32 %v8981_v36, %v8228_v56  ;;  %v8231_v52 = vmul.f32 %v7719_v25, %v14489_v10  ;;  %v3951_v9 = vadd.f32 1.0, %v11667_v13  ;;  %11688 = vpow2.f32 %v9917_v19  ;;  %v18961_v13 = vld [vmem:[#allocation18_spill] sm:$0xff] }
 0x4e4   :  { %18960 = vst [vmem:[#allocation197_spill] sm:$0xff] %v17148_v50  ;;  %v11671_v47 = vpop.eup %11670  ;;  %v8978_v44 = vadd.f32 %v8977_v11, %v8976_v61  ;;  %v7718_v54 = vmul.f32 %v11669_v33, %v16980_v60  ;;  %11690 = vrcp.f32 %v3948_v5  ;;  %v9919_v18 = vmul.f32 -1.442695, %v1908_v8  ;;  %7089 = vbcast.lane.b32.xlu1 %v17103_v29, 312  ;;  %7085 = vbcast.lane.b32.xlu0 %v17103_v29, 304 }
 0x4e5   :  { %v11673_v63 = vpop.eup %11672  ;;  %v8983_v34 = vadd.f32 %v8982_v17, %v8229_v14  ;;  %11692 = vrcp.f32 %v3951_v9  ;;  %v3950_v27 = vadd.f32 1.0, %v11671_v47  ;;  %v9922_v50 = vmul.f32 -1.442695, %v1911_v6 }
 0x4e6   :  { %v11675_v36 = vpop.eup %11674  ;;  %v17156_v56 = vsel %vm9274_vm5, %v8978_v44, %v17089_v7  ;;  %v8230_v19 = vmul.f32 %v7718_v54, %v14471_v38  ;;  %v3953_v61 = vadd.f32 1.0, %v11673_v63  ;;  %11694 = vpow2.f32 %v9920_v37  ;;  %v17159_v60 = vpop.permute.xlu1 %6871  ;;  %v18962_v37 = vld [vmem:[#allocation134_spill] sm:$0xff] }
 0x4e7   :  { %v17161_v25 = vpop.permute.xlu0 %6867  ;;  %v11677_v8 = vpop.eup %11676  ;;  %v7721_v29 = vmul.f32 %v11675_v36, %v16996_v0  ;;  %11696 = vrcp.f32 %v3950_v27  ;;  %v1910_v14 = vadd.f32 %v18958_v21, %v18674_v53  ;;  %v17168_v11 = vrot.slane %v17094_v12, %v18961_v13 }
 0x4e8   :  { %v11679_v7 = vpop.eup %11678  ;;  %v8984_v5 = vadd.f32 %v8983_v34, %v8230_v19  ;;  %v7720_v6 = vmul.f32 %v11677_v8, %v16998_v41  ;;  %11698 = vrcp.f32 %v3953_v61  ;;  %v1913_v33 = vadd.f32 %v18962_v37, %v18688_v16 }
 0x4e9   :  { %v11681_v17 = vpop.eup %11680  ;;  %v8233_v9 = vmul.f32 %v7721_v29, %v18779_v3  ;;  %v7723_v0 = vmul.f32 %v11679_v7, %v17015_v23  ;;  %11700 = vpow2.f32 %v9919_v18  ;;  %v9921_v47 = vmul.f32 -1.442695, %v1910_v14  ;;  %7100 = vbcast.lane.b32.xlu1 %v17168_v11, 264  ;;  %7096 = vbcast.lane.b32.xlu0 %v17168_v11, 256 }
 0x4ea   :  { %v11683_v21 = vpop.eup %11682  ;;  %v8985_v44 = vadd.f32 %v8984_v5, %v8231_v52  ;;  %v8232_v54 = vmul.f32 %v7720_v6, %v18781_v58  ;;  %v3952_v41 = vadd.f32 1.0, %v11681_v17  ;;  %11702 = vpow2.f32 %v9922_v50  ;;  %v17180_v8 = vpop.permute.xlu1 %6879  ;;  %v18963_v6 = vld [vmem:[#allocation19_spill] sm:$0xff] }
 0x4eb   :  { %v11685_v63 = vpop.eup %11684  ;;  %v8235_v34 = vmul.f32 %v7723_v0, %v18784_v49  ;;  %v7722_v27 = vmul.f32 %v11683_v21, %v17017_v2  ;;  %11704 = vpow2.f32 %v9921_v47  ;;  %v9924_v36 = vmul.f32 -1.442695, %v1913_v33  ;;  %v17182_v29 = vpop.permute.xlu0 %6875  ;;  %v18964_v47 = vld [vmem:[#allocation150_spill] sm:$0xff] }
 0x4ec   :  { %v11687_v23 = vpop.eup %11686  ;;  %v8986_v18 = vrot.slane %v8985_v44, 4  ;;  %v8992_v19 = vadd.f32 %v8233_v9, %v8232_v54  ;;  %11706 = vrcp.f32 %v3952_v41  ;;  %v3955_v61 = vadd.f32 1.0, %v11685_v63 }
 0x4ed   :  { %v11689_v52 = vpop.eup %11688  ;;  %v8234_v14 = vmul.f32 %v7722_v27, %v14007_v57  ;;  %v7725_v50 = vmul.f32 %v11687_v23, %v17036_v48  ;;  %11708 = vpow2.f32 %v9924_v36  ;;  %v1912_v2 = vadd.f32 %v18962_v37, %v18690_v46  ;;  %7104 = vbcast.lane.b32.xlu0 %v17168_v11, 272 }
 0x4ee   :  { %v11691_v13 = vpop.eup %11690  ;;  %v8987_v7 = vadd.f32 %v8986_v18, %v8985_v44  ;;  %11710 = vrcp.f32 %v3955_v61  ;;  %v3954_v5 = vadd.f32 1.0, %v11689_v52  ;;  %v17191_v33 = vrot.slane %v17094_v12, %v18963_v6 }
 0x4ef   :  { %v11693_v17 = vpop.eup %11692  ;;  %v8993_v9 = vadd.f32 %v8992_v19, %v8234_v14  ;;  %v8237_v0 = vmul.f32 %v7725_v50, %v14369_v1  ;;  %v7724_v48 = vmul.f32 %v11691_v13, %v18964_v47  ;;  %v9923_v21 = vmul.f32 -1.442695, %v1912_v2 }
 0x4f0   :  { %v11695_v54 = vpop.eup %11694  ;;  %v8988_v41 = vrot.slane %v8987_v7, 2  ;;  %v7727_v63 = vmul.f32 %v11693_v17, %v17055_v15  ;;  %11712 = vrcp.f32 %v3954_v5  ;;  %7131 = vbcast.lane.b32.xlu1 %v17191_v33, 256  ;;  %v1915_v44 = vadd.f32 %v18962_v37, %v18709_v30 }
 0x4f1   :  { %v11697_v27 = vpop.eup %11696  ;;  %v8236_v36 = vmul.f32 %v7724_v48, %v14237_v45  ;;  %v8994_v23 = vadd.f32 %v8993_v9, %v8235_v34  ;;  %v3957_v18 = vadd.f32 1.0, %v11695_v54  ;;  %11714 = vpow2.f32 %v9923_v21  ;;  %7135 = vbcast.lane.b32.xlu0 %v17191_v33, 264 }
 0x4f2   :  { %v11699_v19 = vpop.eup %11698  ;;  %v8989_v61 = vadd.f32 %v8988_v41, %v8987_v7  ;;  %v8239_v52 = vmul.f32 %v7727_v63, %v14489_v10  ;;  %v7726_v15 = vmul.f32 %v11697_v27, %v17057_v24  ;;  %v9926_v14 = vmul.f32 -1.442695, %v1915_v44  ;;  %v17203_v50 = vpop.permute.xlu1 %6890  ;;  %v18965_v27 = vld [vmem:[#allocation20_spill] sm:$0xff] }
 0x4f3   :  { %v17205_v2 = vpop.permute.xlu0 %6886  ;;  %v11701_v13 = vpop.eup %11700  ;;  %v8995_v5 = vadd.f32 %v8994_v23, %v8236_v36  ;;  %v7729_v6 = vmul.f32 %v11699_v19, %v17069_v59  ;;  %11716 = vrcp.f32 %v3957_v18  ;;  %v1914_v34 = vadd.f32 %v18962_v37, %v18798_v62 }
 0x4f4   :  { %v11703_v17 = vpop.eup %11702  ;;  %v8990_v9 = vrot.slane %v8989_v61, 1  ;;  %v8238_v7 = vmul.f32 %v7726_v15, %v14471_v38  ;;  %v3956_v47 = vadd.f32 1.0, %v11701_v13  ;;  %11718 = vpow2.f32 %v9926_v14 }
 0x4f5   :  { %v11705_v24 = vpop.eup %11704  ;;  %v8996_v48 = vadd.f32 %v8995_v5, %v8237_v0  ;;  %v8241_v21 = vmul.f32 %v7729_v6, %v18779_v3  ;;  %v3959_v54 = vadd.f32 1.0, %v11703_v17  ;;  %v9925_v41 = vmul.f32 -1.442695, %v1914_v34  ;;  %v18966_v34 = vld [vmem:[#allocation116_spill] sm:$0xff] }
 0x4f6   :  { %v11707_v63 = vpop.eup %11706  ;;  %v8991_v44 = vadd.f32 %v8990_v9, %v8989_v61  ;;  %11720 = vrcp.f32 %v3956_v47  ;;  %v3958_v59 = vadd.f32 1.0, %v11705_v24  ;;  %v17214_v36 = vrot.slane %v17094_v12, %v18965_v27  ;;  %v17216_v23 = vpop.permute.xlu1 %6898 }
 0x4f7   :  { %v17218_v18 = vpop.permute.xlu0 %6894  ;;  %v11709_v19 = vpop.eup %11708  ;;  %v8997_v15 = vadd.f32 %v8996_v48, %v8238_v7  ;;  %v7728_v0 = vmul.f32 %v11707_v63, %v17071_v22  ;;  %11722 = vrcp.f32 %v3959_v54  ;;  %v1917_v14 = vadd.f32 %v18962_v37, %v18799_v31 }
 0x4f8   :  { %v11711_v13 = vpop.eup %11710  ;;  %v9312_v61 = vsel %vm9276_vm6, %v8991_v44, %v17156_v56  ;;  %11724 = vrcp.f32 %v3958_v59  ;;  %v3961_v5 = vadd.f32 1.0, %v11709_v19  ;;  %7166 = vbcast.lane.b32.xlu1 %v17214_v36, 256  ;;  %v1916_v6 = vadd.f32 %v18962_v37, %v18792_v4  ;;  %7170 = vbcast.lane.b32.xlu0 %v17214_v36, 264  ;;  %v18968_v56 = vld [vmem:[#allocation128_spill] sm:$0xff] }
 0x4f9   :  { %v17230_v17 = vadd.f32 %v9312_v61, %v18966_v34  ;;  %v8998_v22 = vadd.f32 %v8997_v15, %v8239_v52  ;;  %v8240_v9 = vmul.f32 %v7728_v0, %v18781_v58  ;;  %v7731_v7 = vmul.f32 %v11711_v13, %v17083_v32  ;;  %v18970_v52 = vld [vmem:[#allocation122_spill] sm:$0xff] }
 0x4fa   :  { %v11713_v47 = vpop.eup %11712  ;;  %v17236_v24 = vrot.slane %v18968_v56, %v18959_v55  ;;  %11726 = vrcp.f32 %v3961_v5  ;;  %v9928_v48 = vmul.f32 -1.442695, %v1917_v14  ;;  %v1919_v54 = vadd.f32 %v18962_v37, %v18672_v43  ;;  %v17240_v63 = vpop.permute.xlu1 %6906 }
 0x4fb   :  { %18967 = vst [vmem:[#allocation175_spill] sm:$0xff] %v17230_v17  ;;  %v17242_v44 = vpop.permute.xlu0 %6902  ;;  %v11715_v59 = vpop.eup %11714  ;;  %v18971_v27 = vcombine.high %v18970_v52, %v18970_v52  ;;  %v8999_v19 = vrot.slane %v8998_v22, 4  ;;  %v9005_v15 = vadd.f32 %v8241_v21, %v8240_v9  ;;  %v9927_v0 = vmul.f32 -1.442695, %v1916_v6 }
 0x4fc   :  { %18969 = vst [vmem:[#allocation26_spill] sm:$0xff] %v17236_v24  ;;  %v7730_v13 = vmul.f32 %v11713_v47, %v17085_v42  ;;  %v3960_v14 = vadd.f32 1.0, %v11715_v59  ;;  %11728 = vpow2.f32 %v9925_v41  ;;  %7139 = vbcast.lane.b32.xlu1 %v17191_v33, 272  ;;  %v9930_v61 = vmul.f32 -1.442695, %v1919_v54  ;;  %v18973_v42 = vld [vmem:[#allocation21_spill] sm:$0xff] }
 0x4fd   :  { %v17248_v32 = vrot.slane %v18971_v27, %v18959_v55  ;;  %v11717_v5 = vpop.eup %11716  ;;  %v9000_v34 = vadd.f32 %v8999_v19, %v8998_v22  ;;  %v8243_v17 = vmul.f32 %v7731_v7, %v18784_v49  ;;  %11730 = vpow2.f32 %v9928_v48  ;;  %v18975_v22 = vld [vmem:[#allocation125_spill] sm:$0xff] }
 0x4fe   :  { %v1918_v52 = vadd.f32 %v18962_v37, %v18674_v53  ;;  %v11719_v27 = vpop.eup %11718  ;;  %v7733_v21 = vmul.f32 %v11717_v5, %v17107_v20  ;;  %11732 = vrcp.f32 %v3960_v14  ;;  %v17259_v41 = vrot.slane %v17094_v12, %v18973_v42  ;;  %v17261_v6 = vpop.permute.xlu1 %6914  ;;  %v18978_v42 = vld [vmem:[#allocation139_spill] sm:$0xff] }
 0x4ff   :  { %18972 = vst [vmem:[#allocation207_spill] sm:$0xff] %v17248_v32  ;;  %v8242_v32 = vmul.f32 %v7730_v13, %v14007_v57  ;;  %v17263_v9 = vpop.permute.xlu0 %6910  ;;  %v18976_v7 = vcombine.high %v18975_v22, %v18975_v22  ;;  %v9001_v37 = vrot.slane %v9000_v34, 2  ;;  %v3963_v48 = vadd.f32 1.0, %v11719_v27 }
 0x500   :  { %18974 = vst [vmem:[#allocation198_spill] sm:$0xff] %v17263_v9  ;;  %11734 = vpow2.f32 %v9927_v0  ;;  %v11721_v54 = vpop.eup %11720  ;;  %v8245_v59 = vmul.f32 %v7733_v21, %v14369_v1  ;;  %v9929_v19 = vmul.f32 -1.442695, %v1918_v52  ;;  %7205 = vbcast.lane.b32.xlu1 %v17259_v41, 264  ;;  %7201 = vbcast.lane.b32.xlu0 %v17259_v41, 256  ;;  %v1921_v22 = vadd.f32 %v18978_v42, %v18688_v16 }
 0x501   :  { %v17269_v47 = vrot.slane %v18976_v7, %v18959_v55  ;;  %v9006_v20 = vadd.f32 %v9005_v15, %v8242_v32  ;;  %11736 = vpow2.f32 %v9930_v61  ;;  %v11723_v13 = vpop.eup %11722  ;;  %v9002_v14 = vadd.f32 %v9001_v37, %v9000_v34 }
 0x502   :  { %v7732_v5 = vmul.f32 %v11721_v54, %v17109_v51  ;;  %11738 = vrcp.f32 %v3963_v48  ;;  %v11725_v27 = vpop.eup %11724  ;;  %v7735_v32 = vmul.f32 %v11723_v13, %v17120_v26  ;;  %v1920_v15 = vadd.f32 %v18978_v42, %v18690_v46  ;;  %v17280_v61 = vpop.permute.xlu1 %6925 }
 0x503   :  { %18977 = vst [vmem:[#allocation199_spill] sm:$0xff] %v17269_v47  ;;  %v9007_v0 = vadd.f32 %v9006_v20, %v8243_v17  ;;  %11740 = vpow2.f32 %v9929_v19  ;;  %18979 = vst [vmem:[#allocation200_spill] sm:$0xff] %v17280_v61  ;;  %v17282_v52 = vpop.permute.xlu0 %6921  ;;  %v9003_v21 = vrot.slane %v9002_v14, 1  ;;  %v7734_v51 = vmul.f32 %v11725_v27, %v17122_v40 }
 0x504   :  { %18980 = vst [vmem:[#allocation32_spill] sm:$0xff] %v17282_v52  ;;  %v8244_v34 = vmul.f32 %v7732_v5, %v14237_v45  ;;  %v9932_v7 = vmul.f32 -1.442695, %v1921_v22  ;;  %v11727_v37 = vpop.eup %11726  ;;  %v8247_v48 = vmul.f32 %v7735_v32, %v14489_v10  ;;  %v9931_v17 = vmul.f32 -1.442695, %v1920_v15  ;;  %7174 = vbcast.lane.b32.xlu1 %v17214_v36, 272 }
 0x505   :  { %7108 = vbcast.lane.b32.xlu0 %v17168_v11, 280  ;;  %v1923_v26 = vadd.f32 %v18978_v42, %v18709_v30  ;;  %v1922_v54 = vadd.f32 %v18978_v42, %v18798_v62  ;;  %v17293_v20 = vadd.f32 %v9003_v21, %v9002_v14  ;;  %v8246_v40 = vmul.f32 %v7734_v51, %v14471_v38  ;;  %v18981_v32 = vld [vmem:[#allocation22_spill] sm:$0xff] }
 0x506   :  { %v9008_v19 = vadd.f32 %v9007_v0, %v8244_v34  ;;  %v7737_v13 = vmul.f32 %v11727_v37, %v17132_v35  ;;  %v11729_v5 = vpop.eup %11728  ;;  %11742 = vpow2.f32 %v9932_v7  ;;  %v17299_v15 = vrot.slane %v17094_v12, %v18981_v32  ;;  %v17301_v24 = vpop.permute.xlu1 %6933 }
 0x507   :  { %v9934_v22 = vmul.f32 -1.442695, %v1923_v26  ;;  %v9933_v27 = vmul.f32 -1.442695, %v1922_v54  ;;  %18982 = vst [vmem:[#allocation169_spill] sm:$0xff] %v17301_v24  ;;  %v17303_v47 = vpop.permute.xlu0 %6929  ;;  %v11731_v52 = vpop.eup %11730  ;;  %v3962_v21 = vadd.f32 1.0, %v11729_v5  ;;  %11744 = vpow2.f32 %v9931_v17 }
 0x508   :  { %18983 = vst [vmem:[#allocation145_spill] sm:$0xff] %v17303_v47  ;;  %v9009_v14 = vadd.f32 %v9008_v19, %v8245_v59  ;;  %v8249_v0 = vmul.f32 %v7737_v13, %v18779_v3  ;;  %v11733_v34 = vpop.eup %11732  ;;  %v3965_v35 = vadd.f32 1.0, %v11731_v52  ;;  %7240 = vbcast.lane.b32.xlu1 %v17299_v15, 264  ;;  %v1925_v51 = vadd.f32 %v18978_v42, %v18799_v31 }
 0x509   :  { %11746 = vpow2.f32 %v9934_v22  ;;  %7236 = vbcast.lane.b32.xlu0 %v17299_v15, 256  ;;  %v1924_v7 = vadd.f32 %v18978_v42, %v18792_v4  ;;  %v7736_v59 = vmul.f32 %v11733_v34, %v17134_v28  ;;  %v1927_v17 = vadd.f32 %v18978_v42, %v18672_v43 }
 0x50a   :  { %v11735_v37 = vpop.eup %11734  ;;  %v9010_v26 = vadd.f32 %v9009_v14, %v8246_v40  ;;  %11748 = vrcp.f32 %v3962_v21  ;;  %v9936_v19 = vmul.f32 -1.442695, %v1925_v51  ;;  %v17315_v5 = vpop.permute.xlu1 %6941  ;;  %v1926_v34 = vadd.f32 %v18978_v42, %v18674_v53 }
 0x50b   :  { %v11737_v52 = vpop.eup %11736  ;;  %11750 = vrcp.f32 %v3965_v35  ;;  %v3964_v54 = vadd.f32 1.0, %v11735_v37  ;;  %v9935_v13 = vmul.f32 -1.442695, %v1924_v7  ;;  %18984 = vst [vmem:[#allocation30_spill] sm:$0xff] %v17315_v5  ;;  %v17317_v22 = vpop.permute.xlu0 %6937  ;;  %v8248_v24 = vmul.f32 %v7736_v59, %v18781_v58  ;;  %v18986_v37 = vld [vmem:[#allocation23_spill] sm:$0xff]  ;;  %v18987_v59 = vld [vmem:[#allocation136_spill] sm:$0xff] }
 0x50c   :  { %18985 = vst [vmem:[#allocation64_spill] sm:$0xff] %v17317_v22  ;;  %v11739_v32 = vpop.eup %11738  ;;  %v9011_v47 = vadd.f32 %v9010_v26, %v8247_v48  ;;  %v3967_v40 = vadd.f32 1.0, %v11737_v52  ;;  %11752 = vpow2.f32 %v9933_v27  ;;  %7209 = vbcast.lane.b32.xlu1 %v17259_v41, 272  ;;  %v9938_v21 = vmul.f32 -1.442695, %v1927_v17 }
 0x50d   :  { %v11741_v28 = vpop.eup %11740  ;;  %v7739_v14 = vmul.f32 %v11739_v32, %v17146_v39  ;;  %11754 = vrcp.f32 %v3964_v54  ;;  %7143 = vbcast.lane.b32.xlu0 %v17191_v33, 280  ;;  %v9018_v51 = vadd.f32 %v8249_v0, %v8248_v24  ;;  %v9937_v27 = vmul.f32 -1.442695, %v1926_v34  ;;  %v18989_v54 = vld [vmem:[#allocation24_spill] sm:$0xff] }
 0x50e   :  { %v9012_v35 = vrot.slane %v9011_v47, 4  ;;  %11756 = vrcp.f32 %v3967_v40  ;;  %v3966_v48 = vadd.f32 1.0, %v11741_v28  ;;  %v17330_v39 = vrot.slane %v17094_v12, %v18986_v37  ;;  %v17336_v24 = vpop.permute.xlu1 %6949 }
 0x50f   :  { %v17326_v7 = vmul.f32 %v7739_v14, %v18784_v49  ;;  %11758 = vpow2.f32 %v9936_v19  ;;  %v1929_v17 = vadd.f32 %v18987_v59, %v18688_v16  ;;  %v1928_v42 = vadd.f32 %v18987_v59, %v18690_v46  ;;  %18988 = vst [vmem:[#allocation34_spill] sm:$0xff] %v17336_v24  ;;  %v17348_v32 = vpop.permute.xlu0 %6945 }
 0x510   :  { %v9013_v26 = vadd.f32 %v9012_v35, %v9011_v47  ;;  %11760 = vrcp.f32 %v3966_v48  ;;  %v11743_v0 = vpop.eup %11742  ;;  %7275 = vbcast.lane.b32.xlu1 %v17330_v39, 264  ;;  %v1931_v52 = vadd.f32 %v18987_v59, %v18709_v30  ;;  %v1930_v47 = vadd.f32 %v18987_v59, %v18798_v62  ;;  %18990 = vst [vmem:[#allocation48_spill] sm:$0xff] %v17348_v32 }
 0x511   :  { %11762 = vpow2.f32 %v9935_v13  ;;  %7271 = vbcast.lane.b32.xlu0 %v17330_v39, 256  ;;  %v17346_v19 = vrot.slane %v17094_v12, %v18989_v54  ;;  %v11745_v40 = vpop.eup %11744  ;;  %v3969_v14 = vadd.f32 1.0, %v11743_v0  ;;  %v9940_v13 = vmul.f32 -1.442695, %v1929_v17  ;;  %v18991_v12 = vld [vmem:[#allocation197_spill] sm:$0xff] }
 0x512   :  { %v9014_v28 = vrot.slane %v9013_v26, 2  ;;  %11764 = vpow2.f32 %v9938_v21  ;;  %v3968_v35 = vadd.f32 1.0, %v11745_v40  ;;  %v9939_v48 = vmul.f32 -1.442695, %v1928_v42 }
 0x513   :  { %v11747_v34 = vpop.eup %11746  ;;  %11766 = vpow2.f32 %v9937_v27  ;;  %v9942_v37 = vmul.f32 -1.442695, %v1931_v52  ;;  %v9941_v61 = vmul.f32 -1.442695, %v1930_v47  ;;  %v1933_v21 = vadd.f32 %v18987_v59, %v18799_v31 }
 0x514   :  { %v11749_v24 = vpop.eup %11748  ;;  %v9015_v22 = vadd.f32 %v9014_v28, %v9013_v26  ;;  %11768 = vrcp.f32 %v3969_v14  ;;  %v3971_v5 = vadd.f32 1.0, %v11747_v34  ;;  %7178 = vbcast.lane.b32.xlu1 %v17214_v36, 280  ;;  %v1932_v27 = vadd.f32 %v18987_v59, %v18792_v4 }
 0x515   :  { %v11751_v9 = vpop.eup %11750  ;;  %v7738_v54 = vmul.f32 %v11749_v24, %v18991_v12  ;;  %11770 = vrcp.f32 %v3968_v35  ;;  %7112 = vbcast.lane.b32.xlu0 %v17168_v11, 288  ;;  %v1935_v0 = vadd.f32 %v18987_v59, %v18672_v43  ;;  %v17360_v24 = vpop.permute.xlu1 %6960  ;;  %v9944_v28 = vmul.f32 -1.442695, %v1933_v21 }
 0x516   :  { %v11753_v17 = vpop.eup %11752  ;;  %v9016_v42 = vrot.slane %v9015_v22, 1  ;;  %v7741_v26 = vmul.f32 %v11751_v9, %v17159_v60  ;;  %11772 = vrcp.f32 %v3971_v5  ;;  %v17363_v14 = vpop.permute.xlu0 %6956 }
 0x517   :  { %v11755_v52 = vpop.eup %11754  ;;  %v8250_v47 = vmul.f32 %v7738_v54, %v14007_v57  ;;  %v3970_v40 = vadd.f32 1.0, %v11753_v17  ;;  %11774 = vpow2.f32 %v9940_v13  ;;  %v9943_v13 = vmul.f32 -1.442695, %v1932_v27 }
 0x518   :  { %v11757_v34 = vpop.eup %11756  ;;  %v9017_v35 = vadd.f32 %v9016_v42, %v9015_v22  ;;  %v8253_v12 = vmul.f32 %v7741_v26, %v14369_v1  ;;  %v7740_v60 = vmul.f32 %v11755_v52, %v17161_v25  ;;  %11776 = vpow2.f32 %v9939_v48  ;;  %7306 = vbcast.lane.b32.xlu1 %v17346_v19, 256 }
 0x519   :  { %v11759_v9 = vpop.eup %11758  ;;  %v9019_v5 = vadd.f32 %v9018_v51, %v8250_v47  ;;  %v7743_v32 = vmul.f32 %v11757_v34, %v17180_v8  ;;  %11778 = vrcp.f32 %v3970_v40  ;;  %7244 = vbcast.lane.b32.xlu0 %v17299_v15, 272  ;;  %v17375_v25 = vpop.permute.xlu1 %6968  ;;  %v9946_v52 = vmul.f32 -1.442695, %v1935_v0 }
 0x51a   :  { %v11761_v54 = vpop.eup %11760  ;;  %v17372_v21 = vsel %vm9264_vm0, %v9017_v35, %v17293_v20  ;;  %v8252_v22 = vmul.f32 %v7740_v60, %v14237_v45  ;;  %v3973_v17 = vadd.f32 1.0, %v11759_v9  ;;  %11780 = vpow2.f32 %v9942_v37  ;;  %v17380_v27 = vpop.permute.xlu0 %6964 }
 0x51b   :  { %v11763_v51 = vpop.eup %11762  ;;  %v9020_v8 = vadd.f32 %v9019_v5, %v17326_v7  ;;  %v8255_v48 = vmul.f32 %v7743_v32, %v14489_v10  ;;  %v7742_v42 = vmul.f32 %v11761_v54, %v17182_v29  ;;  %11782 = vpow2.f32 %v9941_v61  ;;  %v18992_v32 = vld [vmem:[#allocation138_spill] sm:$0xff] }
 0x51c   :  { %v11765_v26 = vpop.eup %11764  ;;  %11784 = vrcp.f32 %v3973_v17  ;;  %v3972_v20 = vadd.f32 1.0, %v11763_v51  ;;  %v1934_v47 = vadd.f32 %v18987_v59, %v18674_v53  ;;  %7147 = vbcast.lane.b32.xlu1 %v17191_v33, 288  ;;  %v1937_v0 = vadd.f32 %v18992_v32, %v18688_v16 }
 0x51d   :  { %v11767_v37 = vpop.eup %11766  ;;  %v9021_v40 = vadd.f32 %v9020_v8, %v8252_v22  ;;  %v8254_v34 = vmul.f32 %v7742_v42, %v14471_v38  ;;  %v3975_v35 = vadd.f32 1.0, %v11765_v26  ;;  %11786 = vpow2.f32 %v9944_v28  ;;  %7310 = vbcast.lane.b32.xlu0 %v17346_v19, 264  ;;  %v17389_v60 = vpop.permute.xlu1 %6976 }
 0x51e   :  { %v11769_v29 = vpop.eup %11768  ;;  %11788 = vrcp.f32 %v3972_v20  ;;  %v3974_v61 = vadd.f32 1.0, %v11767_v37  ;;  %v9945_v7 = vmul.f32 -1.442695, %v1934_v47  ;;  %v1936_v28 = vadd.f32 %v18992_v32, %v18690_v46  ;;  %v17394_v54 = vpop.permute.xlu0 %6972 }
 0x51f   :  { %v11771_v59 = vpop.eup %11770  ;;  %v9022_v9 = vadd.f32 %v9021_v40, %v8253_v12  ;;  %v7745_v5 = vmul.f32 %v11769_v29, %v17203_v50  ;;  %11790 = vrcp.f32 %v3975_v35  ;;  %v18993_v17 = vcombine.high %v18968_v56, %v18968_v56 }
 0x520   :  { %v11773_v22 = vpop.eup %11772  ;;  %v7744_v8 = vmul.f32 %v11771_v59, %v17205_v2  ;;  %11792 = vrcp.f32 %v3974_v61  ;;  %v9948_v42 = vmul.f32 -1.442695, %v1937_v0  ;;  %7279 = vbcast.lane.b32.xlu1 %v17330_v39, 272  ;;  %v1939_v2 = vadd.f32 %v18992_v32, %v18709_v30 }
 0x521   :  { %v17400_v51 = vrot.slane %v18993_v17, %v18959_v55  ;;  %v11775_v12 = vpop.eup %11774  ;;  %v9023_v26 = vadd.f32 %v9022_v9, %v8254_v34  ;;  %v8257_v50 = vmul.f32 %v7745_v5, %v18779_v3  ;;  %v7747_v20 = vmul.f32 %v11773_v22, %v17216_v23  ;;  %7213 = vbcast.lane.b32.xlu0 %v17259_v41, 280  ;;  %v17410_v37 = vpop.permute.xlu1 %6984 }
 0x522   :  { %11794 = vpow2.f32 %v9943_v13  ;;  %v11777_v47 = vpop.eup %11776  ;;  %v8256_v56 = vmul.f32 %v7744_v8, %v18781_v58  ;;  %v3977_v55 = vadd.f32 1.0, %v11775_v12  ;;  %v9947_v23 = vmul.f32 -1.442695, %v1936_v28  ;;  %v17412_v13 = vpop.permute.xlu0 %6980 }
 0x523   :  { %18994 = vst [vmem:[#allocation40_spill] sm:$0xff] %v17400_v51  ;;  %11796 = vpow2.f32 %v9946_v52  ;;  %v11779_v40 = vpop.eup %11778  ;;  %v9024_v34 = vadd.f32 %v9023_v26, %v8255_v48  ;;  %v3976_v35 = vadd.f32 1.0, %v11777_v47  ;;  %v8259_v0 = vmul.f32 %v7747_v20, %v18784_v49 }
 0x524   :  { %11798 = vpow2.f32 %v9945_v7  ;;  %v11781_v29 = vpop.eup %11780  ;;  %v9031_v61 = vadd.f32 %v8257_v50, %v8256_v56  ;;  %v7746_v59 = vmul.f32 %v11779_v40, %v17218_v18  ;;  %7182 = vbcast.lane.b32.xlu1 %v17214_v36, 288  ;;  %v1938_v48 = vadd.f32 %v18992_v32, %v18798_v62 }
 0x525   :  { %11800 = vrcp.f32 %v3977_v55  ;;  %v11783_v52 = vpop.eup %11782  ;;  %v9025_v9 = vrot.slane %v9024_v34, 4  ;;  %v3979_v5 = vadd.f32 1.0, %v11781_v29  ;;  %7116 = vbcast.lane.b32.xlu0 %v17168_v11, 296  ;;  %v9950_v17 = vmul.f32 -1.442695, %v1939_v2 }
 0x526   :  { %11802 = vrcp.f32 %v3976_v35  ;;  %v11785_v7 = vpop.eup %11784  ;;  %v8258_v28 = vmul.f32 %v7746_v59, %v14007_v57  ;;  %v3978_v22 = vadd.f32 1.0, %v11783_v52  ;;  %v1941_v26 = vadd.f32 %v18992_v32, %v18799_v31 }
 0x527   :  { %11804 = vpow2.f32 %v9948_v42  ;;  %v11787_v8 = vpop.eup %11786  ;;  %v9026_v18 = vadd.f32 %v9025_v9, %v9024_v34  ;;  %v7749_v12 = vmul.f32 %v11785_v7, %v17240_v63  ;;  %v9949_v56 = vmul.f32 -1.442695, %v1938_v48  ;;  %v17424_v55 = vpop.permute.xlu1 %6995  ;;  %v18995_v48 = vld [vmem:[#allocation198_spill] sm:$0xff] }
 0x528   :  { %11806 = vrcp.f32 %v3979_v5  ;;  %v11789_v50 = vpop.eup %11788  ;;  %v9032_v20 = vadd.f32 %v9031_v61, %v8258_v28  ;;  %v3981_v47 = vadd.f32 1.0, %v11787_v8  ;;  %v17426_v40 = vpop.permute.xlu0 %6991  ;;  %7314 = vbcast.lane.b32.xlu1 %v17346_v19, 272  ;;  %v1940_v59 = vadd.f32 %v18992_v32, %v18792_v4 }
 0x529   :  { %11808 = vrcp.f32 %v3978_v22  ;;  %v11791_v35 = vpop.eup %11790  ;;  %v9027_v42 = vrot.slane %v9026_v18, 2  ;;  %v8261_v2 = vmul.f32 %v7749_v12, %v14369_v1  ;;  %v7748_v34 = vmul.f32 %v11789_v50, %v17242_v44  ;;  %7248 = vbcast.lane.b32.xlu0 %v17299_v15, 280 }
 0x52a   :  { %11810 = vpow2.f32 %v9947_v23  ;;  %v11793_v63 = vpop.eup %11792  ;;  %v9033_v29 = vadd.f32 %v9032_v20, %v8259_v0  ;;  %v7751_v61 = vmul.f32 %v11791_v35, %v17261_v6  ;;  %v9952_v22 = vmul.f32 -1.442695, %v1941_v26 }
 0x52b   :  { %11812 = vrcp.f32 %v3981_v47  ;;  %v9028_v9 = vadd.f32 %v9027_v42, %v9026_v18  ;;  %v8260_v5 = vmul.f32 %v7748_v34, %v14237_v45  ;;  %v7750_v7 = vmul.f32 %v11793_v63, %v18995_v48  ;;  %v17438_v0 = vpop.permute.xlu1 %7003  ;;  %v18996_v63 = vld [vmem:[#allocation200_spill] sm:$0xff] }
 0x52c   :  { %v11795_v52 = vpop.eup %11794  ;;  %11814 = vpow2.f32 %v9950_v17  ;;  %v8263_v23 = vmul.f32 %v7751_v61, %v14489_v10  ;;  %v17440_v6 = vpop.permute.xlu0 %6999  ;;  %7217 = vbcast.lane.b32.xlu1 %v17259_v41, 288  ;;  %v9951_v35 = vmul.f32 -1.442695, %v1940_v59  ;;  %v1943_v26 = vadd.f32 %v18992_v32, %v18672_v43 }
 0x52d   :  { %v11797_v44 = vpop.eup %11796  ;;  %v3980_v28 = vadd.f32 1.0, %v11795_v52  ;;  %11816 = vpow2.f32 %v9949_v56  ;;  %v9029_v12 = vrot.slane %v9028_v9, 1  ;;  %v9034_v50 = vadd.f32 %v9033_v29, %v8260_v5  ;;  %7151 = vbcast.lane.b32.xlu0 %v17191_v33, 296  ;;  %v18997_v52 = vld [vmem:[#allocation32_spill] sm:$0xff] }
 0x52e   :  { %v11799_v8 = vpop.eup %11798  ;;  %v8262_v18 = vmul.f32 %v7750_v7, %v14471_v38  ;;  %v3983_v20 = vadd.f32 1.0, %v11797_v44  ;;  %v9954_v48 = vmul.f32 -1.442695, %v1943_v26  ;;  %v1942_v7 = vadd.f32 %v18992_v32, %v18674_v53 }
 0x52f   :  { %v11801_v17 = vpop.eup %11800  ;;  %11818 = vrcp.f32 %v3980_v28  ;;  %v3982_v47 = vadd.f32 1.0, %v11799_v8  ;;  %v9030_v42 = vadd.f32 %v9029_v12, %v9028_v9  ;;  %v9035_v34 = vadd.f32 %v9034_v50, %v8261_v2  ;;  %v17451_v44 = vpop.permute.xlu1 %7011 }
 0x530   :  { %v11803_v56 = vpop.eup %11802  ;;  %v7753_v61 = vmul.f32 %v11801_v17, %v18996_v63  ;;  %11820 = vrcp.f32 %v3983_v20  ;;  %v17453_v59 = vpop.permute.xlu0 %7007  ;;  %7120 = vbcast.lane.b32.xlu1 %v17168_v11, 304  ;;  %v18999_v20 = vld [vmem:[#allocation169_spill] sm:$0xff] }
 0x531   :  { %v11805_v29 = vpop.eup %11804  ;;  %v7752_v5 = vmul.f32 %v11803_v56, %v18997_v52  ;;  %11822 = vrcp.f32 %v3982_v47  ;;  %18998 = vst [vmem:[#allocation55_spill] sm:$0xff] %v17453_v59  ;;  %v17457_v9 = vsel %vm9266_vm1, %v9030_v42, %v17372_v21  ;;  %v9036_v2 = vadd.f32 %v9035_v34, %v8262_v18  ;;  %7283 = vbcast.lane.b32.xlu0 %v17330_v39, 280  ;;  %v19000_v47 = vld [vmem:[#allocation140_spill] sm:$0xff]  ;;  %v19001_v42 = vld [vmem:[#allocation145_spill] sm:$0xff] }
 0x532   :  { %v11807_v28 = vpop.eup %11806  ;;  %v8265_v8 = vmul.f32 %v7753_v61, %v18779_v3  ;;  %v3985_v12 = vadd.f32 1.0, %v11805_v29  ;;  %11824 = vpow2.f32 %v9952_v22  ;;  %v1945_v26 = vadd.f32 %v19000_v47, %v18688_v16 }
 0x533   :  { %v11809_v50 = vpop.eup %11808  ;;  %v8264_v32 = vmul.f32 %v7752_v5, %v18781_v58  ;;  %v7755_v17 = vmul.f32 %v11807_v28, %v18999_v20  ;;  %v9037_v21 = vadd.f32 %v9036_v2, %v8263_v23  ;;  %v1944_v34 = vadd.f32 %v19000_v47, %v18690_v46  ;;  %v17470_v5 = vpop.permute.xlu1 %7019  ;;  %v19004_v2 = vld [vmem:[#allocation30_spill] sm:$0xff] }
 0x534   :  { %v11811_v56 = vpop.eup %11810  ;;  %v7754_v18 = vmul.f32 %v11809_v50, %v19001_v42  ;;  %11826 = vrcp.f32 %v3985_v12  ;;  %19002 = vst [vmem:[#allocation47_spill] sm:$0xff] %v17470_v5  ;;  %v17472_v22 = vpop.permute.xlu0 %7015  ;;  %7252 = vbcast.lane.b32.xlu1 %v17299_v15, 288 }
 0x535   :  { %v11813_v63 = vpop.eup %11812  ;;  %v9044_v61 = vadd.f32 %v8265_v8, %v8264_v32  ;;  %v8267_v29 = vmul.f32 %v7755_v17, %v18784_v49  ;;  %v3984_v52 = vadd.f32 1.0, %v11811_v56  ;;  %11828 = vpow2.f32 %v9951_v35  ;;  %19003 = vst [vmem:[#allocation201_spill] sm:$0xff] %v17472_v22  ;;  %7186 = vbcast.lane.b32.xlu0 %v17214_v36, 296 }
 0x536   :  { %v11815_v28 = vpop.eup %11814  ;;  %v9038_v20 = vrot.slane %v9037_v21, 4  ;;  %v8266_v23 = vmul.f32 %v7754_v18, %v14007_v57  ;;  %v7757_v50 = vmul.f32 %v11813_v63, %v19004_v2  ;;  %11830 = vpow2.f32 %v9954_v48 }
 0x537   :  { %v11817_v8 = vpop.eup %11816  ;;  %11832 = vrcp.f32 %v3984_v52  ;;  %v3987_v12 = vadd.f32 1.0, %v11815_v28  ;;  %v9953_v32 = vmul.f32 -1.442695, %v1942_v7  ;;  %v9956_v35 = vmul.f32 -1.442695, %v1945_v26  ;;  %v17483_v63 = vpop.permute.xlu1 %7030 }
 0x538   :  { %v9039_v17 = vadd.f32 %v9038_v20, %v9037_v21  ;;  %v9045_v56 = vadd.f32 %v9044_v61, %v8266_v23  ;;  %v3986_v42 = vadd.f32 1.0, %v11817_v8  ;;  %v9955_v51 = vmul.f32 -1.442695, %v1944_v34  ;;  %19005 = vst [vmem:[#allocation54_spill] sm:$0xff] %v17483_v63  ;;  %v17485_v52 = vpop.permute.xlu0 %7026  ;;  %v19007_v21 = vld [vmem:[#allocation64_spill] sm:$0xff]  ;;  %7155 = vbcast.lane.b32.xlu1 %v17191_v33, 304 }
 0x539   :  { %v11819_v22 = vpop.eup %11818  ;;  %v8269_v5 = vmul.f32 %v7757_v50, %v14369_v1  ;;  %11834 = vrcp.f32 %v3987_v12  ;;  %v1947_v48 = vadd.f32 %v19000_v47, %v18709_v30  ;;  %v1946_v18 = vadd.f32 %v19000_v47, %v18798_v62  ;;  %19006 = vst [vmem:[#allocation202_spill] sm:$0xff] %v17485_v52  ;;  %7318 = vbcast.lane.b32.xlu0 %v17346_v19, 280  ;;  %v19008_v20 = vld [vmem:[#allocation34_spill] sm:$0xff]  ;;  %v19009_v52 = vld [vmem:[#allocation48_spill] sm:$0xff] }
 0x53a   :  { %v11821_v7 = vpop.eup %11820  ;;  %v9040_v26 = vrot.slane %v9039_v17, 2  ;;  %v7756_v61 = vmul.f32 %v11819_v22, %v19007_v21  ;;  %v9046_v28 = vadd.f32 %v9045_v56, %v8267_v29  ;;  %11836 = vrcp.f32 %v3986_v42 }
 0x53b   :  { %v11823_v34 = vpop.eup %11822  ;;  %v7759_v23 = vmul.f32 %v11821_v7, %v19008_v20  ;;  %11838 = vpow2.f32 %v9953_v32  ;;  %v9958_v2 = vmul.f32 -1.442695, %v1947_v48  ;;  %v1949_v50 = vadd.f32 %v19000_v47, %v18799_v31  ;;  %v17498_v7 = vpop.permute.xlu1 %7038 }
 0x53c   :  { %v9041_v8 = vadd.f32 %v9040_v26, %v9039_v17  ;;  %v8268_v12 = vmul.f32 %v7756_v61, %v14237_v45  ;;  %v7758_v63 = vmul.f32 %v11823_v34, %v19009_v52  ;;  %11840 = vpow2.f32 %v9956_v35  ;;  %v11825_v29 = vpop.eup %11824  ;;  %19010 = vst [vmem:[#allocation62_spill] sm:$0xff] %v17498_v7  ;;  %v17500_v32 = vpop.permute.xlu0 %7034  ;;  %7287 = vbcast.lane.b32.xlu1 %v17330_v39, 288 }
 0x53d   :  { %v8271_v22 = vmul.f32 %v7759_v23, %v14489_v10  ;;  %11842 = vpow2.f32 %v9955_v51  ;;  %v9957_v56 = vmul.f32 -1.442695, %v1946_v18  ;;  %v1948_v42 = vadd.f32 %v19000_v47, %v18792_v4  ;;  %19011 = vst [vmem:[#allocation204_spill] sm:$0xff] %v17500_v32  ;;  %7221 = vbcast.lane.b32.xlu0 %v17259_v41, 296 }
 0x53e   :  { %v11827_v48 = vpop.eup %11826  ;;  %v9042_v21 = vrot.slane %v9041_v8, 1  ;;  %v9047_v17 = vadd.f32 %v9046_v28, %v8268_v12  ;;  %v8270_v26 = vmul.f32 %v7758_v63, %v14471_v38  ;;  %v3989_v61 = vadd.f32 1.0, %v11825_v29 }
 0x53f   :  { %v11829_v35 = vpop.eup %11828  ;;  %v7761_v51 = vmul.f32 %v11827_v48, %v17360_v24  ;;  %11844 = vpow2.f32 %v9958_v2  ;;  %v9960_v18 = vmul.f32 -1.442695, %v1949_v50  ;;  %v1951_v52 = vadd.f32 %v19000_v47, %v18672_v43  ;;  %v17509_v7 = vpop.permute.xlu1 %7046 }
 0x540   :  { %v11831_v34 = vpop.eup %11830  ;;  %v9043_v20 = vadd.f32 %v9042_v21, %v9041_v8  ;;  %v9048_v23 = vadd.f32 %v9047_v17, %v8269_v5  ;;  %11846 = vrcp.f32 %v3989_v61  ;;  %v3988_v28 = vadd.f32 1.0, %v11829_v35  ;;  %v17511_v59 = vpop.permute.xlu0 %7042  ;;  %7190 = vbcast.lane.b32.xlu1 %v17214_v36, 304  ;;  %v19012_v8 = vld [vmem:[#allocation86_spill] sm:$0xff] }
 0x541   :  { %v11833_v12 = vpop.eup %11832  ;;  %v8273_v63 = vmul.f32 %v7761_v51, %v18779_v3  ;;  %v3991_v29 = vadd.f32 1.0, %v11831_v34  ;;  %11848 = vpow2.f32 %v9957_v56  ;;  %v9959_v32 = vmul.f32 -1.442695, %v1948_v42  ;;  %7124 = vbcast.lane.b32.xlu0 %v17168_v11, 312  ;;  %v19013_v56 = vld [vmem:[#allocation159_spill] sm:$0xff]  ;;  %v19014_v35 = vld [vmem:[#allocation142_spill] sm:$0xff] }
 0x542   :  { %v17515_v24 = vsel %vm9268_vm2, %v9043_v20, %v17457_v9  ;;  %v9049_v2 = vadd.f32 %v9048_v23, %v8270_v26  ;;  %v7760_v50 = vmul.f32 %v11833_v12, %v17363_v14  ;;  %11850 = vrcp.f32 %v3988_v28 }
 0x543   :  { %v11835_v5 = vpop.eup %11834  ;;  %v17522_v42 = vadd.f32 %v19013_v56, %v19012_v8  ;;  %11852 = vrcp.f32 %v3991_v29  ;;  %v9962_v48 = vmul.f32 -1.442695, %v1951_v52  ;;  %v1950_v21 = vadd.f32 %v19000_v47, %v18674_v53 }
 0x544   :  { %v11837_v9 = vpop.eup %11836  ;;  %v9050_v17 = vadd.f32 %v9049_v2, %v8271_v22  ;;  %v8272_v26 = vmul.f32 %v7760_v50, %v18781_v58  ;;  %v7763_v14 = vmul.f32 %v11835_v5, %v17375_v25  ;;  %11854 = vpow2.f32 %v9960_v18  ;;  %7322 = vbcast.lane.b32.xlu1 %v17346_v19, 288  ;;  %v17535_v25 = vpop.permute.xlu1 %7054 }
 0x545   :  { %v11839_v61 = vpop.eup %11838  ;;  %v7762_v11 = vmul.f32 %v11837_v9, %v17380_v27  ;;  %11856 = vpow2.f32 %v9959_v32  ;;  %v1953_v51 = vadd.f32 %v19014_v35, %v18688_v16  ;;  %v1952_v52 = vadd.f32 %v19014_v35, %v18690_v46  ;;  %7256 = vbcast.lane.b32.xlu0 %v17299_v15, 296  ;;  %v17537_v18 = vpop.permute.xlu0 %7050 }
 0x546   :  { %v11841_v34 = vpop.eup %11840  ;;  %v9051_v20 = vrot.slane %v9050_v17, 4  ;;  %v9057_v47 = vadd.f32 %v8273_v63, %v8272_v26  ;;  %v3990_v23 = vadd.f32 1.0, %v11839_v61  ;;  %v9961_v22 = vmul.f32 -1.442695, %v1950_v21 }
 0x547   :  { %v11843_v27 = vpop.eup %11842  ;;  %v8275_v32 = vmul.f32 %v7763_v14, %v18784_v49  ;;  %v8274_v28 = vmul.f32 %v7762_v11, %v14007_v57  ;;  %v3993_v12 = vadd.f32 1.0, %v11841_v34  ;;  %11858 = vpow2.f32 %v9962_v48 }
 0x548   :  { %v9052_v29 = vadd.f32 %v9051_v20, %v9050_v17  ;;  %11860 = vrcp.f32 %v3990_v23  ;;  %v3992_v63 = vadd.f32 1.0, %v11843_v27  ;;  %v1955_v2 = vadd.f32 %v19014_v35, %v18709_v30  ;;  %7225 = vbcast.lane.b32.xlu1 %v17259_v41, 304 }
 0x549   :  { %v11845_v50 = vpop.eup %11844  ;;  %v9058_v5 = vadd.f32 %v9057_v47, %v8274_v28  ;;  %11862 = vrcp.f32 %v3993_v12  ;;  %v9964_v56 = vmul.f32 -1.442695, %v1953_v51  ;;  %v1954_v21 = vadd.f32 %v19014_v35, %v18798_v62  ;;  %7159 = vbcast.lane.b32.xlu0 %v17191_v33, 312 }
 0x54a   :  { %v11847_v9 = vpop.eup %11846  ;;  %v9053_v26 = vrot.slane %v9052_v29, 2  ;;  %11864 = vrcp.f32 %v3992_v63  ;;  %v3995_v14 = vadd.f32 1.0, %v11845_v50  ;;  %v9963_v61 = vmul.f32 -1.442695, %v1952_v52  ;;  %v17550_v27 = vpop.permute.xlu1 %7065 }
 0x54b   :  { %v11849_v48 = vpop.eup %11848  ;;  %v7765_v17 = vmul.f32 %v11847_v9, %v17389_v60  ;;  %v9059_v11 = vadd.f32 %v9058_v5, %v8275_v32  ;;  %11866 = vpow2.f32 %v9961_v22  ;;  %v1957_v51 = vadd.f32 %v19014_v35, %v18799_v31  ;;  %v17552_v52 = vpop.permute.xlu0 %7061 }
 0x54c   :  { %v11851_v34 = vpop.eup %11850  ;;  %v9054_v20 = vadd.f32 %v9053_v26, %v9052_v29  ;;  %11868 = vrcp.f32 %v3995_v14  ;;  %v3994_v47 = vadd.f32 1.0, %v11849_v48  ;;  %v9966_v23 = vmul.f32 -1.442695, %v1955_v2  ;;  %7194 = vbcast.lane.b32.xlu1 %v17214_v36, 312 }
 0x54d   :  { %v11853_v28 = vpop.eup %11852  ;;  %v7764_v33 = vmul.f32 %v11851_v34, %v17394_v54  ;;  %11870 = vpow2.f32 %v9964_v56  ;;  %v9965_v12 = vmul.f32 -1.442695, %v1954_v21  ;;  %v1956_v60 = vadd.f32 %v19014_v35, %v18792_v4  ;;  %7291 = vbcast.lane.b32.xlu0 %v17330_v39, 296  ;;  %v17567_v56 = vld [vmem:[%s18186_s7] ss:$0 sm:$0xff] }
 0x54e   :  { %v11855_v22 = vpop.eup %11854  ;;  %v9055_v32 = vrot.slane %v9054_v20, 1  ;;  %v8277_v63 = vmul.f32 %v7765_v17, %v14369_v1  ;;  %v7767_v29 = vmul.f32 %v11853_v28, %v17410_v37  ;;  %11872 = vrcp.f32 %v3994_v47  ;;  %v19015_v37 = vld [vmem:[#allocation41_spill] sm:$0xff]  ;;  %v17571_v26 = vpop.permute.xlu1 %7073 }
 0x54f   :  { %v11857_v2 = vpop.eup %11856  ;;  %v8276_v50 = vmul.f32 %v7764_v33, %v14237_v45  ;;  %v3997_v54 = vadd.f32 1.0, %v11855_v22  ;;  %11874 = vpow2.f32 %v9963_v61  ;;  %v1959_v5 = vadd.f32 %v19014_v35, %v18672_v43  ;;  %v17573_v14 = vpop.permute.xlu0 %7069 }
 0x550   :  { %v9373_v21 = vsub.f32 %v19015_v37, %v17567_v56  ;;  %v9056_v9 = vadd.f32 %v9055_v32, %v9054_v20  ;;  %v3996_v36 = vadd.f32 1.0, %v11857_v2  ;;  %11876 = vpow2.f32 %v9966_v23  ;;  %7326 = vbcast.lane.b32.xlu1 %v17346_v19, 296  ;;  %v19016_v32 = vld [vmem:[#allocation167_spill] sm:$0xff] }
 0x551   :  { %v11859_v48 = vpop.eup %11858  ;;  %v9060_v61 = vadd.f32 %v9059_v11, %v8276_v50  ;;  %11878 = vrcp.f32 %v3997_v54  ;;  %v9968_v17 = vmul.f32 -1.442695, %v1957_v51  ;;  %v9967_v34 = vmul.f32 -1.442695, %v1956_v60  ;;  %7260 = vbcast.lane.b32.xlu0 %v17299_v15, 304 }
 0x552   :  { %v11861_v47 = vpop.eup %11860  ;;  %v17577_v28 = vsel %vm9270_vm3, %v9056_v9, %v17515_v24  ;;  %11880 = vrcp.f32 %v3996_v36  ;;  %v3999_v33 = vadd.f32 1.0, %v11859_v48  ;;  %v1958_v20 = vadd.f32 %v19014_v35, %v18674_v53  ;;  %v17587_v54 = vpop.permute.xlu1 %7081 }
 0x553   :  { %v11863_v23 = vpop.eup %11862  ;;  %v7766_v11 = vmul.f32 %v11861_v47, %v17412_v13  ;;  %v9061_v22 = vadd.f32 %v9060_v61, %v8277_v63  ;;  %11882 = vpow2.f32 %v9965_v12  ;;  %v9970_v51 = vmul.f32 -1.442695, %v1959_v5  ;;  %v17589_v35 = vpop.permute.xlu0 %7077  ;;  %v19017_v12 = vld [vmem:[#allocation147_spill] sm:$0xff]  ;;  %v17603_v47 = vld [vmem:[%s18184_s5] ss:$0 sm:$0xff] }
 0x554   :  { %v11865_v60 = vpop.eup %11864  ;;  %v9387_v2 = vmul.f32 %v19016_v32, %v9373_v21  ;;  %v8279_v24 = vmul.f32 %v7767_v29, %v14489_v10  ;;  %v7769_v50 = vmul.f32 %v11863_v23, %v17424_v55  ;;  %11884 = vrcp.f32 %v3999_v33  ;;  %7295 = vbcast.lane.b32.xlu1 %v17330_v39, 304  ;;  %19018 = vst [vmem:[#allocation71_spill] sm:$0xff] %v17603_v47  ;;  %v19020_v33 = vld [vmem:[#allocation35_spill] sm:$0xff] }
 0x555   :  { %v11867_v37 = vpop.eup %11866  ;;  %v8278_v9 = vmul.f32 %v7766_v11, %v14471_v38  ;;  %v7768_v13 = vmul.f32 %v11865_v60, %v17426_v40  ;;  %11886 = vpow2.f32 %v9968_v17  ;;  %v1961_v63 = vadd.f32 %v19017_v12, %v18688_v16  ;;  %7229 = vbcast.lane.b32.xlu0 %v17259_v41, 312 }
 0x556   :  { %v11869_v5 = vpop.eup %11868  ;;  %v8281_v21 = vmul.f32 %v7769_v50, %v18779_v3  ;;  %v3998_v29 = vadd.f32 1.0, %v11867_v37  ;;  %11888 = vpow2.f32 %v9967_v34  ;;  %v9969_v55 = vmul.f32 -1.442695, %v1958_v20 }
 0x557   :  { %v11871_v36 = vpop.eup %11870  ;;  %v9062_v48 = vadd.f32 %v9061_v22, %v8278_v9  ;;  %v8280_v61 = vmul.f32 %v7768_v13, %v18781_v58  ;;  %v7771_v40 = vmul.f32 %v11869_v5, %v17438_v0  ;;  %11890 = vpow2.f32 %v9970_v51  ;;  %v17610_v23 = vpop.permute.xlu0 %7085  ;;  %v19021_v0 = vld [vmem:[#allocation57_spill] sm:$0xff] }
 0x558   :  { %v11873_v17 = vpop.eup %11872  ;;  %v17606_v34 = vmul.f32 %v17603_v47, %v9387_v2  ;;  %11892 = vrcp.f32 %v3998_v29  ;;  %v4001_v41 = vadd.f32 1.0, %v11871_v36  ;;  %v9972_v13 = vmul.f32 -1.442695, %v1961_v63  ;;  %7330 = vbcast.lane.b32.xlu1 %v17346_v19, 304  ;;  %v17618_v5 = vpop.permute.xlu1 %7089 }
 0x559   :  { %v11875_v11 = vpop.eup %11874  ;;  %v9063_v51 = vadd.f32 %v9062_v48, %v8279_v24  ;;  %v9070_v60 = vadd.f32 %v8281_v21, %v8280_v61  ;;  %v7770_v50 = vmul.f32 %v11873_v17, %v17440_v6  ;;  %v8283_v9 = vmul.f32 %v7771_v40, %v18784_v49  ;;  %7264 = vbcast.lane.b32.xlu0 %v17299_v15, 312  ;;  %v19022_v17 = vld [vmem:[#allocation55_spill] sm:$0xff] }
 0x55a   :  { %19019 = vst [vmem:[#allocation205_spill] sm:$0xff] %v17606_v34  ;;  %v11877_v37 = vpop.eup %11876  ;;  %11894 = vrcp.f32 %v4001_v41  ;;  %v4000_v2 = vadd.f32 1.0, %v11875_v11  ;;  %v1960_v48 = vadd.f32 %v19017_v12, %v18690_v46  ;;  %v1963_v63 = vadd.f32 %v19017_v12, %v18709_v30 }
 0x55b   :  { %v11879_v29 = vpop.eup %11878  ;;  %v9064_v36 = vrot.slane %v9063_v51, 4  ;;  %v8282_v22 = vmul.f32 %v7770_v50, %v14007_v57  ;;  %v4003_v24 = vadd.f32 1.0, %v11877_v37  ;;  %11896 = vpow2.f32 %v9969_v55  ;;  %v17627_v11 = vpop.permute.xlu0 %7096 }
 0x55c   :  { %v11881_v21 = vpop.eup %11880  ;;  %v7773_v6 = vmul.f32 %v11879_v29, %v17451_v44  ;;  %11898 = vrcp.f32 %v4000_v2  ;;  %v1962_v44 = vadd.f32 %v19017_v12, %v18798_v62  ;;  %7334 = vbcast.lane.b32.xlu1 %v17346_v19, 312  ;;  %v19023_v29 = vld [vmem:[#allocation47_spill] sm:$0xff]  ;;  %v9974_v8 = vmul.f32 -1.442695, %v1963_v63 }
 0x55d   :  { %v11883_v61 = vpop.eup %11882  ;;  %v9065_v15 = vadd.f32 %v9064_v36, %v9063_v51  ;;  %v9071_v40 = vadd.f32 %v9070_v60, %v8282_v22  ;;  %v7772_v41 = vmul.f32 %v11881_v21, %v19022_v17  ;;  %11900 = vrcp.f32 %v4003_v24  ;;  %7299 = vbcast.lane.b32.xlu0 %v17330_v39, 312 }
 0x55e   :  { %v11885_v50 = vpop.eup %11884  ;;  %v8285_v55 = vmul.f32 %v7773_v6, %v14369_v1  ;;  %v4002_v37 = vadd.f32 1.0, %v11883_v61  ;;  %11902 = vpow2.f32 %v9972_v13  ;;  %v9971_v6 = vmul.f32 -1.442695, %v1960_v48  ;;  %v17638_v61 = vpop.permute.xlu1 %7100 }
 0x55f   :  { %v11887_v2 = vpop.eup %11886  ;;  %v9066_v51 = vrot.slane %v9065_v15, 2  ;;  %v8284_v22 = vmul.f32 %v7772_v41, %v14237_v45  ;;  %v9072_v60 = vadd.f32 %v9071_v40, %v8283_v9  ;;  %v7775_v36 = vmul.f32 %v11885_v50, %v19023_v29  ;;  %v17642_v50 = vpop.permute.xlu0 %7104 }
 0x560   :  { %v11889_v24 = vpop.eup %11888  ;;  %11904 = vrcp.f32 %v4002_v37  ;;  %v4005_v21 = vadd.f32 1.0, %v11887_v2  ;;  %v1965_v13 = vadd.f32 %v19017_v12, %v18799_v31  ;;  %v9973_v9 = vmul.f32 -1.442695, %v1962_v44  ;;  %19024 = vst [vmem:[#allocation74_spill] sm:$0xff] %v17642_v50  ;;  %v19025_v37 = vld [vmem:[#allocation201_spill] sm:$0xff] }
 0x561   :  { %v11891_v17 = vpop.eup %11890  ;;  %v9067_v19 = vadd.f32 %v9066_v51, %v9065_v15  ;;  %v9073_v20 = vadd.f32 %v9072_v60, %v8284_v22  ;;  %v4004_v39 = vadd.f32 1.0, %v11889_v24  ;;  %v1964_v40 = vadd.f32 %v19017_v12, %v18792_v4  ;;  %v19026_v24 = vld [vmem:[#allocation54_spill] sm:$0xff] }
 0x562   :  { %v11893_v34 = vpop.eup %11892  ;;  %11906 = vrcp.f32 %v4005_v21  ;;  %v4007_v41 = vadd.f32 1.0, %v11891_v17  ;;  %v8287_v15 = vmul.f32 %v7775_v36, %v14489_v10  ;;  %v9976_v51 = vmul.f32 -1.442695, %v1965_v13 }
 0x563   :  { %v9068_v48 = vrot.slane %v9067_v19, 1  ;;  %v7774_v2 = vmul.f32 %v11893_v34, %v19025_v37  ;;  %v9074_v29 = vadd.f32 %v9073_v20, %v8285_v55  ;;  %11908 = vrcp.f32 %v4004_v39  ;;  %v17652_v55 = vpop.permute.xlu1 %7131 }
 0x564   :  { %v11895_v31 = vpop.eup %11894  ;;  %11910 = vrcp.f32 %v4007_v41  ;;  %v1967_v63 = vadd.f32 %v19017_v12, %v18672_v43  ;;  %v9975_v34 = vmul.f32 -1.442695, %v1964_v40  ;;  %v1966_v20 = vadd.f32 %v19017_v12, %v18674_v53  ;;  %v19027_v41 = vld [vmem:[#allocation202_spill] sm:$0xff]  ;;  %v19029_v40 = vld [vmem:[#allocation193_spill] sm:$0xff] }
 0x565   :  { %v11897_v22 = vpop.eup %11896  ;;  %v9069_v44 = vadd.f32 %v9068_v48, %v9067_v19  ;;  %v8286_v60 = vmul.f32 %v7774_v2, %v14471_v38  ;;  %v7777_v21 = vmul.f32 %v11895_v31, %v19026_v24  ;;  %11912 = vpow2.f32 %v9971_v6  ;;  %v19028_v48 = vld [vmem:[#allocation62_spill] sm:$0xff]  ;;  %v17663_v2 = vpop.permute.xlu0 %7135 }
 0x566   :  { %v11899_v17 = vpop.eup %11898  ;;  %v4006_v50 = vadd.f32 1.0, %v11897_v22  ;;  %11914 = vpow2.f32 %v9974_v8  ;;  %v9978_v8 = vmul.f32 -1.442695, %v1967_v63  ;;  %v1969_v12 = vadd.f32 %v19029_v40, %v18688_v16 }
 0x567   :  { %v11901_v36 = vpop.eup %11900  ;;  %v17656_v13 = vsel %vm9272_vm4, %v9069_v44, %v17577_v28  ;;  %v9075_v19 = vadd.f32 %v9074_v29, %v8286_v60  ;;  %v8289_v39 = vmul.f32 %v7777_v21, %v18779_v3  ;;  %v7776_v31 = vmul.f32 %v11899_v17, %v19027_v41 }
 0x568   :  { %v11903_v6 = vpop.eup %11902  ;;  %v7779_v37 = vmul.f32 %v11901_v36, %v19028_v48  ;;  %11916 = vrcp.f32 %v4006_v50  ;;  %v19030_v44 = vsub.f32 %v19020_v33, %v17567_v56  ;;  %v19031_v50 = vsub.f32 %v19021_v0, %v17567_v56 }
 0x569   :  { %v9076_v22 = vadd.f32 %v9075_v19, %v8287_v15  ;;  %v8288_v24 = vmul.f32 %v7776_v31, %v18781_v58  ;;  %v4009_v28 = vadd.f32 1.0, %v11903_v6  ;;  %11918 = vpow2.f32 %v9973_v9  ;;  %v19032_v15 = vld [vmem:[#allocation204_spill] sm:$0xff] }
 0x56a   :  { %v11905_v29 = vpop.eup %11904  ;;  %v9388_v60 = vmul.f32 %v19016_v32, %v19030_v44  ;;  %v9389_v63 = vmul.f32 %v19016_v32, %v19031_v50  ;;  %11920 = vpow2.f32 %v9976_v51  ;;  %v9977_v21 = vmul.f32 -1.442695, %v1966_v20  ;;  %v17678_v6 = vpop.permute.xlu1 %7166 }
 0x56b   :  { %v9077_v17 = vrot.slane %v9076_v22, 4  ;;  %v9083_v36 = vadd.f32 %v8289_v39, %v8288_v24  ;;  %v7778_v19 = vmul.f32 %v11905_v29, %v19032_v15  ;;  %11922 = vrcp.f32 %v4009_v28  ;;  %v17688_v28 = vpop.permute.xlu0 %7170 }
 0x56c   :  { %v11907_v41 = vpop.eup %11906  ;;  %v8291_v9 = vmul.f32 %v7779_v37, %v18784_v49  ;;  %11924 = vpow2.f32 %v9975_v34  ;;  %v9980_v31 = vmul.f32 -1.442695, %v1969_v12  ;;  %v1968_v33 = vadd.f32 %v19029_v40, %v18690_v46  ;;  %v19034_v34 = vld [vmem:[#allocation195_spill] sm:$0xff] }
 0x56d   :  { %v11909_v0 = vpop.eup %11908  ;;  %v9078_v48 = vadd.f32 %v9077_v17, %v9076_v22  ;;  %v8290_v51 = vmul.f32 %v7778_v19, %v14007_v57  ;;  %v7781_v20 = vmul.f32 %v11907_v41, %v17509_v7  ;;  %11926 = vpow2.f32 %v9978_v8 }
 0x56e   :  { %v11911_v39 = vpop.eup %11910  ;;  %v17683_v24 = vmul.f32 %v17603_v47, %v9388_v60  ;;  %v7780_v37 = vmul.f32 %v11909_v0, %v17511_v59  ;;  %11928 = vpow2.f32 %v9977_v21  ;;  %v1976_v12 = vadd.f32 %v19034_v34, %v18690_v46  ;;  %v17695_v21 = vpop.permute.xlu1 %7139 }
 0x56f   :  { %v11913_v29 = vpop.eup %11912  ;;  %v17691_v22 = vmul.f32 %v17603_v47, %v9389_v63  ;;  %v9079_v44 = vrot.slane %v9078_v48, 2  ;;  %v9084_v50 = vadd.f32 %v9083_v36, %v8290_v51  ;;  %v7783_v7 = vmul.f32 %v11911_v39, %v17535_v25  ;;  %v19036_v63 = vld [vmem:[#allocation75_spill] sm:$0xff] }
 0x570   :  { %19033 = vst [vmem:[#allocation96_spill] sm:$0xff] %v17683_v24  ;;  %v11915_v8 = vpop.eup %11914  ;;  %v8292_v60 = vmul.f32 %v7780_v37, %v14237_v45  ;;  %v4008_v17 = vadd.f32 1.0, %v11913_v29  ;;  %11930 = vpow2.f32 %v9980_v31  ;;  %v9979_v59 = vmul.f32 -1.442695, %v1968_v33  ;;  %v19037_v37 = vld [vmem:[#allocation199_spill] sm:$0xff] }
 0x571   :  { %19035 = vst [vmem:[#allocation56_spill] sm:$0xff] %v17691_v22  ;;  %v9080_v15 = vadd.f32 %v9079_v44, %v9078_v48  ;;  %v8293_v19 = vmul.f32 %v7781_v20, %v14369_v1  ;;  %v9085_v41 = vadd.f32 %v9084_v50, %v8291_v9  ;;  %v4011_v0 = vadd.f32 1.0, %v11915_v8 }
 0x572   :  { %v11917_v24 = vpop.eup %11916  ;;  %v9376_v22 = vsub.f32 %v19036_v63, %v17567_v56  ;;  %11932 = vrcp.f32 %v4008_v17  ;;  %v9987_v36 = vmul.f32 -1.442695, %v1976_v12  ;;  %v1970_v25 = vadd.f32 %v19029_v40, %v18798_v62  ;;  %v17706_v44 = vpop.permute.xlu1 %7205 }
 0x573   :  { %v11919_v51 = vpop.eup %11918  ;;  %v9081_v39 = vrot.slane %v9080_v15, 1  ;;  %v9086_v31 = vadd.f32 %v9085_v41, %v8292_v60  ;;  %v7782_v33 = vmul.f32 %v11917_v24, %v17537_v18  ;;  %11934 = vrcp.f32 %v4011_v0  ;;  %v17708_v12 = vpop.permute.xlu0 %7201 }
 0x574   :  { %v11921_v48 = vpop.eup %11920  ;;  %v8295_v20 = vmul.f32 %v7783_v7, %v14489_v10  ;;  %v4010_v9 = vadd.f32 1.0, %v11919_v51  ;;  %11936 = vpow2.f32 %v9979_v59  ;;  %v1984_v29 = vadd.f32 %v19037_v37, %v18690_v46 }
 0x575   :  { %v11923_v50 = vpop.eup %11922  ;;  %v9082_v8 = vadd.f32 %v9081_v39, %v9080_v15  ;;  %v8294_v17 = vmul.f32 %v7782_v33, %v14471_v38  ;;  %v9087_v60 = vadd.f32 %v9086_v31, %v8293_v19  ;;  %v4013_v41 = vadd.f32 1.0, %v11921_v48 }
 0x576   :  { %v11925_v18 = vpop.eup %11924  ;;  %v7785_v24 = vmul.f32 %v11923_v50, %v17550_v27  ;;  %11938 = vrcp.f32 %v4010_v9  ;;  %v1977_v7 = vadd.f32 %v19034_v34, %v18688_v16  ;;  %v1978_v59 = vadd.f32 %v19034_v34, %v18798_v62  ;;  %v17723_v33 = vpop.permute.xlu1 %7174 }
 0x577   :  { %v11927_v0 = vpop.eup %11926  ;;  %v17718_v63 = vsel %vm9274_vm5, %v9082_v8, %v17656_v13  ;;  %v9088_v15 = vadd.f32 %v9087_v60, %v8294_v17  ;;  %11940 = vrcp.f32 %v4013_v41  ;;  %v4012_v51 = vadd.f32 1.0, %v11925_v18  ;;  %v17725_v48 = vpop.permute.xlu0 %7108 }
 0x578   :  { %v11929_v19 = vpop.eup %11928  ;;  %v17721_v39 = vmul.f32 %v19016_v32, %v9376_v22  ;;  %v4015_v27 = vadd.f32 1.0, %v11927_v0  ;;  %11942 = vpow2.f32 %v9987_v36  ;;  %v9981_v31 = vmul.f32 -1.442695, %v1970_v25  ;;  %v19039_v22 = vld [vmem:[#allocation189_spill] sm:$0xff] }
 0x579   :  { %v9089_v9 = vadd.f32 %v9088_v15, %v8295_v20  ;;  %11944 = vrcp.f32 %v4012_v51  ;;  %v4014_v50 = vadd.f32 1.0, %v11929_v19  ;;  %v9995_v43 = vmul.f32 -1.442695, %v1984_v29 }
 0x57a   :  { %19038 = vst [vmem:[#allocation143_spill] sm:$0xff] %v17721_v39  ;;  %v11931_v13 = vpop.eup %11930  ;;  %11946 = vrcp.f32 %v4015_v27  ;;  %v9988_v8 = vmul.f32 -1.442695, %v1977_v7  ;;  %v1985_v17 = vadd.f32 %v19037_v37, %v18688_v16  ;;  %v1993_v60 = vadd.f32 %v19039_v22, %v18688_v16  ;;  %v17737_v0 = vpop.permute.xlu1 %7240 }
 0x57b   :  { %v9090_v41 = vrot.slane %v9089_v9, 4  ;;  %11948 = vrcp.f32 %v4014_v50  ;;  %v4017_v36 = vadd.f32 1.0, %v11931_v13  ;;  %v9989_v25 = vmul.f32 -1.442695, %v1978_v59  ;;  %19040 = vst [vmem:[#allocation206_spill] sm:$0xff] %v17737_v0  ;;  %v17739_v15 = vpop.permute.xlu0 %7236 }
 0x57c   :  { %v11933_v18 = vpop.eup %11932  ;;  %11950 = vpow2.f32 %v9981_v31  ;;  %v1992_v20 = vadd.f32 %v19039_v22, %v18690_v46  ;;  %v1986_v29 = vadd.f32 %v19037_v37, %v18798_v62  ;;  %v1971_v7 = vadd.f32 %v19029_v40, %v18709_v30  ;;  %19041 = vst [vmem:[#allocation165_spill] sm:$0xff] %v17739_v15 }
 0x57d   :  { %v11935_v51 = vpop.eup %11934  ;;  %v9091_v19 = vadd.f32 %v9090_v41, %v9089_v9  ;;  %v8297_v27 = vmul.f32 %v7785_v24, %v18779_v3  ;;  %v7784_v59 = vmul.f32 %v11933_v18, %v17552_v52  ;;  %11952 = vrcp.f32 %v4017_v36 }
 0x57e   :  { %v11937_v31 = vpop.eup %11936  ;;  %v7787_v50 = vmul.f32 %v11935_v51, %v17571_v26  ;;  %11954 = vpow2.f32 %v9995_v43  ;;  %v9996_v13 = vmul.f32 -1.442695, %v1985_v17  ;;  %v10004_v53 = vmul.f32 -1.442695, %v1993_v60  ;;  %v17745_v24 = vpop.permute.xlu1 %7209 }
 0x57f   :  { %v9092_v32 = vrot.slane %v9091_v19, 2  ;;  %v8296_v47 = vmul.f32 %v7784_v59, %v18781_v58  ;;  %v4016_v39 = vadd.f32 1.0, %v11937_v31  ;;  %11956 = vpow2.f32 %v9988_v8  ;;  %v17748_v43 = vpop.permute.xlu0 %7143 }
 0x580   :  { %v11939_v0 = vpop.eup %11938  ;;  %11958 = vpow2.f32 %v9989_v25  ;;  %v10003_v15 = vmul.f32 -1.442695, %v1992_v20  ;;  %v9997_v9 = vmul.f32 -1.442695, %v1986_v29  ;;  %v9982_v41 = vmul.f32 -1.442695, %v1971_v7 }
 0x581   :  { %v11941_v52 = vpop.eup %11940  ;;  %v9093_v36 = vadd.f32 %v9092_v32, %v9091_v19  ;;  %v9096_v18 = vadd.f32 %v8297_v27, %v8296_v47  ;;  %v7786_v26 = vmul.f32 %v11939_v0, %v17573_v14  ;;  %11960 = vrcp.f32 %v4016_v39  ;;  %v19042_v25 = vld [vmem:[#allocation26_spill] sm:$0xff] }
 0x582   :  { %v11943_v17 = vpop.eup %11942  ;;  %v8299_v60 = vmul.f32 %v7787_v50, %v18784_v49  ;;  %v7789_v8 = vmul.f32 %v11941_v52, %v17587_v54  ;;  %11962 = vpow2.f32 %v9996_v13  ;;  %v2001_v20 = vadd.f32 %v19042_v25, %v18688_v16  ;;  %v17761_v31 = vpop.permute.xlu1 %7275 }
 0x583   :  { %v11945_v29 = vpop.eup %11944  ;;  %v9094_v7 = vrot.slane %v9093_v36, 1  ;;  %v8298_v51 = vmul.f32 %v7786_v26, %v14007_v57  ;;  %v4024_v32 = vadd.f32 1.0, %v11943_v17  ;;  %11964 = vpow2.f32 %v10004_v53  ;;  %v17768_v17 = vpop.permute.xlu0 %7271 }
 0x584   :  { %v11947_v47 = vpop.eup %11946  ;;  %v7788_v14 = vmul.f32 %v11945_v29, %v17589_v35  ;;  %11966 = vpow2.f32 %v10003_v15  ;;  %v2000_v39 = vadd.f32 %v19042_v25, %v18690_v46  ;;  %v1994_v54 = vadd.f32 %v19039_v22, %v18798_v62 }
 0x585   :  { %v11949_v0 = vpop.eup %11948  ;;  %v9095_v19 = vadd.f32 %v9094_v7, %v9093_v36  ;;  %v9097_v27 = vadd.f32 %v9096_v18, %v8298_v51  ;;  %v7791_v59 = vmul.f32 %v11947_v47, %v17618_v5  ;;  %11968 = vrcp.f32 %v4024_v32 }
 0x586   :  { %v11951_v50 = vpop.eup %11950  ;;  %v8300_v53 = vmul.f32 %v7788_v14, %v14237_v45  ;;  %v7790_v35 = vmul.f32 %v11949_v0, %v17610_v23  ;;  %11970 = vpow2.f32 %v9997_v9  ;;  %v10012_v15 = vmul.f32 -1.442695, %v2001_v20 }
 0x587   :  { %v11953_v13 = vpop.eup %11952  ;;  %v9319_v52 = vsel %vm9276_vm6, %v9095_v19, %v17718_v63  ;;  %v8301_v26 = vmul.f32 %v7789_v8, %v14369_v1  ;;  %v9098_v36 = vadd.f32 %v9097_v27, %v8299_v60  ;;  %v4018_v18 = vadd.f32 1.0, %v11951_v50 }
 0x588   :  { %v11955_v5 = vpop.eup %11954  ;;  %v17771_v29 = vadd.f32 %v9319_v52, %v17522_v42  ;;  %v7793_v7 = vmul.f32 %v11953_v13, %v17638_v61  ;;  %11972 = vpow2.f32 %v9982_v41  ;;  %v1979_v23 = vadd.f32 %v19034_v34, %v18709_v30  ;;  %v17778_v41 = vpop.permute.xlu1 %7178 }
 0x589   :  { %v11957_v9 = vpop.eup %11956  ;;  %v9099_v20 = vadd.f32 %v9098_v36, %v8300_v53  ;;  %v8302_v63 = vmul.f32 %v7790_v35, %v14471_v38  ;;  %11974 = vrcp.f32 %v4018_v18  ;;  %v4032_v8 = vadd.f32 1.0, %v11955_v5 }
 0x58a   :  { %v11959_v60 = vpop.eup %11958  ;;  %v4025_v51 = vadd.f32 1.0, %v11957_v9  ;;  %11976 = vpow2.f32 %v10012_v15  ;;  %v10011_v32 = vmul.f32 -1.442695, %v2000_v39  ;;  %v10005_v47 = vmul.f32 -1.442695, %v1994_v54  ;;  %v19043_v54 = vld [vmem:[#allocation207_spill] sm:$0xff] }
 0x58b   :  { %v11961_v14 = vpop.eup %11960  ;;  %v8303_v42 = vmul.f32 %v7791_v59, %v14489_v10  ;;  %v9100_v0 = vadd.f32 %v9099_v20, %v8301_v26  ;;  %11978 = vrcp.f32 %v4032_v8  ;;  %v4026_v61 = vadd.f32 1.0, %v11959_v60  ;;  %v17784_v59 = vpop.permute.xlu0 %7112 }
 0x58c   :  { %v11963_v19 = vpop.eup %11962  ;;  %v8305_v27 = vmul.f32 %v7793_v7, %v18779_v3  ;;  %v7792_v50 = vmul.f32 %v11961_v14, %v17627_v11  ;;  %11980 = vrcp.f32 %v4025_v51  ;;  %v9990_v53 = vmul.f32 -1.442695, %v1979_v23  ;;  %v17796_v51 = vpop.permute.xlu1 %7306 }
 0x58d   :  { %v11965_v35 = vpop.eup %11964  ;;  %v9101_v13 = vadd.f32 %v9100_v0, %v8302_v63  ;;  %11982 = vrcp.f32 %v4026_v61  ;;  %v4033_v39 = vadd.f32 1.0, %v11963_v19  ;;  %v2009_v15 = vadd.f32 %v19043_v54, %v18688_v16  ;;  %19044 = vst [vmem:[#allocation61_spill] sm:$0xff] %v17796_v51  ;;  %v19046_v61 = vld [vmem:[#allocation175_spill] sm:$0xff] }
 0x58e   :  { %v11967_v52 = vpop.eup %11966  ;;  %v8304_v26 = vmul.f32 %v7792_v50, %v18781_v58  ;;  %v4041_v36 = vadd.f32 1.0, %v11965_v35  ;;  %11984 = vpow2.f32 %v10011_v32  ;;  %v2008_v18 = vadd.f32 %v19043_v54, %v18690_v46  ;;  %v19045_v32 = vld [vmem:[#allocation40_spill] sm:$0xff] }
 0x58f   :  { %v11969_v11 = vpop.eup %11968  ;;  %v17789_v5 = vadd.f32 %v9101_v13, %v8303_v42  ;;  %11986 = vrcp.f32 %v4033_v39  ;;  %v4040_v7 = vadd.f32 1.0, %v11967_v52  ;;  %v1987_v23 = vadd.f32 %v19037_v37, %v18709_v30  ;;  %v17804_v39 = vpop.permute.xlu0 %7244 }
 0x590   :  { %v11971_v9 = vpop.eup %11970  ;;  %v9109_v20 = vadd.f32 %v8305_v27, %v8304_v26  ;;  %v7800_v63 = vmul.f32 %v11969_v11, %v17652_v55  ;;  %11988 = vrcp.f32 %v4041_v36  ;;  %v1972_v8 = vadd.f32 %v19029_v40, %v18792_v4  ;;  %v19047_v36 = vld [vmem:[#allocation74_spill] sm:$0xff] }
 0x591   :  { %11990 = vrcp.f32 %v4040_v7  ;;  %v4034_v60 = vadd.f32 1.0, %v11971_v9  ;;  %v2016_v14 = vadd.f32 %v19045_v32, %v18690_v46  ;;  %v2002_v42 = vadd.f32 %v19042_v25, %v18798_v62 }
 0x592   :  { %v11973_v0 = vpop.eup %11972  ;;  %11992 = vpow2.f32 %v10005_v47  ;;  %v10020_v55 = vmul.f32 -1.442695, %v2009_v15  ;;  %v10019_v27 = vmul.f32 -1.442695, %v2008_v18  ;;  %v9998_v13 = vmul.f32 -1.442695, %v1987_v23 }
 0x593   :  { %v11975_v50 = vpop.eup %11974  ;;  %11994 = vrcp.f32 %v4034_v60  ;;  %v4019_v35 = vadd.f32 1.0, %v11973_v0  ;;  %v1980_v52 = vadd.f32 %v19034_v34, %v18792_v4  ;;  %v9983_v7 = vmul.f32 -1.442695, %v1972_v8 }
 0x594   :  { %v11977_v46 = vpop.eup %11976  ;;  %v7794_v11 = vmul.f32 %v11975_v50, %v19047_v36  ;;  %11996 = vpow2.f32 %v9990_v53  ;;  %v10027_v18 = vmul.f32 -1.442695, %v2016_v14  ;;  %v10013_v9 = vmul.f32 -1.442695, %v2002_v42  ;;  %v17816_v53 = vpop.permute.xlu1 %7147 }
 0x595   :  { %v11979_v47 = vpop.eup %11978  ;;  %11998 = vrcp.f32 %v4019_v35  ;;  %v4049_v15 = vadd.f32 1.0, %v11977_v46  ;;  %v2017_v19 = vadd.f32 %v19045_v32, %v18688_v16  ;;  %v9991_v8 = vmul.f32 -1.442695, %v1980_v52 }
 0x596   :  { %v11981_v60 = vpop.eup %11980  ;;  %v8306_v23 = vmul.f32 %v7794_v11, %v14007_v57  ;;  %v7808_v0 = vmul.f32 %v11979_v47, %v17678_v6  ;;  %12000 = vpow2.f32 %v10020_v55  ;;  %v2010_v14 = vadd.f32 %v19043_v54, %v18798_v62 }
 0x597   :  { %v11983_v51 = vpop.eup %11982  ;;  %v7801_v26 = vmul.f32 %v11981_v60, %v17663_v2  ;;  %12002 = vrcp.f32 %v4049_v15  ;;  %v8312_v50 = vmul.f32 %v7800_v63, %v18781_v58  ;;  %v17825_v2 = vpop.permute.xlu0 %7310  ;;  %v1995_v52 = vadd.f32 %v19039_v22, %v18709_v30 }
 0x598   :  { %v11985_v42 = vpop.eup %11984  ;;  %v17821_v35 = vadd.f32 %v9109_v20, %v8306_v23  ;;  %v7802_v6 = vmul.f32 %v11983_v51, %v17695_v21  ;;  %12004 = vpow2.f32 %v10019_v27  ;;  %v10028_v20 = vmul.f32 -1.442695, %v2017_v19 }
 0x599   :  { %v11987_v55 = vpop.eup %11986  ;;  %v8313_v16 = vmul.f32 %v7801_v26, %v18779_v3  ;;  %v4048_v46 = vadd.f32 1.0, %v11985_v42  ;;  %12006 = vpow2.f32 %v9998_v13  ;;  %v10021_v27 = vmul.f32 -1.442695, %v2010_v14 }
 0x59a   :  { %v11989_v36 = vpop.eup %11988  ;;  %v8314_v11 = vmul.f32 %v7802_v6, %v14007_v57  ;;  %v7809_v63 = vmul.f32 %v11987_v55, %v17688_v28  ;;  %12008 = vpow2.f32 %v9983_v7  ;;  %v8320_v13 = vmul.f32 %v7808_v0, %v18781_v58  ;;  %v17838_v7 = vpop.permute.xlu1 %7279 }
 0x59b   :  { %v11991_v47 = vpop.eup %11990  ;;  %v9122_v21 = vadd.f32 %v8313_v16, %v8312_v50  ;;  %v7817_v51 = vmul.f32 %v11989_v36, %v17706_v44  ;;  %12010 = vrcp.f32 %v4048_v46  ;;  %v10006_v55 = vmul.f32 -1.442695, %v1995_v52  ;;  %v19051_v52 = vld [vmem:[#allocation167_spill] sm:$0xff] }
 0x59c   :  { %v11993_v26 = vpop.eup %11992  ;;  %v8321_v15 = vmul.f32 %v7809_v63, %v18779_v3  ;;  %v7816_v60 = vmul.f32 %v11991_v47, %v17708_v12  ;;  %12012 = vpow2.f32 %v10027_v18  ;;  %v17842_v18 = vpop.permute.xlu0 %7213  ;;  %v1988_v16 = vadd.f32 %v19037_v37, %v18792_v4 }
 0x59d   :  { %v11995_v23 = vpop.eup %11994  ;;  %v17835_v42 = vadd.f32 %v9122_v21, %v8314_v11  ;;  %v8329_v28 = vmul.f32 %v7817_v51, %v18779_v3  ;;  %v4042_v19 = vadd.f32 1.0, %v11993_v26  ;;  %12014 = vpow2.f32 %v10013_v9 }
 0x59e   :  { %v11997_v44 = vpop.eup %11996  ;;  %v9135_v50 = vadd.f32 %v8321_v15, %v8320_v13  ;;  %v8328_v14 = vmul.f32 %v7816_v60, %v18781_v58  ;;  %v7810_v0 = vmul.f32 %v11995_v23, %v17723_v33  ;;  %12016 = vpow2.f32 %v9991_v8  ;;  %v19048_v33 = vld [vmem:[#allocation143_spill] sm:$0xff]  ;;  %v19052_v23 = vld [vmem:[#allocation206_spill] sm:$0xff] }
 0x59f   :  { %v11999_v6 = vpop.eup %11998  ;;  %12018 = vrcp.f32 %v4042_v19  ;;  %v4027_v12 = vadd.f32 1.0, %v11997_v44  ;;  %v19049_v8 = vld [vmem:[#allocation71_spill] sm:$0xff]  ;;  %v19050_v21 = vsub.f32 %v17771_v29, %v17567_v56  ;;  %v17868_v44 = vpop.permute.xlu1 %7182 }
 0x5a0   :  { %v12001_v46 = vpop.eup %12000  ;;  %v17846_v9 = vadd.f32 %v8329_v28, %v8328_v14  ;;  %v8322_v36 = vmul.f32 %v7810_v0, %v14007_v57  ;;  %v7795_v11 = vmul.f32 %v11999_v6, %v17725_v48  ;;  %12020 = vpow2.f32 %v10028_v20  ;;  %v19054_v14 = vld [vmem:[#allocation131_spill] sm:$0xff] }
 0x5a1   :  { %v12003_v63 = vpop.eup %12002  ;;  %v17852_v47 = vmul.f32 %v19049_v8, %v19048_v33  ;;  %v9392_v51 = vmul.f32 %v19051_v52, %v19050_v21  ;;  %12022 = vrcp.f32 %v4027_v12  ;;  %v4057_v26 = vadd.f32 1.0, %v12001_v46  ;;  %v19055_v21 = vld [vmem:[#allocation165_spill] sm:$0xff] }
 0x5a2   :  { %v12005_v13 = vpop.eup %12004  ;;  %v17858_v15 = vadd.f32 %v9135_v50, %v8322_v36  ;;  %v8307_v60 = vmul.f32 %v7795_v11, %v18784_v49  ;;  %v7825_v48 = vmul.f32 %v12003_v63, %v19052_v23  ;;  %12024 = vpow2.f32 %v10021_v27  ;;  %v17878_v36 = vpop.permute.xlu0 %7116 }
 0x5a3   :  { %v12007_v20 = vpop.eup %12006  ;;  %v19053_v28 = vsub.f32 %v19046_v61, %v17567_v56  ;;  %12026 = vrcp.f32 %v4057_v26  ;;  %v4056_v29 = vadd.f32 1.0, %v12005_v13  ;;  %v1973_v50 = vadd.f32 %v19029_v40, %v19054_v14 }
 0x5a4   :  { %v12009_v0 = vpop.eup %12008  ;;  %v17873_v6 = vadd.f32 %v17821_v35, %v8307_v60  ;;  %v4035_v12 = vadd.f32 1.0, %v12007_v20  ;;  %12028 = vpow2.f32 %v10006_v55  ;;  %v9999_v27 = vmul.f32 -1.442695, %v1988_v16 }
 0x5a5   :  { %v17866_v19 = vmul.f32 %v19051_v52, %v19053_v28  ;;  %v12011_v46 = vpop.eup %12010  ;;  %v17876_v56 = vmul.f32 %v19049_v8, %v9392_v51  ;;  %12030 = vrcp.f32 %v4056_v29  ;;  %v4020_v61 = vadd.f32 1.0, %v12009_v0  ;;  %v17892_v29 = vpop.permute.xlu1 %7314 }
 0x5a6   :  { %v2018_v11 = vadd.f32 %v19045_v32, %v18798_v62  ;;  %v12013_v63 = vpop.eup %12012  ;;  %v8337_v33 = vmul.f32 %v7825_v48, %v18779_v3  ;;  %v7824_v35 = vmul.f32 %v12011_v46, %v19055_v21  ;;  %12032 = vrcp.f32 %v4035_v12  ;;  %v17897_v21 = vpop.permute.xlu0 %7248 }
 0x5a7   :  { %v2003_v55 = vadd.f32 %v19042_v25, %v18709_v30  ;;  %v12015_v16 = vpop.eup %12014  ;;  %12034 = vrcp.f32 %v4020_v61  ;;  %v4064_v8 = vadd.f32 1.0, %v12013_v63  ;;  %v9984_v51 = vmul.f32 -1.442695, %v1973_v50 }
 0x5a8   :  { %v1996_v26 = vadd.f32 %v19039_v22, %v18792_v4  ;;  %v12017_v13 = vpop.eup %12016  ;;  %v8336_v60 = vmul.f32 %v7824_v35, %v18781_v58  ;;  %v4050_v62 = vadd.f32 1.0, %v12015_v16  ;;  %12036 = vpow2.f32 %v9999_v27  ;;  %v19056_v16 = vld [vmem:[#allocation151_spill] sm:$0xff] }
 0x5a9   :  { %v1981_v23 = vadd.f32 %v19034_v34, %v19054_v14  ;;  %v12019_v48 = vpop.eup %12018  ;;  %12038 = vrcp.f32 %v4064_v8  ;;  %v4028_v28 = vadd.f32 1.0, %v12017_v13  ;;  %v10029_v0 = vmul.f32 -1.442695, %v2018_v11 }
 0x5aa   :  { %v12021_v50 = vpop.eup %12020  ;;  %v17894_v12 = vadd.f32 %v8337_v33, %v8336_v60  ;;  %v7818_v46 = vmul.f32 %v12019_v48, %v17745_v24  ;;  %12040 = vrcp.f32 %v4050_v62  ;;  %v10014_v61 = vmul.f32 -1.442695, %v2003_v55 }
 0x5ab   :  { %v12023_v63 = vpop.eup %12022  ;;  %12042 = vrcp.f32 %v4028_v28  ;;  %v4065_v27 = vadd.f32 1.0, %v12021_v50  ;;  %v10007_v35 = vmul.f32 -1.442695, %v1996_v26  ;;  %v1974_v8 = vadd.f32 %v19029_v40, %v19056_v16 }
 0x5ac   :  { %v12025_v13 = vpop.eup %12024  ;;  %v8330_v20 = vmul.f32 %v7818_v46, %v14007_v57  ;;  %v7803_v11 = vmul.f32 %v12023_v63, %v17748_v43  ;;  %12044 = vpow2.f32 %v9984_v51  ;;  %v9992_v33 = vmul.f32 -1.442695, %v1981_v23  ;;  %v17912_v23 = vpop.permute.xlu1 %7217 }
 0x5ad   :  { %v12027_v60 = vpop.eup %12026  ;;  %12046 = vrcp.f32 %v4065_v27  ;;  %v4058_v24 = vadd.f32 1.0, %v12025_v13  ;;  %v2011_v55 = vadd.f32 %v19043_v54, %v18709_v30  ;;  %v2004_v62 = vadd.f32 %v19042_v25, %v18792_v4 }
 0x5ae   :  { %v12029_v26 = vpop.eup %12028  ;;  %v17908_v48 = vadd.f32 %v17846_v9, %v8330_v20  ;;  %v8315_v28 = vmul.f32 %v7803_v11, %v18784_v49  ;;  %v7833_v50 = vmul.f32 %v12027_v60, %v17761_v31  ;;  %12048 = vpow2.f32 %v10029_v0  ;;  %v17920_v0 = vpop.permute.xlu0 %7151 }
 0x5af   :  { %v12031_v43 = vpop.eup %12030  ;;  %12050 = vrcp.f32 %v4058_v24  ;;  %v4043_v51 = vadd.f32 1.0, %v12029_v26  ;;  %v9985_v46 = vmul.f32 -1.442695, %v1974_v8  ;;  %v1989_v63 = vadd.f32 %v19037_v37, %v19054_v14 }
 0x5b0   :  { %v12033_v27 = vpop.eup %12032  ;;  %v9124_v13 = vadd.f32 %v17835_v42, %v8315_v28  ;;  %v8345_v9 = vmul.f32 %v7833_v50, %v18779_v3  ;;  %v7832_v20 = vmul.f32 %v12031_v43, %v17768_v17  ;;  %12052 = vpow2.f32 %v10014_v61 }
 0x5b1   :  { %v12035_v11 = vpop.eup %12034  ;;  %v7811_v31 = vmul.f32 %v12033_v27, %v17778_v41  ;;  %12054 = vrcp.f32 %v4043_v51  ;;  %v10022_v60 = vmul.f32 -1.442695, %v2011_v55  ;;  %v10015_v24 = vmul.f32 -1.442695, %v2004_v62  ;;  %v17936_v27 = vpop.permute.xlu1 %7120 }
 0x5b2   :  { %v12037_v8 = vpop.eup %12036  ;;  %v8344_v26 = vmul.f32 %v7832_v20, %v18781_v58  ;;  %v7796_v52 = vmul.f32 %v12035_v11, %v17784_v59  ;;  %12056 = vpow2.f32 %v10007_v35  ;;  %v1982_v42 = vadd.f32 %v19034_v34, %v19056_v16 }
 0x5b3   :  { %v17926_v28 = vpop.eup %12038  ;;  %v8323_v17 = vmul.f32 %v7811_v31, %v18784_v49  ;;  %v4036_v61 = vadd.f32 1.0, %v12037_v8  ;;  %12058 = vpow2.f32 %v9992_v33  ;;  %v10000_v41 = vmul.f32 -1.442695, %v1989_v63 }
 0x5b4   :  { %v12041_v50 = vpop.eup %12040  ;;  %v9174_v43 = vadd.f32 %v8345_v9, %v8344_v26  ;;  %v8308_v55 = vmul.f32 %v7796_v52, %v14237_v45  ;;  %12060 = vpow2.f32 %v9985_v46  ;;  %v2019_v62 = vadd.f32 %v19045_v32, %v18709_v30 }
 0x5b5   :  { %v12043_v59 = vpop.eup %12042  ;;  %v17933_v35 = vadd.f32 %v17858_v15, %v8323_v17  ;;  %v7826_v51 = vmul.f32 %v12041_v50, %v17804_v39  ;;  %12062 = vrcp.f32 %v4036_v61  ;;  %v2012_v33 = vadd.f32 %v19043_v54, %v18792_v4  ;;  %v17947_v39 = vpop.permute.xlu0 %7283 }
 0x5b6   :  { %v12045_v63 = vpop.eup %12044  ;;  %v17941_v9 = vadd.f32 %v17873_v6, %v8308_v55  ;;  %v7804_v52 = vmul.f32 %v12043_v59, %v17816_v53  ;;  %12064 = vpow2.f32 %v10022_v60  ;;  %v9993_v30 = vmul.f32 -1.442695, %v1982_v42  ;;  %v17954_v6 = vld [vmem:[%s18184_s5] ss:$0 sm:$0xff] }
 0x5b7   :  { %v17944_v46 = vpop.eup %12046  ;;  %v8338_v15 = vmul.f32 %v7826_v51, %v14007_v57  ;;  %v4021_v20 = vadd.f32 1.0, %v12045_v63  ;;  %12066 = vpow2.f32 %v10015_v24  ;;  %v1997_v11 = vadd.f32 %v19039_v22, %v19054_v14  ;;  %19057 = vst [vmem:[#allocation66_spill] sm:$0xff] %v17954_v6  ;;  %v17964_v24 = vld [vmem:[%s18185_s6] ss:$0 sm:$0xff]  ;;  %v17981_v63 = vpop.permute.xlu1 %7252 }
 0x5b8   :  { %v12049_v31 = vpop.eup %12048  ;;  %v17958_v53 = vmul.f32 %v17954_v6, %v17866_v19  ;;  %v8316_v60 = vmul.f32 %v7804_v52, %v14237_v45  ;;  %12068 = vpow2.f32 %v10000_v41  ;;  %v10030_v8 = vmul.f32 -1.442695, %v2019_v62 }
 0x5b9   :  { %v12051_v26 = vpop.eup %12050  ;;  %v17968_v42 = vadd.f32 %v17964_v24, %v17876_v56  ;;  %v17971_v17 = vadd.f32 %v17894_v12, %v8338_v15  ;;  %12070 = vrcp.f32 %v4021_v20  ;;  %v4066_v19 = vadd.f32 1.0, %v12049_v31  ;;  %v17987_v20 = vpop.permute.xlu0 %7186 }
 0x5ba   :  { %v12053_v61 = vpop.eup %12052  ;;  %v17973_v50 = vadd.f32 %v9124_v13, %v8316_v60  ;;  %v7834_v41 = vmul.f32 %v12051_v26, %v17838_v7  ;;  %12072 = vpow2.f32 %v9993_v30  ;;  %v10023_v55 = vmul.f32 -1.442695, %v2012_v33 }
 0x5bb   :  { %v12055_v62 = vpop.eup %12054  ;;  %v19058_v59 = vrot.slane %v17789_v5, 4  ;;  %12074 = vrcp.f32 %v4066_v19  ;;  %v4051_v56 = vadd.f32 1.0, %v12053_v61  ;;  %v10008_v12 = vmul.f32 -1.442695, %v1997_v11 }
 0x5bc   :  { %v12057_v52 = vpop.eup %12056  ;;  %v8346_v15 = vmul.f32 %v7834_v41, %v14007_v57  ;;  %v7819_v13 = vmul.f32 %v12055_v62, %v17842_v18  ;;  %12076 = vpow2.f32 %v10030_v8  ;;  %v1990_v7 = vadd.f32 %v19037_v37, %v19056_v16 }
 0x5bd   :  { %v17979_v51 = vadd.f32 %v19058_v59, %v17789_v5  ;;  %v12059_v33 = vpop.eup %12058  ;;  %12078 = vrcp.f32 %v4051_v56  ;;  %v4044_v30 = vadd.f32 1.0, %v12057_v52  ;;  %v19059_v5 = vld [vmem:[#allocation155_spill] sm:$0xff]  ;;  %v2020_v11 = vadd.f32 %v19045_v32, %v18792_v4 }
 0x5be   :  { %v1975_v31 = vadd.f32 %v19029_v40, %v19059_v5  ;;  %v12061_v60 = vpop.eup %12060  ;;  %v17993_v26 = vadd.f32 %v9174_v43, %v8346_v15  ;;  %v8331_v18 = vmul.f32 %v7819_v13, %v18784_v49  ;;  %v4029_v8 = vadd.f32 1.0, %v12059_v33 }
 0x5bf   :  { %12080 = vpow2.f32 %v10023_v55  ;;  %v12063_v19 = vpop.eup %12062  ;;  %v4022_v41 = vadd.f32 1.0, %v12061_v60  ;;  %v2005_v62 = vadd.f32 %v19042_v25, %v19054_v14  ;;  %v10001_v43 = vmul.f32 -1.442695, %v1990_v7  ;;  %v18003_v55 = vpop.permute.xlu1 %7155 }
 0x5c0   :  { %12082 = vrcp.f32 %v4044_v30  ;;  %v12065_v59 = vpop.eup %12064  ;;  %v18000_v40 = vadd.f32 %v17908_v48, %v8331_v18  ;;  %v7812_v4 = vmul.f32 %v12063_v19, %v17868_v44  ;;  %v9986_v15 = vmul.f32 -1.442695, %v1975_v31 }
 0x5c1   :  { %12084 = vrcp.f32 %v4029_v8  ;;  %v12067_v56 = vpop.eup %12066  ;;  %v4059_v52 = vadd.f32 1.0, %v12065_v59  ;;  %v10031_v13 = vmul.f32 -1.442695, %v2020_v11  ;;  %v1998_v48 = vadd.f32 %v19039_v22, %v19056_v16  ;;  %v18008_v8 = vpop.permute.xlu0 %7318 }
 0x5c2   :  { %12086 = vrcp.f32 %v4022_v41  ;;  %v12069_v33 = vpop.eup %12068  ;;  %v8324_v30 = vmul.f32 %v7812_v4, %v14237_v45  ;;  %v4052_v60 = vadd.f32 1.0, %v12067_v56  ;;  %19060 = vst [vmem:[#allocation208_spill] sm:$0xff] %v18008_v8  ;;  %v10016_v7 = vmul.f32 -1.442695, %v2005_v62 }
 0x5c3   :  { %12088 = vpow2.f32 %v10008_v12  ;;  %v12071_v18 = vpop.eup %12070  ;;  %v4037_v44 = vadd.f32 1.0, %v12069_v33  ;;  %v1983_v19 = vadd.f32 %v19034_v34, %v19059_v5  ;;  %v1991_v12 = vadd.f32 %v19037_v37, %v19059_v5 }
 0x5c4   :  { %12090 = vrcp.f32 %v4059_v52  ;;  %v12073_v41 = vpop.eup %12072  ;;  %v18013_v31 = vadd.f32 %v17933_v35, %v8324_v30  ;;  %v7797_v11 = vmul.f32 %v12071_v18, %v17878_v36  ;;  %v2013_v62 = vadd.f32 %v19043_v54, %v19054_v14  ;;  %v18027_v30 = vpop.permute.xlu1 %7287 }
 0x5c5   :  { %12092 = vrcp.f32 %v4052_v60  ;;  %v18018_v59 = vpop.eup %12074  ;;  %v4030_v4 = vadd.f32 1.0, %v12073_v41  ;;  %v2021_v34 = vadd.f32 %v19045_v32, %v19054_v14  ;;  %v10009_v52 = vmul.f32 -1.442695, %v1998_v48  ;;  %v18033_v61 = vpop.permute.xlu0 %7221 }
 0x5c6   :  { %12094 = vrcp.f32 %v4037_v44  ;;  %v12077_v56 = vpop.eup %12076  ;;  %v8309_v35 = vmul.f32 %v7797_v11, %v14369_v1  ;;  %v2006_v36 = vadd.f32 %v19042_v25, %v19056_v16  ;;  %v9994_v60 = vmul.f32 -1.442695, %v1983_v19 }
 0x5c7   :  { %12096 = vpow2.f32 %v10001_v43  ;;  %v12079_v33 = vpop.eup %12078  ;;  %v4067_v37 = vadd.f32 1.0, %v12077_v56  ;;  %v2014_v18 = vadd.f32 %v19043_v54, %v19056_v16  ;;  %v10002_v43 = vmul.f32 -1.442695, %v1991_v12 }
 0x5c8   :  { %12098 = vrcp.f32 %v4030_v4  ;;  %v9113_v14 = vadd.f32 %v17941_v9, %v8309_v35  ;;  %v7827_v41 = vmul.f32 %v12079_v33, %v17897_v21  ;;  %v10024_v4 = vmul.f32 -1.442695, %v2013_v62 }
 0x5c9   :  { %v12081_v44 = vpop.eup %12080  ;;  %12100 = vpow2.f32 %v9986_v15  ;;  %v10032_v56 = vmul.f32 -1.442695, %v2021_v34  ;;  %v10017_v58 = vmul.f32 -1.442695, %v2006_v36  ;;  %v10025_v21 = vmul.f32 -1.442695, %v2014_v18  ;;  %v18044_v36 = vpop.permute.xlu1 %7190 }
 0x5ca   :  { %v12083_v48 = vpop.eup %12082  ;;  %12102 = vrcp.f32 %v4067_v37  ;;  %v4060_v11 = vadd.f32 1.0, %v12081_v44  ;;  %v8339_v19 = vmul.f32 %v7827_v41, %v18784_v49  ;;  %v1999_v15 = vadd.f32 %v19039_v22, %v19059_v5  ;;  %v18055_v37 = vpop.permute.xlu0 %7124 }
 0x5cb   :  { %v12085_v6 = vpop.eup %12084  ;;  %v7820_v57 = vmul.f32 %v12083_v48, %v17912_v23  ;;  %12104 = vpow2.f32 %v10031_v13 }
 0x5cc   :  { %v12087_v8 = vpop.eup %12086  ;;  %v7805_v9 = vmul.f32 %v12085_v6, %v17920_v0  ;;  %12106 = vrcp.f32 %v4060_v11  ;;  %v9163_v35 = vadd.f32 %v17971_v17, %v8339_v19  ;;  %v2022_v0 = vadd.f32 %v19045_v32, %v19056_v16 }
 0x5cd   :  { %v12089_v12 = vpop.eup %12088  ;;  %v8332_v62 = vmul.f32 %v7820_v57, %v14237_v45  ;;  %v7798_v34 = vmul.f32 %v12087_v8, %v17936_v27  ;;  %12108 = vpow2.f32 %v10016_v7  ;;  %v2007_v16 = vadd.f32 %v19042_v25, %v19059_v5 }
 0x5ce   :  { %v12091_v33 = vpop.eup %12090  ;;  %v8317_v23 = vmul.f32 %v7805_v9, %v14369_v1  ;;  %v4045_v13 = vadd.f32 1.0, %v12089_v12  ;;  %12110 = vpow2.f32 %v10009_v52  ;;  %v10033_v9 = vmul.f32 -1.442695, %v2022_v0  ;;  %v19063_v0 = vld [vmem:[#allocation56_spill] sm:$0xff] }
 0x5cf   :  { %v12093_v6 = vpop.eup %12092  ;;  %v18049_v22 = vadd.f32 %v18000_v40, %v8332_v62  ;;  %v8310_v17 = vmul.f32 %v7798_v34, %v14471_v38  ;;  %v7835_v57 = vmul.f32 %v12091_v33, %v17947_v39  ;;  %12112 = vpow2.f32 %v9994_v60  ;;  %v19061_v62 = vld [vmem:[#allocation205_spill] sm:$0xff]  ;;  %v19062_v33 = vld [vmem:[#allocation96_spill] sm:$0xff] }
 0x5d0   :  { %v12095_v27 = vpop.eup %12094  ;;  %v9126_v8 = vadd.f32 %v17973_v50, %v8317_v23  ;;  %v7828_v7 = vmul.f32 %v12093_v6, %v17981_v63  ;;  %12114 = vrcp.f32 %v4045_v13  ;;  %v10010_v63 = vmul.f32 -1.442695, %v1999_v15 }
 0x5d1   :  { %v12097_v52 = vpop.eup %12096  ;;  %v18059_v18 = vadd.f32 %v9113_v14, %v8310_v17  ;;  %v8347_v40 = vmul.f32 %v7835_v57, %v18784_v49  ;;  %v7813_v44 = vmul.f32 %v12095_v27, %v17987_v20  ;;  %12116 = vpow2.f32 %v10002_v43  ;;  %v18071_v43 = vpop.permute.xlu1 %7322 }
 0x5d2   :  { %v12099_v39 = vpop.eup %12098  ;;  %v8340_v60 = vmul.f32 %v7828_v7, %v14237_v45  ;;  %v4038_v50 = vadd.f32 1.0, %v12097_v52  ;;  %12118 = vpow2.f32 %v10024_v4  ;;  %v18077_v15 = vmul.f32 -1.442695, %v2007_v16 }
 0x5d3   :  { %v12101_v41 = vpop.eup %12100  ;;  %v9176_v48 = vadd.f32 %v17993_v26, %v8347_v40  ;;  %v8325_v11 = vmul.f32 %v7813_v44, %v14369_v1  ;;  %v7806_v25 = vmul.f32 %v12099_v39, %v18003_v55  ;;  %12120 = vpow2.f32 %v10032_v56  ;;  %v18079_v56 = vpop.permute.xlu0 %7256 }
 0x5d4   :  { %v18067_v14 = vpop.eup %12102  ;;  %v18069_v19 = vadd.f32 %v9163_v35, %v8340_v60  ;;  %12122 = vrcp.f32 %v4038_v50  ;;  %v4023_v20 = vadd.f32 1.0, %v12101_v41  ;;  %v2023_v35 = vadd.f32 %v19045_v32, %v19059_v5 }
 0x5d5   :  { %v12105_v12 = vpop.eup %12104  ;;  %v18074_v4 = vadd.f32 %v18013_v31, %v8325_v11  ;;  %v8318_v26 = vmul.f32 %v7806_v25, %v14471_v38  ;;  %12124 = vpow2.f32 %v10017_v58  ;;  %v9417_v34 = vadd.f32 %v17964_v24, %v19061_v62  ;;  %v18099_v40 = vpop.permute.xlu1 %7225 }
 0x5d6   :  { %v12107_v55 = vpop.eup %12106  ;;  %12126 = vrcp.f32 %v4023_v20  ;;  %v9418_v23 = vadd.f32 %v17964_v24, %v19062_v33  ;;  %v9419_v6 = vadd.f32 %v17964_v24, %v19063_v0  ;;  %v2015_v32 = vadd.f32 %v19043_v54, %v19059_v5 }
 0x5d7   :  { %v12109_v31 = vpop.eup %12108  ;;  %v18087_v13 = vadd.f32 %v9126_v8, %v8318_v26  ;;  %v7836_v58 = vmul.f32 %v12107_v55, %v18027_v30  ;;  %12128 = vpow2.f32 %v10025_v21  ;;  %v9420_v27 = vadd.f32 %v17964_v24, %v17852_v47  ;;  %v7160_v41 = vpop.permute.xlu0 %7159 }
 0x5d8   :  { %v12111_v17 = vpop.eup %12110  ;;  %v4053_v57 = vadd.f32 1.0, %v12109_v31  ;;  %v9421_v7 = vadd.f32 %v17964_v24, %v17958_v53  ;;  %v4068_v52 = vadd.f32 1.0, %v12105_v12  ;;  %12130 = vpow2.f32 %v10010_v63 }
 0x5d9   :  { %v12113_v16 = vpop.eup %12112  ;;  %v8348_v8 = vmul.f32 %v7836_v58, %v14237_v45  ;;  %v4046_v30 = vadd.f32 1.0, %v12111_v17  ;;  %v9425_v39 = vmax.f32 %v9417_v34, 0.0  ;;  %v9426_v60 = vmax.f32 %v9418_v23, 0.0 }
 0x5da   :  { %v12115_v21 = vpop.eup %12114  ;;  %12132 = vrcp.f32 %v4053_v57  ;;  %v4031_v44 = vadd.f32 1.0, %v12113_v16  ;;  %v9427_v53 = vmax.f32 %v9419_v6, 0.0  ;;  %v9428_v25 = vmax.f32 %v9420_v27, 0.0 }
 0x5db   :  { %v12117_v54 = vpop.eup %12116  ;;  %v18101_v5 = vadd.f32 %v9176_v48, %v8348_v8  ;;  %v7821_v47 = vmul.f32 %v12115_v21, %v18033_v61  ;;  %12134 = vrcp.f32 %v4046_v30  ;;  %v9429_v63 = vmax.f32 %v9421_v7, 0.0  ;;  %9433 = vst [vmem:[#allocation12 + $0x8] sm:$0xff] %v9425_v39  ;;  %9434 = vst [vmem:[#allocation12 + $0x10] sm:$0xff] %v9426_v60 }
 0x5dc   :  { %v12119_v50 = vpop.eup %12118  ;;  %12136 = vrcp.f32 %v4031_v44  ;;  %v4039_v11 = vadd.f32 1.0, %v12117_v54  ;;  %v9430_v48 = vmax.f32 %v17968_v42, 0.0  ;;  %9435 = vst [vmem:[#allocation12 + $0x18] sm:$0xff] %v9427_v53  ;;  %9436 = vst [vmem:[#allocation12 + $0x20] sm:$0xff] %v9428_v25  ;;  %v10034_v33 = vmul.f32 -1.442695, %v2023_v35  ;;  %v7195_v42 = vpop.permute.xlu1 %7194 }
 0x5dd   :  { %v12121_v20 = vpop.eup %12120  ;;  %v8333_v12 = vmul.f32 %v7821_v47, %v14369_v1  ;;  %v4061_v26 = vadd.f32 1.0, %v12119_v50  ;;  %12138 = vpow2.f32 %v10033_v9  ;;  %9437 = vst [vmem:[#allocation12 + $0x28] sm:$0xff] %v9429_v63  ;;  %v19064_v31 = vrot.slane %v17979_v51, 2  ;;  %v7292_v35 = vpop.permute.xlu0 %7291  ;;  %v19066_v50 = vld [vmem:[#allocation208_spill] sm:$0xff] }
 0x5de   :  { %v12123_v55 = vpop.eup %12122  ;;  %12140 = vrcp.f32 %v4039_v11  ;;  %9438 = vst [vmem:[#allocation12 + $0x30] sm:$0xff] %v9430_v48  ;;  %v4069_v16 = vadd.f32 1.0, %v12121_v20  ;;  %v7843_v11 = vmul.f32 %v18067_v14, %v19066_v50  ;;  %v19067_v48 = vld [vmem:[#allocation72_spill] sm:$0xff] }
 0x5df   :  { %v12125_v61 = vpop.eup %12124  ;;  %v9152_v62 = vadd.f32 %v18049_v22, %v8333_v12  ;;  %v7814_v34 = vmul.f32 %v12123_v55, %v18044_v36  ;;  %12142 = vrcp.f32 %v4061_v26  ;;  %v9106_v9 = vadd.f32 %v19064_v31, %v17979_v51 }
 0x5e0   :  { %v12127_v23 = vpop.eup %12126  ;;  %12144 = vrcp.f32 %v4068_v52  ;;  %v4054_v58 = vadd.f32 1.0, %v12125_v61  ;;  %v10026_v22 = vmul.f32 -1.442695, %v2015_v32  ;;  %v7841_v36 = vmul.f32 %v17944_v46, %v17825_v2  ;;  %v19065_v46 = vld [vmem:[#allocation61_spill] sm:$0xff]  ;;  %v7327_v39 = vpop.permute.xlu1 %7326 }
 0x5e1   :  { %v12129_v0 = vpop.eup %12128  ;;  %v8326_v6 = vmul.f32 %v7814_v34, %v14471_v38  ;;  %v7799_v17 = vmul.f32 %v12127_v23, %v18055_v37  ;;  %12146 = vpow2.f32 %v18077_v15  ;;  %v9107_v30 = vrot.slane %v9106_v9, 1 }
 0x5e2   :  { %12148 = vrcp.f32 %v4054_v58  ;;  %v4062_v57 = vadd.f32 1.0, %v12129_v0  ;;  %v12131_v27 = vpop.eup %12130  ;;  %v7840_v21 = vmul.f32 %v17926_v28, %v19065_v46  ;;  %v19068_v0 = vld [vmem:[#allocation95_spill] sm:$0xff] }
 0x5e3   :  { %v9140_v51 = vadd.f32 %v18074_v4, %v8326_v6  ;;  %v8311_v7 = vmul.f32 %v7799_v17, %v14489_v10  ;;  %12150 = vpow2.f32 %v10034_v33  ;;  %v4047_v52 = vadd.f32 1.0, %v12131_v27 }
 0x5e4   :  { %v12133_v8 = vpop.eup %12132  ;;  %12152 = vrcp.f32 %v4062_v57  ;;  %v8353_v4 = vmul.f32 %v7841_v36, %v18779_v3  ;;  %v7261_v3 = vpop.permute.xlu0 %7260  ;;  %v8352_v55 = vmul.f32 %v7840_v21, %v19067_v48 }
 0x5e5   :  { %v12135_v37 = vpop.eup %12134  ;;  %v9115_v15 = vadd.f32 %v18059_v18, %v8311_v7  ;;  %v7829_v32 = vmul.f32 %v12133_v8, %v18079_v56  ;;  %12154 = vpow2.f32 %v10026_v22  ;;  %v7842_v56 = vmul.f32 %v18018_v59, %v17892_v29 }
 0x5e6   :  { %v12137_v2 = vpop.eup %12136  ;;  %v7822_v44 = vmul.f32 %v12135_v37, %v18099_v40  ;;  %12156 = vrcp.f32 %v4047_v52  ;;  %v9108_v59 = vadd.f32 %v9107_v30, %v9106_v9  ;;  %v9187_v58 = vadd.f32 %v8353_v4, %v8352_v55 }
 0x5e7   :  { %v12139_v60 = vpop.eup %12138  ;;  %v9116_v54 = vrot.slane %v9115_v15, 4  ;;  %v8341_v47 = vmul.f32 %v7829_v32, %v14369_v1  ;;  %v7807_v53 = vmul.f32 %v12137_v2, %v7160_v41  ;;  %12158 = vrcp.f32 %v4069_v16 }
 0x5e8   :  { %v12141_v18 = vpop.eup %12140  ;;  %v8334_v28 = vmul.f32 %v7822_v44, %v14471_v38  ;;  %v4070_v25 = vadd.f32 1.0, %v12139_v60  ;;  %v7230_v16 = vpop.permute.xlu0 %7229 }
 0x5e9   :  { %v12143_v40 = vpop.eup %12142  ;;  %v9117_v63 = vadd.f32 %v9116_v54, %v9115_v15  ;;  %v9165_v20 = vadd.f32 %v18069_v19, %v8341_v47  ;;  %v8319_v12 = vmul.f32 %v7807_v53, %v14489_v10  ;;  %v7815_v26 = vmul.f32 %v12141_v18, %v7195_v42  ;;  %v7296_v42 = vpop.permute.xlu1 %7295 }
 0x5ea   :  { %v12145_v41 = vpop.eup %12144  ;;  %v9153_v61 = vadd.f32 %v9152_v62, %v8334_v28  ;;  %v7837_v34 = vmul.f32 %v12143_v40, %v7292_v35  ;;  %12160 = vrcp.f32 %v4070_v25  ;;  %v8354_v19 = vmul.f32 %v7842_v56, %v19068_v0 }
 0x5eb   :  { %v12147_v29 = vpop.eup %12146  ;;  %v9118_v14 = vrot.slane %v9117_v63, 2  ;;  %v9128_v33 = vadd.f32 %v18087_v13, %v8319_v12  ;;  %v8327_v23 = vmul.f32 %v7815_v26, %v14489_v10  ;;  %v8355_v62 = vmul.f32 %v7843_v11, %v18784_v49 }
 0x5ec   :  { %v12149_v31 = vpop.eup %12148  ;;  %v8349_v6 = vmul.f32 %v7837_v34, %v14369_v1  ;;  %v4055_v17 = vadd.f32 1.0, %v12147_v29  ;;  %v7844_v27 = vmul.f32 %v12145_v41, %v18071_v43  ;;  %v9188_v28 = vadd.f32 %v9187_v58, %v8354_v19  ;;  %v7265_v40 = vpop.permute.xlu0 %7264 }
 0x5ed   :  { %v12151_v22 = vpop.eup %12150  ;;  %v9119_v36 = vadd.f32 %v9118_v14, %v9117_v63  ;;  %v9129_v35 = vrot.slane %v9128_v33, 4  ;;  %v9141_v57 = vadd.f32 %v9140_v51, %v8327_v23  ;;  %v7830_v7 = vmul.f32 %v12149_v31, %v7261_v3  ;;  %v7331_v47 = vpop.permute.xlu1 %7330 }
 0x5ee   :  { %v12153_v9 = vpop.eup %12152  ;;  %v9178_v13 = vadd.f32 %v18101_v5, %v8349_v6  ;;  %v4071_v8 = vadd.f32 1.0, %v12151_v22  ;;  %12162 = vrcp.f32 %v4055_v17  ;;  %v8356_v3 = vmul.f32 %v7844_v27, %v14237_v45 }
 0x5ef   :  { %v12155_v52 = vpop.eup %12154  ;;  %v9120_v37 = vrot.slane %v9119_v36, 1  ;;  %v9130_v30 = vadd.f32 %v9129_v35, %v9128_v33  ;;  %v9142_v15 = vrot.slane %v9141_v57, 4  ;;  %v8342_v2 = vmul.f32 %v7830_v7, %v14471_v38 }
 0x5f0   :  { %v12157_v32 = vpop.eup %12156  ;;  %v7838_v49 = vmul.f32 %v12153_v9, %v7296_v42  ;;  %12164 = vrcp.f32 %v4071_v8  ;;  %v4063_v46 = vadd.f32 1.0, %v12155_v52  ;;  %v9189_v26 = vadd.f32 %v9188_v28, %v8355_v62  ;;  %v7300_v19 = vpop.permute.xlu0 %7299 }
 0x5f1   :  { %v12159_v51 = vpop.eup %12158  ;;  %v9121_v21 = vadd.f32 %v9120_v37, %v9119_v36  ;;  %v9131_v4 = vrot.slane %v9130_v30, 2  ;;  %v9143_v43 = vadd.f32 %v9142_v15, %v9141_v57  ;;  %v7823_v44 = vmul.f32 %v12157_v32, %v7230_v16 }
 0x5f2   :  { %v7845_v5 = vmul.f32 %v12159_v51, %v7327_v39  ;;  %v9166_v60 = vadd.f32 %v9165_v20, %v8342_v2  ;;  %v8350_v54 = vmul.f32 %v7838_v49, %v14471_v38  ;;  %12166 = vrcp.f32 %v4063_v46 }
 0x5f3   :  { %v9320_v53 = vsel %vm9264_vm0, %v9121_v21, %v9108_v59  ;;  %v9132_v18 = vadd.f32 %v9131_v4, %v9130_v30  ;;  %v9144_v56 = vrot.slane %v9143_v43, 2  ;;  %v8335_v50 = vmul.f32 %v7823_v44, %v14489_v10  ;;  %v7335_v59 = vpop.permute.xlu1 %7334 }
 0x5f4   :  { %v12161_v11 = vpop.eup %12160  ;;  %v9179_v25 = vadd.f32 %v9178_v13, %v8350_v54  ;;  %v8357_v55 = vmul.f32 %v7845_v5, %v14369_v1  ;;  %v9190_v29 = vadd.f32 %v9189_v26, %v8356_v3 }
 0x5f5   :  { %v9133_v63 = vrot.slane %v9132_v18, 1  ;;  %v9145_v12 = vadd.f32 %v9144_v56, %v9143_v43  ;;  %v9154_v39 = vadd.f32 %v9153_v61, %v8335_v50  ;;  %v7846_v20 = vmul.f32 %v12161_v11, %v7331_v47  ;;  %v19070_v56 = vld [vmem:[#allocation182_spill] sm:$0xff] }
 0x5f6   :  { %v9191_v6 = vadd.f32 %v9190_v29, %v8357_v55 }
 0x5f7   :  { %v9134_v41 = vadd.f32 %v9133_v63, %v9132_v18  ;;  %v9146_v48 = vrot.slane %v9145_v12, 1  ;;  %v9155_v34 = vrot.slane %v9154_v39, 4  ;;  %v8358_v45 = vmul.f32 %v7846_v20, %v14471_v38  ;;  %v19069_v18 = vld [vmem:[#allocation86_spill] sm:$0xff]  ;;  %v19071_v63 = vld [vmem:[#allocation167_spill] sm:$0xff] }
 0x5f8   :  { %v12163_v14 = vpop.eup %12162  ;;  %v437_v50 = vadd.f32 %v19070_v56, %v19069_v18 }
 0x5f9   :  { %v9321_v33 = vsel %vm9266_vm1, %v9134_v41, %v9320_v53  ;;  %v9147_v23 = vadd.f32 %v9146_v48, %v9145_v12  ;;  %v9156_v31 = vadd.f32 %v9155_v34, %v9154_v39  ;;  %v7831_v0 = vmul.f32 %v12163_v14, %v7265_v40  ;;  %v19072_v39 = vld [vmem:[#allocation66_spill] sm:$0xff] }
 0x5fa   :  { %v12165_v58 = vpop.eup %12164  ;;  %v9192_v36 = vadd.f32 %v9191_v6, %v8358_v45 }
 0x5fb   :  { %v9322_v61 = vsel %vm9268_vm2, %v9147_v23, %v9321_v33  ;;  %v9157_v42 = vrot.slane %v9156_v31, 2  ;;  %v7847_v17 = vmul.f32 %v12165_v58, %v7335_v59  ;;  %v8343_v1 = vmul.f32 %v7831_v0, %v14489_v10 }
 0x5fc   :  { %v12167_v22 = vpop.eup %12166 }
 0x5fd   :  { %v9158_v62 = vadd.f32 %v9157_v42, %v9156_v31  ;;  %v8359_v35 = vmul.f32 %v7847_v17, %v14489_v10  ;;  %v7839_v57 = vmul.f32 %v12167_v22, %v7300_v19  ;;  %v9167_v9 = vadd.f32 %v9166_v60, %v8343_v1 }
 0x5ff   :  { %v9159_v27 = vrot.slane %v9158_v62, 1  ;;  %v9193_v13 = vadd.f32 %v9192_v36, %v8359_v35  ;;  %v8351_v38 = vmul.f32 %v7839_v57, %v14489_v10  ;;  %v9168_v7 = vrot.slane %v9167_v9, 4 }
 0x601   :  { %v9160_v16 = vadd.f32 %v9159_v27, %v9158_v62  ;;  %v9194_v8 = vrot.slane %v9193_v13, 4  ;;  %v9180_v52 = vadd.f32 %v9179_v25, %v8351_v38  ;;  %v9169_v37 = vadd.f32 %v9168_v7, %v9167_v9  ;;  %v12175_v25 = vld [vmem:[%s18186_s7] ss:$0 sm:$0xff] }
 0x603   :  { %v9323_v30 = vsel %vm9270_vm3, %v9160_v16, %v9322_v61  ;;  %v9195_v15 = vadd.f32 %v9194_v8, %v9193_v13  ;;  %v9181_v32 = vrot.slane %v9180_v52, 4  ;;  %v9170_v2 = vrot.slane %v9169_v37, 2 }
 0x605   :  { %v9196_v49 = vrot.slane %v9195_v15, 2  ;;  %v9182_v46 = vadd.f32 %v9181_v32, %v9180_v52  ;;  %v9171_v51 = vadd.f32 %v9170_v2, %v9169_v37 }
 0x607   :  { %v9197_v21 = vadd.f32 %v9196_v49, %v9195_v15  ;;  %v9183_v4 = vrot.slane %v9182_v46, 2  ;;  %v9172_v43 = vrot.slane %v9171_v51, 1 }
 0x609   :  { %v9198_v44 = vrot.slane %v9197_v21, 1  ;;  %v9184_v5 = vadd.f32 %v9183_v4, %v9182_v46  ;;  %v9173_v60 = vadd.f32 %v9172_v43, %v9171_v51 }
 0x60b   :  { %v9185_v10 = vrot.slane %v9184_v5, 1  ;;  %v9324_v54 = vsel %vm9272_vm4, %v9173_v60, %v9323_v30  ;;  %v9199_v47 = vadd.f32 %v9198_v44, %v9197_v21 }
 0x60d   :  { %v9186_v53 = vadd.f32 %v9185_v10, %v9184_v5 }
 0x60f   :  { %v9325_v11 = vsel %vm9274_vm5, %v9186_v53, %v9324_v54 }
 0x610   :  { %v9326_v28 = vsel %vm9276_vm6, %v9199_v47, %v9325_v11 }
 0x611   :  { %v9342_v3 = vadd.f32 %v9326_v28, %v437_v50 }
 0x613   :  { %v9379_v40 = vsub.f32 %v9342_v3, %v12175_v25 }
 0x615   :  { %v9393_v12 = vmul.f32 %v19071_v63, %v9379_v40 }
 0x617   :  { %v9408_v20 = vmul.f32 %v19072_v39, %v9393_v12 }
 0x619   :  { %v9423_v26 = vadd.f32 %v17964_v24, %v9408_v20 }
 0x61b   :  { %v9431_v41 = vmax.f32 %v9423_v26, 0.0 }
 0x61d   :  { %9439 = vst [vmem:[#allocation12 + $0x38] sm:$0xff] %v9431_v41 }
 0x61e   :  { %12275 = shalt.err (!%p12272_p8)
}
 0x61f   :  { %s12276_s15 = scalar_lea.hbm %s18188_s9, 1024 }
 0x620   :  { %p12277_p9 = scmp.ne.s32.totalorder %s18188_s9, %s12276_s15  ;;  %p12280_p10 = scmp.lt.u32.totalorder %s12276_s15, %s18188_s9 }
 0x622   :  { %p12282_p11 = pnand %p12280_p10, %p12277_p9 }
 0x624   :  { %12285 = shalt.err (!%p12282_p11)
}
 0x625   :  { %9451 = dma.vmem_to_hbm [thread:$0]  %s9446_s16, 1024, %s18188_s9, [#allocation6], %s12296_s21, %s12296_s21, %s12297_s22  }
 0x626   :  { %12292 = dma.done.wait [#allocation6], 1024  }
 0x627   :  { %12293 = vsyncadd [#allocation6], 4294966272 }
 0x628   :  { %9455 = vsyncpa [#allocation5], 1 }
 0x629   :  { %9456 = vsyncpa [#allocation8], 1 }
 0x62a   :  { %9457 = vsyncpa [#allocation11], 1 }
 0x62b   :  { %9458 = vsyncpa [#allocation6], 1 }

</bundles_post_ra>
